<compile_context>
chip_gen: v5e
topology: v5e:2x2
jax: 0.10.0
libtpu: 0.0.40
codegen_flags: <defaults>
</compile_context>

<pallas_src>
import functools

import jax
import jax.numpy as jnp
from jax import lax
from jax.experimental import pallas as pl
from jax.experimental.pallas import tpu as pltpu

NEG_SLOPE = 0.2


def _leaky_relu(x):
    return jnp.where(x >= 0, x, NEG_SLOPE * x)


def _round_up(x, m):
    return (x + m - 1) // m * m


def residual_block_kernel(x_ref, w1_ref, b1_ref, mask_ref, w2_ref, ws_ref, b2_ref,
                          out_ref, hpad_ref, *, offsets, center, L):
    # x_ref   : (1, Cin_p, Pp_w) bf16   zero-padded input, channel-major, flat spatial on lanes
    # w1_ref  : (27, Cout_p, Cin_p) bf16  conv1 per-tap weights
    # b1_ref  : (Cout_p, 1) f32
    # mask_ref: (1, L) f32   1.0 on valid flat output lanes (kills wrap + lane-pad lanes)
    # w2_ref  : (27, Cout_p, Cout_p) bf16 conv2 per-tap weights
    # ws_ref  : (Cout_p, Cin_p) bf16     folded 1x1x1 skip weight
    # b2_ref  : (Cout_p, 1) f32          b2 + b_skip
    # out_ref : (1, Cout_p, L) f32       L is 128-lane aligned -> unmasked stores
    # hpad_ref: VMEM (Cout_p, Pp_w) bf16 conv1 output re-embedded at padded flat coordinates
    Cout_p = out_ref.shape[1]
    Pp_w = hpad_ref.shape[1]

    # ---- conv1: 27 lane-shifted tap matmuls, f32 accumulation (no im2col scratch) ----
    acc1 = jnp.zeros((Cout_p, L), jnp.float32)
    for t, off in enumerate(offsets):
        acc1 = acc1 + jnp.dot(w1_ref[t], x_ref[0, :, off:off + L],
                              preferred_element_type=jnp.float32)
    h1 = _leaky_relu(acc1 + b1_ref[...]) * mask_ref[...]

    # ---- re-embed conv1 output at padded flat coordinates; halo strips re-zeroed each
    #      step (cheap; grid-order independent; safe under "parallel" megacore sharding) ----
    hpad_ref[:, 0:center] = jnp.zeros((Cout_p, center), jnp.bfloat16)
    hpad_ref[:, center + L:Pp_w] = jnp.zeros((Cout_p, Pp_w - center - L), jnp.bfloat16)
    hpad_ref[:, center:center + L] = h1.astype(jnp.bfloat16)

    # ---- conv2 + folded 1x1x1 skip (skip = center tap of x), tap accumulation again ----
    acc2 = jnp.dot(ws_ref[...], x_ref[0, :, center:center + L],
                   preferred_element_type=jnp.float32)
    for t, off in enumerate(offsets):
        acc2 = acc2 + jnp.dot(w2_ref[t], hpad_ref[:, off:off + L],
                              preferred_element_type=jnp.float32)
    out_ref[0] = _leaky_relu(acc2 + b2_ref[...]).astype(out_ref.dtype)


def residual_block(x_ncdhw, params):
    """x_ncdhw: (N, Cin, D, H, W) float32 — matches PyTorch Conv3d input layout.

    params = (w1, b1, w2, b2, ws, bs) with conv weights in DHWIO layout
    (== torch weight.permute(2,3,4,1,0)); ws: (Cin, Cout) 1x1x1 skip weight
    (identity / zero bias when in_channels == out_channels).
    """
    w1, b1, w2, b2, ws, bs = params
    N, Cin, D, H, W = x_ncdhw.shape
    Cout = w1.shape[-1]
    Dp, Hp, Wp = D + 2, H + 2, W + 2
    Pp = Dp * Hp * Wp
    L = (D - 1) * Hp * Wp + (H - 1) * Wp + W
    center = Hp * Wp + Wp + 1
    # Tight halo identity for 3x3x3 / pad=1: max tap read offset is exactly the padded volume.
    assert 2 * center + L == Pp, "halo arithmetic assumes 3x3x3 conv with padding=1"

    L_pad = _round_up(L, 128)          # lane-dense output (unmasked vst)
    Pp_w = 2 * center + L_pad          # widen so every tap read stays in bounds
    Cin_p = _round_up(Cin, 16)         # bf16 sublane tile is (16, 128)
    Cout_p = _round_up(Cout, 16)

    # NCDHW -> channel-major flat spatial in bf16 (zero spatial halo + zero channel pad +
    # zero lane tail).  No transpose anywhere in the data path.
    x_pad = jnp.pad(x_ncdhw.astype(jnp.bfloat16),
                    ((0, 0), (0, Cin_p - Cin), (1, 1), (1, 1), (1, 1)))
    x_flat = jnp.pad(x_pad.reshape(N, Cin_p, Pp), ((0, 0), (0, 0), (0, Pp_w - Pp)))

    # Per-tap weight stacks: DHWIO -> (27, Cout, Cin) -> channel-padded bf16.
    w1m = jnp.zeros((27, Cout_p, Cin_p), jnp.bfloat16).at[:, :Cout, :Cin].set(
        jnp.transpose(w1, (0, 1, 2, 4, 3)).reshape(27, Cout, Cin).astype(jnp.bfloat16))
    w2m = jnp.zeros((27, Cout_p, Cout_p), jnp.bfloat16).at[:, :Cout, :Cout].set(
        jnp.transpose(w2, (0, 1, 2, 4, 3)).reshape(27, Cout, Cout).astype(jnp.bfloat16))
    wsm = jnp.zeros((Cout_p, Cin_p), jnp.bfloat16).at[:Cout, :Cin].set(
        ws.T.astype(jnp.bfloat16))

    b1c = jnp.zeros((Cout_p, 1), jnp.float32).at[:Cout, 0].set(b1)
    b2c = jnp.zeros((Cout_p, 1), jnp.float32).at[:Cout, 0].set(b2 + bs)

    # Validity mask over the flat conv1 output (zero on wrap lanes and on the lane-pad tail).
    p = jnp.arange(L_pad, dtype=jnp.int32)
    mask = ((p < L) & (((p // Wp) % Hp) < H) & ((p % Wp) < W)
            ).astype(jnp.float32).reshape(1, L_pad)

    offsets = tuple(kd * Hp * Wp + kh * Wp + kw
                    for kd in range(3) for kh in range(3) for kw in range(3))

    # VMEM budget (double-buffered inputs/outputs + scratch) and a cost hint for XLA.
    bytes_x = Cin_p * Pp_w * 2
    bytes_out = Cout_p * L_pad * 4
    bytes_w = 2 * (27 * Cout_p * Cin_p + 27 * Cout_p * Cout_p + Cout_p * Cin_p)
    bytes_small = 4 * (2 * Cout_p + L_pad)
    bytes_scratch = Cout_p * Pp_w * 2
    vmem_limit = int(min(64 * 1024 * 1024,
                         max(32 * 1024 * 1024,
                             2 * (2 * (bytes_x + bytes_out + bytes_w + bytes_small)
                                  + bytes_scratch))))
    flops = 2 * N * L_pad * Cout_p * (27 * Cin_p + 27 * Cout_p + Cin_p)
    cost = pl.CostEstimate(flops=flops, transcendentals=0,
                           bytes_accessed=N * (bytes_x + bytes_out) + bytes_w + bytes_small)

    kernel = functools.partial(residual_block_kernel,
                               offsets=offsets, center=center, L=L_pad)

    out_flat = pl.pallas_call(
        kernel,
        out_shape=jax.ShapeDtypeStruct((N, Cout_p, L_pad), x_ncdhw.dtype),
        grid_spec=pltpu.PrefetchScalarGridSpec(
            num_scalar_prefetch=0,
            grid=(N,),
            in_specs=[
                pl.BlockSpec((1, Cin_p, Pp_w), lambda n: (n, 0, 0)),
                pl.BlockSpec((27, Cout_p, Cin_p), lambda n: (0, 0, 0)),
                pl.BlockSpec((Cout_p, 1), lambda n: (0, 0)),
                pl.BlockSpec((1, L_pad), lambda n: (0, 0)),
                pl.BlockSpec((27, Cout_p, Cout_p), lambda n: (0, 0, 0)),
                pl.BlockSpec((Cout_p, Cin_p), lambda n: (0, 0)),
                pl.BlockSpec((Cout_p, 1), lambda n: (0, 0)),
            ],
            out_specs=pl.BlockSpec((1, Cout_p, L_pad), lambda n: (n, 0, 0)),
            scratch_shapes=[
                pltpu.VMEM((Cout_p, Pp_w), jnp.bfloat16),  # conv1 act at padded flat coords
            ],
        ),
        compiler_params=pltpu.CompilerParams(
            dimension_semantics=("parallel",),
            vmem_limit_bytes=vmem_limit),
        cost_estimate=cost,
    )(x_flat, w1m, b1c, mask, w2m, wsm, b2c)

    # Undo the flat-shift layout: drop lane padding, pad the short tail, reshape to
    # (D, Hp, Wp), crop wrap lanes.  Result is already NCDHW.
    out_valid = out_flat[:, :Cout, :L]
    out_full = jnp.pad(out_valid, ((0, 0), (0, 0), (0, D * Hp * Wp - L)))
    out = out_full.reshape(N, Cout, D, Hp, Wp)[:, :, :, :H, :W]
    return out


# ---------------- pure-JAX reference (for correctness check) ----------------
def _conv3d_ndhwc(x, w, b, pad):
    dn = ('NDHWC', 'DHWIO', 'NDHWC')
    y = lax.conv_general_dilated(x, w, window_strides=(1, 1, 1),
                                 padding=[(pad, pad)] * 3,
                                 dimension_numbers=dn,
                                 precision=lax.Precision.HIGHEST)
    return y + b


def ref_residual_block(x_ncdhw, params):
    w1, b1, w2, b2, ws, bs = params
    Cin = x_ncdhw.shape[1]
    Cout = w1.shape[-1]
    x = jnp.transpose(x_ncdhw, (0, 2, 3, 4, 1))
    residual = _conv3d_ndhwc(x, ws.reshape(1, 1, 1, Cin, Cout), bs, 0)
    out = _leaky_relu(_conv3d_ndhwc(x, w1, b1, 1))
    out = _conv3d_ndhwc(out, w2, b2, 1)
    out = _leaky_relu(out + residual)
    return jnp.transpose(out, (0, 4, 1, 2, 3))


if __name__ == "__main__":
    N, Cin, Cout, D, H, W = 2, 4, 8, 8, 8, 8

    key = jax.random.PRNGKey(0)
    ks = jax.random.split(key, 7)
    x = jax.random.normal(ks[0], (N, Cin, D, H, W), jnp.float32)

    # Deterministic synthetic parameters (shapes per nn.Conv3d in __init__), DHWIO layout.
    w1 = 0.1 * jax.random.normal(ks[1], (3, 3, 3, Cin, Cout), jnp.float32)
    b1 = 0.1 * jax.random.normal(ks[2], (Cout,), jnp.float32)
    w2 = 0.1 * jax.random.normal(ks[3], (3, 3, 3, Cout, Cout), jnp.float32)
    b2 = 0.1 * jax.random.normal(ks[4], (Cout,), jnp.float32)
    if Cin != Cout:
        ws = 0.1 * jax.random.normal(ks[5], (Cin, Cout), jnp.float32)
        bs = 0.1 * jax.random.normal(ks[6], (Cout,), jnp.float32)
    else:
        # nn.Identity skip == 1x1x1 conv with identity weight and zero bias.
        ws = jnp.eye(Cin, dtype=jnp.float32)
        bs = jnp.zeros((Cout,), jnp.float32)
    params = (w1, b1, w2, b2, ws, bs)

    out = jax.block_until_ready(residual_block(x, params))
    assert out.shape == (N, Cout, D, H, W)

    ref = jax.block_until_ready(ref_residual_block(x, params))
    # Kernel runs the MXU path in bf16 with f32 accumulation (same rounding the default
    # MXU precision applied anyway), so tolerance is looser than the HIGHEST-precision ref.
    if not bool(jnp.allclose(out, ref, atol=2e-2, rtol=2e-2)):
        raise AssertionError(
            f"kernel/reference mismatch, max abs err = {float(jnp.max(jnp.abs(out - ref)))}")

    print("KERNEL_OK")
</pallas_src>

<mosaic_0001>
module attributes {stable_mosaic.version = 11 : i64} {
  func.func @residual_block_kernel(%arg0: i32, %arg1: memref<1x16x1118xbf16, #tpu.memory_space<vmem>>, %arg2: memref<27x16x16xbf16, #tpu.memory_space<vmem>>, %arg3: memref<16x1xf32, #tpu.memory_space<vmem>>, %arg4: memref<1x896xf32, #tpu.memory_space<vmem>>, %arg5: memref<27x16x16xbf16, #tpu.memory_space<vmem>>, %arg6: memref<16x16xbf16, #tpu.memory_space<vmem>>, %arg7: memref<16x1xf32, #tpu.memory_space<vmem>>, %arg8: memref<1x16x896xf32, #tpu.memory_space<vmem>>, %arg9: memref<16x1118xbf16, #tpu.memory_space<vmem>>) attributes {dimension_semantics = [#tpu.dimension_semantics<parallel>], iteration_bounds = array<i64: 2>, scalar_prefetch = 0 : i64, scratch_operands = 1 : i64, tpu.core_type = #tpu.core_type<tc>, window_params = [{transform_indices = @transform_0, window_bounds = array<i64: 1, 16, 1118>}, {pipeline_mode = #tpu.pipeline_mode<synchronous>, transform_indices = @transform_1, window_bounds = array<i64: 27, 16, 16>}, {pipeline_mode = #tpu.pipeline_mode<synchronous>, transform_indices = @transform_2, window_bounds = array<i64: 16, 1>}, {pipeline_mode = #tpu.pipeline_mode<synchronous>, transform_indices = @transform_3, window_bounds = array<i64: 1, 896>}, {pipeline_mode = #tpu.pipeline_mode<synchronous>, transform_indices = @transform_4, window_bounds = array<i64: 27, 16, 16>}, {pipeline_mode = #tpu.pipeline_mode<synchronous>, transform_indices = @transform_5, window_bounds = array<i64: 16, 16>}, {pipeline_mode = #tpu.pipeline_mode<synchronous>, transform_indices = @transform_6, window_bounds = array<i64: 16, 1>}, {transform_indices = @transform_7, window_bounds = array<i64: 1, 16, 896>}]} {
    %cst = arith.constant 0.000000e+00 : f32
    %0 = vector.broadcast %cst : f32 to vector<16x896xf32>
    %c0 = arith.constant 0 : index
    %c0_0 = arith.constant 0 : index
    %c0_1 = arith.constant 0 : index
    %1 = vector.load %arg2[%c0, %c0_0, %c0_1] : memref<27x16x16xbf16, #tpu.memory_space<vmem>>, vector<1x16x16xbf16>
    %2 = vector.shape_cast %1 : vector<1x16x16xbf16> to vector<16x16xbf16>
    %c0_2 = arith.constant 0 : index
    %c0_3 = arith.constant 0 : index
    %c0_4 = arith.constant 0 : index
    %3 = vector.load %arg1[%c0_2, %c0_3, %c0_4] : memref<1x16x1118xbf16, #tpu.memory_space<vmem>>, vector<1x16x896xbf16>
    %4 = vector.shape_cast %3 : vector<1x16x896xbf16> to vector<16x896xbf16>
    %cst_5 = arith.constant dense<0.000000e+00> : vector<16x896xf32>
    %5 = tpu.matmul %2, %4, %cst_5 {dimension_numbers = #tpu.dot_dimension_numbers<[1], [0], [0], [1], [0, 0, 1, 1], [], []>} : vector<16x16xbf16>, vector<16x896xbf16>, vector<16x896xf32> -> vector<16x896xf32>
    %6 = arith.addf %0, %5 : vector<16x896xf32>
    %c1 = arith.constant 1 : index
    %c0_6 = arith.constant 0 : index
    %c0_7 = arith.constant 0 : index
    %7 = vector.load %arg2[%c1, %c0_6, %c0_7] : memref<27x16x16xbf16, #tpu.memory_space<vmem>>, vector<1x16x16xbf16>
    %8 = vector.shape_cast %7 : vector<1x16x16xbf16> to vector<16x16xbf16>
    %c0_8 = arith.constant 0 : index
    %c0_9 = arith.constant 0 : index
    %c1_10 = arith.constant 1 : index
    %9 = vector.load %arg1[%c0_8, %c0_9, %c1_10] : memref<1x16x1118xbf16, #tpu.memory_space<vmem>>, vector<1x16x896xbf16>
    %10 = vector.shape_cast %9 : vector<1x16x896xbf16> to vector<16x896xbf16>
    %cst_11 = arith.constant dense<0.000000e+00> : vector<16x896xf32>
    %11 = tpu.matmul %8, %10, %cst_11 {dimension_numbers = #tpu.dot_dimension_numbers<[1], [0], [0], [1], [0, 0, 1, 1], [], []>} : vector<16x16xbf16>, vector<16x896xbf16>, vector<16x896xf32> -> vector<16x896xf32>
    %12 = arith.addf %6, %11 : vector<16x896xf32>
    %c2 = arith.constant 2 : index
    %c0_12 = arith.constant 0 : index
    %c0_13 = arith.constant 0 : index
    %13 = vector.load %arg2[%c2, %c0_12, %c0_13] : memref<27x16x16xbf16, #tpu.memory_space<vmem>>, vector<1x16x16xbf16>
    %14 = vector.shape_cast %13 : vector<1x16x16xbf16> to vector<16x16xbf16>
    %c0_14 = arith.constant 0 : index
    %c0_15 = arith.constant 0 : index
    %c2_16 = arith.constant 2 : index
    %15 = vector.load %arg1[%c0_14, %c0_15, %c2_16] : memref<1x16x1118xbf16, #tpu.memory_space<vmem>>, vector<1x16x896xbf16>
    %16 = vector.shape_cast %15 : vector<1x16x896xbf16> to vector<16x896xbf16>
    %cst_17 = arith.constant dense<0.000000e+00> : vector<16x896xf32>
    %17 = tpu.matmul %14, %16, %cst_17 {dimension_numbers = #tpu.dot_dimension_numbers<[1], [0], [0], [1], [0, 0, 1, 1], [], []>} : vector<16x16xbf16>, vector<16x896xbf16>, vector<16x896xf32> -> vector<16x896xf32>
    %18 = arith.addf %12, %17 : vector<16x896xf32>
    %c3 = arith.constant 3 : index
    %c0_18 = arith.constant 0 : index
    %c0_19 = arith.constant 0 : index
    %19 = vector.load %arg2[%c3, %c0_18, %c0_19] : memref<27x16x16xbf16, #tpu.memory_space<vmem>>, vector<1x16x16xbf16>
    %20 = vector.shape_cast %19 : vector<1x16x16xbf16> to vector<16x16xbf16>
    %c0_20 = arith.constant 0 : index
    %c0_21 = arith.constant 0 : index
    %c10 = arith.constant 10 : index
    %21 = vector.load %arg1[%c0_20, %c0_21, %c10] : memref<1x16x1118xbf16, #tpu.memory_space<vmem>>, vector<1x16x896xbf16>
    %22 = vector.shape_cast %21 : vector<1x16x896xbf16> to vector<16x896xbf16>
    %cst_22 = arith.constant dense<0.000000e+00> : vector<16x896xf32>
    %23 = tpu.matmul %20, %22, %cst_22 {dimension_numbers = #tpu.dot_dimension_numbers<[1], [0], [0], [1], [0, 0, 1, 1], [], []>} : vector<16x16xbf16>, vector<16x896xbf16>, vector<16x896xf32> -> vector<16x896xf32>
    %24 = arith.addf %18, %23 : vector<16x896xf32>
    %c4 = arith.constant 4 : index
    %c0_23 = arith.constant 0 : index
    %c0_24 = arith.constant 0 : index
    %25 = vector.load %arg2[%c4, %c0_23, %c0_24] : memref<27x16x16xbf16, #tpu.memory_space<vmem>>, vector<1x16x16xbf16>
    %26 = vector.shape_cast %25 : vector<1x16x16xbf16> to vector<16x16xbf16>
    %c0_25 = arith.constant 0 : index
    %c0_26 = arith.constant 0 : index
    %c11 = arith.constant 11 : index
    %27 = vector.load %arg1[%c0_25, %c0_26, %c11] : memref<1x16x1118xbf16, #tpu.memory_space<vmem>>, vector<1x16x896xbf16>
    %28 = vector.shape_cast %27 : vector<1x16x896xbf16> to vector<16x896xbf16>
    %cst_27 = arith.constant dense<0.000000e+00> : vector<16x896xf32>
    %29 = tpu.matmul %26, %28, %cst_27 {dimension_numbers = #tpu.dot_dimension_numbers<[1], [0], [0], [1], [0, 0, 1, 1], [], []>} : vector<16x16xbf16>, vector<16x896xbf16>, vector<16x896xf32> -> vector<16x896xf32>
    %30 = arith.addf %24, %29 : vector<16x896xf32>
    %c5 = arith.constant 5 : index
    %c0_28 = arith.constant 0 : index
    %c0_29 = arith.constant 0 : index
    %31 = vector.load %arg2[%c5, %c0_28, %c0_29] : memref<27x16x16xbf16, #tpu.memory_space<vmem>>, vector<1x16x16xbf16>
    %32 = vector.shape_cast %31 : vector<1x16x16xbf16> to vector<16x16xbf16>
    %c0_30 = arith.constant 0 : index
    %c0_31 = arith.constant 0 : index
    %c12 = arith.constant 12 : index
    %33 = vector.load %arg1[%c0_30, %c0_31, %c12] : memref<1x16x1118xbf16, #tpu.memory_space<vmem>>, vector<1x16x896xbf16>
    %34 = vector.shape_cast %33 : vector<1x16x896xbf16> to vector<16x896xbf16>
    %cst_32 = arith.constant dense<0.000000e+00> : vector<16x896xf32>
    %35 = tpu.matmul %32, %34, %cst_32 {dimension_numbers = #tpu.dot_dimension_numbers<[1], [0], [0], [1], [0, 0, 1, 1], [], []>} : vector<16x16xbf16>, vector<16x896xbf16>, vector<16x896xf32> -> vector<16x896xf32>
    %36 = arith.addf %30, %35 : vector<16x896xf32>
    %c6 = arith.constant 6 : index
    %c0_33 = arith.constant 0 : index
    %c0_34 = arith.constant 0 : index
    %37 = vector.load %arg2[%c6, %c0_33, %c0_34] : memref<27x16x16xbf16, #tpu.memory_space<vmem>>, vector<1x16x16xbf16>
    %38 = vector.shape_cast %37 : vector<1x16x16xbf16> to vector<16x16xbf16>
    %c0_35 = arith.constant 0 : index
    %c0_36 = arith.constant 0 : index
    %c20 = arith.constant 20 : index
    %39 = vector.load %arg1[%c0_35, %c0_36, %c20] : memref<1x16x1118xbf16, #tpu.memory_space<vmem>>, vector<1x16x896xbf16>
    %40 = vector.shape_cast %39 : vector<1x16x896xbf16> to vector<16x896xbf16>
    %cst_37 = arith.constant dense<0.000000e+00> : vector<16x896xf32>
    %41 = tpu.matmul %38, %40, %cst_37 {dimension_numbers = #tpu.dot_dimension_numbers<[1], [0], [0], [1], [0, 0, 1, 1], [], []>} : vector<16x16xbf16>, vector<16x896xbf16>, vector<16x896xf32> -> vector<16x896xf32>
    %42 = arith.addf %36, %41 : vector<16x896xf32>
    %c7 = arith.constant 7 : index
    %c0_38 = arith.constant 0 : index
    %c0_39 = arith.constant 0 : index
    %43 = vector.load %arg2[%c7, %c0_38, %c0_39] : memref<27x16x16xbf16, #tpu.memory_space<vmem>>, vector<1x16x16xbf16>
    %44 = vector.shape_cast %43 : vector<1x16x16xbf16> to vector<16x16xbf16>
    %c0_40 = arith.constant 0 : index
    %c0_41 = arith.constant 0 : index
    %c21 = arith.constant 21 : index
    %45 = vector.load %arg1[%c0_40, %c0_41, %c21] : memref<1x16x1118xbf16, #tpu.memory_space<vmem>>, vector<1x16x896xbf16>
    %46 = vector.shape_cast %45 : vector<1x16x896xbf16> to vector<16x896xbf16>
    %cst_42 = arith.constant dense<0.000000e+00> : vector<16x896xf32>
    %47 = tpu.matmul %44, %46, %cst_42 {dimension_numbers = #tpu.dot_dimension_numbers<[1], [0], [0], [1], [0, 0, 1, 1], [], []>} : vector<16x16xbf16>, vector<16x896xbf16>, vector<16x896xf32> -> vector<16x896xf32>
    %48 = arith.addf %42, %47 : vector<16x896xf32>
    %c8 = arith.constant 8 : index
    %c0_43 = arith.constant 0 : index
    %c0_44 = arith.constant 0 : index
    %49 = vector.load %arg2[%c8, %c0_43, %c0_44] : memref<27x16x16xbf16, #tpu.memory_space<vmem>>, vector<1x16x16xbf16>
    %50 = vector.shape_cast %49 : vector<1x16x16xbf16> to vector<16x16xbf16>
    %c0_45 = arith.constant 0 : index
    %c0_46 = arith.constant 0 : index
    %c22 = arith.constant 22 : index
    %51 = vector.load %arg1[%c0_45, %c0_46, %c22] : memref<1x16x1118xbf16, #tpu.memory_space<vmem>>, vector<1x16x896xbf16>
    %52 = vector.shape_cast %51 : vector<1x16x896xbf16> to vector<16x896xbf16>
    %cst_47 = arith.constant dense<0.000000e+00> : vector<16x896xf32>
    %53 = tpu.matmul %50, %52, %cst_47 {dimension_numbers = #tpu.dot_dimension_numbers<[1], [0], [0], [1], [0, 0, 1, 1], [], []>} : vector<16x16xbf16>, vector<16x896xbf16>, vector<16x896xf32> -> vector<16x896xf32>
    %54 = arith.addf %48, %53 : vector<16x896xf32>
    %c9 = arith.constant 9 : index
    %c0_48 = arith.constant 0 : index
    %c0_49 = arith.constant 0 : index
    %55 = vector.load %arg2[%c9, %c0_48, %c0_49] : memref<27x16x16xbf16, #tpu.memory_space<vmem>>, vector<1x16x16xbf16>
    %56 = vector.shape_cast %55 : vector<1x16x16xbf16> to vector<16x16xbf16>
    %c0_50 = arith.constant 0 : index
    %c0_51 = arith.constant 0 : index
    %c100 = arith.constant 100 : index
    %57 = vector.load %arg1[%c0_50, %c0_51, %c100] : memref<1x16x1118xbf16, #tpu.memory_space<vmem>>, vector<1x16x896xbf16>
    %58 = vector.shape_cast %57 : vector<1x16x896xbf16> to vector<16x896xbf16>
    %cst_52 = arith.constant dense<0.000000e+00> : vector<16x896xf32>
    %59 = tpu.matmul %56, %58, %cst_52 {dimension_numbers = #tpu.dot_dimension_numbers<[1], [0], [0], [1], [0, 0, 1, 1], [], []>} : vector<16x16xbf16>, vector<16x896xbf16>, vector<16x896xf32> -> vector<16x896xf32>
    %60 = arith.addf %54, %59 : vector<16x896xf32>
    %c10_53 = arith.constant 10 : index
    %c0_54 = arith.constant 0 : index
    %c0_55 = arith.constant 0 : index
    %61 = vector.load %arg2[%c10_53, %c0_54, %c0_55] : memref<27x16x16xbf16, #tpu.memory_space<vmem>>, vector<1x16x16xbf16>
    %62 = vector.shape_cast %61 : vector<1x16x16xbf16> to vector<16x16xbf16>
    %c0_56 = arith.constant 0 : index
    %c0_57 = arith.constant 0 : index
    %c101 = arith.constant 101 : index
    %63 = vector.load %arg1[%c0_56, %c0_57, %c101] : memref<1x16x1118xbf16, #tpu.memory_space<vmem>>, vector<1x16x896xbf16>
    %64 = vector.shape_cast %63 : vector<1x16x896xbf16> to vector<16x896xbf16>
    %cst_58 = arith.constant dense<0.000000e+00> : vector<16x896xf32>
    %65 = tpu.matmul %62, %64, %cst_58 {dimension_numbers = #tpu.dot_dimension_numbers<[1], [0], [0], [1], [0, 0, 1, 1], [], []>} : vector<16x16xbf16>, vector<16x896xbf16>, vector<16x896xf32> -> vector<16x896xf32>
    %66 = arith.addf %60, %65 : vector<16x896xf32>
    %c11_59 = arith.constant 11 : index
    %c0_60 = arith.constant 0 : index
    %c0_61 = arith.constant 0 : index
    %67 = vector.load %arg2[%c11_59, %c0_60, %c0_61] : memref<27x16x16xbf16, #tpu.memory_space<vmem>>, vector<1x16x16xbf16>
    %68 = vector.shape_cast %67 : vector<1x16x16xbf16> to vector<16x16xbf16>
    %c0_62 = arith.constant 0 : index
    %c0_63 = arith.constant 0 : index
    %c102 = arith.constant 102 : index
    %69 = vector.load %arg1[%c0_62, %c0_63, %c102] : memref<1x16x1118xbf16, #tpu.memory_space<vmem>>, vector<1x16x896xbf16>
    %70 = vector.shape_cast %69 : vector<1x16x896xbf16> to vector<16x896xbf16>
    %cst_64 = arith.constant dense<0.000000e+00> : vector<16x896xf32>
    %71 = tpu.matmul %68, %70, %cst_64 {dimension_numbers = #tpu.dot_dimension_numbers<[1], [0], [0], [1], [0, 0, 1, 1], [], []>} : vector<16x16xbf16>, vector<16x896xbf16>, vector<16x896xf32> -> vector<16x896xf32>
    %72 = arith.addf %66, %71 : vector<16x896xf32>
    %c12_65 = arith.constant 12 : index
    %c0_66 = arith.constant 0 : index
    %c0_67 = arith.constant 0 : index
    %73 = vector.load %arg2[%c12_65, %c0_66, %c0_67] : memref<27x16x16xbf16, #tpu.memory_space<vmem>>, vector<1x16x16xbf16>
    %74 = vector.shape_cast %73 : vector<1x16x16xbf16> to vector<16x16xbf16>
    %c0_68 = arith.constant 0 : index
    %c0_69 = arith.constant 0 : index
    %c110 = arith.constant 110 : index
    %75 = vector.load %arg1[%c0_68, %c0_69, %c110] : memref<1x16x1118xbf16, #tpu.memory_space<vmem>>, vector<1x16x896xbf16>
    %76 = vector.shape_cast %75 : vector<1x16x896xbf16> to vector<16x896xbf16>
    %cst_70 = arith.constant dense<0.000000e+00> : vector<16x896xf32>
    %77 = tpu.matmul %74, %76, %cst_70 {dimension_numbers = #tpu.dot_dimension_numbers<[1], [0], [0], [1], [0, 0, 1, 1], [], []>} : vector<16x16xbf16>, vector<16x896xbf16>, vector<16x896xf32> -> vector<16x896xf32>
    %78 = arith.addf %72, %77 : vector<16x896xf32>
    %c13 = arith.constant 13 : index
    %c0_71 = arith.constant 0 : index
    %c0_72 = arith.constant 0 : index
    %79 = vector.load %arg2[%c13, %c0_71, %c0_72] : memref<27x16x16xbf16, #tpu.memory_space<vmem>>, vector<1x16x16xbf16>
    %80 = vector.shape_cast %79 : vector<1x16x16xbf16> to vector<16x16xbf16>
    %c0_73 = arith.constant 0 : index
    %c0_74 = arith.constant 0 : index
    %c111 = arith.constant 111 : index
    %81 = vector.load %arg1[%c0_73, %c0_74, %c111] : memref<1x16x1118xbf16, #tpu.memory_space<vmem>>, vector<1x16x896xbf16>
    %82 = vector.shape_cast %81 : vector<1x16x896xbf16> to vector<16x896xbf16>
    %cst_75 = arith.constant dense<0.000000e+00> : vector<16x896xf32>
    %83 = tpu.matmul %80, %82, %cst_75 {dimension_numbers = #tpu.dot_dimension_numbers<[1], [0], [0], [1], [0, 0, 1, 1], [], []>} : vector<16x16xbf16>, vector<16x896xbf16>, vector<16x896xf32> -> vector<16x896xf32>
    %84 = arith.addf %78, %83 : vector<16x896xf32>
    %c14 = arith.constant 14 : index
    %c0_76 = arith.constant 0 : index
    %c0_77 = arith.constant 0 : index
    %85 = vector.load %arg2[%c14, %c0_76, %c0_77] : memref<27x16x16xbf16, #tpu.memory_space<vmem>>, vector<1x16x16xbf16>
    %86 = vector.shape_cast %85 : vector<1x16x16xbf16> to vector<16x16xbf16>
    %c0_78 = arith.constant 0 : index
    %c0_79 = arith.constant 0 : index
    %c112 = arith.constant 112 : index
    %87 = vector.load %arg1[%c0_78, %c0_79, %c112] : memref<1x16x1118xbf16, #tpu.memory_space<vmem>>, vector<1x16x896xbf16>
    %88 = vector.shape_cast %87 : vector<1x16x896xbf16> to vector<16x896xbf16>
    %cst_80 = arith.constant dense<0.000000e+00> : vector<16x896xf32>
    %89 = tpu.matmul %86, %88, %cst_80 {dimension_numbers = #tpu.dot_dimension_numbers<[1], [0], [0], [1], [0, 0, 1, 1], [], []>} : vector<16x16xbf16>, vector<16x896xbf16>, vector<16x896xf32> -> vector<16x896xf32>
    %90 = arith.addf %84, %89 : vector<16x896xf32>
    %c15 = arith.constant 15 : index
    %c0_81 = arith.constant 0 : index
    %c0_82 = arith.constant 0 : index
    %91 = vector.load %arg2[%c15, %c0_81, %c0_82] : memref<27x16x16xbf16, #tpu.memory_space<vmem>>, vector<1x16x16xbf16>
    %92 = vector.shape_cast %91 : vector<1x16x16xbf16> to vector<16x16xbf16>
    %c0_83 = arith.constant 0 : index
    %c0_84 = arith.constant 0 : index
    %c120 = arith.constant 120 : index
    %93 = vector.load %arg1[%c0_83, %c0_84, %c120] : memref<1x16x1118xbf16, #tpu.memory_space<vmem>>, vector<1x16x896xbf16>
    %94 = vector.shape_cast %93 : vector<1x16x896xbf16> to vector<16x896xbf16>
    %cst_85 = arith.constant dense<0.000000e+00> : vector<16x896xf32>
    %95 = tpu.matmul %92, %94, %cst_85 {dimension_numbers = #tpu.dot_dimension_numbers<[1], [0], [0], [1], [0, 0, 1, 1], [], []>} : vector<16x16xbf16>, vector<16x896xbf16>, vector<16x896xf32> -> vector<16x896xf32>
    %96 = arith.addf %90, %95 : vector<16x896xf32>
    %c16 = arith.constant 16 : index
    %c0_86 = arith.constant 0 : index
    %c0_87 = arith.constant 0 : index
    %97 = vector.load %arg2[%c16, %c0_86, %c0_87] : memref<27x16x16xbf16, #tpu.memory_space<vmem>>, vector<1x16x16xbf16>
    %98 = vector.shape_cast %97 : vector<1x16x16xbf16> to vector<16x16xbf16>
    %c0_88 = arith.constant 0 : index
    %c0_89 = arith.constant 0 : index
    %c121 = arith.constant 121 : index
    %99 = vector.load %arg1[%c0_88, %c0_89, %c121] : memref<1x16x1118xbf16, #tpu.memory_space<vmem>>, vector<1x16x896xbf16>
    %100 = vector.shape_cast %99 : vector<1x16x896xbf16> to vector<16x896xbf16>
    %cst_90 = arith.constant dense<0.000000e+00> : vector<16x896xf32>
    %101 = tpu.matmul %98, %100, %cst_90 {dimension_numbers = #tpu.dot_dimension_numbers<[1], [0], [0], [1], [0, 0, 1, 1], [], []>} : vector<16x16xbf16>, vector<16x896xbf16>, vector<16x896xf32> -> vector<16x896xf32>
    %102 = arith.addf %96, %101 : vector<16x896xf32>
    %c17 = arith.constant 17 : index
    %c0_91 = arith.constant 0 : index
    %c0_92 = arith.constant 0 : index
    %103 = vector.load %arg2[%c17, %c0_91, %c0_92] : memref<27x16x16xbf16, #tpu.memory_space<vmem>>, vector<1x16x16xbf16>
    %104 = vector.shape_cast %103 : vector<1x16x16xbf16> to vector<16x16xbf16>
    %c0_93 = arith.constant 0 : index
    %c0_94 = arith.constant 0 : index
    %c122 = arith.constant 122 : index
    %105 = vector.load %arg1[%c0_93, %c0_94, %c122] : memref<1x16x1118xbf16, #tpu.memory_space<vmem>>, vector<1x16x896xbf16>
    %106 = vector.shape_cast %105 : vector<1x16x896xbf16> to vector<16x896xbf16>
    %cst_95 = arith.constant dense<0.000000e+00> : vector<16x896xf32>
    %107 = tpu.matmul %104, %106, %cst_95 {dimension_numbers = #tpu.dot_dimension_numbers<[1], [0], [0], [1], [0, 0, 1, 1], [], []>} : vector<16x16xbf16>, vector<16x896xbf16>, vector<16x896xf32> -> vector<16x896xf32>
    %108 = arith.addf %102, %107 : vector<16x896xf32>
    %c18 = arith.constant 18 : index
    %c0_96 = arith.constant 0 : index
    %c0_97 = arith.constant 0 : index
    %109 = vector.load %arg2[%c18, %c0_96, %c0_97] : memref<27x16x16xbf16, #tpu.memory_space<vmem>>, vector<1x16x16xbf16>
    %110 = vector.shape_cast %109 : vector<1x16x16xbf16> to vector<16x16xbf16>
    %c0_98 = arith.constant 0 : index
    %c0_99 = arith.constant 0 : index
    %c200 = arith.constant 200 : index
    %111 = vector.load %arg1[%c0_98, %c0_99, %c200] : memref<1x16x1118xbf16, #tpu.memory_space<vmem>>, vector<1x16x896xbf16>
    %112 = vector.shape_cast %111 : vector<1x16x896xbf16> to vector<16x896xbf16>
    %cst_100 = arith.constant dense<0.000000e+00> : vector<16x896xf32>
    %113 = tpu.matmul %110, %112, %cst_100 {dimension_numbers = #tpu.dot_dimension_numbers<[1], [0], [0], [1], [0, 0, 1, 1], [], []>} : vector<16x16xbf16>, vector<16x896xbf16>, vector<16x896xf32> -> vector<16x896xf32>
    %114 = arith.addf %108, %113 : vector<16x896xf32>
    %c19 = arith.constant 19 : index
    %c0_101 = arith.constant 0 : index
    %c0_102 = arith.constant 0 : index
    %115 = vector.load %arg2[%c19, %c0_101, %c0_102] : memref<27x16x16xbf16, #tpu.memory_space<vmem>>, vector<1x16x16xbf16>
    %116 = vector.shape_cast %115 : vector<1x16x16xbf16> to vector<16x16xbf16>
    %c0_103 = arith.constant 0 : index
    %c0_104 = arith.constant 0 : index
    %c201 = arith.constant 201 : index
    %117 = vector.load %arg1[%c0_103, %c0_104, %c201] : memref<1x16x1118xbf16, #tpu.memory_space<vmem>>, vector<1x16x896xbf16>
    %118 = vector.shape_cast %117 : vector<1x16x896xbf16> to vector<16x896xbf16>
    %cst_105 = arith.constant dense<0.000000e+00> : vector<16x896xf32>
    %119 = tpu.matmul %116, %118, %cst_105 {dimension_numbers = #tpu.dot_dimension_numbers<[1], [0], [0], [1], [0, 0, 1, 1], [], []>} : vector<16x16xbf16>, vector<16x896xbf16>, vector<16x896xf32> -> vector<16x896xf32>
    %120 = arith.addf %114, %119 : vector<16x896xf32>
    %c20_106 = arith.constant 20 : index
    %c0_107 = arith.constant 0 : index
    %c0_108 = arith.constant 0 : index
    %121 = vector.load %arg2[%c20_106, %c0_107, %c0_108] : memref<27x16x16xbf16, #tpu.memory_space<vmem>>, vector<1x16x16xbf16>
    %122 = vector.shape_cast %121 : vector<1x16x16xbf16> to vector<16x16xbf16>
    %c0_109 = arith.constant 0 : index
    %c0_110 = arith.constant 0 : index
    %c202 = arith.constant 202 : index
    %123 = vector.load %arg1[%c0_109, %c0_110, %c202] : memref<1x16x1118xbf16, #tpu.memory_space<vmem>>, vector<1x16x896xbf16>
    %124 = vector.shape_cast %123 : vector<1x16x896xbf16> to vector<16x896xbf16>
    %cst_111 = arith.constant dense<0.000000e+00> : vector<16x896xf32>
    %125 = tpu.matmul %122, %124, %cst_111 {dimension_numbers = #tpu.dot_dimension_numbers<[1], [0], [0], [1], [0, 0, 1, 1], [], []>} : vector<16x16xbf16>, vector<16x896xbf16>, vector<16x896xf32> -> vector<16x896xf32>
    %126 = arith.addf %120, %125 : vector<16x896xf32>
    %c21_112 = arith.constant 21 : index
    %c0_113 = arith.constant 0 : index
    %c0_114 = arith.constant 0 : index
    %127 = vector.load %arg2[%c21_112, %c0_113, %c0_114] : memref<27x16x16xbf16, #tpu.memory_space<vmem>>, vector<1x16x16xbf16>
    %128 = vector.shape_cast %127 : vector<1x16x16xbf16> to vector<16x16xbf16>
    %c0_115 = arith.constant 0 : index
    %c0_116 = arith.constant 0 : index
    %c210 = arith.constant 210 : index
    %129 = vector.load %arg1[%c0_115, %c0_116, %c210] : memref<1x16x1118xbf16, #tpu.memory_space<vmem>>, vector<1x16x896xbf16>
    %130 = vector.shape_cast %129 : vector<1x16x896xbf16> to vector<16x896xbf16>
    %cst_117 = arith.constant dense<0.000000e+00> : vector<16x896xf32>
    %131 = tpu.matmul %128, %130, %cst_117 {dimension_numbers = #tpu.dot_dimension_numbers<[1], [0], [0], [1], [0, 0, 1, 1], [], []>} : vector<16x16xbf16>, vector<16x896xbf16>, vector<16x896xf32> -> vector<16x896xf32>
    %132 = arith.addf %126, %131 : vector<16x896xf32>
    %c22_118 = arith.constant 22 : index
    %c0_119 = arith.constant 0 : index
    %c0_120 = arith.constant 0 : index
    %133 = vector.load %arg2[%c22_118, %c0_119, %c0_120] : memref<27x16x16xbf16, #tpu.memory_space<vmem>>, vector<1x16x16xbf16>
    %134 = vector.shape_cast %133 : vector<1x16x16xbf16> to vector<16x16xbf16>
    %c0_121 = arith.constant 0 : index
    %c0_122 = arith.constant 0 : index
    %c211 = arith.constant 211 : index
    %135 = vector.load %arg1[%c0_121, %c0_122, %c211] : memref<1x16x1118xbf16, #tpu.memory_space<vmem>>, vector<1x16x896xbf16>
    %136 = vector.shape_cast %135 : vector<1x16x896xbf16> to vector<16x896xbf16>
    %cst_123 = arith.constant dense<0.000000e+00> : vector<16x896xf32>
    %137 = tpu.matmul %134, %136, %cst_123 {dimension_numbers = #tpu.dot_dimension_numbers<[1], [0], [0], [1], [0, 0, 1, 1], [], []>} : vector<16x16xbf16>, vector<16x896xbf16>, vector<16x896xf32> -> vector<16x896xf32>
    %138 = arith.addf %132, %137 : vector<16x896xf32>
    %c23 = arith.constant 23 : index
    %c0_124 = arith.constant 0 : index
    %c0_125 = arith.constant 0 : index
    %139 = vector.load %arg2[%c23, %c0_124, %c0_125] : memref<27x16x16xbf16, #tpu.memory_space<vmem>>, vector<1x16x16xbf16>
    %140 = vector.shape_cast %139 : vector<1x16x16xbf16> to vector<16x16xbf16>
    %c0_126 = arith.constant 0 : index
    %c0_127 = arith.constant 0 : index
    %c212 = arith.constant 212 : index
    %141 = vector.load %arg1[%c0_126, %c0_127, %c212] : memref<1x16x1118xbf16, #tpu.memory_space<vmem>>, vector<1x16x896xbf16>
    %142 = vector.shape_cast %141 : vector<1x16x896xbf16> to vector<16x896xbf16>
    %cst_128 = arith.constant dense<0.000000e+00> : vector<16x896xf32>
    %143 = tpu.matmul %140, %142, %cst_128 {dimension_numbers = #tpu.dot_dimension_numbers<[1], [0], [0], [1], [0, 0, 1, 1], [], []>} : vector<16x16xbf16>, vector<16x896xbf16>, vector<16x896xf32> -> vector<16x896xf32>
    %144 = arith.addf %138, %143 : vector<16x896xf32>
    %c24 = arith.constant 24 : index
    %c0_129 = arith.constant 0 : index
    %c0_130 = arith.constant 0 : index
    %145 = vector.load %arg2[%c24, %c0_129, %c0_130] : memref<27x16x16xbf16, #tpu.memory_space<vmem>>, vector<1x16x16xbf16>
    %146 = vector.shape_cast %145 : vector<1x16x16xbf16> to vector<16x16xbf16>
    %c0_131 = arith.constant 0 : index
    %c0_132 = arith.constant 0 : index
    %c220 = arith.constant 220 : index
    %147 = vector.load %arg1[%c0_131, %c0_132, %c220] : memref<1x16x1118xbf16, #tpu.memory_space<vmem>>, vector<1x16x896xbf16>
    %148 = vector.shape_cast %147 : vector<1x16x896xbf16> to vector<16x896xbf16>
    %cst_133 = arith.constant dense<0.000000e+00> : vector<16x896xf32>
    %149 = tpu.matmul %146, %148, %cst_133 {dimension_numbers = #tpu.dot_dimension_numbers<[1], [0], [0], [1], [0, 0, 1, 1], [], []>} : vector<16x16xbf16>, vector<16x896xbf16>, vector<16x896xf32> -> vector<16x896xf32>
    %150 = arith.addf %144, %149 : vector<16x896xf32>
    %c25 = arith.constant 25 : index
    %c0_134 = arith.constant 0 : index
    %c0_135 = arith.constant 0 : index
    %151 = vector.load %arg2[%c25, %c0_134, %c0_135] : memref<27x16x16xbf16, #tpu.memory_space<vmem>>, vector<1x16x16xbf16>
    %152 = vector.shape_cast %151 : vector<1x16x16xbf16> to vector<16x16xbf16>
    %c0_136 = arith.constant 0 : index
    %c0_137 = arith.constant 0 : index
    %c221 = arith.constant 221 : index
    %153 = vector.load %arg1[%c0_136, %c0_137, %c221] : memref<1x16x1118xbf16, #tpu.memory_space<vmem>>, vector<1x16x896xbf16>
    %154 = vector.shape_cast %153 : vector<1x16x896xbf16> to vector<16x896xbf16>
    %cst_138 = arith.constant dense<0.000000e+00> : vector<16x896xf32>
    %155 = tpu.matmul %152, %154, %cst_138 {dimension_numbers = #tpu.dot_dimension_numbers<[1], [0], [0], [1], [0, 0, 1, 1], [], []>} : vector<16x16xbf16>, vector<16x896xbf16>, vector<16x896xf32> -> vector<16x896xf32>
    %156 = arith.addf %150, %155 : vector<16x896xf32>
    %c26 = arith.constant 26 : index
    %c0_139 = arith.constant 0 : index
    %c0_140 = arith.constant 0 : index
    %157 = vector.load %arg2[%c26, %c0_139, %c0_140] : memref<27x16x16xbf16, #tpu.memory_space<vmem>>, vector<1x16x16xbf16>
    %158 = vector.shape_cast %157 : vector<1x16x16xbf16> to vector<16x16xbf16>
    %c0_141 = arith.constant 0 : index
    %c0_142 = arith.constant 0 : index
    %c222 = arith.constant 222 : index
    %159 = vector.load %arg1[%c0_141, %c0_142, %c222] : memref<1x16x1118xbf16, #tpu.memory_space<vmem>>, vector<1x16x896xbf16>
    %160 = vector.shape_cast %159 : vector<1x16x896xbf16> to vector<16x896xbf16>
    %cst_143 = arith.constant dense<0.000000e+00> : vector<16x896xf32>
    %161 = tpu.matmul %158, %160, %cst_143 {dimension_numbers = #tpu.dot_dimension_numbers<[1], [0], [0], [1], [0, 0, 1, 1], [], []>} : vector<16x16xbf16>, vector<16x896xbf16>, vector<16x896xf32> -> vector<16x896xf32>
    %162 = arith.addf %156, %161 : vector<16x896xf32>
    %c0_144 = arith.constant 0 : index
    %c0_145 = arith.constant 0 : index
    %163 = vector.load %arg3[%c0_144, %c0_145] : memref<16x1xf32, #tpu.memory_space<vmem>>, vector<16x1xf32>
    %164 = vector.broadcast %163 : vector<16x1xf32> to vector<16x896xf32>
    %165 = arith.addf %162, %164 : vector<16x896xf32>
    %cst_146 = arith.constant 0.000000e+00 : f32
    %166 = vector.broadcast %cst_146 : f32 to vector<16x896xf32>
    %167 = arith.cmpf oge, %165, %166 : vector<16x896xf32>
    %cst_147 = arith.constant 2.000000e-01 : f32
    %168 = vector.broadcast %cst_147 : f32 to vector<16x896xf32>
    %169 = arith.mulf %168, %165 : vector<16x896xf32>
    %170 = arith.select %167, %165, %169 : vector<16x896xi1>, vector<16x896xf32>
    %c0_148 = arith.constant 0 : index
    %c0_149 = arith.constant 0 : index
    %171 = vector.load %arg4[%c0_148, %c0_149] : memref<1x896xf32, #tpu.memory_space<vmem>>, vector<1x896xf32>
    %172 = vector.broadcast %171 : vector<1x896xf32> to vector<16x896xf32>
    %173 = arith.mulf %170, %172 : vector<16x896xf32>
    %cst_150 = arith.constant 0.000000e+00 : bf16
    %174 = vector.broadcast %cst_150 : bf16 to vector<16x111xbf16>
    %c0_151 = arith.constant 0 : index
    %c0_152 = arith.constant 0 : index
    %175 = vector.load %arg9[%c0_151, %c0_152] : memref<16x1118xbf16, #tpu.memory_space<vmem>>, vector<16x111xbf16>
    tpu.vector_store %arg9[%c0_151, %c0_152], %174 {strides = array<i32>} : memref<16x1118xbf16, #tpu.memory_space<vmem>>, vector<16x111xbf16>,
    %cst_153 = arith.constant 0.000000e+00 : bf16
    %176 = vector.broadcast %cst_153 : bf16 to vector<16x111xbf16>
    %c0_154 = arith.constant 0 : index
    %c1007 = arith.constant 1007 : index
    %177 = vector.load %arg9[%c0_154, %c1007] : memref<16x1118xbf16, #tpu.memory_space<vmem>>, vector<16x111xbf16>
    tpu.vector_store %arg9[%c0_154, %c1007], %176 {strides = array<i32>} : memref<16x1118xbf16, #tpu.memory_space<vmem>>, vector<16x111xbf16>,
    %178 = arith.truncf %173 : vector<16x896xf32> to vector<16x896xbf16>
    %c0_155 = arith.constant 0 : index
    %c111_156 = arith.constant 111 : index
    %179 = vector.load %arg9[%c0_155, %c111_156] : memref<16x1118xbf16, #tpu.memory_space<vmem>>, vector<16x896xbf16>
    tpu.vector_store %arg9[%c0_155, %c111_156], %178 {strides = array<i32>} : memref<16x1118xbf16, #tpu.memory_space<vmem>>, vector<16x896xbf16>,
    %c0_157 = arith.constant 0 : index
    %c0_158 = arith.constant 0 : index
    %180 = vector.load %arg6[%c0_157, %c0_158] : memref<16x16xbf16, #tpu.memory_space<vmem>>, vector<16x16xbf16>
    %c0_159 = arith.constant 0 : index
    %c0_160 = arith.constant 0 : index
    %c111_161 = arith.constant 111 : index
    %181 = vector.load %arg1[%c0_159, %c0_160, %c111_161] : memref<1x16x1118xbf16, #tpu.memory_space<vmem>>, vector<1x16x896xbf16>
    %182 = vector.shape_cast %181 : vector<1x16x896xbf16> to vector<16x896xbf16>
    %cst_162 = arith.constant dense<0.000000e+00> : vector<16x896xf32>
    %183 = tpu.matmul %180, %182, %cst_162 {dimension_numbers = #tpu.dot_dimension_numbers<[1], [0], [0], [1], [0, 0, 1, 1], [], []>} : vector<16x16xbf16>, vector<16x896xbf16>, vector<16x896xf32> -> vector<16x896xf32>
    %c0_163 = arith.constant 0 : index
    %c0_164 = arith.constant 0 : index
    %c0_165 = arith.constant 0 : index
    %184 = vector.load %arg5[%c0_163, %c0_164, %c0_165] : memref<27x16x16xbf16, #tpu.memory_space<vmem>>, vector<1x16x16xbf16>
    %185 = vector.shape_cast %184 : vector<1x16x16xbf16> to vector<16x16xbf16>
    %c0_166 = arith.constant 0 : index
    %c0_167 = arith.constant 0 : index
    %186 = vector.load %arg9[%c0_166, %c0_167] : memref<16x1118xbf16, #tpu.memory_space<vmem>>, vector<16x896xbf16>
    %cst_168 = arith.constant dense<0.000000e+00> : vector<16x896xf32>
    %187 = tpu.matmul %185, %186, %cst_168 {dimension_numbers = #tpu.dot_dimension_numbers<[1], [0], [0], [1], [0, 0, 1, 1], [], []>} : vector<16x16xbf16>, vector<16x896xbf16>, vector<16x896xf32> -> vector<16x896xf32>
    %188 = arith.addf %183, %187 : vector<16x896xf32>
    %c1_169 = arith.constant 1 : index
    %c0_170 = arith.constant 0 : index
    %c0_171 = arith.constant 0 : index
    %189 = vector.load %arg5[%c1_169, %c0_170, %c0_171] : memref<27x16x16xbf16, #tpu.memory_space<vmem>>, vector<1x16x16xbf16>
    %190 = vector.shape_cast %189 : vector<1x16x16xbf16> to vector<16x16xbf16>
    %c0_172 = arith.constant 0 : index
    %c1_173 = arith.constant 1 : index
    %191 = vector.load %arg9[%c0_172, %c1_173] : memref<16x1118xbf16, #tpu.memory_space<vmem>>, vector<16x896xbf16>
    %cst_174 = arith.constant dense<0.000000e+00> : vector<16x896xf32>
    %192 = tpu.matmul %190, %191, %cst_174 {dimension_numbers = #tpu.dot_dimension_numbers<[1], [0], [0], [1], [0, 0, 1, 1], [], []>} : vector<16x16xbf16>, vector<16x896xbf16>, vector<16x896xf32> -> vector<16x896xf32>
    %193 = arith.addf %188, %192 : vector<16x896xf32>
    %c2_175 = arith.constant 2 : index
    %c0_176 = arith.constant 0 : index
    %c0_177 = arith.constant 0 : index
    %194 = vector.load %arg5[%c2_175, %c0_176, %c0_177] : memref<27x16x16xbf16, #tpu.memory_space<vmem>>, vector<1x16x16xbf16>
    %195 = vector.shape_cast %194 : vector<1x16x16xbf16> to vector<16x16xbf16>
    %c0_178 = arith.constant 0 : index
    %c2_179 = arith.constant 2 : index
    %196 = vector.load %arg9[%c0_178, %c2_179] : memref<16x1118xbf16, #tpu.memory_space<vmem>>, vector<16x896xbf16>
    %cst_180 = arith.constant dense<0.000000e+00> : vector<16x896xf32>
    %197 = tpu.matmul %195, %196, %cst_180 {dimension_numbers = #tpu.dot_dimension_numbers<[1], [0], [0], [1], [0, 0, 1, 1], [], []>} : vector<16x16xbf16>, vector<16x896xbf16>, vector<16x896xf32> -> vector<16x896xf32>
    %198 = arith.addf %193, %197 : vector<16x896xf32>
    %c3_181 = arith.constant 3 : index
    %c0_182 = arith.constant 0 : index
    %c0_183 = arith.constant 0 : index
    %199 = vector.load %arg5[%c3_181, %c0_182, %c0_183] : memref<27x16x16xbf16, #tpu.memory_space<vmem>>, vector<1x16x16xbf16>
    %200 = vector.shape_cast %199 : vector<1x16x16xbf16> to vector<16x16xbf16>
    %c0_184 = arith.constant 0 : index
    %c10_185 = arith.constant 10 : index
    %201 = vector.load %arg9[%c0_184, %c10_185] : memref<16x1118xbf16, #tpu.memory_space<vmem>>, vector<16x896xbf16>
    %cst_186 = arith.constant dense<0.000000e+00> : vector<16x896xf32>
    %202 = tpu.matmul %200, %201, %cst_186 {dimension_numbers = #tpu.dot_dimension_numbers<[1], [0], [0], [1], [0, 0, 1, 1], [], []>} : vector<16x16xbf16>, vector<16x896xbf16>, vector<16x896xf32> -> vector<16x896xf32>
    %203 = arith.addf %198, %202 : vector<16x896xf32>
    %c4_187 = arith.constant 4 : index
    %c0_188 = arith.constant 0 : index
    %c0_189 = arith.constant 0 : index
    %204 = vector.load %arg5[%c4_187, %c0_188, %c0_189] : memref<27x16x16xbf16, #tpu.memory_space<vmem>>, vector<1x16x16xbf16>
    %205 = vector.shape_cast %204 : vector<1x16x16xbf16> to vector<16x16xbf16>
    %c0_190 = arith.constant 0 : index
    %c11_191 = arith.constant 11 : index
    %206 = vector.load %arg9[%c0_190, %c11_191] : memref<16x1118xbf16, #tpu.memory_space<vmem>>, vector<16x896xbf16>
    %cst_192 = arith.constant dense<0.000000e+00> : vector<16x896xf32>
    %207 = tpu.matmul %205, %206, %cst_192 {dimension_numbers = #tpu.dot_dimension_numbers<[1], [0], [0], [1], [0, 0, 1, 1], [], []>} : vector<16x16xbf16>, vector<16x896xbf16>, vector<16x896xf32> -> vector<16x896xf32>
    %208 = arith.addf %203, %207 : vector<16x896xf32>
    %c5_193 = arith.constant 5 : index
    %c0_194 = arith.constant 0 : index
    %c0_195 = arith.constant 0 : index
    %209 = vector.load %arg5[%c5_193, %c0_194, %c0_195] : memref<27x16x16xbf16, #tpu.memory_space<vmem>>, vector<1x16x16xbf16>
    %210 = vector.shape_cast %209 : vector<1x16x16xbf16> to vector<16x16xbf16>
    %c0_196 = arith.constant 0 : index
    %c12_197 = arith.constant 12 : index
    %211 = vector.load %arg9[%c0_196, %c12_197] : memref<16x1118xbf16, #tpu.memory_space<vmem>>, vector<16x896xbf16>
    %cst_198 = arith.constant dense<0.000000e+00> : vector<16x896xf32>
    %212 = tpu.matmul %210, %211, %cst_198 {dimension_numbers = #tpu.dot_dimension_numbers<[1], [0], [0], [1], [0, 0, 1, 1], [], []>} : vector<16x16xbf16>, vector<16x896xbf16>, vector<16x896xf32> -> vector<16x896xf32>
    %213 = arith.addf %208, %212 : vector<16x896xf32>
    %c6_199 = arith.constant 6 : index
    %c0_200 = arith.constant 0 : index
    %c0_201 = arith.constant 0 : index
    %214 = vector.load %arg5[%c6_199, %c0_200, %c0_201] : memref<27x16x16xbf16, #tpu.memory_space<vmem>>, vector<1x16x16xbf16>
    %215 = vector.shape_cast %214 : vector<1x16x16xbf16> to vector<16x16xbf16>
    %c0_202 = arith.constant 0 : index
    %c20_203 = arith.constant 20 : index
    %216 = vector.load %arg9[%c0_202, %c20_203] : memref<16x1118xbf16, #tpu.memory_space<vmem>>, vector<16x896xbf16>
    %cst_204 = arith.constant dense<0.000000e+00> : vector<16x896xf32>
    %217 = tpu.matmul %215, %216, %cst_204 {dimension_numbers = #tpu.dot_dimension_numbers<[1], [0], [0], [1], [0, 0, 1, 1], [], []>} : vector<16x16xbf16>, vector<16x896xbf16>, vector<16x896xf32> -> vector<16x896xf32>
    %218 = arith.addf %213, %217 : vector<16x896xf32>
    %c7_205 = arith.constant 7 : index
    %c0_206 = arith.constant 0 : index
    %c0_207 = arith.constant 0 : index
    %219 = vector.load %arg5[%c7_205, %c0_206, %c0_207] : memref<27x16x16xbf16, #tpu.memory_space<vmem>>, vector<1x16x16xbf16>
    %220 = vector.shape_cast %219 : vector<1x16x16xbf16> to vector<16x16xbf16>
    %c0_208 = arith.constant 0 : index
    %c21_209 = arith.constant 21 : index
    %221 = vector.load %arg9[%c0_208, %c21_209] : memref<16x1118xbf16, #tpu.memory_space<vmem>>, vector<16x896xbf16>
    %cst_210 = arith.constant dense<0.000000e+00> : vector<16x896xf32>
    %222 = tpu.matmul %220, %221, %cst_210 {dimension_numbers = #tpu.dot_dimension_numbers<[1], [0], [0], [1], [0, 0, 1, 1], [], []>} : vector<16x16xbf16>, vector<16x896xbf16>, vector<16x896xf32> -> vector<16x896xf32>
    %223 = arith.addf %218, %222 : vector<16x896xf32>
    %c8_211 = arith.constant 8 : index
    %c0_212 = arith.constant 0 : index
    %c0_213 = arith.constant 0 : index
    %224 = vector.load %arg5[%c8_211, %c0_212, %c0_213] : memref<27x16x16xbf16, #tpu.memory_space<vmem>>, vector<1x16x16xbf16>
    %225 = vector.shape_cast %224 : vector<1x16x16xbf16> to vector<16x16xbf16>
    %c0_214 = arith.constant 0 : index
    %c22_215 = arith.constant 22 : index
    %226 = vector.load %arg9[%c0_214, %c22_215] : memref<16x1118xbf16, #tpu.memory_space<vmem>>, vector<16x896xbf16>
    %cst_216 = arith.constant dense<0.000000e+00> : vector<16x896xf32>
    %227 = tpu.matmul %225, %226, %cst_216 {dimension_numbers = #tpu.dot_dimension_numbers<[1], [0], [0], [1], [0, 0, 1, 1], [], []>} : vector<16x16xbf16>, vector<16x896xbf16>, vector<16x896xf32> -> vector<16x896xf32>
    %228 = arith.addf %223, %227 : vector<16x896xf32>
    %c9_217 = arith.constant 9 : index
    %c0_218 = arith.constant 0 : index
    %c0_219 = arith.constant 0 : index
    %229 = vector.load %arg5[%c9_217, %c0_218, %c0_219] : memref<27x16x16xbf16, #tpu.memory_space<vmem>>, vector<1x16x16xbf16>
    %230 = vector.shape_cast %229 : vector<1x16x16xbf16> to vector<16x16xbf16>
    %c0_220 = arith.constant 0 : index
    %c100_221 = arith.constant 100 : index
    %231 = vector.load %arg9[%c0_220, %c100_221] : memref<16x1118xbf16, #tpu.memory_space<vmem>>, vector<16x896xbf16>
    %cst_222 = arith.constant dense<0.000000e+00> : vector<16x896xf32>
    %232 = tpu.matmul %230, %231, %cst_222 {dimension_numbers = #tpu.dot_dimension_numbers<[1], [0], [0], [1], [0, 0, 1, 1], [], []>} : vector<16x16xbf16>, vector<16x896xbf16>, vector<16x896xf32> -> vector<16x896xf32>
    %233 = arith.addf %228, %232 : vector<16x896xf32>
    %c10_223 = arith.constant 10 : index
    %c0_224 = arith.constant 0 : index
    %c0_225 = arith.constant 0 : index
    %234 = vector.load %arg5[%c10_223, %c0_224, %c0_225] : memref<27x16x16xbf16, #tpu.memory_space<vmem>>, vector<1x16x16xbf16>
    %235 = vector.shape_cast %234 : vector<1x16x16xbf16> to vector<16x16xbf16>
    %c0_226 = arith.constant 0 : index
    %c101_227 = arith.constant 101 : index
    %236 = vector.load %arg9[%c0_226, %c101_227] : memref<16x1118xbf16, #tpu.memory_space<vmem>>, vector<16x896xbf16>
    %cst_228 = arith.constant dense<0.000000e+00> : vector<16x896xf32>
    %237 = tpu.matmul %235, %236, %cst_228 {dimension_numbers = #tpu.dot_dimension_numbers<[1], [0], [0], [1], [0, 0, 1, 1], [], []>} : vector<16x16xbf16>, vector<16x896xbf16>, vector<16x896xf32> -> vector<16x896xf32>
    %238 = arith.addf %233, %237 : vector<16x896xf32>
    %c11_229 = arith.constant 11 : index
    %c0_230 = arith.constant 0 : index
    %c0_231 = arith.constant 0 : index
    %239 = vector.load %arg5[%c11_229, %c0_230, %c0_231] : memref<27x16x16xbf16, #tpu.memory_space<vmem>>, vector<1x16x16xbf16>
    %240 = vector.shape_cast %239 : vector<1x16x16xbf16> to vector<16x16xbf16>
    %c0_232 = arith.constant 0 : index
    %c102_233 = arith.constant 102 : index
    %241 = vector.load %arg9[%c0_232, %c102_233] : memref<16x1118xbf16, #tpu.memory_space<vmem>>, vector<16x896xbf16>
    %cst_234 = arith.constant dense<0.000000e+00> : vector<16x896xf32>
    %242 = tpu.matmul %240, %241, %cst_234 {dimension_numbers = #tpu.dot_dimension_numbers<[1], [0], [0], [1], [0, 0, 1, 1], [], []>} : vector<16x16xbf16>, vector<16x896xbf16>, vector<16x896xf32> -> vector<16x896xf32>
    %243 = arith.addf %238, %242 : vector<16x896xf32>
    %c12_235 = arith.constant 12 : index
    %c0_236 = arith.constant 0 : index
    %c0_237 = arith.constant 0 : index
    %244 = vector.load %arg5[%c12_235, %c0_236, %c0_237] : memref<27x16x16xbf16, #tpu.memory_space<vmem>>, vector<1x16x16xbf16>
    %245 = vector.shape_cast %244 : vector<1x16x16xbf16> to vector<16x16xbf16>
    %c0_238 = arith.constant 0 : index
    %c110_239 = arith.constant 110 : index
    %246 = vector.load %arg9[%c0_238, %c110_239] : memref<16x1118xbf16, #tpu.memory_space<vmem>>, vector<16x896xbf16>
    %cst_240 = arith.constant dense<0.000000e+00> : vector<16x896xf32>
    %247 = tpu.matmul %245, %246, %cst_240 {dimension_numbers = #tpu.dot_dimension_numbers<[1], [0], [0], [1], [0, 0, 1, 1], [], []>} : vector<16x16xbf16>, vector<16x896xbf16>, vector<16x896xf32> -> vector<16x896xf32>
    %248 = arith.addf %243, %247 : vector<16x896xf32>
    %c13_241 = arith.constant 13 : index
    %c0_242 = arith.constant 0 : index
    %c0_243 = arith.constant 0 : index
    %249 = vector.load %arg5[%c13_241, %c0_242, %c0_243] : memref<27x16x16xbf16, #tpu.memory_space<vmem>>, vector<1x16x16xbf16>
    %250 = vector.shape_cast %249 : vector<1x16x16xbf16> to vector<16x16xbf16>
    %c0_244 = arith.constant 0 : index
    %c111_245 = arith.constant 111 : index
    %251 = vector.load %arg9[%c0_244, %c111_245] : memref<16x1118xbf16, #tpu.memory_space<vmem>>, vector<16x896xbf16>
    %cst_246 = arith.constant dense<0.000000e+00> : vector<16x896xf32>
    %252 = tpu.matmul %250, %251, %cst_246 {dimension_numbers = #tpu.dot_dimension_numbers<[1], [0], [0], [1], [0, 0, 1, 1], [], []>} : vector<16x16xbf16>, vector<16x896xbf16>, vector<16x896xf32> -> vector<16x896xf32>
    %253 = arith.addf %248, %252 : vector<16x896xf32>
    %c14_247 = arith.constant 14 : index
    %c0_248 = arith.constant 0 : index
    %c0_249 = arith.constant 0 : index
    %254 = vector.load %arg5[%c14_247, %c0_248, %c0_249] : memref<27x16x16xbf16, #tpu.memory_space<vmem>>, vector<1x16x16xbf16>
    %255 = vector.shape_cast %254 : vector<1x16x16xbf16> to vector<16x16xbf16>
    %c0_250 = arith.constant 0 : index
    %c112_251 = arith.constant 112 : index
    %256 = vector.load %arg9[%c0_250, %c112_251] : memref<16x1118xbf16, #tpu.memory_space<vmem>>, vector<16x896xbf16>
    %cst_252 = arith.constant dense<0.000000e+00> : vector<16x896xf32>
    %257 = tpu.matmul %255, %256, %cst_252 {dimension_numbers = #tpu.dot_dimension_numbers<[1], [0], [0], [1], [0, 0, 1, 1], [], []>} : vector<16x16xbf16>, vector<16x896xbf16>, vector<16x896xf32> -> vector<16x896xf32>
    %258 = arith.addf %253, %257 : vector<16x896xf32>
    %c15_253 = arith.constant 15 : index
    %c0_254 = arith.constant 0 : index
    %c0_255 = arith.constant 0 : index
    %259 = vector.load %arg5[%c15_253, %c0_254, %c0_255] : memref<27x16x16xbf16, #tpu.memory_space<vmem>>, vector<1x16x16xbf16>
    %260 = vector.shape_cast %259 : vector<1x16x16xbf16> to vector<16x16xbf16>
    %c0_256 = arith.constant 0 : index
    %c120_257 = arith.constant 120 : index
    %261 = vector.load %arg9[%c0_256, %c120_257] : memref<16x1118xbf16, #tpu.memory_space<vmem>>, vector<16x896xbf16>
    %cst_258 = arith.constant dense<0.000000e+00> : vector<16x896xf32>
    %262 = tpu.matmul %260, %261, %cst_258 {dimension_numbers = #tpu.dot_dimension_numbers<[1], [0], [0], [1], [0, 0, 1, 1], [], []>} : vector<16x16xbf16>, vector<16x896xbf16>, vector<16x896xf32> -> vector<16x896xf32>
    %263 = arith.addf %258, %262 : vector<16x896xf32>
    %c16_259 = arith.constant 16 : index
    %c0_260 = arith.constant 0 : index
    %c0_261 = arith.constant 0 : index
    %264 = vector.load %arg5[%c16_259, %c0_260, %c0_261] : memref<27x16x16xbf16, #tpu.memory_space<vmem>>, vector<1x16x16xbf16>
    %265 = vector.shape_cast %264 : vector<1x16x16xbf16> to vector<16x16xbf16>
    %c0_262 = arith.constant 0 : index
    %c121_263 = arith.constant 121 : index
    %266 = vector.load %arg9[%c0_262, %c121_263] : memref<16x1118xbf16, #tpu.memory_space<vmem>>, vector<16x896xbf16>
    %cst_264 = arith.constant dense<0.000000e+00> : vector<16x896xf32>
    %267 = tpu.matmul %265, %266, %cst_264 {dimension_numbers = #tpu.dot_dimension_numbers<[1], [0], [0], [1], [0, 0, 1, 1], [], []>} : vector<16x16xbf16>, vector<16x896xbf16>, vector<16x896xf32> -> vector<16x896xf32>
    %268 = arith.addf %263, %267 : vector<16x896xf32>
    %c17_265 = arith.constant 17 : index
    %c0_266 = arith.constant 0 : index
    %c0_267 = arith.constant 0 : index
    %269 = vector.load %arg5[%c17_265, %c0_266, %c0_267] : memref<27x16x16xbf16, #tpu.memory_space<vmem>>, vector<1x16x16xbf16>
    %270 = vector.shape_cast %269 : vector<1x16x16xbf16> to vector<16x16xbf16>
    %c0_268 = arith.constant 0 : index
    %c122_269 = arith.constant 122 : index
    %271 = vector.load %arg9[%c0_268, %c122_269] : memref<16x1118xbf16, #tpu.memory_space<vmem>>, vector<16x896xbf16>
    %cst_270 = arith.constant dense<0.000000e+00> : vector<16x896xf32>
    %272 = tpu.matmul %270, %271, %cst_270 {dimension_numbers = #tpu.dot_dimension_numbers<[1], [0], [0], [1], [0, 0, 1, 1], [], []>} : vector<16x16xbf16>, vector<16x896xbf16>, vector<16x896xf32> -> vector<16x896xf32>
    %273 = arith.addf %268, %272 : vector<16x896xf32>
    %c18_271 = arith.constant 18 : index
    %c0_272 = arith.constant 0 : index
    %c0_273 = arith.constant 0 : index
    %274 = vector.load %arg5[%c18_271, %c0_272, %c0_273] : memref<27x16x16xbf16, #tpu.memory_space<vmem>>, vector<1x16x16xbf16>
    %275 = vector.shape_cast %274 : vector<1x16x16xbf16> to vector<16x16xbf16>
    %c0_274 = arith.constant 0 : index
    %c200_275 = arith.constant 200 : index
    %276 = vector.load %arg9[%c0_274, %c200_275] : memref<16x1118xbf16, #tpu.memory_space<vmem>>, vector<16x896xbf16>
    %cst_276 = arith.constant dense<0.000000e+00> : vector<16x896xf32>
    %277 = tpu.matmul %275, %276, %cst_276 {dimension_numbers = #tpu.dot_dimension_numbers<[1], [0], [0], [1], [0, 0, 1, 1], [], []>} : vector<16x16xbf16>, vector<16x896xbf16>, vector<16x896xf32> -> vector<16x896xf32>
    %278 = arith.addf %273, %277 : vector<16x896xf32>
    %c19_277 = arith.constant 19 : index
    %c0_278 = arith.constant 0 : index
    %c0_279 = arith.constant 0 : index
    %279 = vector.load %arg5[%c19_277, %c0_278, %c0_279] : memref<27x16x16xbf16, #tpu.memory_space<vmem>>, vector<1x16x16xbf16>
    %280 = vector.shape_cast %279 : vector<1x16x16xbf16> to vector<16x16xbf16>
    %c0_280 = arith.constant 0 : index
    %c201_281 = arith.constant 201 : index
    %281 = vector.load %arg9[%c0_280, %c201_281] : memref<16x1118xbf16, #tpu.memory_space<vmem>>, vector<16x896xbf16>
    %cst_282 = arith.constant dense<0.000000e+00> : vector<16x896xf32>
    %282 = tpu.matmul %280, %281, %cst_282 {dimension_numbers = #tpu.dot_dimension_numbers<[1], [0], [0], [1], [0, 0, 1, 1], [], []>} : vector<16x16xbf16>, vector<16x896xbf16>, vector<16x896xf32> -> vector<16x896xf32>
    %283 = arith.addf %278, %282 : vector<16x896xf32>
    %c20_283 = arith.constant 20 : index
    %c0_284 = arith.constant 0 : index
    %c0_285 = arith.constant 0 : index
    %284 = vector.load %arg5[%c20_283, %c0_284, %c0_285] : memref<27x16x16xbf16, #tpu.memory_space<vmem>>, vector<1x16x16xbf16>
    %285 = vector.shape_cast %284 : vector<1x16x16xbf16> to vector<16x16xbf16>
    %c0_286 = arith.constant 0 : index
    %c202_287 = arith.constant 202 : index
    %286 = vector.load %arg9[%c0_286, %c202_287] : memref<16x1118xbf16, #tpu.memory_space<vmem>>, vector<16x896xbf16>
    %cst_288 = arith.constant dense<0.000000e+00> : vector<16x896xf32>
    %287 = tpu.matmul %285, %286, %cst_288 {dimension_numbers = #tpu.dot_dimension_numbers<[1], [0], [0], [1], [0, 0, 1, 1], [], []>} : vector<16x16xbf16>, vector<16x896xbf16>, vector<16x896xf32> -> vector<16x896xf32>
    %288 = arith.addf %283, %287 : vector<16x896xf32>
    %c21_289 = arith.constant 21 : index
    %c0_290 = arith.constant 0 : index
    %c0_291 = arith.constant 0 : index
    %289 = vector.load %arg5[%c21_289, %c0_290, %c0_291] : memref<27x16x16xbf16, #tpu.memory_space<vmem>>, vector<1x16x16xbf16>
    %290 = vector.shape_cast %289 : vector<1x16x16xbf16> to vector<16x16xbf16>
    %c0_292 = arith.constant 0 : index
    %c210_293 = arith.constant 210 : index
    %291 = vector.load %arg9[%c0_292, %c210_293] : memref<16x1118xbf16, #tpu.memory_space<vmem>>, vector<16x896xbf16>
    %cst_294 = arith.constant dense<0.000000e+00> : vector<16x896xf32>
    %292 = tpu.matmul %290, %291, %cst_294 {dimension_numbers = #tpu.dot_dimension_numbers<[1], [0], [0], [1], [0, 0, 1, 1], [], []>} : vector<16x16xbf16>, vector<16x896xbf16>, vector<16x896xf32> -> vector<16x896xf32>
    %293 = arith.addf %288, %292 : vector<16x896xf32>
    %c22_295 = arith.constant 22 : index
    %c0_296 = arith.constant 0 : index
    %c0_297 = arith.constant 0 : index
    %294 = vector.load %arg5[%c22_295, %c0_296, %c0_297] : memref<27x16x16xbf16, #tpu.memory_space<vmem>>, vector<1x16x16xbf16>
    %295 = vector.shape_cast %294 : vector<1x16x16xbf16> to vector<16x16xbf16>
    %c0_298 = arith.constant 0 : index
    %c211_299 = arith.constant 211 : index
    %296 = vector.load %arg9[%c0_298, %c211_299] : memref<16x1118xbf16, #tpu.memory_space<vmem>>, vector<16x896xbf16>
    %cst_300 = arith.constant dense<0.000000e+00> : vector<16x896xf32>
    %297 = tpu.matmul %295, %296, %cst_300 {dimension_numbers = #tpu.dot_dimension_numbers<[1], [0], [0], [1], [0, 0, 1, 1], [], []>} : vector<16x16xbf16>, vector<16x896xbf16>, vector<16x896xf32> -> vector<16x896xf32>
    %298 = arith.addf %293, %297 : vector<16x896xf32>
    %c23_301 = arith.constant 23 : index
    %c0_302 = arith.constant 0 : index
    %c0_303 = arith.constant 0 : index
    %299 = vector.load %arg5[%c23_301, %c0_302, %c0_303] : memref<27x16x16xbf16, #tpu.memory_space<vmem>>, vector<1x16x16xbf16>
    %300 = vector.shape_cast %299 : vector<1x16x16xbf16> to vector<16x16xbf16>
    %c0_304 = arith.constant 0 : index
    %c212_305 = arith.constant 212 : index
    %301 = vector.load %arg9[%c0_304, %c212_305] : memref<16x1118xbf16, #tpu.memory_space<vmem>>, vector<16x896xbf16>
    %cst_306 = arith.constant dense<0.000000e+00> : vector<16x896xf32>
    %302 = tpu.matmul %300, %301, %cst_306 {dimension_numbers = #tpu.dot_dimension_numbers<[1], [0], [0], [1], [0, 0, 1, 1], [], []>} : vector<16x16xbf16>, vector<16x896xbf16>, vector<16x896xf32> -> vector<16x896xf32>
    %303 = arith.addf %298, %302 : vector<16x896xf32>
    %c24_307 = arith.constant 24 : index
    %c0_308 = arith.constant 0 : index
    %c0_309 = arith.constant 0 : index
    %304 = vector.load %arg5[%c24_307, %c0_308, %c0_309] : memref<27x16x16xbf16, #tpu.memory_space<vmem>>, vector<1x16x16xbf16>
    %305 = vector.shape_cast %304 : vector<1x16x16xbf16> to vector<16x16xbf16>
    %c0_310 = arith.constant 0 : index
    %c220_311 = arith.constant 220 : index
    %306 = vector.load %arg9[%c0_310, %c220_311] : memref<16x1118xbf16, #tpu.memory_space<vmem>>, vector<16x896xbf16>
    %cst_312 = arith.constant dense<0.000000e+00> : vector<16x896xf32>
    %307 = tpu.matmul %305, %306, %cst_312 {dimension_numbers = #tpu.dot_dimension_numbers<[1], [0], [0], [1], [0, 0, 1, 1], [], []>} : vector<16x16xbf16>, vector<16x896xbf16>, vector<16x896xf32> -> vector<16x896xf32>
    %308 = arith.addf %303, %307 : vector<16x896xf32>
    %c25_313 = arith.constant 25 : index
    %c0_314 = arith.constant 0 : index
    %c0_315 = arith.constant 0 : index
    %309 = vector.load %arg5[%c25_313, %c0_314, %c0_315] : memref<27x16x16xbf16, #tpu.memory_space<vmem>>, vector<1x16x16xbf16>
    %310 = vector.shape_cast %309 : vector<1x16x16xbf16> to vector<16x16xbf16>
    %c0_316 = arith.constant 0 : index
    %c221_317 = arith.constant 221 : index
    %311 = vector.load %arg9[%c0_316, %c221_317] : memref<16x1118xbf16, #tpu.memory_space<vmem>>, vector<16x896xbf16>
    %cst_318 = arith.constant dense<0.000000e+00> : vector<16x896xf32>
    %312 = tpu.matmul %310, %311, %cst_318 {dimension_numbers = #tpu.dot_dimension_numbers<[1], [0], [0], [1], [0, 0, 1, 1], [], []>} : vector<16x16xbf16>, vector<16x896xbf16>, vector<16x896xf32> -> vector<16x896xf32>
    %313 = arith.addf %308, %312 : vector<16x896xf32>
    %c26_319 = arith.constant 26 : index
    %c0_320 = arith.constant 0 : index
    %c0_321 = arith.constant 0 : index
    %314 = vector.load %arg5[%c26_319, %c0_320, %c0_321] : memref<27x16x16xbf16, #tpu.memory_space<vmem>>, vector<1x16x16xbf16>
    %315 = vector.shape_cast %314 : vector<1x16x16xbf16> to vector<16x16xbf16>
    %c0_322 = arith.constant 0 : index
    %c222_323 = arith.constant 222 : index
    %316 = vector.load %arg9[%c0_322, %c222_323] : memref<16x1118xbf16, #tpu.memory_space<vmem>>, vector<16x896xbf16>
    %cst_324 = arith.constant dense<0.000000e+00> : vector<16x896xf32>
    %317 = tpu.matmul %315, %316, %cst_324 {dimension_numbers = #tpu.dot_dimension_numbers<[1], [0], [0], [1], [0, 0, 1, 1], [], []>} : vector<16x16xbf16>, vector<16x896xbf16>, vector<16x896xf32> -> vector<16x896xf32>
    %318 = arith.addf %313, %317 : vector<16x896xf32>
    %c0_325 = arith.constant 0 : index
    %c0_326 = arith.constant 0 : index
    %319 = vector.load %arg7[%c0_325, %c0_326] : memref<16x1xf32, #tpu.memory_space<vmem>>, vector<16x1xf32>
    %320 = vector.broadcast %319 : vector<16x1xf32> to vector<16x896xf32>
    %321 = arith.addf %318, %320 : vector<16x896xf32>
    %cst_327 = arith.constant 0.000000e+00 : f32
    %322 = vector.broadcast %cst_327 : f32 to vector<16x896xf32>
    %323 = arith.cmpf oge, %321, %322 : vector<16x896xf32>
    %cst_328 = arith.constant 2.000000e-01 : f32
    %324 = vector.broadcast %cst_328 : f32 to vector<16x896xf32>
    %325 = arith.mulf %324, %321 : vector<16x896xf32>
    %326 = arith.select %323, %321, %325 : vector<16x896xi1>, vector<16x896xf32>
    %c0_329 = arith.constant 0 : index
    %c0_330 = arith.constant 0 : index
    %c0_331 = arith.constant 0 : index
    %327 = vector.load %arg8[%c0_329, %c0_330, %c0_331] : memref<1x16x896xf32, #tpu.memory_space<vmem>>, vector<1x16x896xf32>
    %328 = vector.shape_cast %327 : vector<1x16x896xf32> to vector<16x896xf32>
    %329 = vector.shape_cast %326 : vector<16x896xf32> to vector<1x16x896xf32>
    tpu.vector_store %arg8[%c0_329, %c0_330, %c0_331], %329 {strides = array<i32>} : memref<1x16x896xf32, #tpu.memory_space<vmem>>, vector<1x16x896xf32>,
    return
  }
  func.func @transform_0(%arg0: i32) -> (i32, i32, i32) {
    %c0_i32 = arith.constant 0 : i32
    %c0_i32_0 = arith.constant 0 : i32
    %c0_i32_1 = arith.constant 0 : i32
    return %arg0, %c0_i32, %c0_i32_0 : i32, i32, i32
  }
  func.func @transform_1(%arg0: i32) -> (i32, i32, i32) {
    %c0_i32 = arith.constant 0 : i32
    %c0_i32_0 = arith.constant 0 : i32
    %c0_i32_1 = arith.constant 0 : i32
    %c0_i32_2 = arith.constant 0 : i32
    return %c0_i32, %c0_i32_0, %c0_i32_1 : i32, i32, i32
  }
  func.func @transform_2(%arg0: i32) -> (i32, i32) {
    %c0_i32 = arith.constant 0 : i32
    %c0_i32_0 = arith.constant 0 : i32
    %c0_i32_1 = arith.constant 0 : i32
    return %c0_i32, %c0_i32_0 : i32, i32
  }
  func.func @transform_3(%arg0: i32) -> (i32, i32) {
    %c0_i32 = arith.constant 0 : i32
    %c0_i32_0 = arith.constant 0 : i32
    %c0_i32_1 = arith.constant 0 : i32
    return %c0_i32, %c0_i32_0 : i32, i32
  }
  func.func @transform_4(%arg0: i32) -> (i32, i32, i32) {
    %c0_i32 = arith.constant 0 : i32
    %c0_i32_0 = arith.constant 0 : i32
    %c0_i32_1 = arith.constant 0 : i32
    %c0_i32_2 = arith.constant 0 : i32
    return %c0_i32, %c0_i32_0, %c0_i32_1 : i32, i32, i32
  }
  func.func @transform_5(%arg0: i32) -> (i32, i32) {
    %c0_i32 = arith.constant 0 : i32
    %c0_i32_0 = arith.constant 0 : i32
    %c0_i32_1 = arith.constant 0 : i32
    return %c0_i32, %c0_i32_0 : i32, i32
  }
  func.func @transform_6(%arg0: i32) -> (i32, i32) {
    %c0_i32 = arith.constant 0 : i32
    %c0_i32_0 = arith.constant 0 : i32
    %c0_i32_1 = arith.constant 0 : i32
    return %c0_i32, %c0_i32_0 : i32, i32
  }
  func.func @transform_7(%arg0: i32) -> (i32, i32, i32) {
    %c0_i32 = arith.constant 0 : i32
    %c0_i32_0 = arith.constant 0 : i32
    %c0_i32_1 = arith.constant 0 : i32
    return %arg0, %c0_i32, %c0_i32_0 : i32, i32, i32
  }
}

</mosaic_0001>

<bundles_post_ra>
// kernel: tpu_custom_call.1
= control target key start
LH: loop header
LB: loop body
LE: loop exit
PB: predicated region body
PF: predicated region fallthrough
CT: control target
= control target key end

     0   :  { %12 = vsyncpa [#allocation4], 0  ;;  %s14088_s0 = inlined_call_operand.vmem [shape: bf16[2,16,1118], index: 0, kind: input, shape index: {}]   ;;  %s14089_s1 = inlined_call_operand.vmem [shape: bf16[27,16,16], index: 1, kind: input, shape index: {}]   ;;  %s14090_s2 = inlined_call_operand.vmem [shape: f32[16,1], index: 2, kind: input, shape index: {}]   ;;  %s14091_s3 = inlined_call_operand.vmem [shape: f32[1,896], index: 3, kind: input, shape index: {}]   ;;  %s14092_s4 = inlined_call_operand.vmem [shape: bf16[27,16,16], index: 4, kind: input, shape index: {}]   ;;  %s14093_s5 = inlined_call_operand.vmem [shape: bf16[16,16], index: 5, kind: input, shape index: {}]   ;;  %s14094_s6 = inlined_call_operand.vmem [shape: f32[16,1], index: 6, kind: input, shape index: {}]   ;;  %s14095_s7 = inlined_call_operand.hbm [shape: f32[2,16,896], index: 7, kind: output, shape index: {}]  }
   0x1   :  { %14 = vsyncpa [#allocation4 + $0x1], 0  ;;  %s10421_s24 = smov 0   ;;  %s10423_s25 = smov 0  }
   0x2   :  { %s10425_s26 = smov 0   ;;  %s10427_s27 = smov 0  }
   0x3 LB: > { %s10442_s28 = sadd.s32 4294967295, %s10350_s27   ;;  %s9202_s29 = sadd.s32 4294967294, %s10350_s27   ;;  %s10350_s27 = sphi %s10427_s27, %s14309_s27   ;;  %s10346_s26 = sphi %s10425_s26, %s14308_s26   ;;  %s10342_s25 = sphi %s10423_s25, %s14307_s25   ;;  %s10338_s24 = sphi %s10421_s24, %s14306_s24  }
   0x4   : > { %s10446_s30 = sadd.s32 1, %s10350_s27   ;;  %s179_s8 = sadd.s32 1, %s10346_s26 }
   0x5   : > { %s176_s9 = ssub.s32 %s10350_s27, %s10446_s30  ;;  %p189_p0 = scmp.ne.s32.totalorder %s10346_s26, %s10342_s25 }
   0x6   : > { %p177_p1 = scmp.eq.s32.totalorder %s176_s9, 0  ;;  %p190_p2 = scmp.eq.s32.totalorder %s10442_s28, 1 }
   0x7   : > { %p195_p3 = scmp.ne.s32.totalorder %s10342_s25, %s10338_s24  ;;  %p196_p4 = scmp.eq.s32.totalorder %s9202_s29, 1 }
   0x8   : > { %s10457_s10 = scalar_select %p177_p1, %s10346_s26, %s179_s8  }
   0x9   : > { %p10459_p5 = por %p190_p2, %p189_p0  ;;  %p10463_p6 = por %p196_p4, %p195_p3 }
   0xa   : > { %p9205_p7 = scmp.ge.s32.totalorder %s10350_s27, 1  ;;  %p240_p8 = scmp.lt.s32.totalorder %s10350_s27, 3 }
   0xc   : > { %p241_p9 = pnand %p9205_p7, %p240_p8 }
   0xe   : > { %244 = sbr.rel (%p241_p9) target bundleno = 2153 (0x869), region = 48 }
  0x13   : > { %p272_p10 = scmp.lt.s32.totalorder %s10442_s28, 1  ;;  %s10352_s18 = smov 127   ;;  %vm346_vm0 = vcmask 1039360   ;;  %v10119_v32 = vld [vmem:[%s14089_s1 + $0x8] sm:$0xff]  ;;  %vm361_vm1 = vcmask 130048   ;;  %v10111_v43 = vld [vmem:[%s14089_s1] sm:$0xff] }
  0x14   : > { %s10353_s19 = smov 126   ;;  %s10354_s20 = smov 118   ;;  %vm605_vm2 = vcmask 1031168   ;;  %v10674_v60 = vld [vmem:[%s14089_s1 + $0x10] sm:$0xff]  ;;  %vm759_vm3 = vcmask 965632   ;;  %vm913_vm4 = vcmask 957440  }
  0x15   : > { %s273_s13 = scalar_select %p272_p10, %s10442_s28, 1  ;;  %vm1067_vm5 = vcmask 949248   ;;  %vm1221_vm6 = vcmask 883712   ;;  %vm1375_vm7 = vcmask 875520   ;;  %vm14144_vm8 = vcmask 867328  }
  0x16   : > { %s10355_s21 = smov 117   ;;  %s10356_s22 = smov 116   ;;  %vm14143_vm9 = vcmask 228352   ;;  %vm14142_vm10 = vcmask 220160   ;;  %vm14141_vm11 = vcmask 211968   ;;  %vm14140_vm12 = vcmask 146432  }
  0x17   : > { %s10215_s14 = smul.u32 72, %s273_s13  ;;  %s10357_s23 = smov 108   ;;  %vm2299_vm13 = vcmask 138240   ;;  %vm14116_vm14 = vcmask 64512   ;;  %vm14121_vm15 = vcmask 56320  }
  0x18   : > { %s10358_s9 = smov 107   ;;  %s10359_s15 = smov 106  }
  0x19   : > { %s10474_s17 = scalar_lea.vmem %s14088_s0, %s10215_s14  ;;  %s14110_s8 = smov 28  }
  0x1a   : > { %v9223_v0 = vld [vmem:[%s10474_s17 + $0x8] sm:$0xf]  ;;  %v10116_v1 = vld [vmem:[%s10474_s17 + $0x28] sm:$0xf0]  ;;  %v9215_v2 = vld [vmem:[%s10474_s17] sm:$0xf] }
  0x1b   : > { %v10479_v3 = vor.u32 %v10116_v1, %v9223_v0  ;;  %v10115_v4 = vld [vmem:[%s10474_s17 + $0x20] sm:$0xf0]  ;;  %v10113_v6 = vld [vmem:[%s10474_s17 + $0xc] sm:$0xf]  ;;  %v9225_v7 = vld [vmem:[%s10474_s17 + $0x2c] sm:$0xf0] }
  0x1c   : > { %v10482_v5 = vor.u32 %v10115_v4, %v9215_v2  ;;  %v9231_v8 = vld [vmem:[%s10474_s17 + $0x10] sm:$0xf]  ;;  %v10117_v9 = vld [vmem:[%s10474_s17 + $0x30] sm:$0xf0]  ;;  %v10112_v10 = vld [vmem:[%s10474_s17 + $0x4] sm:$0xf]  ;;  %v10496_v13 = vor.u32 %v10113_v6, %v9225_v7 }
  0x1d   : > { %334 = vrot.lane.b32.xlu1 %v10479_v3, %s10352_s18  ;;  %v9217_v11 = vld [vmem:[%s10474_s17 + $0x24] sm:$0xf0]  ;;  %v10494_v12 = vor.u32 %v10117_v9, %v9231_v8  ;;  %v10114_v15 = vld [vmem:[%s10474_s17 + $0x14] sm:$0xf]  ;;  %v9233_v16 = vld [vmem:[%s10474_s17 + $0x34] sm:$0xf0] }
  0x1e   : > { %330 = vrot.lane.b32.xlu0 %v10482_v5, %s10352_s18  ;;  %v10500_v14 = vor.u32 %v10112_v10, %v9217_v11  ;;  %v10506_v17 = vor.u32 %v10114_v15, %v9233_v16  ;;  %v10120_v18 = vld [vmem:[%s10474_s17 + $0x1c] sm:$0xf]  ;;  %v9241_v19 = vld [vmem:[%s10474_s17 + $0x3c] sm:$0xf0]  ;;  %v9239_v20 = vld [vmem:[%s10474_s17 + $0x18] sm:$0xf] }
  0x1f   : > { %338 = vrot.lane.b32.xlu2 %v10494_v12, %s10352_s18  ;;  %v10121_v21 = vld [vmem:[%s10474_s17 + $0x38] sm:$0xf0]  ;;  %v10514_v22 = vor.u32 %v10120_v18, %v9241_v19  ;;  %v9258_v41 = vld [vmem:[%s10474_s17 + $0x18] sm:$0xf]  ;;  %s14096_s13 = smov 27   ;;  %s14100_s29 = smov 26  }
  0x20   : > { %v10518_v23 = vor.u32 %v10121_v21, %v9239_v20  ;;  %v10118_v42 = vld [vmem:[%s10474_s17 + $0x38] sm:$0xf0]  ;;  %s10364_s14 = smov 17   ;;  %s14214_s16 = smov 54  }
  0x21   : > { %v9259_v46 = vor.u32 %v10118_v42, %v9258_v41  ;;  %v10123_v21 = vld [vmem:[%s14089_s1 + $0x18] sm:$0xff]  ;;  %v10124_v41 = vld [vmem:[%s14089_s1 + $0x20] sm:$0xff] }
  0x25   : > { %336 = vrot.lane.b32.xlu1 %v10496_v13, %s10352_s18 }
  0x26   : > { %332 = vrot.lane.b32.xlu0 %v10500_v14, %s10352_s18 }
  0x27   : > { %340 = vrot.lane.b32.xlu2 %v10506_v17, %s10352_s18 }
  0x2d   : > { %344 = vrot.lane.b32.xlu1 %v10514_v22, %s10352_s18 }
  0x2e   : > { %342 = vrot.lane.b32.xlu0 %v10518_v23, %s10352_s18 }
  0x2f   : > { %589 = vrot.lane.b32.xlu2 %v10482_v5, %s10353_s19 }
  0x35   : > { %593 = vrot.lane.b32.xlu1 %v10479_v3, %s10353_s19 }
  0x36   : > { %591 = vrot.lane.b32.xlu0 %v10500_v14, %s10353_s19 }
  0x37   : > { %595 = vrot.lane.b32.xlu2 %v10496_v13, %s10353_s19 }
  0x3d   : > { %599 = vrot.lane.b32.xlu1 %v10506_v17, %s10353_s19 }
  0x3e   : > { %597 = vrot.lane.b32.xlu0 %v10494_v12, %s10353_s19 }
  0x3f   : > { %601 = vrot.lane.b32.xlu2 %v10518_v23, %s10353_s19 }
  0x45   : > { %743 = vrot.lane.b32.xlu1 %v10482_v5, %s10354_s20 }
  0x46   : > { %603 = vrot.lane.b32.xlu0 %v10514_v22, %s10353_s19 }
  0x47   : > { %745 = vrot.lane.b32.xlu2 %v10500_v14, %s10354_s20 }
  0x4d   : > { %749 = vrot.lane.b32.xlu1 %v10496_v13, %s10354_s20 }
  0x4e   : > { %747 = vrot.lane.b32.xlu0 %v10479_v3, %s10354_s20 }
  0x4f   : > { %751 = vrot.lane.b32.xlu2 %v10494_v12, %s10354_s20 }
  0x55   : > { %755 = vrot.lane.b32.xlu1 %v10518_v23, %s10354_s20 }
  0x56   : > { %753 = vrot.lane.b32.xlu0 %v10506_v17, %s10354_s20 }
  0x57   : > { %757 = vrot.lane.b32.xlu2 %v10514_v22, %s10354_s20 }
  0x5d   : > { %899 = vrot.lane.b32.xlu1 %v10500_v14, %s10355_s21 }
  0x5e   : > { %897 = vrot.lane.b32.xlu0 %v10482_v5, %s10355_s21 }
  0x5f   : > { %901 = vrot.lane.b32.xlu2 %v10479_v3, %s10355_s21 }
  0x65   : > { %905 = vrot.lane.b32.xlu1 %v10494_v12, %s10355_s21 }
  0x66   : > { %903 = vrot.lane.b32.xlu0 %v10496_v13, %s10355_s21 }
  0x67   : > { %907 = vrot.lane.b32.xlu2 %v10506_v17, %s10355_s21 }
  0x6d   : > { %911 = vrot.lane.b32.xlu1 %v10514_v22, %s10355_s21 }
  0x6e   : > { %909 = vrot.lane.b32.xlu0 %v10518_v23, %s10355_s21 }
  0x6f   : > { %1051 = vrot.lane.b32.xlu2 %v10482_v5, %s10356_s22 }
  0x75   : > { %1055 = vrot.lane.b32.xlu1 %v10479_v3, %s10356_s22 }
  0x76   : > { %1053 = vrot.lane.b32.xlu0 %v10500_v14, %s10356_s22 }
  0x77   : > { %1057 = vrot.lane.b32.xlu2 %v10496_v13, %s10356_s22 }
  0x79   : > { %v339_v24 = vpop.permute.xlu2 %338 }
  0x7d   : > { %1061 = vrot.lane.b32.xlu1 %v10506_v17, %s10356_s22 }
  0x7e   : > { %1059 = vrot.lane.b32.xlu0 %v10494_v12, %s10356_s22 }
  0x7f   : > { %1063 = vrot.lane.b32.xlu2 %v10518_v23, %s10356_s22 }
  0x81   : > { %v341_v27 = vpop.permute.xlu2 %340 }
  0x82   : > { %v351_v33 = vsel %vm346_vm0, %v339_v24, %v341_v27 }
  0x85   : > { %1205 = vrot.lane.b32.xlu1 %v10482_v5, %s10357_s23 }
  0x86   : > { %1065 = vrot.lane.b32.xlu0 %v10514_v22, %s10356_s22 }
  0x87   : > { %1207 = vrot.lane.b32.xlu2 %v10500_v14, %s10357_s23 }
  0x89   : > { %v590_v40 = vpop.permute.xlu2 %589 }
  0x8d   : > { %1211 = vrot.lane.b32.xlu1 %v10496_v13, %s10357_s23 }
  0x8e   : > { %1209 = vrot.lane.b32.xlu0 %v10479_v3, %s10357_s23 }
  0x8f   : > { %v335_v25 = vpop.permute.xlu1 %334  ;;  %1213 = vrot.lane.b32.xlu2 %v10494_v12, %s10357_s23 }
  0x90   : > { %v331_v26 = vpop.permute.xlu0 %330 }
  0x91   : > { %v596_v49 = vpop.permute.xlu2 %595 }
  0x95   : > { %1217 = vrot.lane.b32.xlu1 %v10518_v23, %s10357_s23 }
  0x96   : > { %1215 = vrot.lane.b32.xlu0 %v10506_v17, %s10357_s23 }
  0x97   : > { %v337_v28 = vpop.permute.xlu1 %336  ;;  %1219 = vrot.lane.b32.xlu2 %v10514_v22, %s10357_s23 }
  0x98   : > { %v333_v29 = vpop.permute.xlu0 %332  ;;  %v349_v30 = vsel %vm346_vm0, %v335_v25, %v337_v28  ;;  %v350_v31 = vsel %vm346_vm0, %v337_v28, %v339_v24 }
  0x99   : > { %v347_v34 = vsel %vm346_vm0, %v331_v26, %v333_v29  ;;  %v348_v35 = vsel %vm346_vm0, %v333_v29, %v335_v25  ;;  %400 = vmatpush.bf16.msra.mxu2 %v349_v30  ;;  %414 = vmatpush.bf16.msra.mxu3 %v350_v31  ;;  %v602_v52 = vpop.permute.xlu2 %601 }
  0x9a   : > { %372 = vmatpush.bf16.msra.mxu0 %v347_v34  ;;  %386 = vmatpush.bf16.msra.mxu1 %v348_v35 }
  0x9c   : > { %9247 = vmatmul.msk.bf16.vlgmr.msra.gmra.mxu2 %vm361_vm1, %v10119_v32  ;;  %9248 = vmatmul.msk.bf16.vlgmr.msra.gmra.mxu3 %vm361_vm1, %v10119_v32 }
  0x9d   : > { %490 = vmatpush.bf16.msrb.mxu3 %v10482_v5  ;;  %9245 = vmatmul.msk.bf16.vlgmr.msra.gmra.mxu0 %vm361_vm1, %v10119_v32 }
  0x9e   : > { %428 = vmatpush.bf16.msrb.mxu0 %v351_v33  ;;  %9246 = vmatmul.msk.bf16.vlgmr.msra.gmra.mxu1 %vm361_vm1, %v10119_v32 }
  0x9f   : > { %v345_v36 = vpop.permute.xlu1 %344  ;;  %1359 = vrot.lane.b32.xlu0 %v10482_v5, %s10358_s9  ;;  %1361 = vrot.lane.b32.xlu1 %v10500_v14, %s10358_s9 }
  0xa0   : > { %v343_v37 = vpop.permute.xlu0 %342  ;;  %1363 = vrot.lane.b32.xlu2 %v10479_v3, %s10358_s9 }
  0xa1   : > { %546 = vmatpush.bf16.msra.mxu3 %v10494_v12  ;;  %v352_v38 = vsel %vm346_vm0, %v341_v27, %v343_v37  ;;  %v353_v39 = vsel %vm346_vm0, %v343_v37, %v345_v36  ;;  %v746_v59 = vpop.permute.xlu2 %745 }
  0xa2   : > { %504 = vmatpush.bf16.msra.mxu0 %v10500_v14  ;;  %442 = vmatpush.bf16.msrb.mxu1 %v352_v38 }
  0xa3   : > { %456 = vmatpush.bf16.msrb.mxu2 %v353_v39 }
  0xa6   : > { %518 = vmatpush.bf16.msra.mxu1 %v10479_v3 }
  0xa7   : > { %532 = vmatpush.bf16.msra.mxu2 %v10496_v13  ;;  %1365 = vrot.lane.b32.xlu0 %v10496_v13, %s10358_s9  ;;  %v594_v44 = vpop.permute.xlu1 %593 }
  0xa8   : > { %1367 = vrot.lane.b32.xlu1 %v10494_v12, %s10358_s9  ;;  %v592_v45 = vpop.permute.xlu0 %591  ;;  %1369 = vrot.lane.b32.xlu2 %v10506_v17, %s10358_s9  ;;  %v608_v53 = vsel %vm605_vm2, %v594_v44, %v596_v49 }
  0xa9   : > { %v606_v47 = vsel %vm605_vm2, %v590_v40, %v592_v45  ;;  %v607_v48 = vsel %vm605_vm2, %v592_v45, %v594_v44  ;;  %v752_v4 = vpop.permute.xlu2 %751 }
  0xac   : > { %9251 = vmatmul.msk.bf16.vlgmr.msrb.gmra.mxu2 %vm361_vm1, %v10119_v32  ;;  %9260 = vmatmul.msk.bf16.vlgmr.msrb.gmra.mxu3 %vm361_vm1, %v10111_v43 }
  0xad   : > { %9249 = vmatmul.msk.bf16.vlgmr.msrb.gmra.mxu0 %vm361_vm1, %v10119_v32  ;;  %630 = vmatpush.bf16.msrb.mxu2 %v606_v47 }
  0xae   : > { %9250 = vmatmul.msk.bf16.vlgmr.msrb.gmra.mxu1 %vm361_vm1, %v10119_v32  ;;  %560 = vmatpush.bf16.msrb.mxu0 %v10506_v17 }
  0xaf   : > { %574 = vmatpush.bf16.msrb.mxu1 %v9259_v46  ;;  %644 = vmatpush.bf16.msrb.mxu3 %v607_v48  ;;  %v600_v50 = vpop.permute.xlu1 %599 }
  0xb0   : > { %1373 = vrot.lane.b32.xlu1 %v10514_v22, %s10358_s9  ;;  %1371 = vrot.lane.b32.xlu0 %v10518_v23, %s10358_s9  ;;  %v598_v51 = vpop.permute.xlu0 %597  ;;  %v611_v56 = vsel %vm605_vm2, %v600_v50, %v602_v52 }
  0xb1   : > { %1513 = vrot.lane.b32.xlu2 %v10482_v5, %s10359_s15  ;;  %v609_v54 = vsel %vm605_vm2, %v596_v49, %v598_v51  ;;  %v610_v55 = vsel %vm605_vm2, %v598_v51, %v600_v50  ;;  %v758_v8 = vpop.permute.xlu2 %757  ;;  %v10792_v50 = vld [vmem:[%s14089_s1 + $0x28] sm:$0xff] }
  0xb7   : > { %v744_v57 = vpop.permute.xlu1 %743 }
  0xb8   : > { %1515 = vrot.lane.b32.xlu0 %v10500_v14, %s10359_s15  ;;  %1517 = vrot.lane.b32.xlu1 %v10479_v3, %s10359_s15  ;;  %v604_v58 = vpop.permute.xlu0 %603  ;;  %v760_v0 = vsel %vm759_vm3, %v744_v57, %v746_v59 }
  0xb9   : > { %1519 = vrot.lane.b32.xlu2 %v10496_v13, %s10359_s15  ;;  %v612_v63 = vsel %vm605_vm2, %v602_v52, %v604_v58  ;;  %v902_v20 = vpop.permute.xlu2 %901 }
  0xbc   : > { %9263 = vmatmul.msk.bf16.vlgmr.msra.gmra.mxu2 %vm361_vm1, %v10111_v43  ;;  %9264 = vmatmul.msk.bf16.vlgmr.msra.gmra.mxu3 %vm361_vm1, %v10111_v43 }
  0xbd   : > { %9261 = vmatmul.msk.bf16.vlgmr.msra.gmra.mxu0 %vm361_vm1, %v10111_v43  ;;  %686 = vmatpush.bf16.msra.mxu2 %v610_v55 }
  0xbe   : > { %9262 = vmatmul.msk.bf16.vlgmr.msra.gmra.mxu1 %vm361_vm1, %v10111_v43  ;;  %658 = vmatpush.bf16.msra.mxu0 %v608_v53 }
  0xbf   : > { %672 = vmatpush.bf16.msra.mxu1 %v609_v54  ;;  %700 = vmatpush.bf16.msra.mxu3 %v611_v56  ;;  %v750_v61 = vpop.permute.xlu1 %749 }
  0xc0   : > { %1521 = vrot.lane.b32.xlu0 %v10494_v12, %s10359_s15  ;;  %1523 = vrot.lane.b32.xlu1 %v10506_v17, %s10359_s15  ;;  %v748_v62 = vpop.permute.xlu0 %747  ;;  %v763_v9 = vsel %vm759_vm3, %v750_v61, %v752_v4 }
  0xc1   : > { %1525 = vrot.lane.b32.xlu2 %v10518_v23, %s10359_s15  ;;  %v761_v1 = vsel %vm759_vm3, %v746_v59, %v748_v62  ;;  %v762_v2 = vsel %vm759_vm3, %v748_v62, %v750_v61  ;;  %v908_v30 = vpop.permute.xlu2 %907 }
  0xc7   : > { %v756_v7 = vpop.permute.xlu1 %755 }
  0xc8   : > { %1527 = vrot.lane.b32.xlu0 %v10514_v22, %s10359_s15  ;;  %1667 = vrot.lane.b32.xlu1 %v10482_v5, %s14110_s8  ;;  %v754_v6 = vpop.permute.xlu0 %753  ;;  %v766_v11 = vsel %vm759_vm3, %v756_v7, %v758_v8 }
  0xc9   : > { %1669 = vrot.lane.b32.xlu2 %v10500_v14, %s14110_s8  ;;  %v764_v10 = vsel %vm759_vm3, %v752_v4, %v754_v6  ;;  %v765_v15 = vsel %vm759_vm3, %v754_v6, %v756_v7  ;;  %v1052_v32 = vpop.permute.xlu2 %1051 }
  0xcc   : > { %9273 = vmatmul.msk.bf16.vlgmr.msrb.gmra.mxu2 %vm361_vm1, %v10674_v60  ;;  %9274 = vmatmul.msk.bf16.vlgmr.msrb.gmra.mxu3 %vm361_vm1, %v10674_v60 }
  0xcd   : > { %9265 = vmatmul.msk.bf16.vlgmr.msrb.gmra.mxu0 %vm361_vm1, %v10111_v43  ;;  %798 = vmatpush.bf16.msrb.mxu2 %v761_v1 }
  0xce   : > { %9266 = vmatmul.msk.bf16.vlgmr.msrb.gmra.mxu1 %vm361_vm1, %v10111_v43  ;;  %714 = vmatpush.bf16.msrb.mxu0 %v612_v63 }
  0xcf   : > { %784 = vmatpush.bf16.msrb.mxu1 %v760_v0  ;;  %812 = vmatpush.bf16.msrb.mxu3 %v762_v2  ;;  %v900_v18 = vpop.permute.xlu1 %899 }
  0xd0   : > { %1671 = vrot.lane.b32.xlu0 %v10479_v3, %s14110_s8  ;;  %1673 = vrot.lane.b32.xlu1 %v10496_v13, %s14110_s8  ;;  %v898_v16 = vpop.permute.xlu0 %897  ;;  %v915_v26 = vsel %vm913_vm4, %v900_v18, %v902_v20 }
  0xd1   : > { %1675 = vrot.lane.b32.xlu2 %v10494_v12, %s14110_s8  ;;  %v914_v25 = vsel %vm913_vm4, %v898_v16, %v900_v18  ;;  %v1058_v39 = vpop.permute.xlu2 %1057 }
  0xd7   : > { %v906_v24 = vpop.permute.xlu1 %905 }
  0xd8   : > { %1677 = vrot.lane.b32.xlu0 %v10506_v17, %s14110_s8  ;;  %1679 = vrot.lane.b32.xlu1 %v10518_v23, %s14110_s8  ;;  %v904_v19 = vpop.permute.xlu0 %903  ;;  %v918_v34 = vsel %vm913_vm4, %v906_v24, %v908_v30 }
  0xd9   : > { %1681 = vrot.lane.b32.xlu2 %v10514_v22, %s14110_s8  ;;  %v916_v27 = vsel %vm913_vm4, %v902_v20, %v904_v19  ;;  %v917_v28 = vsel %vm913_vm4, %v904_v19, %v906_v24  ;;  %v1064_v48 = vpop.permute.xlu2 %1063  ;;  %s14117_s8 = smov 54  }
  0xdc   : > { %9277 = vmatmul.msk.bf16.vlgmr.msra.gmra.mxu2 %vm361_vm1, %v10674_v60  ;;  %9278 = vmatmul.msk.bf16.vlgmr.msra.gmra.mxu3 %vm361_vm1, %v10674_v60 }
  0xdd   : > { %9275 = vmatmul.msk.bf16.vlgmr.msra.gmra.mxu0 %vm361_vm1, %v10674_v60  ;;  %854 = vmatpush.bf16.msra.mxu2 %v765_v15 }
  0xde   : > { %9276 = vmatmul.msk.bf16.vlgmr.msra.gmra.mxu1 %vm361_vm1, %v10674_v60  ;;  %826 = vmatpush.bf16.msra.mxu0 %v763_v9 }
  0xdf   : > { %840 = vmatpush.bf16.msra.mxu1 %v764_v10  ;;  %868 = vmatpush.bf16.msra.mxu3 %v766_v11  ;;  %v912_v31 = vpop.permute.xlu1 %911 }
  0xe0   : > { %1821 = vrot.lane.b32.xlu0 %v10482_v5, %s14096_s13  ;;  %1823 = vrot.lane.b32.xlu1 %v10500_v14, %s14096_s13  ;;  %v910_v29 = vpop.permute.xlu0 %909 }
  0xe1   : > { %1825 = vrot.lane.b32.xlu2 %v10479_v3, %s14096_s13  ;;  %v919_v35 = vsel %vm913_vm4, %v908_v30, %v910_v29  ;;  %v920_v36 = vsel %vm913_vm4, %v910_v29, %v912_v31  ;;  %v1208_v51 = vpop.permute.xlu2 %1207  ;;  %v10864_v30 = vld [vmem:[%s14089_s1 + $0x30] sm:$0xff] }
  0xe7   : > { %v1056_v38 = vpop.permute.xlu1 %1055 }
  0xe8   : > { %1827 = vrot.lane.b32.xlu0 %v10496_v13, %s14096_s13  ;;  %1829 = vrot.lane.b32.xlu1 %v10494_v12, %s14096_s13  ;;  %v1054_v33 = vpop.permute.xlu0 %1053  ;;  %v1070_v44 = vsel %vm1067_vm5, %v1056_v38, %v1058_v39 }
  0xe9   : > { %1831 = vrot.lane.b32.xlu2 %v10506_v17, %s14096_s13  ;;  %v1068_v37 = vsel %vm1067_vm5, %v1052_v32, %v1054_v33  ;;  %v1069_v43 = vsel %vm1067_vm5, %v1054_v33, %v1056_v38  ;;  %v1214_v0 = vpop.permute.xlu2 %1213 }
  0xec   : > { %9287 = vmatmul.msk.bf16.vlgmr.msrb.gmra.mxu2 %vm361_vm1, %v10123_v21  ;;  %9288 = vmatmul.msk.bf16.vlgmr.msrb.gmra.mxu3 %vm361_vm1, %v10123_v21 }
  0xed   : > { %9279 = vmatmul.msk.bf16.vlgmr.msrb.gmra.mxu0 %vm361_vm1, %v10674_v60  ;;  %966 = vmatpush.bf16.msrb.mxu2 %v916_v27 }
  0xee   : > { %9286 = vmatmul.msk.bf16.vlgmr.msrb.gmra.mxu1 %vm361_vm1, %v10123_v21  ;;  %938 = vmatpush.bf16.msrb.mxu0 %v914_v25 }
  0xef   : > { %952 = vmatpush.bf16.msrb.mxu1 %v915_v26  ;;  %980 = vmatpush.bf16.msrb.mxu3 %v917_v28  ;;  %v1062_v42 = vpop.permute.xlu1 %1061 }
  0xf0   : > { %1833 = vrot.lane.b32.xlu0 %v10518_v23, %s14096_s13  ;;  %1835 = vrot.lane.b32.xlu1 %v10514_v22, %s14096_s13  ;;  %v1060_v40 = vpop.permute.xlu0 %1059  ;;  %s14098_s13 = smov 18   ;;  %v1073_v55 = vsel %vm1067_vm5, %v1062_v42, %v1064_v48 }
  0xf1   : > { %1975 = vrot.lane.b32.xlu2 %v10482_v5, %s14100_s29  ;;  %v1071_v45 = vsel %vm1067_vm5, %v1058_v39, %v1060_v40  ;;  %v1072_v46 = vsel %vm1067_vm5, %v1060_v40, %v1062_v42 }
  0xf7   : > { %v1206_v49 = vpop.permute.xlu1 %1205 }
  0xf8   : > { %1977 = vrot.lane.b32.xlu0 %v10500_v14, %s14100_s29  ;;  %1979 = vrot.lane.b32.xlu1 %v10479_v3, %s14100_s29  ;;  %v1066_v47 = vpop.permute.xlu0 %1065  ;;  %v1222_v57 = vsel %vm1221_vm6, %v1206_v49, %v1208_v51 }
  0xf9   : > { %1981 = vrot.lane.b32.xlu2 %v10496_v13, %s14100_s29  ;;  %v1074_v56 = vsel %vm1067_vm5, %v1064_v48, %v1066_v47 }
  0xfc   : > { %9291 = vmatmul.msk.bf16.vlgmr.msra.gmra.mxu2 %vm361_vm1, %v10123_v21  ;;  %9292 = vmatmul.msk.bf16.vlgmr.msra.gmra.mxu3 %vm361_vm1, %v10123_v21 }
  0xfd   : > { %9289 = vmatmul.msk.bf16.vlgmr.msra.gmra.mxu0 %vm361_vm1, %v10123_v21  ;;  %1022 = vmatpush.bf16.msra.mxu2 %v920_v36 }
  0xfe   : > { %9290 = vmatmul.msk.bf16.vlgmr.msra.gmra.mxu1 %vm361_vm1, %v10123_v21  ;;  %994 = vmatpush.bf16.msra.mxu0 %v918_v34  ;;  %v1220_v21 = vpop.permute.xlu2 %1219 }
  0xff   : > { %1008 = vmatpush.bf16.msra.mxu1 %v919_v35  ;;  %1092 = vmatpush.bf16.msra.mxu3 %v1068_v37  ;;  %v1212_v61 = vpop.permute.xlu1 %1211 }
 0x100   : > { %1983 = vrot.lane.b32.xlu0 %v10494_v12, %s14100_s29  ;;  %1985 = vrot.lane.b32.xlu1 %v10506_v17, %s14100_s29  ;;  %v1210_v52 = vpop.permute.xlu0 %1209  ;;  %v1225_v10 = vsel %vm1221_vm6, %v1212_v61, %v1214_v0 }
 0x101   : > { %1987 = vrot.lane.b32.xlu2 %v10518_v23, %s14100_s29  ;;  %v1223_v58 = vsel %vm1221_vm6, %v1208_v51, %v1210_v52  ;;  %v1224_v9 = vsel %vm1221_vm6, %v1210_v52, %v1212_v61 }
 0x106   : > { %v1364_v31 = vpop.permute.xlu2 %1363 }
 0x107   : > { %v1218_v6 = vpop.permute.xlu1 %1217 }
 0x108   : > { %1989 = vrot.lane.b32.xlu0 %v10514_v22, %s14100_s29  ;;  %2129 = vrot.lane.b32.xlu1 %v10482_v5, %s14098_s13  ;;  %v1216_v4 = vpop.permute.xlu0 %1215  ;;  %s14102_s29 = smov 16   ;;  %v1228_v37 = vsel %vm1221_vm6, %v1218_v6, %v1220_v21 }
 0x109   : > { %2131 = vrot.lane.b32.xlu2 %v10500_v14, %s14098_s13  ;;  %v1226_v11 = vsel %vm1221_vm6, %v1214_v0, %v1216_v4  ;;  %v1227_v15 = vsel %vm1221_vm6, %v1216_v4, %v1218_v6 }
 0x10c   : > { %9301 = vmatmul.msk.bf16.vlgmr.msrb.gmra.mxu2 %vm361_vm1, %v10124_v41  ;;  %9302 = vmatmul.msk.bf16.vlgmr.msrb.gmra.mxu3 %vm361_vm1, %v10124_v41 }
 0x10d   : > { %9299 = vmatmul.msk.bf16.vlgmr.msrb.gmra.mxu0 %vm361_vm1, %v10124_v41  ;;  %1134 = vmatpush.bf16.msrb.mxu2 %v1071_v45 }
 0x10e   : > { %9300 = vmatmul.msk.bf16.vlgmr.msrb.gmra.mxu1 %vm361_vm1, %v10124_v41  ;;  %1106 = vmatpush.bf16.msrb.mxu0 %v1069_v43 }
 0x10f   : > { %1120 = vmatpush.bf16.msrb.mxu1 %v1070_v44  ;;  %1148 = vmatpush.bf16.msrb.mxu3 %v1072_v46 }
 0x110   : > { %2133 = vrot.lane.b32.xlu0 %v10479_v3, %s14098_s13  ;;  %2135 = vrot.lane.b32.xlu1 %v10496_v13, %s14098_s13 }
 0x111   : > { %2137 = vrot.lane.b32.xlu2 %v10494_v12, %s14098_s13  ;;  %v1360_v20 = vpop.permute.xlu0 %1359  ;;  %v1362_v26 = vpop.permute.xlu1 %1361 }
 0x112   : > { %v1376_v38 = vsel %vm1375_vm7, %v1360_v20, %v1362_v26  ;;  %v1377_v39 = vsel %vm1375_vm7, %v1362_v26, %v1364_v31  ;;  %v10127_v26 = vld [vmem:[%s14089_s1 + $0x38] sm:$0xff] }
 0x118   : > { %2139 = vrot.lane.b32.xlu0 %v10506_v17, %s14098_s13  ;;  %2141 = vrot.lane.b32.xlu1 %v10518_v23, %s14098_s13 }
 0x119   : > { %2143 = vrot.lane.b32.xlu2 %v10514_v22, %s14098_s13  ;;  %v1366_v32 = vpop.permute.xlu0 %1365  ;;  %s14104_s13 = smov 8  }
 0x11a   : > { %v374_v53 = vpop.f32.mrf.mxu0  ;;  %v1378_v40 = vsel %vm1375_vm7, %v1364_v31, %v1366_v32  ;;  %v1368_v45 = vpop.permute.xlu1 %1367 }
 0x11b   : > { %v10800_v54 = vpop.f32.mrf.mxu1  ;;  %v1379_v61 = vsel %vm1375_vm7, %v1366_v32, %v1368_v45 }
 0x11c   : > { %9305 = vmatmul.msk.bf16.vlgmr.msra.gmra.mxu2 %vm361_vm1, %v10124_v41  ;;  %9312 = vmatmul.msk.bf16.vlgmr.msra.gmra.mxu3 %vm361_vm1, %v10792_v50 }
 0x11d   : > { %9303 = vmatmul.msk.bf16.vlgmr.msra.gmra.mxu0 %vm361_vm1, %v10124_v41  ;;  %1246 = vmatpush.bf16.msra.mxu2 %v1222_v57 }
 0x11e   : > { %9304 = vmatmul.msk.bf16.vlgmr.msra.gmra.mxu1 %vm361_vm1, %v10124_v41  ;;  %1162 = vmatpush.bf16.msra.mxu0 %v1073_v55 }
 0x11f   : > { %1176 = vmatpush.bf16.msra.mxu1 %v1074_v56  ;;  %v402_v59 = vpop.f32.mrf.mxu2  ;;  %v10811_v60 = vpop.f32.mrf.mxu3  ;;  %1260 = vmatpush.bf16.msra.mxu3 %v1223_v58 }
 0x120   : > { %2285 = vrot.lane.b32.xlu1 %v10500_v14, %s10364_s14  ;;  %2283 = vrot.lane.b32.xlu0 %v10482_v5, %s10364_s14 }
 0x121   : > { %2287 = vrot.lane.b32.xlu2 %v10479_v3, %s10364_s14 }
 0x122   : > { %v376_v62 = vpop.f32.mrf.mxu0  ;;  %v1372_v55 = vpop.permute.xlu0 %1371 }
 0x123   : > { %v10819_v63 = vpop.f32.mrf.mxu1  ;;  %v1374_v56 = vpop.permute.xlu1 %1373 }
 0x124   : > { %v1382_v0 = vsel %vm1375_vm7, %v1372_v55, %v1374_v56 }
 0x127   : > { %v10821_v1 = vpop.f32.mrf.mxu2  ;;  %v10823_v2 = vpop.f32.mrf.mxu3 }
 0x128   : > { %2289 = vrot.lane.b32.xlu0 %v10496_v13, %s10364_s14  ;;  %2291 = vrot.lane.b32.xlu1 %v10494_v12, %s10364_s14 }
 0x129   : > { %2293 = vrot.lane.b32.xlu2 %v10506_v17, %s10364_s14 }
 0x12a   : > { %v430_v7 = vpop.f32.mrf.mxu0 }
 0x12b   : > { %v10831_v8 = vpop.f32.mrf.mxu1 }
 0x12c   : > { %9315 = vmatmul.msk.bf16.vlgmr.msrb.gmra.mxu2 %vm361_vm1, %v10792_v50  ;;  %9316 = vmatmul.msk.bf16.vlgmr.msrb.gmra.mxu3 %vm361_vm1, %v10792_v50 }
 0x12d   : > { %9313 = vmatmul.msk.bf16.vlgmr.msrb.gmra.mxu0 %vm361_vm1, %v10792_v50  ;;  %1302 = vmatpush.bf16.msrb.mxu2 %v1226_v11 }
 0x12e   : > { %9314 = vmatmul.msk.bf16.vlgmr.msrb.gmra.mxu1 %vm361_vm1, %v10792_v50  ;;  %1274 = vmatpush.bf16.msrb.mxu0 %v1224_v9 }
 0x12f   : > { %1288 = vmatpush.bf16.msrb.mxu1 %v1225_v10  ;;  %v10845_v16 = vpop.f32.mrf.mxu2  ;;  %v492_v18 = vpop.f32.mrf.mxu3  ;;  %1316 = vmatpush.bf16.msrb.mxu3 %v1227_v15 }
 0x130   : > { %v10847_v19 = vadd.f32 %v492_v18, %v374_v53  ;;  %2295 = vrot.lane.b32.xlu0 %v10518_v23, %s10364_s14  ;;  %2297 = vrot.lane.b32.xlu1 %v10514_v22, %s10364_s14  ;;  %v1518_v18 = vpop.permute.xlu1 %1517 }
 0x131   : > { %2437 = vrot.lane.b32.xlu2 %v10482_v5, %s14102_s29 }
 0x132   : > { %v432_v24 = vpop.f32.mrf.mxu0 }
 0x133   : > { %v10855_v25 = vpop.f32.mrf.mxu1 }
 0x137   : > { %v494_v27 = vpop.f32.mrf.mxu3  ;;  %v10857_v28 = vpop.f32.mrf.mxu2 }
 0x138   : > { %v10859_v29 = vadd.f32 %v494_v27, %v376_v62  ;;  %2441 = vrot.lane.b32.xlu1 %v10479_v3, %s14102_s29  ;;  %2439 = vrot.lane.b32.xlu0 %v10500_v14, %s14102_s29 }
 0x139   : > { %2443 = vrot.lane.b32.xlu2 %v10496_v13, %s14102_s29 }
 0x13a   : > { %v506_v33 = vpop.f32.mrf.mxu0 }
 0x13b   : > { %v520_v34 = vpop.f32.mrf.mxu1  ;;  %v507_v35 = vadd.f32 %v506_v33, %v10800_v54 }
 0x13c   : > { %v10873_v36 = vadd.f32 %v520_v34, %v402_v59  ;;  %9325 = vmatmul.msk.bf16.vlgmr.msra.gmra.mxu2 %vm361_vm1, %v10864_v30  ;;  %9326 = vmatmul.msk.bf16.vlgmr.msra.gmra.mxu3 %vm361_vm1, %v10864_v30 }
 0x13d   : > { %9317 = vmatmul.msk.bf16.vlgmr.msra.gmra.mxu0 %vm361_vm1, %v10792_v50  ;;  %1414 = vmatpush.bf16.msra.mxu2 %v1377_v39 }
 0x13e   : > { %9318 = vmatmul.msk.bf16.vlgmr.msra.gmra.mxu1 %vm361_vm1, %v10792_v50  ;;  %1330 = vmatpush.bf16.msra.mxu0 %v1228_v37  ;;  %v1370_v50 = vpop.permute.xlu2 %1369 }
 0x13f   : > { %1400 = vmatpush.bf16.msra.mxu1 %v1376_v38  ;;  %v534_v41 = vpop.f32.mrf.mxu2  ;;  %v548_v42 = vpop.f32.mrf.mxu3  ;;  %1428 = vmatpush.bf16.msra.mxu3 %v1378_v40  ;;  %v1380_v62 = vsel %vm1375_vm7, %v1368_v45, %v1370_v50 }
 0x140   : > { %v10888_v43 = vadd.f32 %v534_v41, %v10811_v60  ;;  %v10890_v44 = vadd.f32 %v548_v42, %v430_v7  ;;  %2445 = vrot.lane.b32.xlu0 %v10494_v12, %s14102_s29  ;;  %2447 = vrot.lane.b32.xlu1 %v10506_v17, %s14102_s29 }
 0x141   : > { %2449 = vrot.lane.b32.xlu2 %v10518_v23, %s14102_s29 }
 0x142   : > { %v508_v46 = vpop.f32.mrf.mxu0 }
 0x143   : > { %v522_v47 = vpop.f32.mrf.mxu1  ;;  %v509_v48 = vadd.f32 %v508_v46, %v10819_v63  ;;  %v1381_v63 = vsel %vm1375_vm7, %v1370_v50, %v1372_v55 }
 0x144   : > { %v10900_v49 = vadd.f32 %v522_v47, %v10821_v1 }
 0x146   : > { %v1514_v1 = vpop.permute.xlu2 %1513 }
 0x147   : > { %v550_v51 = vpop.f32.mrf.mxu3  ;;  %v536_v52 = vpop.f32.mrf.mxu2 }
 0x148   : > { %v10902_v53 = vadd.f32 %v550_v51, %v432_v24  ;;  %v10905_v54 = vadd.f32 %v536_v52, %v10823_v2  ;;  %2451 = vrot.lane.b32.xlu0 %v10514_v22, %s14102_s29  ;;  %2591 = vrot.lane.b32.xlu1 %v10482_v5, %s14104_s13  ;;  %s14106_s29 = smov 7  }
 0x149   : > { %2593 = vrot.lane.b32.xlu2 %v10500_v14, %s14104_s13 }
 0x14a   : > { %v562_v57 = vpop.f32.mrf.mxu0 }
 0x14b   : > { %v576_v58 = vpop.f32.mrf.mxu1  ;;  %v563_v59 = vadd.f32 %v562_v57, %v10831_v8  ;;  %v1516_v8 = vpop.permute.xlu0 %1515 }
 0x14c   : > { %v10915_v60 = vadd.f32 %v576_v58, %v10845_v16  ;;  %9329 = vmatmul.msk.bf16.vlgmr.msrb.gmra.mxu2 %vm361_vm1, %v10864_v30  ;;  %9330 = vmatmul.msk.bf16.vlgmr.msrb.gmra.mxu3 %vm361_vm1, %v10864_v30  ;;  %v1530_v32 = vsel %vm14144_vm8, %v1514_v1, %v1516_v8  ;;  %v1531_v33 = vsel %vm14144_vm8, %v1516_v8, %v1518_v18 }
 0x14d   : > { %9327 = vmatmul.msk.bf16.vlgmr.msrb.gmra.mxu0 %vm361_vm1, %v10864_v30  ;;  %1470 = vmatpush.bf16.msrb.mxu2 %v1381_v63 }
 0x14e   : > { %9328 = vmatmul.msk.bf16.vlgmr.msrb.gmra.mxu1 %vm361_vm1, %v10864_v30  ;;  %1442 = vmatpush.bf16.msrb.mxu0 %v1379_v61  ;;  %v1520_v16 = vpop.permute.xlu2 %1519 }
 0x14f   : > { %1456 = vmatpush.bf16.msrb.mxu1 %v1380_v62  ;;  %v632_v2 = vpop.f32.mrf.mxu2  ;;  %v646_v4 = vpop.f32.mrf.mxu3  ;;  %1484 = vmatpush.bf16.msrb.mxu3 %v1382_v0  ;;  %v1532_v34 = vsel %vm14144_vm8, %v1518_v18, %v1520_v16  ;;  %v10128_v18 = vld [vmem:[%s14089_s1 + $0x40] sm:$0xff] }
 0x150   : > { %v10930_v6 = vadd.f32 %v632_v2, %v10847_v19  ;;  %v10932_v7 = vadd.f32 %v646_v4, %v507_v35  ;;  %2597 = vrot.lane.b32.xlu1 %v10496_v13, %s14104_s13  ;;  %2595 = vrot.lane.b32.xlu0 %v10479_v3, %s14104_s13 }
 0x151   : > { %2599 = vrot.lane.b32.xlu2 %v10494_v12, %s14104_s13 }
 0x152   : > { %v564_v9 = vpop.f32.mrf.mxu0 }
 0x153   : > { %v578_v10 = vpop.f32.mrf.mxu1  ;;  %v565_v11 = vadd.f32 %v564_v9, %v10855_v25  ;;  %v1522_v25 = vpop.permute.xlu0 %1521 }
 0x154   : > { %v10942_v15 = vadd.f32 %v578_v10, %v10857_v28  ;;  %v1533_v35 = vsel %vm14144_vm8, %v1520_v16, %v1522_v25 }
 0x157   : > { %v634_v19 = vpop.f32.mrf.mxu2  ;;  %v648_v20 = vpop.f32.mrf.mxu3 }
 0x158   : > { %v10945_v21 = vadd.f32 %v634_v19, %v10859_v29  ;;  %v10947_v24 = vadd.f32 %v648_v20, %v509_v48  ;;  %2601 = vrot.lane.b32.xlu0 %v10506_v17, %s14104_s13  ;;  %2603 = vrot.lane.b32.xlu1 %v10518_v23, %s14104_s13 }
 0x159   : > { %2605 = vrot.lane.b32.xlu2 %v10514_v22, %s14104_s13  ;;  %s14112_s13 = smov 56  }
 0x15a   : > { %v660_v27 = vpop.f32.mrf.mxu0 }
 0x15b   : > { %v674_v28 = vpop.f32.mrf.mxu1  ;;  %v723_v29 = vadd.f32 %v660_v27, %v10873_v36  ;;  %v1526_v36 = vpop.permute.xlu2 %1525 }
 0x15c   : > { %v10960_v31 = vadd.f32 %v674_v28, %v10888_v43  ;;  %9339 = vmatmul.msk.bf16.vlgmr.msra.gmra.mxu2 %vm361_vm1, %v10127_v26  ;;  %9340 = vmatmul.msk.bf16.vlgmr.msra.gmra.mxu3 %vm361_vm1, %v10127_v26  ;;  %v1528_v45 = vpop.permute.xlu0 %1527 }
 0x15d   : > { %9331 = vmatmul.msk.bf16.vlgmr.msra.gmra.mxu0 %vm361_vm1, %v10864_v30  ;;  %1582 = vmatpush.bf16.msra.mxu2 %v1532_v34  ;;  %v1524_v30 = vpop.permute.xlu1 %1523  ;;  %v1536_v58 = vsel %vm14144_vm8, %v1526_v36, %v1528_v45 }
 0x15e   : > { %9338 = vmatmul.msk.bf16.vlgmr.msra.gmra.mxu1 %vm361_vm1, %v10127_v26  ;;  %1554 = vmatpush.bf16.msra.mxu0 %v1530_v32  ;;  %v1534_v56 = vsel %vm14144_vm8, %v1522_v25, %v1524_v30  ;;  %v1535_v57 = vsel %vm14144_vm8, %v1524_v30, %v1526_v36  ;;  %vm4619_vm8 = vcmask 1043456  }
 0x15f   : > { %1568 = vmatpush.bf16.msra.mxu1 %v1531_v33  ;;  %v688_v37 = vpop.f32.mrf.mxu2  ;;  %v702_v38 = vpop.f32.mrf.mxu3  ;;  %1596 = vmatpush.bf16.msra.mxu3 %v1533_v35 }
 0x160   : > { %v10972_v39 = vadd.f32 %v688_v37, %v10890_v44  ;;  %v10974_v40 = vadd.f32 %v702_v38, %v563_v59  ;;  %2747 = vrot.lane.b32.xlu1 %v10500_v14, %s14106_s29  ;;  %2745 = vrot.lane.b32.xlu0 %v10482_v5, %s14106_s29 }
 0x161   : > { %2749 = vrot.lane.b32.xlu2 %v10479_v3, %s14106_s29 }
 0x162   : > { %v662_v41 = vpop.f32.mrf.mxu0 }
 0x163   : > { %v676_v42 = vpop.f32.mrf.mxu1  ;;  %v730_v43 = vadd.f32 %v662_v41, %v10900_v49  ;;  %v1670_v52 = vpop.permute.xlu2 %1669 }
 0x164   : > { %v10984_v44 = vadd.f32 %v676_v42, %v10905_v54  ;;  %v1672_v0 = vpop.permute.xlu0 %1671 }
 0x165   : > { %v1668_v51 = vpop.permute.xlu1 %1667 }
 0x166   : > { %v1684_v59 = vsel %vm14143_vm9, %v1668_v51, %v1670_v52 }
 0x167   : > { %v690_v46 = vpop.f32.mrf.mxu2  ;;  %v704_v47 = vpop.f32.mrf.mxu3 }
 0x168   : > { %v10987_v48 = vadd.f32 %v690_v46, %v10902_v53  ;;  %v10989_v50 = vadd.f32 %v704_v47, %v565_v11  ;;  %2753 = vrot.lane.b32.xlu1 %v10494_v12, %s14106_s29  ;;  %2751 = vrot.lane.b32.xlu0 %v10496_v13, %s14106_s29 }
 0x169   : > { %2755 = vrot.lane.b32.xlu2 %v10506_v17, %s14106_s29 }
 0x16a   : > { %v716_v49 = vpop.f32.mrf.mxu0 }
 0x16b   : > { %v786_v54 = vpop.f32.mrf.mxu1  ;;  %v727_v55 = vadd.f32 %v716_v49, %v10915_v60 }
 0x16c   : > { %v10999_v53 = vadd.f32 %v786_v54, %v10930_v6  ;;  %9343 = vmatmul.msk.bf16.vlgmr.msrb.gmra.mxu2 %vm361_vm1, %v10127_v26  ;;  %9344 = vmatmul.msk.bf16.vlgmr.msrb.gmra.mxu3 %vm361_vm1, %v10127_v26 }
 0x16d   : > { %9341 = vmatmul.msk.bf16.vlgmr.msrb.gmra.mxu0 %vm361_vm1, %v10127_v26  ;;  %1638 = vmatpush.bf16.msrb.mxu2 %v1536_v58  ;;  %v1674_v8 = vpop.permute.xlu1 %1673 }
 0x16e   : > { %9342 = vmatmul.msk.bf16.vlgmr.msrb.gmra.mxu1 %vm361_vm1, %v10127_v26  ;;  %1610 = vmatpush.bf16.msrb.mxu0 %v1534_v56  ;;  %v1685_v26 = vsel %vm14143_vm9, %v1670_v52, %v1672_v0  ;;  %v1686_v25 = vsel %vm14143_vm9, %v1672_v0, %v1674_v8 }
 0x16f   : > { %1624 = vmatpush.bf16.msrb.mxu1 %v1535_v57  ;;  %v800_v60 = vpop.f32.mrf.mxu2  ;;  %v814_v61 = vpop.f32.mrf.mxu3  ;;  %1708 = vmatpush.bf16.msrb.mxu3 %v1684_v59 }
 0x170   : > { %v11010_v62 = vadd.f32 %v800_v60, %v10932_v7  ;;  %v11012_v63 = vadd.f32 %v814_v61, %v723_v29  ;;  %2757 = vrot.lane.b32.xlu0 %v10518_v23, %s14106_s29  ;;  %2759 = vrot.lane.b32.xlu1 %v10514_v22, %s14106_s29  ;;  %v1676_v7 = vpop.permute.xlu2 %1675  ;;  %s14108_s29 = smov 6  }
 0x171   : > { %2899 = vrot.lane.b32.xlu2 %v10482_v5, %s14108_s29 }
 0x172   : > { %v718_v1 = vpop.f32.mrf.mxu0 }
 0x173   : > { %v788_v2 = vpop.f32.mrf.mxu1  ;;  %v734_v4 = vadd.f32 %v718_v1, %v10942_v15  ;;  %v1678_v15 = vpop.permute.xlu0 %1677 }
 0x174   : > { %v11022_v6 = vadd.f32 %v788_v2, %v10945_v21 }
 0x175   : > { %v1680_v32 = vpop.permute.xlu1 %1679 }
 0x176   : > { %v1689_v45 = vsel %vm14143_vm9, %v1678_v15, %v1680_v32 }
 0x177   : > { %v802_v9 = vpop.f32.mrf.mxu2  ;;  %v816_v10 = vpop.f32.mrf.mxu3 }
 0x178   : > { %v11025_v11 = vadd.f32 %v802_v9, %v10947_v24  ;;  %v11027_v16 = vadd.f32 %v816_v10, %v730_v43  ;;  %2901 = vrot.lane.b32.xlu0 %v10500_v14, %s14108_s29  ;;  %2903 = vrot.lane.b32.xlu1 %v10479_v3, %s14108_s29  ;;  %v1687_v3 = vsel %vm14143_vm9, %v1674_v8, %v1676_v7  ;;  %v1682_v5 = vpop.permute.xlu2 %1681 }
 0x179   : > { %v1688_v14 = vsel %vm14143_vm9, %v1676_v7, %v1678_v15  ;;  %2905 = vrot.lane.b32.xlu2 %v10496_v13, %s14108_s29  ;;  %v1690_v46 = vsel %vm14143_vm9, %v1680_v32, %v1682_v5 }
 0x17a   : > { %v828_v19 = vpop.f32.mrf.mxu0 }
 0x17b   : > { %v842_v20 = vpop.f32.mrf.mxu1  ;;  %v878_v21 = vadd.f32 %v828_v19, %v10960_v31  ;;  %v1822_v37 = vpop.permute.xlu0 %1821 }
 0x17c   : > { %v11040_v24 = vadd.f32 %v842_v20, %v10972_v39  ;;  %9353 = vmatmul.msk.bf16.vlgmr.msra.gmra.mxu2 %vm361_vm1, %v10128_v18  ;;  %9354 = vmatmul.msk.bf16.vlgmr.msra.gmra.mxu3 %vm361_vm1, %v10128_v18 }
 0x17d   : > { %9351 = vmatmul.msk.bf16.vlgmr.msra.gmra.mxu0 %vm361_vm1, %v10128_v18  ;;  %1750 = vmatpush.bf16.msra.mxu2 %v1687_v3  ;;  %v1824_v13 = vpop.permute.xlu1 %1823 }
 0x17e   : > { %9352 = vmatmul.msk.bf16.vlgmr.msra.gmra.mxu1 %vm361_vm1, %v10128_v18  ;;  %1722 = vmatpush.bf16.msra.mxu0 %v1685_v26 }
 0x17f   : > { %1736 = vmatpush.bf16.msra.mxu1 %v1686_v25  ;;  %v856_v27 = vpop.f32.mrf.mxu2  ;;  %v870_v28 = vpop.f32.mrf.mxu3  ;;  %1764 = vmatpush.bf16.msra.mxu3 %v1688_v14 }
 0x180   : > { %v880_v29 = vadd.f32 %v856_v27, %v10974_v40  ;;  %v11051_v31 = vadd.f32 %v870_v28, %v727_v55  ;;  %2909 = vrot.lane.b32.xlu1 %v10506_v17, %s14108_s29  ;;  %2907 = vrot.lane.b32.xlu0 %v10494_v12, %s14108_s29  ;;  %v11071_v12 = vld [vmem:[%s14089_s1 + $0x48] sm:$0xff]  ;;  %v1826_v30 = vpop.permute.xlu2 %1825  ;;  %v11130_v27 = vld [vmem:[%s14089_s1 + $0x50] sm:$0xff] }
 0x181   : > { %2911 = vrot.lane.b32.xlu2 %v10518_v23, %s14108_s29  ;;  %v1839_v23 = vsel %vm14142_vm10, %v1824_v13, %v1826_v30 }
 0x182   : > { %v830_v33 = vpop.f32.mrf.mxu0 }
 0x183   : > { %v844_v34 = vpop.f32.mrf.mxu1  ;;  %v885_v35 = vadd.f32 %v830_v33, %v10984_v44  ;;  %v1828_v52 = vpop.permute.xlu0 %1827 }
 0x184   : > { %v11061_v36 = vadd.f32 %v844_v34, %v10987_v48 }
 0x185   : > { %v1830_v57 = vpop.permute.xlu1 %1829 }
 0x187   : > { %v858_v38 = vpop.f32.mrf.mxu2  ;;  %v872_v39 = vpop.f32.mrf.mxu3 }
 0x188   : > { %v11064_v40 = vadd.f32 %v858_v38, %v10989_v50  ;;  %v11066_v17 = vadd.f32 %v872_v39, %v734_v4  ;;  %2913 = vrot.lane.b32.xlu0 %v10514_v22, %s14108_s29  ;;  %v1838_v22 = vsel %vm14142_vm10, %v1822_v37, %v1824_v13  ;;  %v1832_v56 = vpop.permute.xlu2 %1831  ;;  %v1840_v4 = vsel %vm14142_vm10, %v1826_v30, %v1828_v52  ;;  %s14114_s29 = smov 55  }
 0x189   : > { %v1842_v7 = vsel %vm14142_vm10, %v1830_v57, %v1832_v56 }
 0x18a   : > { %v940_v41 = vpop.f32.mrf.mxu0 }
 0x18b   : > { %v954_v42 = vpop.f32.mrf.mxu1  ;;  %v1029_v43 = vadd.f32 %v940_v41, %v10999_v53 }
 0x18c   : > { %v11079_v44 = vadd.f32 %v954_v42, %v11010_v62  ;;  %9357 = vmatmul.msk.bf16.vlgmr.msrb.gmra.mxu2 %vm361_vm1, %v10128_v18  ;;  %9364 = vmatmul.msk.bf16.vlgmr.msrb.gmra.mxu3 %vm361_vm1, %v11071_v12  ;;  %v1834_v62 = vpop.permute.xlu0 %1833 }
 0x18d   : > { %9355 = vmatmul.msk.bf16.vlgmr.msrb.gmra.mxu0 %vm361_vm1, %v10128_v18  ;;  %1862 = vmatpush.bf16.msrb.mxu2 %v1838_v22  ;;  %v1843_v8 = vsel %vm14142_vm10, %v1832_v56, %v1834_v62  ;;  %v1836_v15 = vpop.permute.xlu1 %1835 }
 0x18e   : > { %9356 = vmatmul.msk.bf16.vlgmr.msrb.gmra.mxu1 %vm361_vm1, %v10128_v18  ;;  %1778 = vmatpush.bf16.msrb.mxu0 %v1689_v45 }
 0x18f   : > { %1792 = vmatpush.bf16.msrb.mxu1 %v1690_v46  ;;  %v968_v47 = vpop.f32.mrf.mxu2  ;;  %v982_v48 = vpop.f32.mrf.mxu3  ;;  %1876 = vmatpush.bf16.msrb.mxu3 %v1839_v23 }
 0x190   : > { %v1031_v50 = vadd.f32 %v968_v47, %v11012_v63  ;;  %v11091_v51 = vadd.f32 %v982_v48, %v878_v21  ;;  %v1976_v9 = vpop.permute.xlu2 %1975 }
 0x192   : > { %v942_v49 = vpop.f32.mrf.mxu0 }
 0x193   : > { %v956_v54 = vpop.f32.mrf.mxu1  ;;  %v1036_v55 = vadd.f32 %v942_v49, %v11022_v6  ;;  %v1841_v6 = vsel %vm14142_vm10, %v1828_v52, %v1830_v57 }
 0x194   : > { %v11095_v53 = vadd.f32 %v956_v54, %v11025_v11  ;;  %v1978_v26 = vpop.permute.xlu0 %1977 }
 0x195   : > { %v1980_v28 = vpop.permute.xlu1 %1979 }
 0x196   : > { %v1993_v37 = vsel %vm14141_vm11, %v1978_v26, %v1980_v28 }
 0x197   : > { %v970_v58 = vpop.f32.mrf.mxu2  ;;  %v984_v59 = vpop.f32.mrf.mxu3 }
 0x198   : > { %v1038_v60 = vadd.f32 %v970_v58, %v11027_v16  ;;  %v11098_v61 = vadd.f32 %v984_v59, %v885_v35  ;;  %v1844_v35 = vsel %vm14142_vm10, %v1834_v62, %v1836_v15  ;;  %vm4569_vm10 = vcmask 904192  }
 0x19a   : > { %v996_v63 = vpop.f32.mrf.mxu0 }
 0x19b   : > { %v1010_v0 = vpop.f32.mrf.mxu1  ;;  %v1033_v1 = vadd.f32 %v996_v63, %v11040_v24 }
 0x19c   : > { %v11101_v2 = vadd.f32 %v1010_v0, %v880_v29  ;;  %9367 = vmatmul.msk.bf16.vlgmr.msra.gmra.mxu2 %vm361_vm1, %v11071_v12  ;;  %9368 = vmatmul.msk.bf16.vlgmr.msra.gmra.mxu3 %vm361_vm1, %v11071_v12  ;;  %v1982_v29 = vpop.permute.xlu2 %1981  ;;  %v1984_v30 = vpop.permute.xlu0 %1983 }
 0x19d   : > { %9365 = vmatmul.msk.bf16.vlgmr.msra.gmra.mxu0 %vm361_vm1, %v11071_v12  ;;  %1918 = vmatpush.bf16.msra.mxu2 %v1842_v7  ;;  %v1994_v38 = vsel %vm14141_vm11, %v1980_v28, %v1982_v29  ;;  %v1986_v46 = vpop.permute.xlu1 %1985  ;;  %v1995_v54 = vsel %vm14141_vm11, %v1982_v29, %v1984_v30 }
 0x19e   : > { %9366 = vmatmul.msk.bf16.vlgmr.msra.gmra.mxu1 %vm361_vm1, %v11071_v12  ;;  %1890 = vmatpush.bf16.msra.mxu0 %v1840_v4 }
 0x19f   : > { %1904 = vmatpush.bf16.msra.mxu1 %v1841_v6  ;;  %v1024_v10 = vpop.f32.mrf.mxu2  ;;  %v1094_v11 = vpop.f32.mrf.mxu3  ;;  %1932 = vmatpush.bf16.msra.mxu3 %v1843_v8 }
 0x1a0   : > { %v1035_v16 = vadd.f32 %v1024_v10, %v11051_v31  ;;  %v11116_v18 = vadd.f32 %v1094_v11, %v1029_v43  ;;  %v10131_v11 = vld [vmem:[%s14089_s1 + $0x58] sm:$0xff] }
 0x1a2   : > { %v998_v19 = vpop.f32.mrf.mxu0 }
 0x1a3   : > { %v1012_v20 = vpop.f32.mrf.mxu1  ;;  %v1040_v21 = vadd.f32 %v998_v19, %v11061_v36  ;;  %v1992_v36 = vsel %vm14141_vm11, %v1976_v9, %v1978_v26 }
 0x1a4   : > { %v11120_v24 = vadd.f32 %v1012_v20, %v11064_v40  ;;  %v1988_v45 = vpop.permute.xlu2 %1987  ;;  %v1990_v48 = vpop.permute.xlu0 %1989 }
 0x1a5   : > { %v1997_v56 = vsel %vm14141_vm11, %v1986_v46, %v1988_v45  ;;  %v2130_v57 = vpop.permute.xlu1 %2129 }
 0x1a7   : > { %v1026_v25 = vpop.f32.mrf.mxu2  ;;  %v1096_v3 = vpop.f32.mrf.mxu3 }
 0x1a8   : > { %v11123_v14 = vadd.f32 %v1026_v25, %v11066_v17  ;;  %v11125_v5 = vadd.f32 %v1096_v3, %v1036_v55  ;;  %v1996_v55 = vsel %vm14141_vm11, %v1984_v30, %v1986_v46 }
 0x1aa   : > { %v1108_v31 = vpop.f32.mrf.mxu0 }
 0x1ab   : > { %v1122_v32 = vpop.f32.mrf.mxu1  ;;  %v1184_v33 = vadd.f32 %v1108_v31, %v11079_v44 }
 0x1ac   : > { %v11133_v34 = vadd.f32 %v1122_v32, %v1031_v50  ;;  %9377 = vmatmul.msk.bf16.vlgmr.msrb.gmra.mxu2 %vm361_vm1, %v11130_v27  ;;  %9378 = vmatmul.msk.bf16.vlgmr.msrb.gmra.mxu3 %vm361_vm1, %v11130_v27  ;;  %v2132_v58 = vpop.permute.xlu2 %2131  ;;  %v2134_v6 = vpop.permute.xlu0 %2133 }
 0x1ad   : > { %9369 = vmatmul.msk.bf16.vlgmr.msrb.gmra.mxu0 %vm361_vm1, %v11071_v12  ;;  %2030 = vmatpush.bf16.msrb.mxu2 %v1993_v37  ;;  %v2136_v4 = vpop.permute.xlu1 %2135 }
 0x1ae   : > { %9370 = vmatmul.msk.bf16.vlgmr.msrb.gmra.mxu1 %vm361_vm1, %v11071_v12  ;;  %1946 = vmatpush.bf16.msrb.mxu0 %v1844_v35  ;;  %v2148_v26 = vsel %vm14140_vm12, %v2134_v6, %v2136_v4 }
 0x1af   : > { %2016 = vmatpush.bf16.msrb.mxu1 %v1992_v36  ;;  %v1136_v39 = vpop.f32.mrf.mxu2  ;;  %v1150_v40 = vpop.f32.mrf.mxu3  ;;  %2044 = vmatpush.bf16.msrb.mxu3 %v1994_v38 }
 0x1b0   : > { %v1186_v17 = vadd.f32 %v1136_v39, %v11091_v51  ;;  %v11148_v13 = vadd.f32 %v1150_v40, %v1033_v1 }
 0x1b2   : > { %v1110_v41 = vpop.f32.mrf.mxu0 }
 0x1b3   : > { %v1124_v42 = vpop.f32.mrf.mxu1  ;;  %v1191_v43 = vadd.f32 %v1110_v41, %v11095_v53  ;;  %v1998_v53 = vsel %vm14141_vm11, %v1988_v45, %v1990_v48 }
 0x1b4   : > { %v11151_v44 = vadd.f32 %v1124_v42, %v1038_v60  ;;  %v2140_v31 = vpop.permute.xlu0 %2139 }
 0x1b5   : > { %v2142_v3 = vpop.permute.xlu1 %2141 }
 0x1b7   : > { %v1138_v12 = vpop.f32.mrf.mxu2  ;;  %v1152_v22 = vpop.f32.mrf.mxu3 }
 0x1b8   : > { %v11154_v23 = vadd.f32 %v1138_v12, %v11098_v61  ;;  %v11156_v47 = vadd.f32 %v1152_v22, %v1040_v21  ;;  %v2146_v21 = vsel %vm14140_vm12, %v2130_v57, %v2132_v58 }
 0x1ba   : > { %v1164_v50 = vpop.f32.mrf.mxu0 }
 0x1bb   : > { %v1178_v51 = vpop.f32.mrf.mxu1  ;;  %v1188_v52 = vadd.f32 %v1164_v50, %v11101_v2 }
 0x1bc   : > { %v11159_v49 = vadd.f32 %v1178_v51, %v1035_v16  ;;  %9381 = vmatmul.msk.bf16.vlgmr.msra.gmra.mxu2 %vm361_vm1, %v11130_v27  ;;  %9382 = vmatmul.msk.bf16.vlgmr.msra.gmra.mxu3 %vm361_vm1, %v11130_v27  ;;  %v2138_v16 = vpop.permute.xlu2 %2137 }
 0x1bd   : > { %9379 = vmatmul.msk.bf16.vlgmr.msra.gmra.mxu0 %vm361_vm1, %v11130_v27  ;;  %2086 = vmatpush.bf16.msra.mxu2 %v1997_v56  ;;  %v2149_v25 = vsel %vm14140_vm12, %v2136_v4, %v2138_v16  ;;  %v2286_v40 = vpop.permute.xlu1 %2285 }
 0x1be   : > { %9380 = vmatmul.msk.bf16.vlgmr.msra.gmra.mxu1 %vm361_vm1, %v11130_v27  ;;  %2058 = vmatpush.bf16.msra.mxu0 %v1995_v54 }
 0x1bf   : > { %2072 = vmatpush.bf16.msra.mxu1 %v1996_v55  ;;  %v1248_v59 = vpop.f32.mrf.mxu2  ;;  %v1262_v60 = vpop.f32.mrf.mxu3  ;;  %2100 = vmatpush.bf16.msra.mxu3 %v1998_v53 }
 0x1c0   : > { %v1337_v61 = vadd.f32 %v1248_v59, %v11116_v18  ;;  %v11174_v62 = vadd.f32 %v1262_v60, %v1184_v33  ;;  %v10132_v59 = vld [vmem:[%s14089_s1 + $0x60] sm:$0xff] }
 0x1c2   : > { %v1166_v63 = vpop.f32.mrf.mxu0 }
 0x1c3   : > { %v1180_v0 = vpop.f32.mrf.mxu1  ;;  %v1195_v1 = vadd.f32 %v1166_v63, %v11120_v24  ;;  %v2147_v24 = vsel %vm14140_vm12, %v2132_v58, %v2134_v6 }
 0x1c4   : > { %v11178_v2 = vadd.f32 %v1180_v0, %v11123_v14  ;;  %v2144_v35 = vpop.permute.xlu2 %2143 }
 0x1c5   : > { %v2152_v45 = vsel %vm14140_vm12, %v2142_v3, %v2144_v35  ;;  %v2292_v54 = vpop.permute.xlu1 %2291 }
 0x1c7   : > { %v1250_v7 = vpop.f32.mrf.mxu2  ;;  %v1264_v8 = vpop.f32.mrf.mxu3 }
 0x1c8   : > { %v11181_v9 = vadd.f32 %v1250_v7, %v11125_v5  ;;  %v11183_v10 = vadd.f32 %v1264_v8, %v1191_v43  ;;  %v2150_v43 = vsel %vm14140_vm12, %v2138_v16, %v2140_v31 }
 0x1ca   : > { %v1276_v18 = vpop.f32.mrf.mxu0 }
 0x1cb   : > { %v1290_v15 = vpop.f32.mrf.mxu1  ;;  %v1339_v19 = vadd.f32 %v1276_v18, %v11133_v34 }
 0x1cc   : > { %v11189_v20 = vadd.f32 %v1290_v15, %v1186_v17  ;;  %9391 = vmatmul.msk.bf16.vlgmr.msrb.gmra.mxu2 %vm361_vm1, %v10131_v11  ;;  %9392 = vmatmul.msk.bf16.vlgmr.msrb.gmra.mxu3 %vm361_vm1, %v10131_v11  ;;  %v2284_v17 = vpop.permute.xlu0 %2283  ;;  %v2288_v48 = vpop.permute.xlu2 %2287 }
 0x1cd   : > { %9383 = vmatmul.msk.bf16.vlgmr.msrb.gmra.mxu0 %vm361_vm1, %v11130_v27  ;;  %2198 = vmatpush.bf16.msrb.mxu2 %v2148_v26  ;;  %v2300_v46 = vsel %vm2299_vm13, %v2284_v17, %v2286_v40  ;;  %v2298_v7 = vpop.permute.xlu1 %2297 }
 0x1ce   : > { %9390 = vmatmul.msk.bf16.vlgmr.msrb.gmra.mxu1 %vm361_vm1, %v10131_v11  ;;  %2170 = vmatpush.bf16.msrb.mxu0 %v2146_v21 }
 0x1cf   : > { %2184 = vmatpush.bf16.msrb.mxu1 %v2147_v24  ;;  %v1304_v14 = vpop.f32.mrf.mxu2  ;;  %v1318_v5 = vpop.f32.mrf.mxu3  ;;  %2212 = vmatpush.bf16.msrb.mxu3 %v2149_v25  ;;  %v9491_v25 = vld [vmem:[%s10474_s17 + $0xc] sm:$0xf] }
 0x1d0   : > { %v1341_v28 = vadd.f32 %v1304_v14, %v11148_v13  ;;  %v11201_v29 = vadd.f32 %v1318_v5, %v1188_v52 }
 0x1d2   : > { %v1278_v32 = vpop.f32.mrf.mxu0 }
 0x1d3   : > { %v1292_v33 = vpop.f32.mrf.mxu1  ;;  %v1346_v34 = vadd.f32 %v1278_v32, %v11151_v44  ;;  %v2151_v44 = vsel %vm14140_vm12, %v2140_v31, %v2142_v3  ;;  %v10144_v3 = vld [vmem:[%s10474_s17 + $0x2c] sm:$0xf0]  ;;  %v9493_v32 = vld [vmem:[%s10474_s17 + $0x30] sm:$0xf0] }
 0x1d4   : > { %v11205_v27 = vadd.f32 %v1292_v33, %v11154_v23  ;;  %v2290_v55 = vpop.permute.xlu0 %2289  ;;  %v2294_v60 = vpop.permute.xlu2 %2293  ;;  %v11270_v14 = vor.u32 %v10144_v3, %v9491_v25  ;;  %v10140_v31 = vld [vmem:[%s10474_s17 + $0x10] sm:$0xf] }
 0x1d5   : > { %v2303_v4 = vsel %vm2299_vm13, %v2290_v55, %v2292_v54  ;;  %v2304_v6 = vsel %vm2299_vm13, %v2292_v54, %v2294_v60  ;;  %v11286_v35 = vor.u32 %v10140_v31, %v9493_v32  ;;  %v10141_v54 = vld [vmem:[%s10474_s17 + $0x18] sm:$0xf]  ;;  %v9499_v32 = vld [vmem:[%s10474_s17 + $0x14] sm:$0xf] }
 0x1d6   : > { %3097 = vrot.lane.b32.xlu0 %v11270_v14, %s14112_s13 }
 0x1d7   : > { %v1306_v36 = vpop.f32.mrf.mxu2  ;;  %v1320_v37 = vpop.f32.mrf.mxu3 }
 0x1d8   : > { %v11208_v38 = vadd.f32 %v1306_v36, %v11156_v47  ;;  %v11210_v39 = vadd.f32 %v1320_v37, %v1195_v1  ;;  %v2301_v1 = vsel %vm2299_vm13, %v2286_v40, %v2288_v48  ;;  %v2442_v36 = vpop.permute.xlu1 %2441 }
 0x1da   : > { %v1332_v13 = vpop.f32.mrf.mxu0 }
 0x1db   : > { %v1402_v30 = vpop.f32.mrf.mxu1  ;;  %v1343_v41 = vadd.f32 %v1332_v13, %v11159_v49 }
 0x1dc   : > { %v11213_v42 = vadd.f32 %v1402_v30, %v1337_v61  ;;  %9395 = vmatmul.msk.bf16.vlgmr.msra.gmra.mxu2 %vm361_vm1, %v10131_v11  ;;  %9396 = vmatmul.msk.bf16.vlgmr.msra.gmra.mxu3 %vm361_vm1, %v10131_v11  ;;  %v2438_v5 = vpop.permute.xlu2 %2437 }
 0x1dd   : > { %9393 = vmatmul.msk.bf16.vlgmr.msra.gmra.mxu0 %vm361_vm1, %v10131_v11  ;;  %2254 = vmatpush.bf16.msra.mxu2 %v2152_v45 }
 0x1de   : > { %9394 = vmatmul.msk.bf16.vlgmr.msra.gmra.mxu1 %vm361_vm1, %v10131_v11  ;;  %2226 = vmatpush.bf16.msra.mxu0 %v2150_v43  ;;  %v10143_v11 = vld [vmem:[%s10474_s17 + $0x24] sm:$0xf0] }
 0x1df   : > { %2240 = vmatpush.bf16.msra.mxu1 %v2151_v44  ;;  %v1416_v12 = vpop.f32.mrf.mxu2  ;;  %v1430_v22 = vpop.f32.mrf.mxu3  ;;  %2324 = vmatpush.bf16.msra.mxu3 %v2300_v46 }
 0x1e0   : > { %v11224_v23 = vadd.f32 %v1416_v12, %v11174_v62  ;;  %v11226_v47 = vadd.f32 %v1430_v22, %v1339_v19  ;;  %v2296_v19 = vpop.permute.xlu0 %2295 }
 0x1e1   : > { %v2305_v13 = vsel %vm2299_vm13, %v2294_v60, %v2296_v19  ;;  %v2306_v30 = vsel %vm2299_vm13, %v2296_v19, %v2298_v7 }
 0x1e2   : > { %v1334_v50 = vpop.f32.mrf.mxu0 }
 0x1e3   : > { %v1404_v51 = vpop.f32.mrf.mxu1  ;;  %v1350_v52 = vadd.f32 %v1334_v50, %v11178_v2  ;;  %v2302_v2 = vsel %vm2299_vm13, %v2288_v48, %v2290_v55 }
 0x1e4   : > { %v11230_v49 = vadd.f32 %v1404_v51, %v11181_v9  ;;  %v2444_v12 = vpop.permute.xlu2 %2443  ;;  %v9507_v51 = vld [vmem:[%s10474_s17 + $0x1c] sm:$0xf] }
 0x1e7   : > { %v1418_v53 = vpop.f32.mrf.mxu2  ;;  %v1432_v56 = vpop.f32.mrf.mxu3 }
 0x1e8   : > { %v11233_v57 = vadd.f32 %v1418_v53, %v11183_v10  ;;  %v11235_v58 = vadd.f32 %v1432_v56, %v1346_v34  ;;  %v9483_v10 = vld [vmem:[%s10474_s17 + $0x4] sm:$0xf]  ;;  %v2440_v37 = vpop.permute.xlu0 %2439  ;;  %v9501_v53 = vld [vmem:[%s10474_s17 + $0x38] sm:$0xf0]  ;;  %v2448_v56 = vpop.permute.xlu1 %2447 }
 0x1e9   : > { %v11260_v15 = vor.u32 %v10143_v11, %v9483_v10  ;;  %v2455_v43 = vsel %vm361_vm1, %v2440_v37, %v2442_v36 }
 0x1ea   : > { %v1444_v61 = vpop.f32.mrf.mxu0 }
 0x1eb   : > { %v1458_v62 = vpop.f32.mrf.mxu1  ;;  %v11241_v63 = vadd.f32 %v1444_v61, %v11189_v20  ;;  %3093 = vrot.lane.b32.xlu1 %v11260_v15, %s14112_s13 }
 0x1ec   : > { %v11243_v0 = vadd.f32 %v1458_v62, %v1341_v28  ;;  %9405 = vmatmul.msk.bf16.vlgmr.msrb.gmra.mxu2 %vm361_vm1, %v10132_v59  ;;  %9406 = vmatmul.msk.bf16.vlgmr.msrb.gmra.mxu3 %vm361_vm1, %v10132_v59  ;;  %v2450_v62 = vpop.permute.xlu2 %2449 }
 0x1ed   : > { %9403 = vmatmul.msk.bf16.vlgmr.msrb.gmra.mxu0 %vm361_vm1, %v10132_v59  ;;  %2366 = vmatpush.bf16.msrb.mxu2 %v2303_v4 }
 0x1ee   : > { %9404 = vmatmul.msk.bf16.vlgmr.msrb.gmra.mxu1 %vm361_vm1, %v10132_v59  ;;  %2338 = vmatpush.bf16.msrb.mxu0 %v2301_v1 }
 0x1ef   : > { %2352 = vmatpush.bf16.msrb.mxu1 %v2302_v2  ;;  %v1472_v8 = vpop.f32.mrf.mxu2  ;;  %v1486_v9 = vpop.f32.mrf.mxu3  ;;  %2380 = vmatpush.bf16.msrb.mxu3 %v2304_v6  ;;  %v2456_v6 = vsel %vm361_vm1, %v2442_v36, %v2444_v12  ;;  %v10145_v36 = vld [vmem:[%s10474_s17 + $0x34] sm:$0xf0] }
 0x1f0   : > { %v11256_v16 = vadd.f32 %v1472_v8, %v11201_v29  ;;  %v11258_v18 = vadd.f32 %v1486_v9, %v1343_v41  ;;  %v2454_v41 = vsel %vm361_vm1, %v2438_v5, %v2440_v37  ;;  %v10139_v8 = vld [vmem:[%s10474_s17 + $0x8] sm:$0xf]  ;;  %v9485_v9 = vld [vmem:[%s10474_s17 + $0x28] sm:$0xf0]  ;;  %v2592_v11 = vpop.permute.xlu1 %2591 }
 0x1f1   : > { %v11346_v10 = vor.u32 %v10139_v8, %v9485_v9 }
 0x1f2   : > { %v1446_v20 = vpop.f32.mrf.mxu0 }
 0x1f3   : > { %v1460_v21 = vpop.f32.mrf.mxu1  ;;  %v1501_v24 = vadd.f32 %v1446_v20, %v11205_v27  ;;  %v11284_v27 = vld [vmem:[%s14089_s1 + $0x68] sm:$0xff]  ;;  %3099 = vrot.lane.b32.xlu1 %v11286_v35, %s14112_s13  ;;  %3095 = vrot.lane.b32.xlu2 %v11346_v10, %s14112_s13 }
 0x1f4   : > { %v11266_v26 = vadd.f32 %v1460_v21, %v11208_v38 }
 0x1f7   : > { %v1474_v28 = vpop.f32.mrf.mxu2  ;;  %v1488_v29 = vpop.f32.mrf.mxu3 }
 0x1f8   : > { %v11277_v33 = vadd.f32 %v1474_v28, %v11210_v39  ;;  %v11279_v34 = vadd.f32 %v1488_v29, %v1350_v52  ;;  %v10146_v52 = vld [vmem:[%s10474_s17 + $0x3c] sm:$0xf0]  ;;  %v2594_v28 = vpop.permute.xlu2 %2593 }
 0x1f9   : > { %v11316_v55 = vor.u32 %v10146_v52, %v9507_v51 }
 0x1fa   : > { %v1556_v38 = vpop.f32.mrf.mxu0 }
 0x1fb   : > { %v1570_v40 = vpop.f32.mrf.mxu1  ;;  %v1645_v17 = vadd.f32 %v1556_v38, %v11213_v42  ;;  %3105 = vrot.lane.b32.xlu1 %v11316_v55, %s14112_s13 }
 0x1fc   : > { %v11292_v39 = vadd.f32 %v1570_v40, %v11224_v23  ;;  %9409 = vmatmul.msk.bf16.vlgmr.msra.gmra.mxu2 %vm361_vm1, %v10132_v59  ;;  %9416 = vmatmul.msk.bf16.vlgmr.msra.gmra.mxu3 %vm361_vm1, %v11284_v27  ;;  %v11377_v40 = vld [vmem:[%s14089_s1 + $0x70] sm:$0xff] }
 0x1fd   : > { %9407 = vmatmul.msk.bf16.vlgmr.msra.gmra.mxu0 %vm361_vm1, %v10132_v59  ;;  %2478 = vmatpush.bf16.msra.mxu2 %v2454_v41 }
 0x1fe   : > { %9408 = vmatmul.msk.bf16.vlgmr.msra.gmra.mxu1 %vm361_vm1, %v10132_v59  ;;  %2394 = vmatpush.bf16.msra.mxu0 %v2305_v13  ;;  %v2446_v59 = vpop.permute.xlu0 %2445 }
 0x1ff   : > { %2408 = vmatpush.bf16.msra.mxu1 %v2306_v30  ;;  %v1584_v42 = vpop.f32.mrf.mxu2  ;;  %v1598_v44 = vpop.f32.mrf.mxu3  ;;  %2492 = vmatpush.bf16.msra.mxu3 %v2455_v43  ;;  %v2457_v7 = vsel %vm361_vm1, %v2444_v12, %v2446_v59 }
 0x200   : > { %v11304_v45 = vadd.f32 %v1584_v42, %v11226_v47  ;;  %v11307_v46 = vadd.f32 %v1598_v44, %v11241_v63  ;;  %v11319_v47 = vor.u32 %v10141_v54, %v9501_v53  ;;  %v2608_v42 = vsel %vm14116_vm14, %v2592_v11, %v2594_v28 }
 0x202   : > { %v1558_v22 = vpop.f32.mrf.mxu0  ;;  %3103 = vrot.lane.b32.xlu0 %v11319_v47, %s14112_s13 }
 0x203   : > { %v1572_v23 = vpop.f32.mrf.mxu1  ;;  %v1652_v48 = vadd.f32 %v1558_v22, %v11230_v49  ;;  %3249 = vrot.lane.b32.xlu1 %v11346_v10, %s14114_s29  ;;  %v10142_v22 = vld [vmem:[%s10474_s17 + $0x20] sm:$0xf] }
 0x204   : > { %v11311_v50 = vadd.f32 %v1572_v23, %v11233_v57  ;;  %v9509_v23 = vld [vmem:[%s10474_s17 + $0x40] sm:$0xf0] }
 0x205   : > { %v11411_v52 = vor.u32 %v10142_v22, %v9509_v23 }
 0x207   : > { %v1586_v60 = vpop.f32.mrf.mxu2  ;;  %v1600_v49 = vpop.f32.mrf.mxu3 }
 0x208   : > { %v11326_v57 = vadd.f32 %v1586_v60, %v11235_v58  ;;  %v11328_v61 = vadd.f32 %v1600_v49, %v1501_v24  ;;  %v2458_v58 = vsel %vm361_vm1, %v2446_v59, %v2448_v56  ;;  %v2452_v24 = vpop.permute.xlu0 %2451 }
 0x209   : > { %v2460_v43 = vsel %vm361_vm1, %v2450_v62, %v2452_v24 }
 0x20a   : > { %v1612_v63 = vpop.f32.mrf.mxu0  ;;  %3247 = vrot.lane.b32.xlu0 %v11260_v15, %s14114_s29 }
 0x20b   : > { %v1626_v1 = vpop.f32.mrf.mxu1  ;;  %v11331_v2 = vadd.f32 %v1612_v63, %v11243_v0  ;;  %v2459_v0 = vsel %vm361_vm1, %v2448_v56, %v2450_v62 }
 0x20c   : > { %v11334_v4 = vadd.f32 %v1626_v1, %v11256_v16  ;;  %9419 = vmatmul.msk.bf16.vlgmr.msrb.gmra.mxu2 %vm361_vm1, %v11284_v27  ;;  %9420 = vmatmul.msk.bf16.vlgmr.msrb.gmra.mxu3 %vm361_vm1, %v11284_v27 }
 0x20d   : > { %9417 = vmatmul.msk.bf16.vlgmr.msrb.gmra.mxu0 %vm361_vm1, %v11284_v27  ;;  %2534 = vmatpush.bf16.msrb.mxu2 %v2458_v58 }
 0x20e   : > { %9418 = vmatmul.msk.bf16.vlgmr.msrb.gmra.mxu1 %vm361_vm1, %v11284_v27  ;;  %2506 = vmatpush.bf16.msrb.mxu0 %v2456_v6 }
 0x20f   : > { %2520 = vmatpush.bf16.msrb.mxu1 %v2457_v7  ;;  %v1640_v16 = vpop.f32.mrf.mxu2  ;;  %v1710_v19 = vpop.f32.mrf.mxu3  ;;  %2548 = vmatpush.bf16.msrb.mxu3 %v2459_v0 }
 0x210   : > { %v11353_v20 = vadd.f32 %v1640_v16, %v11258_v18  ;;  %v11355_v21 = vadd.f32 %v1710_v19, %v1645_v17  ;;  %v2596_v17 = vpop.permute.xlu0 %2595 }
 0x211   : > { %v2609_v44 = vsel %vm14116_vm14, %v2594_v28, %v2596_v17 }
 0x212   : > { %v1614_v25 = vpop.f32.mrf.mxu0  ;;  %3253 = vrot.lane.b32.xlu0 %v11286_v35, %s14114_s29 }
 0x213   : > { %v1628_v3 = vpop.f32.mrf.mxu1  ;;  %v1656_v5 = vadd.f32 %v1614_v25, %v11266_v26  ;;  %v11381_v26 = vor.u32 %v10145_v36, %v9499_v32  ;;  %v10135_v36 = vld [vmem:[%s14089_s1 + $0x78] sm:$0xff] }
 0x214   : > { %v11365_v18 = vadd.f32 %v1628_v3, %v11277_v33  ;;  %v2598_v33 = vpop.permute.xlu1 %2597 }
 0x215   : > { %3255 = vrot.lane.b32.xlu1 %v11381_v26, %s14114_s29  ;;  %3101 = vrot.lane.b32.xlu2 %v11381_v26, %s14112_s13  ;;  %v2610_v12 = vsel %vm14116_vm14, %v2596_v17, %v2598_v33 }
 0x217   : > { %v1642_v29 = vpop.f32.mrf.mxu2  ;;  %v1712_v31 = vpop.f32.mrf.mxu3 }
 0x218   : > { %v11370_v37 = vadd.f32 %v1642_v29, %v11279_v34  ;;  %v11372_v38 = vadd.f32 %v1712_v31, %v1652_v48  ;;  %v2602_v1 = vpop.permute.xlu0 %2601 }
 0x21a   : > { %v1724_v13 = vpop.f32.mrf.mxu0  ;;  %3259 = vrot.lane.b32.xlu0 %v11316_v55, %s14114_s29 }
 0x21b   : > { %v1738_v30 = vpop.f32.mrf.mxu1  ;;  %v1800_v34 = vadd.f32 %v1724_v13, %v11292_v39 }
 0x21c   : > { %v11389_v41 = vadd.f32 %v1738_v30, %v11304_v45  ;;  %9429 = vmatmul.msk.bf16.vlgmr.msra.gmra.mxu2 %vm361_vm1, %v11377_v40  ;;  %9430 = vmatmul.msk.bf16.vlgmr.msra.gmra.mxu3 %vm361_vm1, %v11377_v40  ;;  %v2604_v59 = vpop.permute.xlu1 %2603 }
 0x21d   : > { %9421 = vmatmul.msk.bf16.vlgmr.msra.gmra.mxu0 %vm361_vm1, %v11284_v27  ;;  %2646 = vmatpush.bf16.msra.mxu2 %v2609_v44  ;;  %v2613_v58 = vsel %vm14116_vm14, %v2602_v1, %v2604_v59 }
 0x21e   : > { %9422 = vmatmul.msk.bf16.vlgmr.msra.gmra.mxu1 %vm361_vm1, %v11284_v27  ;;  %2562 = vmatpush.bf16.msra.mxu0 %v2460_v43  ;;  %v2600_v27 = vpop.permute.xlu2 %2599 }
 0x21f   : > { %2632 = vmatpush.bf16.msra.mxu1 %v2608_v42  ;;  %v1752_v39 = vpop.f32.mrf.mxu2  ;;  %v1766_v45 = vpop.f32.mrf.mxu3  ;;  %2660 = vmatpush.bf16.msra.mxu3 %v2610_v12  ;;  %v2612_v8 = vsel %vm14116_vm14, %v2600_v27, %v2602_v1 }
 0x220   : > { %v11406_v48 = vadd.f32 %v1752_v39, %v11307_v46  ;;  %v11409_v51 = vadd.f32 %v1766_v45, %v11331_v2  ;;  %3107 = vrot.lane.b32.xlu2 %v11411_v52, %s14112_s13  ;;  %3261 = vrot.lane.b32.xlu1 %v11411_v52, %s14114_s29  ;;  %s14122_s13 = smov 45  }
 0x222   : > { %v1726_v54 = vpop.f32.mrf.mxu0  ;;  %3403 = vrot.lane.b32.xlu0 %v11346_v10, %s14117_s8 }
 0x223   : > { %v1740_v53 = vpop.f32.mrf.mxu1  ;;  %v1807_v46 = vadd.f32 %v1726_v54, %v11311_v50 }
 0x224   : > { %v11421_v56 = vadd.f32 %v1740_v53, %v11326_v57 }
 0x226   : > { %v2606_v2 = vpop.permute.xlu2 %2605 }
 0x227   : > { %v1754_v60 = vpop.f32.mrf.mxu2  ;;  %v1768_v49 = vpop.f32.mrf.mxu3  ;;  %v2614_v9 = vsel %vm14116_vm14, %v2604_v59, %v2606_v2 }
 0x228   : > { %v11424_v62 = vadd.f32 %v1754_v60, %v11328_v61  ;;  %v11426_v63 = vadd.f32 %v1768_v49, %v1656_v5  ;;  %3251 = vrot.lane.b32.xlu2 %v11270_v14, %s14114_s29  ;;  %3405 = vrot.lane.b32.xlu1 %v11270_v14, %s14117_s8  ;;  %v2611_v61 = vsel %vm14116_vm14, %v2598_v33, %v2600_v27  ;;  %vm14124_vm14 = vcmask 48128  }
 0x22a   : > { %v1780_v6 = vpop.f32.mrf.mxu0  ;;  %3409 = vrot.lane.b32.xlu0 %v11381_v26, %s14117_s8 }
 0x22b   : > { %v1794_v7 = vpop.f32.mrf.mxu1  ;;  %v1804_v50 = vadd.f32 %v1780_v6, %v11334_v4  ;;  %v2748_v4 = vpop.permute.xlu1 %2747 }
 0x22c   : > { %v11436_v57 = vadd.f32 %v1794_v7, %v11353_v20  ;;  %9433 = vmatmul.msk.bf16.vlgmr.msrb.gmra.mxu2 %vm361_vm1, %v11377_v40  ;;  %9434 = vmatmul.msk.bf16.vlgmr.msrb.gmra.mxu3 %vm361_vm1, %v11377_v40  ;;  %v2746_v20 = vpop.permute.xlu0 %2745 }
 0x22d   : > { %9431 = vmatmul.msk.bf16.vlgmr.msrb.gmra.mxu0 %vm361_vm1, %v11377_v40  ;;  %2702 = vmatpush.bf16.msrb.mxu2 %v2613_v58  ;;  %v2762_v30 = vsel %vm14121_vm15, %v2746_v20, %v2748_v4 }
 0x22e   : > { %9432 = vmatmul.msk.bf16.vlgmr.msrb.gmra.mxu1 %vm361_vm1, %v11377_v40  ;;  %2674 = vmatpush.bf16.msrb.mxu0 %v2611_v61 }
 0x22f   : > { %2688 = vmatpush.bf16.msrb.mxu1 %v2612_v8  ;;  %v1864_v0 = vpop.f32.mrf.mxu2  ;;  %v1878_v11 = vpop.f32.mrf.mxu3  ;;  %2716 = vmatpush.bf16.msrb.mxu3 %v2614_v9 }
 0x230   : > { %v11451_v16 = vadd.f32 %v1864_v0, %v11355_v21  ;;  %v11453_v19 = vadd.f32 %v1878_v11, %v1800_v34  ;;  %3411 = vrot.lane.b32.xlu1 %v11319_v47, %s14117_s8  ;;  %3257 = vrot.lane.b32.xlu2 %v11319_v47, %s14114_s29  ;;  %v2750_v21 = vpop.permute.xlu2 %2749  ;;  %s14119_s29 = smov 46  }
 0x231   : > { %v2763_v34 = vsel %vm14121_vm15, %v2748_v4, %v2750_v21 }
 0x232   : > { %v1782_v24 = vpop.f32.mrf.mxu0  ;;  %3415 = vrot.lane.b32.xlu0 %v11411_v52, %s14117_s8 }
 0x233   : > { %v1796_v25 = vpop.f32.mrf.mxu1  ;;  %v1811_v3 = vadd.f32 %v1782_v24, %v11365_v18  ;;  %v2754_v18 = vpop.permute.xlu1 %2753 }
 0x234   : > { %v11463_v5 = vadd.f32 %v1796_v25, %v11370_v37  ;;  %v2752_v33 = vpop.permute.xlu0 %2751 }
 0x235   : > { %v2764_v43 = vsel %vm14121_vm15, %v2750_v21, %v2752_v33  ;;  %v2765_v42 = vsel %vm14121_vm15, %v2752_v33, %v2754_v18 }
 0x237   : > { %v1866_v28 = vpop.f32.mrf.mxu2  ;;  %v1880_v29 = vpop.f32.mrf.mxu3 }
 0x238   : > { %v11466_v31 = vadd.f32 %v1866_v28, %v11372_v38  ;;  %v11468_v32 = vadd.f32 %v1880_v29, %v1807_v46  ;;  %3555 = vrot.lane.b32.xlu1 %v11260_v15, %s14119_s29  ;;  %3401 = vrot.lane.b32.xlu2 %v11260_v15, %s14117_s8  ;;  %v2756_v22 = vpop.permute.xlu2 %2755 }
 0x23a   : > { %v1892_v37 = vpop.f32.mrf.mxu0  ;;  %3559 = vrot.lane.b32.xlu0 %v11270_v14, %s14119_s29 }
 0x23b   : > { %v1906_v17 = vpop.f32.mrf.mxu1  ;;  %v1955_v38 = vadd.f32 %v1892_v37, %v11389_v41  ;;  %v2760_v27 = vpop.permute.xlu1 %2759 }
 0x23c   : > { %v11481_v13 = vadd.f32 %v1906_v17, %v11406_v48  ;;  %9443 = vmatmul.msk.bf16.vlgmr.msra.gmra.mxu2 %vm361_vm1, %v10135_v36  ;;  %9444 = vmatmul.msk.bf16.vlgmr.msra.gmra.mxu3 %vm361_vm1, %v10135_v36  ;;  %v2758_v45 = vpop.permute.xlu0 %2757 }
 0x23d   : > { %9435 = vmatmul.msk.bf16.vlgmr.msra.gmra.mxu0 %vm361_vm1, %v11377_v40  ;;  %2814 = vmatpush.bf16.msra.mxu2 %v2764_v43  ;;  %v2767_v6 = vsel %vm14121_vm15, %v2756_v22, %v2758_v45  ;;  %v2768_v7 = vsel %vm14121_vm15, %v2758_v45, %v2760_v27  ;;  %v11594_v27 = vld [vmem:[%s14089_s1 + $0x88] sm:$0xff] }
 0x23e   : > { %9442 = vmatmul.msk.bf16.vlgmr.msra.gmra.mxu1 %vm361_vm1, %v10135_v36  ;;  %2786 = vmatpush.bf16.msra.mxu0 %v2762_v30 }
 0x23f   : > { %2800 = vmatpush.bf16.msra.mxu1 %v2763_v34  ;;  %v1920_v41 = vpop.f32.mrf.mxu2  ;;  %v1934_v44 = vpop.f32.mrf.mxu3  ;;  %2828 = vmatpush.bf16.msra.mxu3 %v2765_v42 }
 0x240   : > { %v11493_v12 = vadd.f32 %v1920_v41, %v11409_v51  ;;  %v11495_v39 = vadd.f32 %v1934_v44, %v1804_v50  ;;  %3407 = vrot.lane.b32.xlu2 %v11286_v35, %s14117_s8  ;;  %3561 = vrot.lane.b32.xlu1 %v11286_v35, %s14119_s29  ;;  %v2900_v60 = vpop.permute.xlu2 %2899 }
 0x242   : > { %v1894_v23 = vpop.f32.mrf.mxu0  ;;  %3565 = vrot.lane.b32.xlu0 %v11319_v47, %s14119_s29 }
 0x243   : > { %v1908_v40 = vpop.f32.mrf.mxu1  ;;  %v1962_v48 = vadd.f32 %v1894_v23, %v11421_v56  ;;  %v2904_v58 = vpop.permute.xlu1 %2903 }
 0x244   : > { %v11505_v51 = vadd.f32 %v1908_v40, %v11424_v62  ;;  %v2902_v49 = vpop.permute.xlu0 %2901 }
 0x245   : > { %v2916_v50 = vsel %vm14124_vm14, %v2900_v60, %v2902_v49  ;;  %v2917_v33 = vsel %vm14124_vm14, %v2902_v49, %v2904_v58 }
 0x247   : > { %v1922_v54 = vpop.f32.mrf.mxu2  ;;  %v1936_v53 = vpop.f32.mrf.mxu3 }
 0x248   : > { %v11508_v46 = vadd.f32 %v1922_v54, %v11426_v63  ;;  %v11510_v59 = vadd.f32 %v1936_v53, %v1811_v3  ;;  %3413 = vrot.lane.b32.xlu2 %v11316_v55, %s14117_s8  ;;  %3567 = vrot.lane.b32.xlu1 %v11316_v55, %s14119_s29  ;;  %v2766_v63 = vsel %vm14121_vm15, %v2754_v18, %v2756_v22  ;;  %v10136_v3 = vld [vmem:[%s14089_s1 + $0x80] sm:$0xff]  ;;  %v2906_v21 = vpop.permute.xlu2 %2905  ;;  %vm14130_vm15 = vcmask 457728   ;;  %s14128_s8 = smov 36  }
 0x249   : > { %v2918_v18 = vsel %vm14124_vm14, %v2904_v58, %v2906_v21 }
 0x24a   : > { %v1948_v1 = vpop.f32.mrf.mxu0  ;;  %3709 = vrot.lane.b32.xlu0 %v11260_v15, %s14122_s13 }
 0x24b   : > { %v2018_v2 = vpop.f32.mrf.mxu1  ;;  %v1959_v56 = vadd.f32 %v1948_v1, %v11436_v57 }
 0x24c   : > { %v11520_v62 = vadd.f32 %v2018_v2, %v11451_v16  ;;  %9447 = vmatmul.msk.bf16.vlgmr.msrb.gmra.mxu2 %vm361_vm1, %v10135_v36  ;;  %9448 = vmatmul.msk.bf16.vlgmr.msrb.gmra.mxu3 %vm361_vm1, %v10135_v36  ;;  %v2908_v28 = vpop.permute.xlu0 %2907 }
 0x24d   : > { %9445 = vmatmul.msk.bf16.vlgmr.msrb.gmra.mxu0 %vm361_vm1, %v10135_v36  ;;  %2870 = vmatpush.bf16.msrb.mxu2 %v2768_v7  ;;  %v2919_v37 = vsel %vm14124_vm14, %v2906_v21, %v2908_v28 }
 0x24e   : > { %9446 = vmatmul.msk.bf16.vlgmr.msrb.gmra.mxu1 %vm361_vm1, %v10135_v36  ;;  %2842 = vmatpush.bf16.msrb.mxu0 %v2766_v63 }
 0x24f   : > { %2856 = vmatpush.bf16.msrb.mxu1 %v2767_v6  ;;  %v2032_v57 = vpop.f32.mrf.mxu2  ;;  %v2046_v61 = vpop.f32.mrf.mxu3  ;;  %2940 = vmatpush.bf16.msrb.mxu3 %v2916_v50 }
 0x250   : > { %v11531_v8 = vadd.f32 %v2032_v57, %v11453_v19  ;;  %v11533_v9 = vadd.f32 %v2046_v61, %v1955_v38  ;;  %3557 = vrot.lane.b32.xlu2 %v11346_v10, %s14119_s29  ;;  %3711 = vrot.lane.b32.xlu1 %v11346_v10, %s14122_s13 }
 0x252   : > { %v1950_v4 = vpop.f32.mrf.mxu0  ;;  %3715 = vrot.lane.b32.xlu0 %v11286_v35, %s14122_s13 }
 0x253   : > { %v2020_v0 = vpop.f32.mrf.mxu1  ;;  %v1966_v11 = vadd.f32 %v1950_v4, %v11463_v5  ;;  %v2910_v5 = vpop.permute.xlu1 %2909 }
 0x254   : > { %v11543_v16 = vadd.f32 %v2020_v0, %v11466_v31  ;;  %v2920_v17 = vsel %vm14124_vm14, %v2908_v28, %v2910_v5  ;;  %v2914_v43 = vpop.permute.xlu0 %2913 }
 0x257   : > { %v2034_v19 = vpop.f32.mrf.mxu2  ;;  %v2048_v20 = vpop.f32.mrf.mxu3 }
 0x258   : > { %v11546_v24 = vadd.f32 %v2034_v19, %v11468_v32  ;;  %v11548_v25 = vadd.f32 %v2048_v20, %v1962_v48  ;;  %3563 = vrot.lane.b32.xlu2 %v11381_v26, %s14119_s29  ;;  %3717 = vrot.lane.b32.xlu1 %v11381_v26, %s14122_s13 }
 0x25a   : > { %v2060_v29 = vpop.f32.mrf.mxu0  ;;  %3721 = vrot.lane.b32.xlu0 %v11316_v55, %s14122_s13 }
 0x25b   : > { %v2074_v31 = vpop.f32.mrf.mxu1  ;;  %v2110_v32 = vadd.f32 %v2060_v29, %v11481_v13 }
 0x25c   : > { %v11561_v36 = vadd.f32 %v2074_v31, %v11493_v12  ;;  %9457 = vmatmul.msk.bf16.vlgmr.msra.gmra.mxu2 %vm361_vm1, %v10136_v3  ;;  %9458 = vmatmul.msk.bf16.vlgmr.msra.gmra.mxu3 %vm361_vm1, %v10136_v3 }
 0x25d   : > { %9455 = vmatmul.msk.bf16.vlgmr.msra.gmra.mxu0 %vm361_vm1, %v10136_v3  ;;  %2982 = vmatpush.bf16.msra.mxu2 %v2919_v37  ;;  %v3094_v45 = vpop.permute.xlu1 %3093 }
 0x25e   : > { %9456 = vmatmul.msk.bf16.vlgmr.msra.gmra.mxu1 %vm361_vm1, %v10136_v3  ;;  %2954 = vmatpush.bf16.msra.mxu0 %v2917_v33 }
 0x25f   : > { %2968 = vmatpush.bf16.msra.mxu1 %v2918_v18  ;;  %v2088_v38 = vpop.f32.mrf.mxu2  ;;  %v2102_v13 = vpop.f32.mrf.mxu3  ;;  %2996 = vmatpush.bf16.msra.mxu3 %v2920_v17 }
 0x260   : > { %v11572_v30 = vadd.f32 %v2088_v38, %v11495_v39  ;;  %v11574_v34 = vadd.f32 %v2102_v13, %v1959_v56  ;;  %3569 = vrot.lane.b32.xlu2 %v11411_v52, %s14119_s29  ;;  %3723 = vrot.lane.b32.xlu1 %v11411_v52, %s14122_s13  ;;  %v2912_v39 = vpop.permute.xlu2 %2911  ;;  %s14125_s29 = smov 44  }
 0x261   : > { %v2921_v60 = vsel %vm14124_vm14, %v2910_v5, %v2912_v39  ;;  %v2922_v49 = vsel %vm14124_vm14, %v2912_v39, %v2914_v43  ;;  %vm14127_vm14 = vcmask 449536  }
 0x262   : > { %v2062_v42 = vpop.f32.mrf.mxu0  ;;  %3865 = vrot.lane.b32.xlu0 %v11346_v10, %s14125_s29 }
 0x263   : > { %v2076_v41 = vpop.f32.mrf.mxu1  ;;  %v2117_v44 = vadd.f32 %v2062_v42, %v11505_v51  ;;  %v3098_v51 = vpop.permute.xlu0 %3097 }
 0x264   : > { %v11584_v12 = vadd.f32 %v2076_v41, %v11508_v46 }
 0x265   : > { %v3100_v50 = vpop.permute.xlu1 %3099 }
 0x267   : > { %v2090_v22 = vpop.f32.mrf.mxu2  ;;  %v2104_v23 = vpop.f32.mrf.mxu3 }
 0x268   : > { %v11587_v40 = vadd.f32 %v2090_v22, %v11510_v59  ;;  %v11589_v48 = vadd.f32 %v2104_v23, %v1966_v11  ;;  %3713 = vrot.lane.b32.xlu2 %v11270_v14, %s14122_s13  ;;  %3867 = vrot.lane.b32.xlu1 %v11270_v14, %s14125_s29  ;;  %v3096_v1 = vpop.permute.xlu2 %3095 }
 0x269   : > { %v3110_v2 = vsel %vm14130_vm15, %v3094_v45, %v3096_v1  ;;  %v3111_v56 = vsel %vm14130_vm15, %v3096_v1, %v3098_v51  ;;  %v11680_v45 = vld [vmem:[%s14089_s1 + $0x90] sm:$0xff] }
 0x26a   : > { %v2172_v54 = vpop.f32.mrf.mxu0  ;;  %3871 = vrot.lane.b32.xlu0 %v11381_v26, %s14125_s29 }
 0x26b   : > { %v2186_v53 = vpop.f32.mrf.mxu1  ;;  %v2261_v46 = vadd.f32 %v2172_v54, %v11520_v62 }
 0x26c   : > { %v11604_v59 = vadd.f32 %v2186_v53, %v11531_v8  ;;  %9461 = vmatmul.msk.bf16.vlgmr.msrb.gmra.mxu2 %vm361_vm1, %v10136_v3  ;;  %9468 = vmatmul.msk.bf16.vlgmr.msrb.gmra.mxu3 %vm361_vm1, %v11594_v27 }
 0x26d   : > { %9459 = vmatmul.msk.bf16.vlgmr.msrb.gmra.mxu0 %vm361_vm1, %v10136_v3  ;;  %3134 = vmatpush.bf16.msrb.mxu2 %v3110_v2  ;;  %v3106_v20 = vpop.permute.xlu1 %3105 }
 0x26e   : > { %9460 = vmatmul.msk.bf16.vlgmr.msrb.gmra.mxu1 %vm361_vm1, %v10136_v3  ;;  %3010 = vmatpush.bf16.msrb.mxu0 %v2921_v60 }
 0x26f   : > { %3024 = vmatpush.bf16.msrb.mxu1 %v2922_v49  ;;  %v2200_v62 = vpop.f32.mrf.mxu2  ;;  %v2214_v63 = vpop.f32.mrf.mxu3  ;;  %3148 = vmatpush.bf16.msrb.mxu3 %v3111_v56 }
 0x270   : > { %v11616_v6 = vadd.f32 %v2200_v62, %v11533_v9  ;;  %v11618_v7 = vadd.f32 %v2214_v63, %v2110_v32  ;;  %3719 = vrot.lane.b32.xlu2 %v11319_v47, %s14122_s13  ;;  %3873 = vrot.lane.b32.xlu1 %v11319_v47, %s14125_s29  ;;  %v3102_v9 = vpop.permute.xlu2 %3101  ;;  %s10376_s13 = smov 35  }
 0x271   : > { %v3113_v5 = vsel %vm14130_vm15, %v3100_v50, %v3102_v9 }
 0x272   : > { %v2174_v57 = vpop.f32.mrf.mxu0  ;;  %3877 = vrot.lane.b32.xlu0 %v11411_v52, %s14125_s29 }
 0x273   : > { %v2188_v61 = vpop.f32.mrf.mxu1  ;;  %v2268_v8 = vadd.f32 %v2174_v57, %v11543_v16 }
 0x274   : > { %v11628_v58 = vadd.f32 %v2188_v61, %v11546_v24  ;;  %v3104_v3 = vpop.permute.xlu0 %3103 }
 0x275   : > { %v3114_v29 = vsel %vm14130_vm15, %v3102_v9, %v3104_v3  ;;  %v3115_v31 = vsel %vm14130_vm15, %v3104_v3, %v3106_v20  ;;  %v3250_v43 = vpop.permute.xlu1 %3249 }
 0x277   : > { %v2202_v4 = vpop.f32.mrf.mxu2  ;;  %v2216_v0 = vpop.f32.mrf.mxu3 }
 0x278   : > { %v11631_v11 = vadd.f32 %v2202_v4, %v11548_v25  ;;  %v11633_v19 = vadd.f32 %v2216_v0, %v2117_v44  ;;  %3863 = vrot.lane.b32.xlu2 %v11260_v15, %s14125_s29  ;;  %4017 = vrot.lane.b32.xlu1 %v11260_v15, %s14128_s8  ;;  %v3112_v25 = vsel %vm14130_vm15, %v3098_v51, %v3100_v50 }
 0x27a   : > { %v2228_v21 = vpop.f32.mrf.mxu0  ;;  %4021 = vrot.lane.b32.xlu0 %v11270_v14, %s14128_s8  ;;  %v3108_v37 = vpop.permute.xlu2 %3107 }
 0x27b   : > { %v2242_v28 = vpop.f32.mrf.mxu1  ;;  %v2265_v16 = vadd.f32 %v2228_v21, %v11561_v36  ;;  %v3116_v51 = vsel %vm14130_vm15, %v3106_v20, %v3108_v37  ;;  %vm14132_vm15 = vcmask 375808  }
 0x27c   : > { %v11643_v24 = vadd.f32 %v2242_v28, %v11572_v30  ;;  %9471 = vmatmul.msk.bf16.vlgmr.msra.gmra.mxu2 %vm361_vm1, %v11594_v27  ;;  %9472 = vmatmul.msk.bf16.vlgmr.msra.gmra.mxu3 %vm361_vm1, %v11594_v27 }
 0x27d   : > { %9469 = vmatmul.msk.bf16.vlgmr.msra.gmra.mxu0 %vm361_vm1, %v11594_v27  ;;  %3190 = vmatpush.bf16.msra.mxu2 %v3114_v29 }
 0x27e   : > { %9470 = vmatmul.msk.bf16.vlgmr.msra.gmra.mxu1 %vm361_vm1, %v11594_v27  ;;  %3162 = vmatpush.bf16.msra.mxu0 %v3112_v25 }
 0x27f   : > { %3176 = vmatpush.bf16.msra.mxu1 %v3113_v5  ;;  %v2256_v32 = vpop.f32.mrf.mxu2  ;;  %v2326_v36 = vpop.f32.mrf.mxu3  ;;  %3204 = vmatpush.bf16.msra.mxu3 %v3115_v31 }
 0x280   : > { %v11658_v33 = vadd.f32 %v2256_v32, %v11574_v34  ;;  %v11660_v18 = vadd.f32 %v2326_v36, %v2261_v46  ;;  %3869 = vrot.lane.b32.xlu2 %v11286_v35, %s14125_s29  ;;  %4023 = vrot.lane.b32.xlu1 %v11286_v35, %s14128_s8  ;;  %v3248_v34 = vpop.permute.xlu0 %3247 }
 0x281   : > { %v3264_v54 = vsel %vm14127_vm14, %v3248_v34, %v3250_v43 }
 0x282   : > { %v2230_v17 = vpop.f32.mrf.mxu0  ;;  %4027 = vrot.lane.b32.xlu0 %v11319_v47, %s14128_s8 }
 0x283   : > { %v2244_v38 = vpop.f32.mrf.mxu1  ;;  %v2272_v13 = vadd.f32 %v2230_v17, %v11584_v12  ;;  %v3252_v12 = vpop.permute.xlu2 %3251 }
 0x284   : > { %v11670_v30 = vadd.f32 %v2244_v38, %v11587_v40  ;;  %v3265_v46 = vsel %vm14127_vm14, %v3250_v43, %v3252_v12 }
 0x287   : > { %v2258_v42 = vpop.f32.mrf.mxu2  ;;  %v2328_v41 = vpop.f32.mrf.mxu3 }
 0x288   : > { %v11673_v44 = vadd.f32 %v2258_v42, %v11589_v48  ;;  %v11675_v39 = vadd.f32 %v2328_v41, %v2268_v8  ;;  %4029 = vrot.lane.b32.xlu1 %v11316_v55, %s14128_s8  ;;  %3875 = vrot.lane.b32.xlu2 %v11316_v55, %s14125_s29  ;;  %v3254_v53 = vpop.permute.xlu0 %3253  ;;  %v3256_v56 = vpop.permute.xlu1 %3255  ;;  %v10147_v42 = vld [vmem:[%s14089_s1 + $0x98] sm:$0xff]  ;;  %s10379_s29 = smov 111  }
 0x289   : > { %v3266_v60 = vsel %vm14127_vm14, %v3252_v12, %v3254_v53 }
 0x28a   : > { %v2340_v22 = vpop.f32.mrf.mxu0  ;;  %4171 = vrot.lane.b32.xlu0 %v11260_v15, %s10376_s13 }
 0x28b   : > { %v2354_v23 = vpop.f32.mrf.mxu1  ;;  %v2416_v40 = vadd.f32 %v2340_v22, %v11604_v59 }
 0x28c   : > { %v11690_v48 = vadd.f32 %v2354_v23, %v11616_v6  ;;  %9513 = vmatmul.msk.bf16.vlgmr.msrb.gmra.mxu2 %vm361_vm1, %v11680_v45  ;;  %9514 = vmatmul.msk.bf16.vlgmr.msrb.gmra.mxu3 %vm361_vm1, %v11680_v45 }
 0x28d   : > { %9473 = vmatmul.msk.bf16.vlgmr.msrb.gmra.mxu0 %vm361_vm1, %v11594_v27  ;;  %3302 = vmatpush.bf16.msrb.mxu2 %v3265_v46 }
 0x28e   : > { %9474 = vmatmul.msk.bf16.vlgmr.msrb.gmra.mxu1 %vm361_vm1, %v11594_v27  ;;  %3218 = vmatpush.bf16.msrb.mxu0 %v3116_v51 }
 0x28f   : > { %3288 = vmatpush.bf16.msrb.mxu1 %v3264_v54  ;;  %v2368_v59 = vpop.f32.mrf.mxu2  ;;  %v2382_v49 = vpop.f32.mrf.mxu3  ;;  %3316 = vmatpush.bf16.msrb.mxu3 %v3266_v60 }
 0x290   : > { %v11705_v1 = vadd.f32 %v2368_v59, %v11618_v7  ;;  %v11707_v2 = vadd.f32 %v2382_v49, %v2265_v16  ;;  %4173 = vrot.lane.b32.xlu1 %v11346_v10, %s10376_s13  ;;  %4019 = vrot.lane.b32.xlu2 %v11346_v10, %s14128_s8  ;;  %v3258_v7 = vpop.permute.xlu2 %3257  ;;  %v3260_v9 = vpop.permute.xlu0 %3259 }
 0x291   : > { %v3268_v3 = vsel %vm14127_vm14, %v3256_v56, %v3258_v7  ;;  %v3269_v21 = vsel %vm14127_vm14, %v3258_v7, %v3260_v9 }
 0x292   : > { %v2342_v62 = vpop.f32.mrf.mxu0  ;;  %4177 = vrot.lane.b32.xlu0 %v11286_v35, %s10376_s13  ;;  %v3262_v4 = vpop.permute.xlu1 %3261 }
 0x293   : > { %v2356_v63 = vpop.f32.mrf.mxu1  ;;  %v2423_v27 = vadd.f32 %v2342_v62, %v11628_v58  ;;  %v3270_v28 = vsel %vm14127_vm14, %v3260_v9, %v3262_v4 }
 0x294   : > { %v11717_v6 = vadd.f32 %v2356_v63, %v11631_v11 }
 0x297   : > { %v2370_v50 = vpop.f32.mrf.mxu2  ;;  %v2384_v57 = vpop.f32.mrf.mxu3 }
 0x298   : > { %v11720_v61 = vadd.f32 %v2370_v50, %v11633_v19  ;;  %v11722_v8 = vadd.f32 %v2384_v57, %v2272_v13  ;;  %4025 = vrot.lane.b32.xlu2 %v11381_v26, %s14128_s8  ;;  %4179 = vrot.lane.b32.xlu1 %v11381_v26, %s10376_s13  ;;  %v3267_v19 = vsel %vm14127_vm14, %v3254_v53, %v3256_v56  ;;  %v3402_v16 = vpop.permute.xlu2 %3401  ;;  %v3404_v31 = vpop.permute.xlu0 %3403  ;;  %vm14131_vm14 = vcmask 441344  }
 0x299   : > { %v3418_v22 = vsel %vm14131_vm14, %v3402_v16, %v3404_v31 }
 0x29a   : > { %v2396_v0 = vpop.f32.mrf.mxu0  ;;  %4183 = vrot.lane.b32.xlu0 %v11316_v55, %s10376_s13  ;;  %v3406_v17 = vpop.permute.xlu1 %3405 }
 0x29b   : > { %v2410_v20 = vpop.f32.mrf.mxu1  ;;  %v2420_v58 = vadd.f32 %v2396_v0, %v11643_v24  ;;  %v3419_v23 = vsel %vm14131_vm14, %v3404_v31, %v3406_v17 }
 0x29c   : > { %v11732_v11 = vadd.f32 %v2410_v20, %v11658_v33  ;;  %9517 = vmatmul.msk.bf16.vlgmr.msra.gmra.mxu2 %vm361_vm1, %v11680_v45  ;;  %9518 = vmatmul.msk.bf16.vlgmr.msra.gmra.mxu3 %vm361_vm1, %v11680_v45 }
 0x29d   : > { %9515 = vmatmul.msk.bf16.vlgmr.msra.gmra.mxu0 %vm361_vm1, %v11680_v45  ;;  %3358 = vmatpush.bf16.msra.mxu2 %v3269_v21 }
 0x29e   : > { %9516 = vmatmul.msk.bf16.vlgmr.msra.gmra.mxu1 %vm361_vm1, %v11680_v45  ;;  %3330 = vmatpush.bf16.msra.mxu0 %v3267_v19 }
 0x29f   : > { %3344 = vmatpush.bf16.msra.mxu1 %v3268_v3  ;;  %v2480_v24 = vpop.f32.mrf.mxu2  ;;  %v2494_v25 = vpop.f32.mrf.mxu3  ;;  %3372 = vmatpush.bf16.msra.mxu3 %v3270_v28 }
 0x2a0   : > { %v11747_v5 = vadd.f32 %v2480_v24, %v11660_v18  ;;  %v11749_v29 = vadd.f32 %v2494_v25, %v2416_v40  ;;  %4031 = vrot.lane.b32.xlu2 %v11411_v52, %s14128_s8  ;;  %4185 = vrot.lane.b32.xlu1 %v11411_v52, %s10376_s13  ;;  %v3408_v18 = vpop.permute.xlu2 %3407  ;;  %s10377_s8 = smov 34  }
 0x2a2   : > { %v2398_v32 = vpop.f32.mrf.mxu0  ;;  %4327 = vrot.lane.b32.xlu0 %v11346_v10, %s10377_s8  ;;  %v3420_v10 = vsel %vm14131_vm14, %v3406_v17, %v3408_v18  ;;  %v3412_v46 = vpop.permute.xlu1 %3411 }
 0x2a3   : > { %v2412_v36 = vpop.f32.mrf.mxu1  ;;  %v2427_v33 = vadd.f32 %v2398_v32, %v11670_v30  ;;  %v3410_v30 = vpop.permute.xlu0 %3409 }
 0x2a4   : > { %v11759_v37 = vadd.f32 %v2412_v36, %v11673_v44  ;;  %v3421_v40 = vsel %vm14131_vm14, %v3408_v18, %v3410_v30  ;;  %v3422_v57 = vsel %vm14131_vm14, %v3410_v30, %v3412_v46 }
 0x2a7   : > { %v2482_v38 = vpop.f32.mrf.mxu2  ;;  %v2496_v13 = vpop.f32.mrf.mxu3 }
 0x2a8   : > { %v11762_v34 = vadd.f32 %v2482_v38, %v11675_v39  ;;  %v11764_v43 = vadd.f32 %v2496_v13, %v2423_v27  ;;  %4175 = vrot.lane.b32.xlu2 %v11270_v14, %s10376_s13  ;;  %4329 = vrot.lane.b32.xlu1 %v11270_v14, %s10377_s8  ;;  %v3414_v14 = vpop.permute.xlu2 %3413 }
 0x2aa   : > { %v2508_v41 = vpop.f32.mrf.mxu0  ;;  %4333 = vrot.lane.b32.xlu0 %v11381_v26, %s10377_s8  ;;  %v3556_v63 = vpop.permute.xlu1 %3555 }
 0x2ab   : > { %v2522_v44 = vpop.f32.mrf.mxu1  ;;  %v2571_v39 = vadd.f32 %v2508_v41, %v11690_v48 }
 0x2ac   : > { %v11777_v12 = vadd.f32 %v2522_v44, %v11705_v1  ;;  %9527 = vmatmul.msk.bf16.vlgmr.msrb.gmra.mxu2 %vm361_vm1, %v10147_v42  ;;  %9528 = vmatmul.msk.bf16.vlgmr.msrb.gmra.mxu3 %vm361_vm1, %v10147_v42  ;;  %v3416_v1 = vpop.permute.xlu0 %3415 }
 0x2ad   : > { %9519 = vmatmul.msk.bf16.vlgmr.msrb.gmra.mxu0 %vm361_vm1, %v11680_v45  ;;  %3470 = vmatpush.bf16.msrb.mxu2 %v3420_v10 }
 0x2ae   : > { %9526 = vmatmul.msk.bf16.vlgmr.msrb.gmra.mxu1 %vm361_vm1, %v10147_v42  ;;  %3442 = vmatpush.bf16.msrb.mxu0 %v3418_v22 }
 0x2af   : > { %3456 = vmatpush.bf16.msrb.mxu1 %v3419_v23  ;;  %v2536_v48 = vpop.f32.mrf.mxu2  ;;  %v2550_v51 = vpop.f32.mrf.mxu3  ;;  %3484 = vmatpush.bf16.msrb.mxu3 %v3421_v40 }
 0x2b0   : > { %v2573_v54 = vadd.f32 %v2536_v48, %v11707_v2  ;;  %v11789_v53 = vadd.f32 %v2550_v51, %v2420_v58  ;;  %4181 = vrot.lane.b32.xlu2 %v11319_v47, %s10376_s13  ;;  %4335 = vrot.lane.b32.xlu1 %v11319_v47, %s10377_s8  ;;  %v3558_v27 = vpop.permute.xlu2 %3557  ;;  %v11867_v48 = vld [vmem:[%s14089_s1 + $0xa8] sm:$0xff] }
 0x2b2   : > { %v2510_v60 = vpop.f32.mrf.mxu0  ;;  %4339 = vrot.lane.b32.xlu0 %v11411_v52, %s10377_s8  ;;  %v3424_v52 = vsel %vm14131_vm14, %v3414_v14, %v3416_v1  ;;  %v3562_v28 = vpop.permute.xlu1 %3561 }
 0x2b3   : > { %v2524_v59 = vpop.f32.mrf.mxu1  ;;  %v2578_v45 = vadd.f32 %v2510_v60, %v11717_v6 }
 0x2b4   : > { %v11799_v49 = vadd.f32 %v2524_v59, %v11720_v61  ;;  %v3423_v61 = vsel %vm14131_vm14, %v3412_v46, %v3414_v14  ;;  %v3560_v20 = vpop.permute.xlu0 %3559  ;;  %vm14134_vm14 = vcmask 367616  }
 0x2b5   : > { %v3574_v18 = vsel %vm14132_vm15, %v3560_v20, %v3562_v28 }
 0x2b7   : > { %v2538_v2 = vpop.f32.mrf.mxu2  ;;  %v2552_v56 = vpop.f32.mrf.mxu3 }
 0x2b8   : > { %v11802_v62 = vadd.f32 %v2538_v2, %v11722_v8  ;;  %v11804_v26 = vadd.f32 %v2552_v56, %v2427_v33  ;;  %4325 = vrot.lane.b32.xlu2 %v11260_v15, %s10377_s8  ;;  %v3572_v8 = vsel %vm14132_vm15, %v3556_v63, %v3558_v27  ;;  %v3564_v21 = vpop.permute.xlu2 %3563 }
 0x2b9   : > { %v3575_v17 = vsel %vm14132_vm15, %v3562_v28, %v3564_v21 }
 0x2ba   : > { %v2564_v47 = vpop.f32.mrf.mxu0  ;;  %v3568_v30 = vpop.permute.xlu1 %3567 }
 0x2bb   : > { %v2634_v7 = vpop.f32.mrf.mxu1  ;;  %v2575_v6 = vadd.f32 %v2564_v47, %v11732_v11 }
 0x2bc   : > { %v11812_v50 = vadd.f32 %v2634_v7, %v11747_v5  ;;  %9531 = vmatmul.msk.bf16.vlgmr.msra.gmra.mxu2 %vm361_vm1, %v10147_v42  ;;  %9532 = vmatmul.msk.bf16.vlgmr.msra.gmra.mxu3 %vm361_vm1, %v10147_v42  ;;  %v3566_v31 = vpop.permute.xlu0 %3565 }
 0x2bd   : > { %9529 = vmatmul.msk.bf16.vlgmr.msra.gmra.mxu0 %vm361_vm1, %v10147_v42  ;;  %3526 = vmatpush.bf16.msra.mxu2 %v3424_v52  ;;  %v3576_v38 = vsel %vm14132_vm15, %v3564_v21, %v3566_v31 }
 0x2be   : > { %9530 = vmatmul.msk.bf16.vlgmr.msra.gmra.mxu1 %vm361_vm1, %v10147_v42  ;;  %3498 = vmatpush.bf16.msra.mxu0 %v3422_v57 }
 0x2bf   : > { %3512 = vmatpush.bf16.msra.mxu1 %v3423_v61  ;;  %v2648_v15 = vpop.f32.mrf.mxu2  ;;  %v2662_v9 = vpop.f32.mrf.mxu3  ;;  %3596 = vmatpush.bf16.msra.mxu3 %v3572_v8 }
 0x2c0   : > { %v2724_v4 = vadd.f32 %v2648_v15, %v11749_v29  ;;  %v11823_v0 = vadd.f32 %v2662_v9, %v2571_v39  ;;  %4331 = vrot.lane.b32.xlu2 %v11286_v35, %s10377_s8  ;;  %v10148_v29 = vld [vmem:[%s14089_s1 + $0xa0] sm:$0xff] }
 0x2c2   : > { %v2566_v58 = vpop.f32.mrf.mxu0  ;;  %v3712_v51 = vpop.permute.xlu1 %3711 }
 0x2c3   : > { %v2636_v11 = vpop.f32.mrf.mxu1  ;;  %v2582_v19 = vadd.f32 %v2566_v58, %v11759_v37  ;;  %v3573_v37 = vsel %vm14132_vm15, %v3558_v27, %v3560_v20 }
 0x2c4   : > { %v11829_v3 = vadd.f32 %v2636_v11, %v11762_v34  ;;  %v3710_v22 = vpop.permute.xlu0 %3709 }
 0x2c5   : > { %v3726_v1 = vsel %vm14134_vm14, %v3710_v22, %v3712_v51 }
 0x2c7   : > { %v2650_v16 = vpop.f32.mrf.mxu2  ;;  %v2664_v24 = vpop.f32.mrf.mxu3 }
 0x2c8   : > { %v11832_v25 = vadd.f32 %v2650_v16, %v11764_v43  ;;  %v11834_v5 = vadd.f32 %v2664_v24, %v2578_v45  ;;  %4337 = vrot.lane.b32.xlu2 %v11316_v55, %s10377_s8  ;;  %v3570_v55 = vpop.permute.xlu2 %3569  ;;  %v3577_v45 = vsel %vm14132_vm15, %v3566_v31, %v3568_v30 }
 0x2ca   : > { %v2676_v35 = vpop.f32.mrf.mxu0  ;;  %v3718_v61 = vpop.permute.xlu1 %3717 }
 0x2cb   : > { %v2690_v32 = vpop.f32.mrf.mxu1  ;;  %v2726_v36 = vadd.f32 %v2676_v35, %v11777_v12 }
 0x2cc   : > { %v11842_v33 = vadd.f32 %v2690_v32, %v2573_v54  ;;  %9541 = vmatmul.msk.bf16.vlgmr.msrb.gmra.mxu2 %vm361_vm1, %v10148_v29  ;;  %9542 = vmatmul.msk.bf16.vlgmr.msrb.gmra.mxu3 %vm361_vm1, %v10148_v29  ;;  %v3716_v27 = vpop.permute.xlu0 %3715 }
 0x2cd   : > { %9539 = vmatmul.msk.bf16.vlgmr.msrb.gmra.mxu0 %vm361_vm1, %v10148_v29  ;;  %3638 = vmatpush.bf16.msrb.mxu2 %v3575_v17 }
 0x2ce   : > { %9540 = vmatmul.msk.bf16.vlgmr.msrb.gmra.mxu1 %vm361_vm1, %v10148_v29  ;;  %3610 = vmatpush.bf16.msrb.mxu0 %v3573_v37 }
 0x2cf   : > { %3624 = vmatpush.bf16.msrb.mxu1 %v3574_v18  ;;  %v2704_v13 = vpop.f32.mrf.mxu2  ;;  %v2718_v34 = vpop.f32.mrf.mxu3  ;;  %3652 = vmatpush.bf16.msrb.mxu3 %v3576_v38 }
 0x2d0   : > { %v2728_v43 = vadd.f32 %v2704_v13, %v11789_v53  ;;  %v11853_v42 = vadd.f32 %v2718_v34, %v2575_v6  ;;  %v3714_v54 = vpop.permute.xlu2 %3713  ;;  %v11921_v13 = vld [vmem:[%s14089_s1 + $0xb0] sm:$0xff] }
 0x2d1   : > { %v3727_v2 = vsel %vm14134_vm14, %v3712_v51, %v3714_v54 }
 0x2d2   : > { %v2678_v41 = vpop.f32.mrf.mxu0  ;;  %v3724_v31 = vpop.permute.xlu1 %3723 }
 0x2d3   : > { %v2692_v44 = vpop.f32.mrf.mxu1  ;;  %v2733_v39 = vadd.f32 %v2678_v41, %v11799_v49  ;;  %v3578_v49 = vsel %vm14132_vm15, %v3568_v30, %v3570_v55  ;;  %vm14133_vm15 = vcmask 359424  }
 0x2d4   : > { %v11857_v12 = vadd.f32 %v2692_v44, %v11802_v62 }
 0x2d7   : > { %v2706_v23 = vpop.f32.mrf.mxu2  ;;  %v2720_v10 = vpop.f32.mrf.mxu3 }
 0x2d8   : > { %v11860_v40 = vadd.f32 %v2706_v23, %v11804_v26  ;;  %v11862_v14 = vadd.f32 %v2720_v10, %v2582_v19  ;;  %v3720_v57 = vpop.permute.xlu2 %3719  ;;  %v3728_v19 = vsel %vm14134_vm14, %v3714_v54, %v3716_v27 }
 0x2d9   : > { %v3730_v21 = vsel %vm14134_vm14, %v3718_v61, %v3720_v57 }
 0x2da   : > { %v2788_v53 = vpop.f32.mrf.mxu0  ;;  %v3868_v34 = vpop.permute.xlu1 %3867 }
 0x2db   : > { %v2802_v46 = vpop.f32.mrf.mxu1  ;;  %v2877_v60 = vadd.f32 %v2788_v53, %v11812_v50 }
 0x2dc   : > { %v11870_v59 = vadd.f32 %v2802_v46, %v2724_v4  ;;  %9545 = vmatmul.msk.bf16.vlgmr.msra.gmra.mxu2 %vm361_vm1, %v10148_v29  ;;  %9552 = vmatmul.msk.bf16.vlgmr.msra.gmra.mxu3 %vm361_vm1, %v11867_v48  ;;  %v3722_v4 = vpop.permute.xlu0 %3721 }
 0x2dd   : > { %9543 = vmatmul.msk.bf16.vlgmr.msra.gmra.mxu0 %vm361_vm1, %v10148_v29  ;;  %3750 = vmatpush.bf16.msra.mxu2 %v3726_v1  ;;  %v3731_v28 = vsel %vm14134_vm14, %v3720_v57, %v3722_v4 }
 0x2de   : > { %9544 = vmatmul.msk.bf16.vlgmr.msra.gmra.mxu1 %vm361_vm1, %v10148_v29  ;;  %3666 = vmatpush.bf16.msra.mxu0 %v3577_v45 }
 0x2df   : > { %3680 = vmatpush.bf16.msra.mxu1 %v3578_v49  ;;  %v2816_v56 = vpop.f32.mrf.mxu2  ;;  %v2830_v62 = vpop.f32.mrf.mxu3  ;;  %3764 = vmatpush.bf16.msra.mxu3 %v3727_v2 }
 0x2e0   : > { %v2879_v26 = vadd.f32 %v2816_v56, %v11823_v0  ;;  %v11882_v63 = vadd.f32 %v2830_v62, %v2726_v36  ;;  %v3864_v16 = vpop.permute.xlu2 %3863 }
 0x2e2   : > { %v2790_v47 = vpop.f32.mrf.mxu0  ;;  %v3874_v49 = vpop.permute.xlu1 %3873 }
 0x2e3   : > { %v2804_v7 = vpop.f32.mrf.mxu1  ;;  %v2884_v6 = vadd.f32 %v2790_v47, %v11829_v3  ;;  %v3729_v3 = vsel %vm14134_vm14, %v3716_v27, %v3718_v61 }
 0x2e4   : > { %v11886_v50 = vadd.f32 %v2804_v7, %v11832_v25  ;;  %v3866_v37 = vpop.permute.xlu0 %3865 }
 0x2e5   : > { %v3881_v22 = vsel %vm14133_vm15, %v3866_v37, %v3868_v34 }
 0x2e7   : > { %v2818_v52 = vpop.f32.mrf.mxu2  ;;  %v2832_v8 = vpop.f32.mrf.mxu3 }
 0x2e8   : > { %v2886_v15 = vadd.f32 %v2818_v52, %v11834_v5  ;;  %v11889_v9 = vadd.f32 %v2832_v8, %v2733_v39  ;;  %v3732_v39 = vsel %vm14134_vm14, %v3722_v4, %v3724_v31  ;;  %vm14139_vm14 = vcmask 285696  }
 0x2ea   : > { %v2844_v0 = vpop.f32.mrf.mxu0  ;;  %v4018_v61 = vpop.permute.xlu1 %4017 }
 0x2eb   : > { %v2858_v20 = vpop.f32.mrf.mxu1  ;;  %v2881_v58 = vadd.f32 %v2844_v0, %v11842_v33 }
 0x2ec   : > { %v11892_v11 = vadd.f32 %v2858_v20, %v2728_v43  ;;  %9555 = vmatmul.msk.bf16.vlgmr.msrb.gmra.mxu2 %vm361_vm1, %v11867_v48  ;;  %9556 = vmatmul.msk.bf16.vlgmr.msrb.gmra.mxu3 %vm361_vm1, %v11867_v48  ;;  %v3870_v43 = vpop.permute.xlu2 %3869  ;;  %v3872_v54 = vpop.permute.xlu0 %3871 }
 0x2ed   : > { %9553 = vmatmul.msk.bf16.vlgmr.msrb.gmra.mxu0 %vm361_vm1, %v11867_v48  ;;  %3806 = vmatpush.bf16.msrb.mxu2 %v3730_v21  ;;  %v3882_v23 = vsel %vm14133_vm15, %v3868_v34, %v3870_v43  ;;  %v3883_v7 = vsel %vm14133_vm15, %v3870_v43, %v3872_v54 }
 0x2ee   : > { %9554 = vmatmul.msk.bf16.vlgmr.msrb.gmra.mxu1 %vm361_vm1, %v11867_v48  ;;  %3778 = vmatpush.bf16.msrb.mxu0 %v3728_v19 }
 0x2ef   : > { %3792 = vmatpush.bf16.msrb.mxu1 %v3729_v3  ;;  %v2872_v24 = vpop.f32.mrf.mxu2  ;;  %v2942_v25 = vpop.f32.mrf.mxu3  ;;  %3820 = vmatpush.bf16.msrb.mxu3 %v3731_v28 }
 0x2f0   : > { %v2883_v5 = vadd.f32 %v2872_v24, %v11853_v42  ;;  %v11907_v29 = vadd.f32 %v2942_v25, %v2877_v60  ;;  %v10151_v25 = vld [vmem:[%s14089_s1 + $0xb8] sm:$0xff] }
 0x2f2   : > { %v2846_v35 = vpop.f32.mrf.mxu0  ;;  %v4024_v19 = vpop.permute.xlu1 %4023 }
 0x2f3   : > { %v2860_v32 = vpop.f32.mrf.mxu1  ;;  %v2888_v36 = vadd.f32 %v2846_v35, %v11857_v12  ;;  %v3880_v12 = vsel %vm14133_vm15, %v3864_v16, %v3866_v37 }
 0x2f4   : > { %v11911_v33 = vadd.f32 %v2860_v32, %v11860_v40  ;;  %v3876_v45 = vpop.permute.xlu2 %3875  ;;  %v3878_v62 = vpop.permute.xlu0 %3877 }
 0x2f5   : > { %v3885_v57 = vsel %vm14133_vm15, %v3874_v49, %v3876_v45 }
 0x2f7   : > { %v2874_v18 = vpop.f32.mrf.mxu2  ;;  %v2944_v17 = vpop.f32.mrf.mxu3 }
 0x2f8   : > { %v11914_v38 = vadd.f32 %v2874_v18, %v11862_v14  ;;  %v11916_v55 = vadd.f32 %v2944_v17, %v2884_v6  ;;  %v3884_v6 = vsel %vm14133_vm15, %v3872_v54, %v3874_v49 }
 0x2fa   : > { %v2956_v42 = vpop.f32.mrf.mxu0  ;;  %v4030_v17 = vpop.permute.xlu1 %4029 }
 0x2fb   : > { %v2970_v30 = vpop.f32.mrf.mxu1  ;;  %v3032_v41 = vadd.f32 %v2956_v42, %v11870_v59 }
 0x2fc   : > { %v11924_v44 = vadd.f32 %v2970_v30, %v2879_v26  ;;  %9565 = vmatmul.msk.bf16.vlgmr.msra.gmra.mxu2 %vm361_vm1, %v11921_v13  ;;  %9566 = vmatmul.msk.bf16.vlgmr.msra.gmra.mxu3 %vm361_vm1, %v11921_v13  ;;  %v4020_v52 = vpop.permute.xlu2 %4019  ;;  %v4022_v3 = vpop.permute.xlu0 %4021 }
 0x2fd   : > { %9557 = vmatmul.msk.bf16.vlgmr.msra.gmra.mxu0 %vm361_vm1, %v11867_v48  ;;  %3918 = vmatpush.bf16.msra.mxu2 %v3881_v22 }
 0x2fe   : > { %9558 = vmatmul.msk.bf16.vlgmr.msra.gmra.mxu1 %vm361_vm1, %v11867_v48  ;;  %3834 = vmatpush.bf16.msra.mxu0 %v3732_v39 }
 0x2ff   : > { %3904 = vmatpush.bf16.msra.mxu1 %v3880_v12  ;;  %v2984_v10 = vpop.f32.mrf.mxu2  ;;  %v2998_v40 = vpop.f32.mrf.mxu3  ;;  %3932 = vmatpush.bf16.msra.mxu3 %v3882_v23 }
 0x300   : > { %v3034_v14 = vadd.f32 %v2984_v10, %v11882_v63  ;;  %v11939_v51 = vadd.f32 %v2998_v40, %v2881_v58 }
 0x302   : > { %v2958_v53 = vpop.f32.mrf.mxu0  ;;  %v4174_v40 = vpop.permute.xlu1 %4173 }
 0x303   : > { %v2972_v46 = vpop.f32.mrf.mxu1  ;;  %v3039_v60 = vadd.f32 %v2958_v53, %v11886_v50  ;;  %v3886_v50 = vsel %vm14133_vm15, %v3876_v45, %v3878_v62  ;;  %vm14135_vm15 = vcmask 293888  }
 0x304   : > { %v11942_v59 = vadd.f32 %v2972_v46, %v2886_v15  ;;  %v4036_v37 = vsel %vm14135_vm15, %v4022_v3, %v4024_v19  ;;  %v4028_v42 = vpop.permute.xlu0 %4027 }
 0x307   : > { %v2986_v48 = vpop.f32.mrf.mxu2  ;;  %v3000_v1 = vpop.f32.mrf.mxu3 }
 0x308   : > { %v11945_v2 = vadd.f32 %v2986_v48, %v11889_v9  ;;  %v11947_v56 = vadd.f32 %v3000_v1, %v2888_v36  ;;  %v4034_v36 = vsel %vm14135_vm15, %v4018_v61, %v4020_v52 }
 0x30a   : > { %v3012_v26 = vpop.f32.mrf.mxu0 }
 0x30b   : > { %v3026_v63 = vpop.f32.mrf.mxu1  ;;  %v3036_v27 = vadd.f32 %v3012_v26, %v11892_v11 }
 0x30c   : > { %v11950_v47 = vadd.f32 %v3026_v63, %v2883_v5  ;;  %9569 = vmatmul.msk.bf16.vlgmr.msrb.gmra.mxu2 %vm361_vm1, %v11921_v13  ;;  %9570 = vmatmul.msk.bf16.vlgmr.msrb.gmra.mxu3 %vm361_vm1, %v11921_v13  ;;  %v4026_v5 = vpop.permute.xlu2 %4025 }
 0x30d   : > { %9567 = vmatmul.msk.bf16.vlgmr.msrb.gmra.mxu0 %vm361_vm1, %v11921_v13  ;;  %3974 = vmatpush.bf16.msrb.mxu2 %v3885_v57  ;;  %v4037_v18 = vsel %vm14135_vm15, %v4024_v19, %v4026_v5 }
 0x30e   : > { %9568 = vmatmul.msk.bf16.vlgmr.msrb.gmra.mxu1 %vm361_vm1, %v11921_v13  ;;  %3946 = vmatpush.bf16.msrb.mxu0 %v3883_v7  ;;  %v4180_v7 = vpop.permute.xlu1 %4179 }
 0x30f   : > { %3960 = vmatpush.bf16.msrb.mxu1 %v3884_v6  ;;  %v3136_v8 = vpop.f32.mrf.mxu2  ;;  %v3150_v15 = vpop.f32.mrf.mxu3  ;;  %3988 = vmatpush.bf16.msrb.mxu3 %v3886_v50 }
 0x310   : > { %v3225_v9 = vadd.f32 %v3136_v8, %v11907_v29  ;;  %v11965_v4 = vadd.f32 %v3150_v15, %v3032_v41  ;;  %v10152_v8 = vld [vmem:[%s14089_s1 + $0xc0] sm:$0xff] }
 0x312   : > { %v3014_v0 = vpop.f32.mrf.mxu0 }
 0x313   : > { %v3028_v20 = vpop.f32.mrf.mxu1  ;;  %v3043_v58 = vadd.f32 %v3014_v0, %v11911_v33  ;;  %v4035_v33 = vsel %vm14135_vm15, %v4020_v52, %v4022_v3 }
 0x314   : > { %v11969_v11 = vadd.f32 %v3028_v20, %v11914_v38  ;;  %v4032_v39 = vpop.permute.xlu2 %4031 }
 0x315   : > { %v4040_v45 = vsel %vm14135_vm15, %v4030_v17, %v4032_v39 }
 0x317   : > { %v3138_v21 = vpop.f32.mrf.mxu2  ;;  %v3152_v28 = vpop.f32.mrf.mxu3 }
 0x318   : > { %v11972_v16 = vadd.f32 %v3138_v21, %v11916_v55  ;;  %v11974_v24 = vadd.f32 %v3152_v28, %v3039_v60  ;;  %v4038_v60 = vsel %vm14135_vm15, %v4026_v5, %v4028_v42  ;;  %v4186_v21 = vpop.permute.xlu1 %4185 }
 0x31a   : > { %v3164_v29 = vpop.f32.mrf.mxu0 }
 0x31b   : > { %v3178_v31 = vpop.f32.mrf.mxu1  ;;  %v3227_v35 = vadd.f32 %v3164_v29, %v11924_v44 }
 0x31c   : > { %v11980_v32 = vadd.f32 %v3178_v31, %v3034_v14  ;;  %9579 = vmatmul.msk.bf16.vlgmr.msra.gmra.mxu2 %vm361_vm1, %v10151_v25  ;;  %9580 = vmatmul.msk.bf16.vlgmr.msra.gmra.mxu3 %vm361_vm1, %v10151_v25  ;;  %v4172_v14 = vpop.permute.xlu0 %4171  ;;  %v4176_v62 = vpop.permute.xlu2 %4175 }
 0x31d   : > { %9571 = vmatmul.msk.bf16.vlgmr.msra.gmra.mxu0 %vm361_vm1, %v11921_v13  ;;  %4086 = vmatpush.bf16.msra.mxu2 %v4036_v37  ;;  %v4188_v49 = vsel %vm14139_vm14, %v4172_v14, %v4174_v40 }
 0x31e   : > { %9578 = vmatmul.msk.bf16.vlgmr.msra.gmra.mxu1 %vm361_vm1, %v10151_v25  ;;  %4058 = vmatpush.bf16.msra.mxu0 %v4034_v36 }
 0x31f   : > { %4072 = vmatpush.bf16.msra.mxu1 %v4035_v33  ;;  %v3192_v38 = vpop.f32.mrf.mxu2  ;;  %v3206_v55 = vpop.f32.mrf.mxu3  ;;  %4100 = vmatpush.bf16.msra.mxu3 %v4037_v18 }
 0x320   : > { %v3229_v34 = vadd.f32 %v3192_v38, %v11939_v51  ;;  %v11992_v43 = vadd.f32 %v3206_v55, %v3036_v27  ;;  %v12057_v38 = vld [vmem:[%s14089_s1 + $0xc8] sm:$0xff]  ;;  %v4330_v55 = vpop.permute.xlu1 %4329 }
 0x322   : > { %v3166_v30 = vpop.f32.mrf.mxu0 }
 0x323   : > { %v3180_v41 = vpop.f32.mrf.mxu1  ;;  %v3234_v44 = vadd.f32 %v3166_v30, %v11942_v59  ;;  %v4039_v59 = vsel %vm14135_vm15, %v4028_v42, %v4030_v17  ;;  %vm14138_vm15 = vcmask 277504  }
 0x324   : > { %v11996_v13 = vadd.f32 %v3180_v41, %v11945_v2  ;;  %v4178_v6 = vpop.permute.xlu0 %4177  ;;  %v4182_v15 = vpop.permute.xlu2 %4181 }
 0x325   : > { %v4191_v19 = vsel %vm14139_vm14, %v4178_v6, %v4180_v7  ;;  %v4192_v3 = vsel %vm14139_vm14, %v4180_v7, %v4182_v15 }
 0x327   : > { %v3194_v12 = vpop.f32.mrf.mxu2  ;;  %v3208_v22 = vpop.f32.mrf.mxu3 }
 0x328   : > { %v11999_v23 = vadd.f32 %v3194_v12, %v11947_v56  ;;  %v12001_v10 = vadd.f32 %v3208_v22, %v3043_v58  ;;  %v4189_v58 = vsel %vm14139_vm14, %v4174_v40, %v4176_v62 }
 0x32a   : > { %v3220_v51 = vpop.f32.mrf.mxu0 }
 0x32b   : > { %v3290_v54 = vpop.f32.mrf.mxu1  ;;  %v3231_v53 = vadd.f32 %v3220_v51, %v11950_v47 }
 0x32c   : > { %v12004_v46 = vadd.f32 %v3290_v54, %v3225_v9  ;;  %9583 = vmatmul.msk.bf16.vlgmr.msrb.gmra.mxu2 %vm361_vm1, %v10151_v25  ;;  %9584 = vmatmul.msk.bf16.vlgmr.msrb.gmra.mxu3 %vm361_vm1, %v10151_v25  ;;  %v4184_v5 = vpop.permute.xlu0 %4183  ;;  %v4326_v36 = vpop.permute.xlu2 %4325 }
 0x32d   : > { %9581 = vmatmul.msk.bf16.vlgmr.msrb.gmra.mxu0 %vm361_vm1, %v10151_v25  ;;  %4142 = vmatpush.bf16.msrb.mxu2 %v4040_v45  ;;  %v4336_v45 = vpop.permute.xlu1 %4335 }
 0x32e   : > { %9582 = vmatmul.msk.bf16.vlgmr.msrb.gmra.mxu1 %vm361_vm1, %v10151_v25  ;;  %4114 = vmatpush.bf16.msrb.mxu0 %v4038_v60 }
 0x32f   : > { %4128 = vmatpush.bf16.msrb.mxu1 %v4039_v59  ;;  %v3304_v48 = vpop.f32.mrf.mxu2  ;;  %v3318_v1 = vpop.f32.mrf.mxu3  ;;  %4212 = vmatpush.bf16.msrb.mxu3 %v4188_v49 }
 0x330   : > { %v3380_v2 = vadd.f32 %v3304_v48, %v11965_v4  ;;  %v12015_v56 = vadd.f32 %v3318_v1, %v3227_v35 }
 0x332   : > { %v3222_v26 = vpop.f32.mrf.mxu0 }
 0x333   : > { %v3292_v63 = vpop.f32.mrf.mxu1  ;;  %v3238_v27 = vadd.f32 %v3222_v26, %v11969_v11  ;;  %v4190_v11 = vsel %vm14139_vm14, %v4176_v62, %v4178_v6 }
 0x334   : > { %v12019_v47 = vadd.f32 %v3292_v63, %v11972_v16  ;;  %v4332_v14 = vpop.permute.xlu2 %4331 }
 0x335   : > { %v4344_v62 = vsel %vm14138_vm15, %v4330_v55, %v4332_v14 }
 0x337   : > { %v3306_v50 = vpop.f32.mrf.mxu2  ;;  %v3320_v57 = vpop.f32.mrf.mxu3 }
 0x338   : > { %v12022_v61 = vadd.f32 %v3306_v50, %v11974_v24  ;;  %v12024_v52 = vadd.f32 %v3320_v57, %v3234_v44  ;;  %v4193_v44 = vsel %vm14139_vm14, %v4182_v15, %v4184_v5 }
 0x33a   : > { %v3332_v9 = vpop.f32.mrf.mxu0 }
 0x33b   : > { %v3346_v4 = vpop.f32.mrf.mxu1  ;;  %v3382_v0 = vadd.f32 %v3332_v9, %v11980_v32 }
 0x33c   : > { %v12030_v20 = vadd.f32 %v3346_v4, %v3229_v34  ;;  %9593 = vmatmul.msk.bf16.vlgmr.msra.gmra.mxu2 %vm361_vm1, %v10152_v8  ;;  %9594 = vmatmul.msk.bf16.vlgmr.msra.gmra.mxu3 %vm361_vm1, %v10152_v8  ;;  %v4328_v34 = vpop.permute.xlu0 %4327  ;;  %v4338_v49 = vpop.permute.xlu2 %4337 }
 0x33d   : > { %9591 = vmatmul.msk.bf16.vlgmr.msra.gmra.mxu0 %vm361_vm1, %v10152_v8  ;;  %4254 = vmatpush.bf16.msra.mxu2 %v4191_v19  ;;  %v4342_v39 = vsel %vm14138_vm15, %v4326_v36, %v4328_v34  ;;  %v4343_v12 = vsel %vm14138_vm15, %v4328_v34, %v4330_v55 }
 0x33e   : > { %9592 = vmatmul.msk.bf16.vlgmr.msra.gmra.mxu1 %vm361_vm1, %v10152_v8  ;;  %4226 = vmatpush.bf16.msra.mxu0 %v4189_v58 }
 0x33f   : > { %4240 = vmatpush.bf16.msra.mxu1 %v4190_v11  ;;  %v3360_v28 = vpop.f32.mrf.mxu2  ;;  %v3374_v16 = vpop.f32.mrf.mxu3  ;;  %4268 = vmatpush.bf16.msra.mxu3 %v4192_v3 }
 0x340   : > { %v3384_v24 = vadd.f32 %v3360_v28, %v11992_v43  ;;  %v12041_v25 = vadd.f32 %v3374_v16, %v3231_v53 }
 0x342   : > { %v3334_v29 = vpop.f32.mrf.mxu0 }
 0x343   : > { %v3348_v31 = vpop.f32.mrf.mxu1  ;;  %v12044_v35 = vadd.f32 %v3334_v29, %v11996_v13  ;;  %v4194_v13 = vsel %vm14139_vm14, %v4184_v5, %v4186_v21 }
 0x344   : > { %v12047_v32 = vadd.f32 %v3348_v31, %v11999_v23  ;;  %v4334_v59 = vpop.permute.xlu0 %4333 }
 0x345   : > { %v4345_v26 = vsel %vm14138_vm15, %v4332_v14, %v4334_v59  ;;  %v4346_v63 = vsel %vm14138_vm15, %v4334_v59, %v4336_v45 }
 0x347   : > { %v3362_v33 = vpop.f32.mrf.mxu2  ;;  %v3376_v37 = vpop.f32.mrf.mxu3 }
 0x348   : > { %v12050_v18 = vadd.f32 %v3362_v33, %v12001_v10  ;;  %v12052_v17 = vadd.f32 %v3376_v37, %v3238_v27  ;;  %v4347_v27 = vsel %vm14138_vm15, %v4336_v45, %v4338_v49 }
 0x34a   : > { %v3444_v43 = vpop.f32.mrf.mxu0 }
 0x34b   : > { %v3458_v42 = vpop.f32.mrf.mxu1  ;;  %v3533_v30 = vadd.f32 %v3444_v43, %v12004_v46 }
 0x34c   : > { %v3534_v41 = vadd.f32 %v3458_v42, %v3380_v2  ;;  %9597 = vmatmul.msk.bf16.vlgmr.msrb.gmra.mxu2 %vm361_vm1, %v10152_v8  ;;  %9604 = vmatmul.msk.bf16.vlgmr.msrb.gmra.mxu3 %vm361_vm1, %v12057_v38  ;;  %v4340_v58 = vpop.permute.xlu0 %4339 }
 0x34d   : > { %9595 = vmatmul.msk.bf16.vlgmr.msrb.gmra.mxu0 %vm361_vm1, %v10152_v8  ;;  %4366 = vmatpush.bf16.msrb.mxu2 %v4342_v39  ;;  %v4348_v28 = vsel %vm14138_vm15, %v4338_v49, %v4340_v58 }
 0x34e   : > { %9596 = vmatmul.msk.bf16.vlgmr.msrb.gmra.mxu1 %vm361_vm1, %v10152_v8  ;;  %4282 = vmatpush.bf16.msrb.mxu0 %v4193_v44  ;;  %v14136_v8 = vmov 0  }
 0x34f   : > { %4296 = vmatpush.bf16.msrb.mxu1 %v4194_v13  ;;  %v3472_v22 = vpop.f32.mrf.mxu2  ;;  %v3486_v23 = vpop.f32.mrf.mxu3  ;;  %4380 = vmatpush.bf16.msrb.mxu3 %v4343_v12 }
 0x350   : > { %v3535_v10 = vadd.f32 %v3472_v22, %v12015_v56  ;;  %v3536_v40 = vadd.f32 %v3486_v23, %v3382_v0  ;;  %10285 = vset.pattern.permute.xlu1 %v14136_v8  ;;  %10286 = vset.pattern.permute.xlu2 %v14136_v8 }
 0x351   : > { %10287 = vset.pattern.permute.xlu0 %v14136_v8 }
 0x352   : > { %v3446_v51 = vpop.f32.mrf.mxu0 }
 0x353   : > { %v12070_v54 = vpop.f32.mrf.mxu1  ;;  %v12073_v53 = vadd.f32 %v3446_v51, %v12019_v47  ;;  %v4471_v47 = vld [vmem:[%s14090_s2] sm:$0xff] }
 0x354   : > { %4475 = vperm.xlu1 %10285, %v4471_v47  }
 0x357   : > { %v12075_v46 = vpop.f32.mrf.mxu2  ;;  %v12077_v60 = vpop.f32.mrf.mxu3 }
 0x35a   : > { %v3500_v48 = vpop.f32.mrf.mxu0 }
 0x35b   : > { %v3514_v1 = vpop.f32.mrf.mxu1  ;;  %v3537_v2 = vadd.f32 %v3500_v48, %v12030_v20  ;;  %v10154_v20 = vld [vmem:[%s14089_s1 + $0xd0] sm:$0xff] }
 0x35c   : > { %v3538_v56 = vadd.f32 %v3514_v1, %v3384_v24  ;;  %9607 = vmatmul.msk.bf16.vlgmr.msra.gmra.mxu2 %vm361_vm1, %v12057_v38  ;;  %9608 = vmatmul.msk.bf16.vlgmr.msra.gmra.mxu3 %vm361_vm1, %v12057_v38 }
 0x35d   : > { %9605 = vmatmul.msk.bf16.vlgmr.msra.gmra.mxu0 %vm361_vm1, %v12057_v38  ;;  %4422 = vmatpush.bf16.msra.mxu2 %v4346_v63 }
 0x35e   : > { %9606 = vmatmul.msk.bf16.vlgmr.msra.gmra.mxu1 %vm361_vm1, %v12057_v38  ;;  %4394 = vmatpush.bf16.msra.mxu0 %v4344_v62 }
 0x35f   : > { %4408 = vmatpush.bf16.msra.mxu1 %v4345_v26  ;;  %v3528_v7 = vpop.f32.mrf.mxu2  ;;  %v3598_v6 = vpop.f32.mrf.mxu3  ;;  %4436 = vmatpush.bf16.msra.mxu3 %v4347_v27 }
 0x360   : > { %v3539_v50 = vadd.f32 %v3528_v7, %v12041_v25  ;;  %v3687_v57 = vadd.f32 %v3598_v6, %v3533_v30 }
 0x362   : > { %v12099_v15 = vpop.f32.mrf.mxu0 }
 0x363   : > { %v12101_v9 = vpop.f32.mrf.mxu1 }
 0x367   : > { %v12103_v4 = vpop.f32.mrf.mxu2  ;;  %v12105_v0 = vpop.f32.mrf.mxu3 }
 0x36a   : > { %v3612_v11 = vpop.f32.mrf.mxu0 }
 0x36b   : > { %v3626_v19 = vpop.f32.mrf.mxu1  ;;  %v3688_v3 = vadd.f32 %v3612_v11, %v3534_v41 }
 0x36c   : > { %v3689_v21 = vadd.f32 %v3626_v19, %v3535_v10  ;;  %9617 = vmatmul.msk.bf16.vlgmr.msrb.gmra.mxu2 %vm361_vm1, %v10154_v20  ;;  %9618 = vmatmul.msk.bf16.vlgmr.msrb.gmra.mxu3 %vm361_vm1, %v10154_v20 }
 0x36d   : > { %9609 = vmatmul.msk.bf16.vlgmr.msrb.gmra.mxu0 %vm361_vm1, %v12057_v38 }
 0x36e   : > { %9610 = vmatmul.msk.bf16.vlgmr.msrb.gmra.mxu1 %vm361_vm1, %v12057_v38  ;;  %4450 = vmatpush.bf16.msrb.mxu0 %v4348_v28  ;;  %v4472_v38 = vld [vmem:[%s14090_s2 + $0x8] sm:$0xff] }
 0x36f   : > { %v3640_v16 = vpop.f32.mrf.mxu2  ;;  %v3654_v24 = vpop.f32.mrf.mxu3  ;;  %4480 = vperm.xlu2 %10286, %v4472_v38  }
 0x370   : > { %v3690_v25 = vadd.f32 %v3640_v16, %v3536_v40  ;;  %v3691_v5 = vadd.f32 %v3654_v24, %v3537_v2 }
 0x372   : > { %v12117_v29 = vpop.f32.mrf.mxu0 }
 0x373   : > { %v12119_v31 = vpop.f32.mrf.mxu1 }
 0x377   : > { %v12121_v36 = vpop.f32.mrf.mxu2  ;;  %v12123_v33 = vpop.f32.mrf.mxu3 }
 0x37a   : > { %v3668_v37 = vpop.f32.mrf.mxu0 }
 0x37b   : > { %v3682_v55 = vpop.f32.mrf.mxu1  ;;  %v3692_v34 = vadd.f32 %v3668_v37, %v3538_v56 }
 0x37c   : > { %v3693_v43 = vadd.f32 %v3682_v55, %v3539_v50  ;;  %9621 = vmatmul.msk.bf16.vlgmr.msra.gmra.mxu2 %vm361_vm1, %v10154_v20  ;;  %9622 = vmatmul.msk.bf16.vlgmr.msra.gmra.mxu3 %vm361_vm1, %v10154_v20 }
 0x37d   : > { %9619 = vmatmul.msk.bf16.vlgmr.msra.gmra.mxu0 %vm361_vm1, %v10154_v20 }
 0x37e   : > { %9620 = vmatmul.msk.bf16.vlgmr.msra.gmra.mxu1 %vm361_vm1, %v10154_v20 }
 0x37f   : > { %v3752_v42 = vpop.f32.mrf.mxu2  ;;  %v3766_v30 = vpop.f32.mrf.mxu3 }
 0x380   : > { %v3841_v41 = vadd.f32 %v3752_v42, %v3687_v57  ;;  %v3842_v44 = vadd.f32 %v3766_v30, %v3688_v3 }
 0x382   : > { %v12132_v13 = vpop.f32.mrf.mxu0 }
 0x383   : > { %v12134_v39 = vpop.f32.mrf.mxu1 }
 0x387   : > { %v12136_v12 = vpop.f32.mrf.mxu2  ;;  %v12138_v22 = vpop.f32.mrf.mxu3 }
 0x38a   : > { %v3780_v23 = vpop.f32.mrf.mxu0 }
 0x38b   : > { %v3794_v10 = vpop.f32.mrf.mxu1  ;;  %v3843_v40 = vadd.f32 %v3780_v23, %v3689_v21 }
 0x38c   : > { %v3844_v14 = vadd.f32 %v3794_v10, %v3690_v25 }
 0x38d   : > { %9623 = vmatmul.msk.bf16.vlgmr.msrb.gmra.mxu0 %vm361_vm1, %v10154_v20 }
 0x38f   : > { %v3808_v51 = vpop.f32.mrf.mxu2  ;;  %v3822_v59 = vpop.f32.mrf.mxu3 }
 0x390   : > { %v3845_v45 = vadd.f32 %v3808_v51, %v3691_v5  ;;  %v3846_v49 = vadd.f32 %v3822_v59, %v3692_v34 }
 0x392   : > { %v12141_v48 = vpop.f32.mrf.mxu0 }
 0x393   : > { %v12143_v1 = vpop.f32.mrf.mxu1 }
 0x397   : > { %v12145_v2 = vpop.f32.mrf.mxu2  ;;  %v12147_v56 = vpop.f32.mrf.mxu3 }
 0x39a   : > { %v3836_v62 = vpop.f32.mrf.mxu0 }
 0x39b   : > { %v3906_v26 = vpop.f32.mrf.mxu1  ;;  %v3847_v63 = vadd.f32 %v3836_v62, %v3693_v43 }
 0x39c   : > { %v3995_v27 = vadd.f32 %v3906_v26, %v3841_v41 }
 0x39f   : > { %v3920_v47 = vpop.f32.mrf.mxu2  ;;  %v3934_v7 = vpop.f32.mrf.mxu3 }
 0x3a0   : > { %v3996_v6 = vadd.f32 %v3920_v47, %v3842_v44  ;;  %v12149_v50 = vadd.f32 %v3934_v7, %v3843_v40 }
 0x3a2   : > { %v12151_v57 = vpop.f32.mrf.mxu0 }
 0x3a3   : > { %14147 = vst [vmem:[#allocation6_spill] sm:$0xff] %v12151_v57  ;;  %v12153_v20 = vpop.f32.mrf.mxu1 }
 0x3a7   : > { %v12155_v58 = vpop.f32.mrf.mxu2  ;;  %v12157_v11 = vpop.f32.mrf.mxu3 }
 0x3aa   : > { %v3948_v19 = vpop.f32.mrf.mxu0 }
 0x3ab   : > { %v3962_v3 = vpop.f32.mrf.mxu1  ;;  %v12159_v21 = vadd.f32 %v3948_v19, %v3844_v14 }
 0x3ac   : > { %v12161_v28 = vadd.f32 %v3962_v3, %v3845_v45 }
 0x3af   : > { %v3976_v16 = vpop.f32.mrf.mxu2  ;;  %v3990_v24 = vpop.f32.mrf.mxu3 }
 0x3b0   : > { %v12163_v25 = vadd.f32 %v3976_v16, %v3846_v49  ;;  %v12165_v5 = vadd.f32 %v3990_v24, %v3847_v63 }
 0x3b2   : > { %14148 = vst [vmem:[#allocation7_spill] sm:$0xff] %v12165_v5  ;;  %v12167_v37 = vpop.f32.mrf.mxu0  ;;  %v3542_v5 = vadd.f32 %v12075_v46, %v12024_v52 }
 0x3b3   : > { %v12169_v55 = vpop.f32.mrf.mxu1 }
 0x3b4   : > { %v3696_v52 = vadd.f32 %v12119_v31, %v3542_v5 }
 0x3b7   : > { %v12171_v34 = vpop.f32.mrf.mxu2  ;;  %v12173_v43 = vpop.f32.mrf.mxu3 }
 0x3b8   : > { %14149 = vst [vmem:[#allocation8_spill] sm:$0xff] %v12173_v43 }
 0x3ba   : > { %v4060_v38 = vpop.f32.mrf.mxu0 }
 0x3bb   : > { %v4074_v42 = vpop.f32.mrf.mxu1 }
 0x3bf   : > { %v12175_v30 = vpop.f32.mrf.mxu2  ;;  %v12177_v41 = vpop.f32.mrf.mxu3 }
 0x3c2   : > { %v4062_v44 = vpop.f32.mrf.mxu0 }
 0x3c3   : > { %v4076_v23 = vpop.f32.mrf.mxu1 }
 0x3c7   : > { %v12179_v10 = vpop.f32.mrf.mxu2  ;;  %v12181_v40 = vpop.f32.mrf.mxu3 }
 0x3ca   : > { %v12183_v14 = vpop.f32.mrf.mxu0 }
 0x3cb   : > { %v12185_v51 = vpop.f32.mrf.mxu1 }
 0x3cf   : > { %v12187_v59 = vpop.f32.mrf.mxu2  ;;  %v4214_v45 = vpop.f32.mrf.mxu3 }
 0x3d0   : > { %14150 = vst [vmem:[#allocation9_spill] sm:$0xff] %v12187_v59 }
 0x3d2   : > { %v12189_v49 = vpop.f32.mrf.mxu0 }
 0x3d3   : > { %v12191_v62 = vpop.f32.mrf.mxu1 }
 0x3d4   : > { %14151 = vst [vmem:[#allocation10_spill] sm:$0xff] %v12191_v62  ;;  %v4149_v62 = vadd.f32 %v4060_v38, %v3995_v27 }
 0x3d6   : > { %v4303_v46 = vadd.f32 %v4214_v45, %v4149_v62  ;;  %v4151_v45 = vadd.f32 %v12175_v30, %v12149_v50  ;;  %v4153_v50 = vadd.f32 %v12183_v14, %v12161_v28 }
 0x3d7   : > { %v12193_v26 = vpop.f32.mrf.mxu2  ;;  %v4216_v63 = vpop.f32.mrf.mxu3 }
 0x3d8   : > { %14152 = vst [vmem:[#allocation11_spill] sm:$0xff] %v12193_v26  ;;  %v3541_v26 = vadd.f32 %v12070_v54, %v12022_v61  ;;  %v3694_v61 = vadd.f32 %v12105_v0, %v12073_v53 }
 0x3da   : > { %v4228_v47 = vpop.f32.mrf.mxu0  ;;  %v3695_v54 = vadd.f32 %v12117_v29, %v3541_v26  ;;  %v3850_v29 = vadd.f32 %v12141_v48, %v3696_v52 }
 0x3db   : > { %v12195_v7 = vpop.f32.mrf.mxu1 }
 0x3dc   : > { %v4004_v27 = vadd.f32 %v12157_v11, %v3850_v29  ;;  %v4305_v52 = vadd.f32 %v12195_v7, %v4151_v45 }
 0x3df   : > { %v12197_v19 = vpop.f32.mrf.mxu2  ;;  %v12199_v3 = vpop.f32.mrf.mxu3 }
 0x3e0   : > { %14153 = vst [vmem:[#allocation12_spill] sm:$0xff] %v12199_v3  ;;  %v3543_v3 = vadd.f32 %v12077_v60, %v12044_v35 }
 0x3e2   : > { %v4230_v16 = vpop.f32.mrf.mxu0  ;;  %v3697_v35 = vadd.f32 %v12121_v36, %v3543_v3  ;;  %v4152_v3 = vadd.f32 %v12177_v41, %v12159_v21 }
 0x3e3   : > { %v12201_v24 = vpop.f32.mrf.mxu1 }
 0x3e4   : > { %14154 = vst [vmem:[#allocation13_spill] sm:$0xff] %v12201_v24  ;;  %v3544_v24 = vadd.f32 %v12099_v15, %v12047_v32  ;;  %v12228_v32 = vpop.permute.xlu1 %4475  ;;  %v4306_v21 = vadd.f32 %v12197_v19, %v4152_v3 }
 0x3e6   : > { %v3698_v15 = vadd.f32 %v12123_v33, %v3544_v24  ;;  %v3851_v33 = vadd.f32 %v12143_v1, %v3697_v35  ;;  %v4158_v24 = vadd.f32 %v12179_v10, %v4004_v27  ;;  %v14158_v35 = vld [vmem:[#allocation10_spill] sm:$0xff] }
 0x3e7   : > { %v12203_v8 = vpop.f32.mrf.mxu2  ;;  %v12205_v43 = vpop.f32.mrf.mxu3  ;;  %v14159_v14 = vld [vmem:[#allocation12_spill] sm:$0xff] }
 0x3e8   : > { %14155 = vst [vmem:[#allocation14_spill] sm:$0xff] %v12203_v8  ;;  %v4150_v8 = vadd.f32 %v4074_v42, %v3996_v6  ;;  %v4005_v11 = vadd.f32 %v12167_v37, %v3851_v33 }
 0x3e9   : > { %14156 = vst [vmem:[#allocation15_spill] sm:$0xff] %v12205_v43  ;;  %v3545_v43 = vadd.f32 %v12101_v9, %v12050_v18  ;;  %v3848_v9 = vadd.f32 %v12136_v12, %v3694_v61 }
 0x3ea   : > { %v12207_v57 = vpop.f32.mrf.mxu0  ;;  %v4304_v60 = vadd.f32 %v4228_v47, %v4150_v8  ;;  %v12241_v8 = vld [vmem:[%s14091_s3] sm:$0xff] }
 0x3eb   : > { %v12209_v59 = vpop.f32.mrf.mxu1  ;;  %v3699_v18 = vadd.f32 %v12132_v13, %v3545_v43  ;;  %v3852_v13 = vadd.f32 %v12145_v2, %v3698_v15  ;;  %v4002_v12 = vadd.f32 %v12153_v20, %v3848_v9  ;;  %v4541_v2 = vperm.slane %v12241_v8, 0  ;;  %v14160_v19 = vld [vmem:[#allocation13_spill] sm:$0xff] }
 0x3ec   : > { %14157 = vst [vmem:[#allocation16_spill] sm:$0xff] %v12209_v59  ;;  %v3546_v59 = vadd.f32 %v12103_v4, %v12052_v17  ;;  %v3849_v17 = vadd.f32 %v12138_v22, %v3695_v54  ;;  %v4542_v20 = vperm.slane %v12241_v8, 1  ;;  %v4544_v29 = vperm.slane %v12241_v8, 3 }
 0x3ed   : > { %v4156_v38 = vadd.f32 %v4062_v44, %v4002_v12  ;;  %v4006_v42 = vadd.f32 %v12169_v55, %v3852_v13 }
 0x3ee   : > { %v12235_v0 = vadd.f32 %v12134_v39, %v3546_v59  ;;  %v4003_v22 = vadd.f32 %v12155_v58, %v3849_v17  ;;  %v3853_v39 = vadd.f32 %v12147_v56, %v3699_v18  ;;  %v4307_v18 = vadd.f32 %v14159_v14, %v4153_v50 }
 0x3ef   : > { %v4368_v4 = vpop.f32.mrf.mxu2  ;;  %v4382_v53 = vpop.f32.mrf.mxu3  ;;  %v4310_v62 = vadd.f32 %v4216_v63, %v4156_v38  ;;  %v4160_v10 = vadd.f32 %v12189_v49, %v4006_v42  ;;  %v4312_v17 = vadd.f32 %v14160_v19, %v4158_v24 }
 0x3f0   : > { %v4457_v31 = vadd.f32 %v4368_v4, %v4303_v46  ;;  %v4458_v36 = vadd.f32 %v4382_v53, %v4304_v60  ;;  %v4157_v1 = vadd.f32 %v4076_v23, %v4003_v22  ;;  %v4007_v59 = vadd.f32 %v12171_v34, %v3853_v39  ;;  %v12262_v23 = vpop.permute.xlu2 %4480 }
 0x3f1   : > { %v4159_v34 = vadd.f32 %v12181_v40, %v4005_v11 }
 0x3f2   : > { %v12249_v48 = vpop.f32.mrf.mxu0  ;;  %v4483_v5 = vadd.f32 %v12228_v32, %v4457_v31  ;;  %v4484_v43 = vadd.f32 %v12228_v32, %v4458_v36  ;;  %v4311_v44 = vadd.f32 %v4230_v16, %v4157_v1  ;;  %v4154_v16 = vadd.f32 %v12185_v51, %v12163_v25 }
 0x3f3   : > { %v12251_v6 = vpop.f32.mrf.mxu1  ;;  %v4161_v46 = vadd.f32 %v14158_v35, %v4007_v59  ;;  %v4543_v25 = vperm.slane %v12241_v8, 2  ;;  %v4545_v36 = vperm.slane %v12241_v8, 4 }
 0x3f4   : > { %vm4497_vm15 = vcmp.ge.f32.partialorder %v4483_v5, 0.0  ;;  %vm4498_vm14 = vcmp.ge.f32.partialorder %v4484_v43, 0.0  ;;  %v4511_v58 = vmul.f32 0.2, %v4483_v5  ;;  %v4512_v56 = vmul.f32 0.2, %v4484_v43 }
 0x3f5   : > { %v4308_v31 = vadd.f32 %v12207_v57, %v4154_v16  ;;  %v14165_v16 = vld [vmem:[#allocation15_spill] sm:$0xff] }
 0x3f6   : > { %v4525_v26 = vsel %vm4497_vm15, %v4483_v5, %v4511_v58  ;;  %v4526_v47 = vsel %vm4498_vm14, %v4484_v43, %v4512_v56  ;;  %v14161_v58 = vld [vmem:[#allocation14_spill] sm:$0xff] }
 0x3f7   : > { %v4370_v61 = vpop.f32.mrf.mxu2  ;;  %v4384_v37 = vpop.f32.mrf.mxu3  ;;  %v4555_v54 = vmul.f32 %v4541_v2, %v4525_v26  ;;  %v4556_v55 = vmul.f32 %v4542_v20, %v4526_v47  ;;  %v4313_v56 = vadd.f32 %v14161_v58, %v4159_v34  ;;  %v14162_v47 = vmov 0  }
 0x3f8   : > { %v4464_v30 = vadd.f32 %v4370_v61, %v4310_v62  ;;  %v4465_v63 = vadd.f32 %v4384_v37, %v4311_v44  ;;  %4571 = vst.msk [vmem:[#allocation2 + $0x24] sm:$0xf] %vm4569_vm10, %v14162_v47 }
 0x3f9   : > { %v4577_v41 = vpack.c.bf16 %v4556_v55, %v4555_v54  ;;  %4570 = vst.msk [vmem:[#allocation2] sm:$0xf] %vm4569_vm10, %v14162_v47  ;;  %v14163_v54 = vld [vmem:[#allocation7_spill] sm:$0xff]  ;;  %v14164_v55 = vld [vmem:[#allocation9_spill] sm:$0xff] }
 0x3fa   : > { %v4396_v60 = vpop.f32.mrf.mxu0  ;;  %v4490_v40 = vadd.f32 %v12262_v23, %v4464_v30  ;;  %v4491_v28 = vadd.f32 %v12262_v23, %v4465_v63  ;;  %v4155_v34 = vadd.f32 %v14164_v55, %v14163_v54  ;;  %v9677_v54 = vld [vmem:[%s10474_s17 + $0x8] sm:$0xf] }
 0x3fb   : > { %v4410_v15 = vpop.f32.mrf.mxu1  ;;  %v4459_v9 = vadd.f32 %v4396_v60, %v4305_v52  ;;  %4593 = vrot.lane.b32.xlu0 %v4577_v41, %s10379_s29  ;;  %v4314_v52 = vadd.f32 %v14165_v16, %v4160_v10  ;;  %v14166_v10 = vld [vmem:[#allocation6_spill] sm:$0xff]  ;;  %v10159_v16 = vld [vmem:[%s10474_s17 + $0x1c] sm:$0xf] }
 0x3fc   : > { %v4460_v51 = vadd.f32 %v4410_v15, %v4306_v21  ;;  %vm4504_vm14 = vcmp.ge.f32.partialorder %v4490_v40, 0.0  ;;  %vm4505_vm15 = vcmp.ge.f32.partialorder %v4491_v28, 0.0  ;;  %v4518_v49 = vmul.f32 0.2, %v4490_v40 }
 0x3fd   : > { %v4519_v7 = vmul.f32 0.2, %v4491_v28  ;;  %v4485_v4 = vadd.f32 %v12228_v32, %v4459_v9  ;;  %v4315_v21 = vadd.f32 %v12249_v48, %v4161_v46  ;;  %v14167_v48 = vld [vmem:[#allocation16_spill] sm:$0xff] }
 0x3fe   : > { %v4486_v53 = vadd.f32 %v12228_v32, %v4460_v51  ;;  %v4532_v33 = vsel %vm4504_vm14, %v4490_v40, %v4518_v49  ;;  %v3854_v49 = vadd.f32 %v14166_v10, %v12235_v0  ;;  %v4309_v46 = vadd.f32 %v14167_v48, %v4155_v34  ;;  %v10161_v34 = vld [vmem:[%s10474_s17 + $0x28] sm:$0xf0] }
 0x3ff   : > { %v4533_v13 = vsel %vm4505_vm15, %v4491_v28, %v4519_v7  ;;  %vm4499_vm12 = vcmp.ge.f32.partialorder %v4485_v4, 0.0  ;;  %v4513_v12 = vmul.f32 0.2, %v4485_v4  ;;  %v4424_v39 = vpop.f32.mrf.mxu2  ;;  %v4438_v27 = vpop.f32.mrf.mxu3  ;;  %v4562_v38 = vmul.f32 %v4541_v2, %v4532_v33 }
 0x400   : > { %vm4500_vm11 = vcmp.ge.f32.partialorder %v4486_v53, 0.0  ;;  %v4514_v22 = vmul.f32 0.2, %v4486_v53  ;;  %v4461_v5 = vadd.f32 %v4424_v39, %v4307_v18  ;;  %v4462_v43 = vadd.f32 %v4438_v27, %v4308_v31 }
 0x401   : > { %v4563_v1 = vmul.f32 %v4542_v20, %v4533_v13  ;;  %v4527_v11 = vsel %vm4499_vm12, %v4485_v4, %v4513_v12  ;;  %v4546_v2 = vperm.slane %v12241_v8, 5  ;;  %v14168_v13 = vld [vmem:[#allocation8_spill] sm:$0xff] }
 0x402   : > { %v4528_v42 = vsel %vm4500_vm11, %v4486_v53, %v4514_v22  ;;  %v4557_v57 = vmul.f32 %v4543_v25, %v4527_v11  ;;  %v4487_v45 = vadd.f32 %v12228_v32, %v4461_v5  ;;  %v4488_v62 = vadd.f32 %v12228_v32, %v4462_v43  ;;  %v4398_v44 = vpop.f32.mrf.mxu0 }
 0x403   : > { %v4558_v59 = vmul.f32 %v4544_v29, %v4528_v42  ;;  %v4412_v26 = vpop.f32.mrf.mxu1  ;;  %v4466_v20 = vadd.f32 %v4398_v44, %v4312_v17  ;;  %v4581_v24 = vpack.c.bf16 %v4563_v1, %v4562_v38  ;;  %v4008_v12 = vadd.f32 %v14168_v13, %v3854_v49 }
 0x404   : > { %v4467_v3 = vadd.f32 %v4412_v26, %v4313_v56  ;;  %vm4501_vm11 = vcmp.ge.f32.partialorder %v4487_v45, 0.0  ;;  %v4515_v61 = vmul.f32 0.2, %v4487_v45  ;;  %vm4502_vm12 = vcmp.ge.f32.partialorder %v4488_v62, 0.0 }
 0x405   : > { %v4516_v37 = vmul.f32 0.2, %v4488_v62  ;;  %v4492_v50 = vadd.f32 %v12262_v23, %v4466_v20  ;;  %4601 = vrot.lane.b32.xlu2 %v4581_v24, %s10379_s29  ;;  %v4578_v63 = vpack.c.bf16 %v4558_v59, %v4557_v57  ;;  %v4547_v56 = vperm.slane %v12241_v8, 6 }
 0x406   : > { %v4493_v30 = vadd.f32 %v12262_v23, %v4467_v3  ;;  %v4529_v41 = vsel %vm4501_vm11, %v4487_v45, %v4515_v61 }
 0x407   : > { %v4530_v35 = vsel %vm4502_vm12, %v4488_v62, %v4516_v37  ;;  %v4559_v60 = vmul.f32 %v4545_v36, %v4529_v41  ;;  %vm4506_vm10 = vcmp.ge.f32.partialorder %v4492_v50, 0.0  ;;  %v4520_v40 = vmul.f32 0.2, %v4492_v50  ;;  %4595 = vrot.lane.b32.xlu1 %v4578_v63, %s10379_s29  ;;  %v4426_v28 = vpop.f32.mrf.mxu2  ;;  %v4440_v14 = vpop.f32.mrf.mxu3  ;;  %v10162_v37 = vld [vmem:[%s10474_s17 + $0x30] sm:$0xf0] }
 0x408   : > { %v4560_v15 = vmul.f32 %v4546_v2, %v4530_v35  ;;  %vm4507_vm14 = vcmp.ge.f32.partialorder %v4493_v30, 0.0  ;;  %v4521_v18 = vmul.f32 0.2, %v4493_v30  ;;  %v4468_v9 = vadd.f32 %v4426_v28, %v4314_v52  ;;  %v10160_v63 = vld [vmem:[%s10474_s17 + $0x20] sm:$0xf0] }
 0x409   : > { %v4469_v51 = vadd.f32 %v4440_v14, %v4315_v21  ;;  %v4534_v7 = vsel %vm4506_vm10, %v4492_v50, %v4520_v40  ;;  %v9678_v50 = vor.u32 %v10161_v34, %v9677_v54  ;;  %v9695_v21 = vld [vmem:[%s10474_s17 + $0x3c] sm:$0xf0]  ;;  %v10158_v35 = vld [vmem:[%s10474_s17 + $0x14] sm:$0xf]  ;;  %v10157_v40 = vld [vmem:[%s10474_s17 + $0xc] sm:$0xf] }
 0x40a   : > { %v4579_v19 = vpack.c.bf16 %v4560_v15, %v4559_v60  ;;  %v4564_v17 = vmul.f32 %v4543_v25, %v4534_v7  ;;  %v4535_v4 = vsel %vm4507_vm14, %v4493_v30, %v4521_v18  ;;  %v4494_v53 = vadd.f32 %v12262_v23, %v4468_v9  ;;  %v4452_v33 = vpop.f32.mrf.mxu0  ;;  %v14169_v25 = vld [vmem:[#allocation11_spill] sm:$0xff]  ;;  %v9669_v30 = vld [vmem:[%s10474_s17] sm:$0xf]  ;;  %v9687_v60 = vld [vmem:[%s10474_s17 + $0x34] sm:$0xf0] }
 0x40b   : > { %v4495_v31 = vadd.f32 %v12262_v23, %v4469_v51  ;;  %v4565_v22 = vmul.f32 %v4544_v29, %v4535_v4  ;;  %v4463_v39 = vadd.f32 %v4452_v33, %v4309_v46  ;;  %v4162_v38 = vadd.f32 %v14169_v25, %v4008_v12  ;;  %v9679_v28 = vld [vmem:[%s10474_s17 + $0x2c] sm:$0xf0]  ;;  %v9693_v18 = vld [vmem:[%s10474_s17 + $0x18] sm:$0xf]  ;;  %v10163_v9 = vld [vmem:[%s10474_s17 + $0x38] sm:$0xf0] }
 0x40c   : > { %vm4508_vm15 = vcmp.ge.f32.partialorder %v4494_v53, 0.0  ;;  %v4522_v0 = vmul.f32 0.2, %v4494_v53  ;;  %v9670_v52 = vor.u32 %v10160_v63, %v9669_v30  ;;  %v9698_v41 = vor.u32 %v10159_v16, %v9695_v21 }
 0x40d   : > { %vm4509_vm11 = vcmp.ge.f32.partialorder %v4495_v31, 0.0  ;;  %v4523_v27 = vmul.f32 0.2, %v4495_v31  ;;  %v4489_v5 = vadd.f32 %v12228_v32, %v4463_v39  ;;  %v4582_v43 = vpack.c.bf16 %v4565_v22, %v4564_v17 }
 0x40e   : > { %v4536_v1 = vsel %vm4508_vm15, %v4494_v53, %v4522_v0  ;;  %v4316_v32 = vadd.f32 %v12251_v6, %v4162_v38  ;;  %v9671_v6 = vld [vmem:[%s10474_s17 + $0x24] sm:$0xf0]  ;;  %v9690_v15 = vor.u32 %v10158_v35, %v9687_v60  ;;  %v9682_v14 = vor.u32 %v10157_v40, %v9679_v28 }
 0x40f   : > { %v4537_v58 = vsel %vm4509_vm11, %v4495_v31, %v4523_v27  ;;  %v4566_v11 = vmul.f32 %v4545_v36, %v4536_v1  ;;  %vm4503_vm12 = vcmp.ge.f32.partialorder %v4489_v5, 0.0  ;;  %v4517_v29 = vmul.f32 0.2, %v4489_v5  ;;  %4597 = vrot.lane.b32.xlu1 %v4579_v19, %s10379_s29  ;;  %4603 = vrot.lane.b32.xlu0 %v4582_v43, %s10379_s29 }
 0x410   : > { %v4567_v42 = vmul.f32 %v4546_v2, %v4537_v58  ;;  %v10156_v2 = vld [vmem:[%s10474_s17 + $0x4] sm:$0xf]  ;;  %v9694_v51 = vor.u32 %v10163_v9, %v9693_v18  ;;  %vm4572_vm14 = vcmask 1044344   ;;  %vm4641_vm15 = vcmask 1047556  }
 0x411   : > { %v4531_v57 = vsel %vm4503_vm12, %v4489_v5, %v4517_v29  ;;  %v9674_v24 = vor.u32 %v10156_v2, %v9671_v6  ;;  %vm4617_vm11 = vcmask 908288   ;;  %vm4642_vm12 = vmor %vm4641_vm15, %vm4572_vm14 }
 0x412   : > { %v4583_v59 = vpack.c.bf16 %v4567_v42, %v4566_v11  ;;  %v4454_v45 = vpop.f32.mrf.mxu0  ;;  %v4561_v62 = vmul.f32 %v4547_v56, %v4531_v57 }
 0x413   : > { %v4470_v44 = vadd.f32 %v4454_v45, %v4316_v32 }
 0x414   : > { %v4580_v8 = vpack.c.bf16 %v4561_v62, %v4561_v62 }
 0x415   : > { %v4496_v36 = vadd.f32 %v12262_v23, %v4470_v44  ;;  %v9685_v23 = vld [vmem:[%s10474_s17 + $0x10] sm:$0xf]  ;;  %s14174_s17 = smov 26  }
 0x416   : > { %4599 = vrot.lane.b32.xlu2 %v4580_v8, %s10379_s29  ;;  %v9686_v55 = vor.u32 %v10162_v37, %v9685_v23  ;;  %v10172_v8 = vld [vmem:[%s14092_s4 + $0x8] sm:$0xff] }
 0x417   : > { %vm4510_vm10 = vcmp.ge.f32.partialorder %v4496_v36, 0.0  ;;  %v4524_v26 = vmul.f32 0.2, %v4496_v36  ;;  %4605 = vrot.lane.b32.xlu0 %v4583_v59, %s10379_s29 }
 0x419   : > { %v4538_v20 = vsel %vm4510_vm10, %v4496_v36, %v4524_v26  ;;  %vm4573_vm10 = vcmask 769028  }
 0x41a   : > { %v4568_v3 = vmul.f32 %v4547_v56, %v4538_v20  ;;  %vm4574_vm9 = vmor %vm4573_vm10, %vm4572_vm14 }
 0x41b   : > { %4575 = vst.msk [vmem:[#allocation2 + $0x1c] sm:$0xff] %vm4574_vm9, %v14162_v47 }
 0x41c   : > { %v4584_v61 = vpack.c.bf16 %v4568_v3, %v4568_v3  ;;  %4576 = vst.msk [vmem:[#allocation2 + $0x40] sm:$0xff] %vm4574_vm9, %v14162_v47  ;;  %vm4647_vm9 = vcmask 908292  }
 0x41d   : > { %vm12374_vm14 = vmor %vm4647_vm9, %vm4619_vm8 }
 0x41e   : > { %4607 = vrot.lane.b32.xlu1 %v4584_v61, %s10379_s29  ;;  %4853 = vrot.lane.b32.xlu2 %v9670_v52, %s10364_s14 }
 0x41f   : > { %4855 = vrot.lane.b32.xlu0 %v9674_v24, %s10364_s14 }
 0x426   : > { %4857 = vrot.lane.b32.xlu1 %v9678_v50, %s10364_s14  ;;  %4859 = vrot.lane.b32.xlu2 %v9682_v14, %s10364_s14 }
 0x427   : > { %4861 = vrot.lane.b32.xlu0 %v9686_v55, %s10364_s14  ;;  %v10164_v55 = vld [vmem:[%s14092_s4] sm:$0xff] }
 0x42e   : > { %4863 = vrot.lane.b32.xlu1 %v9690_v15, %s10364_s14  ;;  %4865 = vrot.lane.b32.xlu2 %v9694_v51, %s10364_s14 }
 0x42f   : > { %4867 = vrot.lane.b32.xlu0 %v9698_v41, %s10364_s14 }
 0x45f   : > { %v4602_v10 = vpop.permute.xlu2 %4601 }
 0x460   : > { %v4613_v49 = vrot.slane %v4602_v10, 4 }
 0x462   : > { %v4626_v48 = vsel %vm4617_vm11, %v4613_v49, %v4602_v10 }
 0x463   : > { %4650 = vst.msk [vmem:[#allocation2 + $0x24] sm:$0xff] %vm4642_vm12, %v4626_v48 }
 0x46a   : > { %v9716_v17 = vld [vmem:[#allocation2 + $0x24] sm:$0xf0]  ;;  %v10177_v4 = vld [vmem:[#allocation2 + $0x20] sm:$0xf0] }
 0x46b   : > { %v10168_v33 = vld [vmem:[#allocation2 + $0x20] sm:$0xf0]  ;;  %v9632_v27 = vld [vmem:[#allocation2 + $0x24] sm:$0xf0] }
 0x46d   : > { %v4594_v46 = vpop.permute.xlu0 %4593 }
 0x46e   : > { %v4609_v7 = vrot.slane %v4594_v46, 4 }
 0x470   : > { %v4618_v19 = vsel %vm4617_vm11, %v4609_v7, %v4594_v46  ;;  %v4600_v1 = vpop.permute.xlu2 %4599 }
 0x471   : > { %4643 = vst.msk [vmem:[#allocation2] sm:$0xff] %vm4642_vm12, %v4618_v19  ;;  %v4612_v11 = vrot.slane %v4600_v1, 4 }
 0x478   : > { %v10173_v53 = vld [vmem:[#allocation2 + $0x4] sm:$0xf]  ;;  %v9714_v31 = vld [vmem:[#allocation2] sm:$0xf] }
 0x479   : > { %v12357_v13 = vor.u32 %v10177_v4, %v9714_v31  ;;  %v12359_v12 = vor.u32 %v10173_v53, %v9716_v17  ;;  %v4596_v22 = vpop.permute.xlu1 %4595  ;;  %v9630_v39 = vld [vmem:[#allocation2] sm:$0xf]  ;;  %v10165_v0 = vld [vmem:[#allocation2 + $0x4] sm:$0xf]  ;;  %v4854_v17 = vpop.permute.xlu2 %4853 }
 0x47a   : > { %v4610_v47 = vrot.slane %v4596_v22, 4  ;;  %v9631_v5 = vor.u32 %v10168_v33, %v9630_v39  ;;  %v9635_v43 = vor.u32 %v10165_v0, %v9632_v27 }
 0x47b   : > { %5032 = vrot.lane.b32.xlu1 %v12357_v13, %s10352_s18  ;;  %5034 = vrot.lane.b32.xlu2 %v12359_v12, %s10352_s18 }
 0x47c   : > { %v4620_v25 = vsel %vm4619_vm8, %v4609_v7, %v4610_v47  ;;  %4725 = vmatpush.bf16.msrb.mxu1 %v9631_v5  ;;  %4739 = vmatpush.bf16.msrb.mxu2 %v9635_v43 }
 0x47d   : > { %v4621_v38 = vsel %vm4617_vm11, %v4620_v25, %v4596_v22 }
 0x47e   : > { %4644 = vst [vmem:[#allocation2 + $0x8] sm:$0xff] %v4621_v38 }
 0x47f   : > { %9657 = vmatmul.msk.bf16.vlgmr.msrb.gmra.mxu2 %vm361_vm1, %v10164_v55  ;;  %9656 = vmatmul.msk.bf16.vlgmr.msrb.gmra.mxu1 %vm361_vm1, %v10164_v55 }
 0x481   : > { %v4598_v58 = vpop.permute.xlu1 %4597  ;;  %v4604_v56 = vpop.permute.xlu0 %4603 }
 0x482   : > { %v4611_v42 = vrot.slane %v4598_v58, 4  ;;  %v4614_v29 = vrot.slane %v4604_v56, 4 }
 0x484   : > { %v4622_v32 = vsel %vm4619_vm8, %v4610_v47, %v4611_v42  ;;  %v4624_v57 = vsel %vm4619_vm8, %v4611_v42, %v4612_v11  ;;  %v4627_v59 = vsel %vm4619_vm8, %v4613_v49, %v4614_v29  ;;  %v4860_v47 = vpop.permute.xlu2 %4859 }
 0x485   : > { %v4623_v45 = vsel %vm4617_vm11, %v4622_v32, %v4598_v58  ;;  %v4625_v62 = vsel %vm4617_vm11, %v4624_v57, %v4600_v1  ;;  %v4628_v44 = vsel %vm4617_vm11, %v4627_v59, %v4604_v56  ;;  %v10174_v6 = vld [vmem:[#allocation2 + $0xc] sm:$0xf]  ;;  %v9722_v3 = vld [vmem:[#allocation2 + $0x8] sm:$0xf]  ;;  %v10155_v1 = vld [vmem:[%s14093_s5] sm:$0xff] }
 0x486   : > { %4645 = vst [vmem:[#allocation2 + $0x10] sm:$0xff] %v4623_v45  ;;  %v9638_v54 = vld [vmem:[#allocation2 + $0x8] sm:$0xf]  ;;  %v10166_v50 = vld [vmem:[#allocation2 + $0xc] sm:$0xf] }
 0x487   : > { %4651 = vst [vmem:[#allocation2 + $0x2c] sm:$0xff] %v4628_v44 }
 0x488   : > { %4649 = vst.msk [vmem:[#allocation2 + $0x18] sm:$0xff] %vm12374_vm14, %v4625_v62 }
 0x489   : > { %v4606_v36 = vpop.permute.xlu0 %4605 }
 0x48a   : > { %v4615_v26 = vrot.slane %v4606_v36, 4 }
 0x48c   : > { %v4629_v2 = vsel %vm4619_vm8, %v4614_v29, %v4615_v26  ;;  %v4866_v11 = vpop.permute.xlu2 %4865 }
 0x48d   : > { %v4630_v20 = vsel %vm4617_vm11, %v4629_v2, %v4606_v36  ;;  %v10175_v35 = vld [vmem:[#allocation2 + $0x14] sm:$0xf]  ;;  %v9730_v15 = vld [vmem:[#allocation2 + $0x10] sm:$0xf] }
 0x48e   : > { %v9724_v24 = vld [vmem:[#allocation2 + $0x2c] sm:$0xf0]  ;;  %v10178_v61 = vld [vmem:[#allocation2 + $0x28] sm:$0xf0]  ;;  %4652 = vst [vmem:[#allocation2 + $0x34] sm:$0xff] %v4630_v20 }
 0x48f   : > { %v12382_v23 = vor.u32 %v10178_v61, %v9722_v3  ;;  %v12384_v37 = vor.u32 %v10174_v6, %v9724_v24  ;;  %v10169_v34 = vld [vmem:[#allocation2 + $0x28] sm:$0xf0]  ;;  %v9640_v30 = vld [vmem:[#allocation2 + $0x2c] sm:$0xf0]  ;;  %v10167_v49 = vld [vmem:[#allocation2 + $0x14] sm:$0xf] }
 0x490   : > { %v4608_v63 = vpop.permute.xlu1 %4607  ;;  %v9639_v16 = vor.u32 %v10169_v34, %v9638_v54  ;;  %v9643_v52 = vor.u32 %v10166_v50, %v9640_v30  ;;  %v9646_v9 = vld [vmem:[#allocation2 + $0x10] sm:$0xf]  ;;  %v9738_v7 = vld [vmem:[#allocation2 + $0x18] sm:$0xf]  ;;  %v10176_v0 = vld [vmem:[#allocation2 + $0x1c] sm:$0xf] }
 0x491   : > { %5036 = vrot.lane.b32.xlu0 %v12382_v23, %s10352_s18  ;;  %5038 = vrot.lane.b32.xlu1 %v12384_v37, %s10352_s18  ;;  %v4616_v21 = vrot.slane %v4608_v63, 4  ;;  %v9654_v53 = vld [vmem:[#allocation2 + $0x18] sm:$0xf]  ;;  %v4856_v22 = vpop.permute.xlu0 %4855 }
 0x492   : > { %4753 = vmatpush.bf16.msrb.mxu3 %v9639_v16  ;;  %4767 = vmatpush.bf16.msra.mxu0 %v9643_v52  ;;  %v4869_v58 = vsel %vm2299_vm13, %v4854_v17, %v4856_v22 }
 0x493   : > { %v4631_v41 = vsel %vm4619_vm8, %v4615_v26, %v4616_v21  ;;  %vm14185_vm8 = vcmask 228352  }
 0x494   : > { %v4632_v60 = vsel %vm4617_vm11, %v4631_v41, %v4608_v63  ;;  %vm14186_vm15 = vmmov %vm14185_vm8 }
 0x495   : > { %v9732_v40 = vld [vmem:[#allocation2 + $0x34] sm:$0xf0]  ;;  %v10179_v28 = vld [vmem:[#allocation2 + $0x30] sm:$0xf0]  ;;  %9658 = vmatmul.msk.bf16.vlgmr.msrb.gmra.mxu3 %vm361_vm1, %v10164_v55  ;;  %9659 = vmatmul.msk.bf16.vlgmr.msra.gmra.mxu0 %vm361_vm1, %v10164_v55  ;;  %4653 = vst.msk [vmem:[#allocation2 + $0x3c] sm:$0xff] %vm12374_vm14, %v4632_v60  ;;  %vm14187_vm11 = vmmov %vm14185_vm8  ;;  %vm14192_vm14 = vcmask 220160  }
 0x496   : > { %v12399_v14 = vor.u32 %v10179_v28, %v9730_v15  ;;  %v12401_v18 = vor.u32 %v10175_v35, %v9732_v40  ;;  %v10170_v51 = vld [vmem:[#allocation2 + $0x30] sm:$0xf0]  ;;  %v9648_v48 = vld [vmem:[#allocation2 + $0x34] sm:$0xf0]  ;;  %4893 = vmatpush.bf16.msrb.mxu0 %v4869_v58  ;;  %vm14188_vm12 = vmmov %vm14185_vm8 }
 0x497   : > { %v9647_v10 = vor.u32 %v10170_v51, %v9646_v9  ;;  %v9651_v46 = vor.u32 %v10167_v49, %v9648_v48  ;;  %v12546_v60 = vld [vmem:[%s14092_s4 + $0x10] sm:$0xff]  ;;  %vm14189_vm10 = vmmov %vm14185_vm8 }
 0x498   : > { %5040 = vrot.lane.b32.xlu2 %v12399_v14, %s10352_s18  ;;  %v4858_v5 = vpop.permute.xlu1 %4857  ;;  %vm14191_vm9 = vmmov %vm14185_vm8 }
 0x499   : > { %5042 = vrot.lane.b32.xlu0 %v12401_v18, %s10352_s18  ;;  %4781 = vmatpush.bf16.msra.mxu1 %v9647_v10  ;;  %v4862_v43 = vpop.permute.xlu0 %4861  ;;  %v4871_v25 = vsel %vm2299_vm13, %v4858_v5, %v4860_v47  ;;  %v4870_v56 = vsel %vm2299_vm13, %v4856_v22, %v4858_v5 }
 0x49a   : > { %4795 = vmatpush.bf16.msra.mxu2 %v9651_v46  ;;  %v4872_v38 = vsel %vm2299_vm13, %v4860_v47, %v4862_v43 }
 0x49c   : > { %v10180_v19 = vld [vmem:[#allocation2 + $0x38] sm:$0xf0]  ;;  %9660 = vmatmul.msk.bf16.vlgmr.msra.gmra.mxu1 %vm361_vm1, %v10164_v55  ;;  %v9740_v39 = vld [vmem:[#allocation2 + $0x3c] sm:$0xf0] }
 0x49d   : > { %v12409_v4 = vor.u32 %v10180_v19, %v9738_v7  ;;  %v10171_v31 = vld [vmem:[#allocation2 + $0x38] sm:$0xf0]  ;;  %9661 = vmatmul.msk.bf16.vlgmr.msra.gmra.mxu2 %vm361_vm1, %v10164_v55  ;;  %v12420_v27 = vor.u32 %v10176_v0, %v9740_v39  ;;  %4907 = vmatpush.bf16.msrb.mxu1 %v4870_v56 }
 0x49e   : > { %v9655_v33 = vor.u32 %v10171_v31, %v9654_v53  ;;  %4921 = vmatpush.bf16.msrb.mxu2 %v4871_v25 }
 0x49f   : > { %5044 = vrot.lane.b32.xlu1 %v12409_v4, %s10352_s18 }
 0x4a0   : > { %5185 = vrot.lane.b32.xlu2 %v12357_v13, %s10353_s19  ;;  %4809 = vmatpush.bf16.msra.mxu3 %v9655_v33  ;;  %v4864_v32 = vpop.permute.xlu1 %4863 }
 0x4a1   : > { %5187 = vrot.lane.b32.xlu0 %v12359_v12, %s10353_s19  ;;  %v4868_v42 = vpop.permute.xlu0 %4867  ;;  %v4873_v57 = vsel %vm2299_vm13, %v4862_v43, %v4864_v32  ;;  %v4874_v59 = vsel %vm2299_vm13, %v4864_v32, %v4866_v11 }
 0x4a2   : > { %v4875_v29 = vsel %vm2299_vm13, %v4866_v11, %v4868_v42  ;;  %4949 = vmatpush.bf16.msra.mxu0 %v4873_v57  ;;  %4963 = vmatpush.bf16.msra.mxu1 %v4874_v59 }
 0x4a3   : > { %4977 = vmatpush.bf16.msra.mxu2 %v4875_v29 }
 0x4a4   : > { %4935 = vmatpush.bf16.msrb.mxu3 %v4872_v38 }
 0x4a5   : > { %9662 = vmatmul.msk.bf16.vlgmr.msra.gmra.mxu3 %vm361_vm1, %v10164_v55  ;;  %9699 = vmatmul.msk.bf16.vlgmr.msrb.gmra.mxu0 %vm361_vm1, %v10155_v1 }
 0x4a7   : > { %5189 = vrot.lane.b32.xlu1 %v12382_v23, %s10353_s19 }
 0x4a8   : > { %5046 = vrot.lane.b32.xlu2 %v12420_v27, %s10352_s18  ;;  %s14218_s18 = smov 46  }
 0x4a9   : > { %5191 = vrot.lane.b32.xlu0 %v12384_v37, %s10353_s19 }
 0x4ac   : > { %9700 = vmatmul.msk.bf16.vlgmr.msrb.gmra.mxu1 %vm361_vm1, %v10155_v1 }
 0x4ad   : > { %9701 = vmatmul.msk.bf16.vlgmr.msrb.gmra.mxu2 %vm361_vm1, %v10155_v1 }
 0x4af   : > { %5193 = vrot.lane.b32.xlu1 %v12399_v14, %s10353_s19 }
 0x4b0   : > { %5195 = vrot.lane.b32.xlu2 %v12401_v18, %s10353_s19 }
 0x4b1   : > { %5197 = vrot.lane.b32.xlu0 %v12409_v4, %s10353_s19 }
 0x4b5   : > { %9702 = vmatmul.msk.bf16.vlgmr.msrb.gmra.mxu3 %vm361_vm1, %v10155_v1  ;;  %9703 = vmatmul.msk.bf16.vlgmr.msra.gmra.mxu0 %vm361_vm1, %v10155_v1 }
 0x4b7   : > { %5199 = vrot.lane.b32.xlu1 %v12420_v27, %s10353_s19  ;;  %s14219_s19 = smov 45  }
 0x4b8   : > { %5340 = vrot.lane.b32.xlu2 %v12359_v12, %s10354_s20 }
 0x4b9   : > { %5342 = vrot.lane.b32.xlu0 %v12382_v23, %s10354_s20 }
 0x4bc   : > { %9704 = vmatmul.msk.bf16.vlgmr.msra.gmra.mxu1 %vm361_vm1, %v10155_v1 }
 0x4bd   : > { %9705 = vmatmul.msk.bf16.vlgmr.msra.gmra.mxu2 %vm361_vm1, %v10155_v1 }
 0x4bf   : > { %5344 = vrot.lane.b32.xlu1 %v12384_v37, %s10354_s20 }
 0x4c0   : > { %5338 = vrot.lane.b32.xlu2 %v12357_v13, %s10354_s20 }
 0x4c1   : > { %5346 = vrot.lane.b32.xlu0 %v12399_v14, %s10354_s20 }
 0x4c7   : > { %5348 = vrot.lane.b32.xlu1 %v12401_v18, %s10354_s20 }
 0x4c8   : > { %5350 = vrot.lane.b32.xlu2 %v12409_v4, %s10354_s20 }
 0x4c9   : > { %5352 = vrot.lane.b32.xlu0 %v12420_v27, %s10354_s20  ;;  %s14175_s20 = smov 18  }
 0x4cf   : > { %5491 = vrot.lane.b32.xlu1 %v12357_v13, %s10355_s21 }
 0x4d0   : > { %5493 = vrot.lane.b32.xlu2 %v12359_v12, %s10355_s21 }
 0x4d1   : > { %5495 = vrot.lane.b32.xlu0 %v12382_v23, %s10355_s21 }
 0x4d5   : > { %v5035_v45 = vpop.permute.xlu2 %5034 }
 0x4d7   : > { %5497 = vrot.lane.b32.xlu1 %v12384_v37, %s10355_s21 }
 0x4d8   : > { %5499 = vrot.lane.b32.xlu2 %v12399_v14, %s10355_s21 }
 0x4d9   : > { %5501 = vrot.lane.b32.xlu0 %v12401_v18, %s10355_s21 }
 0x4df   : > { %5503 = vrot.lane.b32.xlu1 %v12409_v4, %s10355_s21 }
 0x4e0   : > { %5505 = vrot.lane.b32.xlu2 %v12420_v27, %s10355_s21 }
 0x4e1   : > { %5644 = vrot.lane.b32.xlu0 %v12357_v13, %s10356_s22 }
 0x4e7   : > { %5646 = vrot.lane.b32.xlu1 %v12359_v12, %s10356_s22 }
 0x4e8   : > { %5648 = vrot.lane.b32.xlu2 %v12382_v23, %s10356_s22 }
 0x4e9   : > { %5650 = vrot.lane.b32.xlu0 %v12384_v37, %s10356_s22 }
 0x4ed   : > { %v5033_v62 = vpop.permute.xlu1 %5032 }
 0x4ee   : > { %v5048_v44 = vsel %vm346_vm0, %v5033_v62, %v5035_v45  ;;  %v10182_v62 = vld [vmem:[%s14092_s4 + $0x18] sm:$0xff] }
 0x4ef   : > { %5072 = vmatpush.bf16.msra.mxu3 %v5048_v44  ;;  %5652 = vrot.lane.b32.xlu1 %v12399_v14, %s10356_s22 }
 0x4f0   : > { %5654 = vrot.lane.b32.xlu2 %v12401_v18, %s10356_s22 }
 0x4f1   : > { %5656 = vrot.lane.b32.xlu0 %v12409_v4, %s10356_s22 }
 0x4f2   : > { %9744 = vmatmul.msk.bf16.vlgmr.msra.gmra.mxu3 %vm361_vm1, %v10172_v8  ;;  %v5041_v36 = vpop.permute.xlu2 %5040 }
 0x4f7   : > { %5797 = vrot.lane.b32.xlu1 %v12357_v13, %s10357_s23 }
 0x4f8   : > { %5799 = vrot.lane.b32.xlu2 %v12359_v12, %s10357_s23 }
 0x4f9   : > { %5801 = vrot.lane.b32.xlu0 %v12382_v23, %s10357_s23 }
 0x4fa   : > { %v5186_v26 = vpop.permute.xlu2 %5185 }
 0x4fc   : > { %v12534_v50 = vpop.f32.mrf.mxu1 }
 0x4ff   : > { %5658 = vrot.lane.b32.xlu1 %v12420_v27, %s10356_s22  ;;  %s14220_s22 = smov 44  }
 0x500   : > { %5803 = vrot.lane.b32.xlu2 %v12384_v37, %s10357_s23 }
 0x501   : > { %5805 = vrot.lane.b32.xlu0 %v12399_v14, %s10357_s23 }
 0x502   : > { %v5047_v6 = vpop.permute.xlu2 %5046  ;;  %v12541_v35 = vpop.f32.mrf.mxu2 }
 0x503   : > { %v5039_v2 = vpop.permute.xlu1 %5038  ;;  %v5037_v20 = vpop.permute.xlu0 %5036 }
 0x504   : > { %v5051_v3 = vsel %vm346_vm0, %v5039_v2, %v5041_v36  ;;  %v5049_v24 = vsel %vm346_vm0, %v5035_v45, %v5037_v20  ;;  %v5050_v61 = vsel %vm346_vm0, %v5037_v20, %v5039_v2  ;;  %v12556_v40 = vpop.f32.mrf.mxu1 }
 0x505   : > { %5114 = vmatpush.bf16.msrb.mxu2 %v5051_v3  ;;  %5086 = vmatpush.bf16.msrb.mxu0 %v5049_v24 }
 0x506   : > { %5100 = vmatpush.bf16.msrb.mxu1 %v5050_v61 }
 0x507   : > { %5807 = vrot.lane.b32.xlu1 %v12401_v18, %s10357_s23 }
 0x508   : > { %9747 = vmatmul.msk.bf16.vlgmr.msrb.gmra.mxu2 %vm361_vm1, %v10172_v8  ;;  %9745 = vmatmul.msk.bf16.vlgmr.msrb.gmra.mxu0 %vm361_vm1, %v10172_v8 }
 0x509   : > { %9746 = vmatmul.msk.bf16.vlgmr.msrb.gmra.mxu1 %vm361_vm1, %v10172_v8  ;;  %5809 = vrot.lane.b32.xlu2 %v12409_v4, %s10357_s23 }
 0x50a   : > { %5811 = vrot.lane.b32.xlu0 %v12420_v27, %s10357_s23  ;;  %v5196_v54 = vpop.permute.xlu2 %5195  ;;  %v12564_v49 = vpop.f32.mrf.mxu2  ;;  %s14176_s23 = smov 16  }
 0x50b   : > { %v5043_v55 = vpop.permute.xlu0 %5042 }
 0x50c   : > { %v5052_v34 = vsel %vm346_vm0, %v5041_v36, %v5043_v55 }
 0x50d   : > { %5128 = vmatpush.bf16.msrb.mxu3 %v5052_v34 }
 0x50f   : > { %5952 = vrot.lane.b32.xlu1 %v12359_v12, %s10358_s9 }
 0x510   : > { %9748 = vmatmul.msk.bf16.vlgmr.msrb.gmra.mxu3 %vm361_vm1, %v10172_v8 }
 0x511   : > { %5954 = vrot.lane.b32.xlu2 %v12382_v23, %s10358_s9  ;;  %v5045_v30 = vpop.permute.xlu1 %5044 }
 0x512   : > { %5956 = vrot.lane.b32.xlu0 %v12384_v37, %s10358_s9  ;;  %v5053_v16 = vsel %vm346_vm0, %v5043_v55, %v5045_v30  ;;  %v5054_v52 = vsel %vm346_vm0, %v5045_v30, %v5047_v6  ;;  %v5341_v21 = vpop.permute.xlu2 %5340  ;;  %v12572_v7 = vpop.f32.mrf.mxu0  ;;  %vm14177_vm0 = vcmask 867328  }
 0x513   : > { %v5188_v63 = vpop.permute.xlu0 %5187  ;;  %5142 = vmatpush.bf16.msra.mxu0 %v5053_v16  ;;  %5156 = vmatpush.bf16.msra.mxu1 %v5054_v52 }
 0x514   : > { %v5201_v41 = vsel %vm605_vm2, %v5186_v26, %v5188_v63 }
 0x515   : > { %5225 = vmatpush.bf16.msra.mxu2 %v5201_v41 }
 0x517   : > { %5950 = vrot.lane.b32.xlu1 %v12357_v13, %s10358_s9 }
 0x518   : > { %9749 = vmatmul.msk.bf16.vlgmr.msra.gmra.mxu0 %vm361_vm1, %v10172_v8  ;;  %v12550_v15 = vpop.f32.mrf.mxu3  ;;  %9757 = vmatmul.msk.bf16.vlgmr.msra.gmra.mxu2 %vm361_vm1, %v12546_v60 }
 0x519   : > { %9750 = vmatmul.msk.bf16.vlgmr.msra.gmra.mxu1 %vm361_vm1, %v10172_v8  ;;  %5958 = vrot.lane.b32.xlu2 %v12399_v14, %s10358_s9  ;;  %v5190_v28 = vpop.permute.xlu1 %5189  ;;  %v12574_v19 = vpop.f32.mrf.mxu1 }
 0x51a   : > { %5960 = vrot.lane.b32.xlu0 %v12401_v18, %s10358_s9  ;;  %v5202_v51 = vsel %vm605_vm2, %v5188_v63, %v5190_v28  ;;  %v5339_v48 = vpop.permute.xlu2 %5338  ;;  %v12600_v25 = vpop.f32.mrf.mxu0 }
 0x51b   : > { %v5192_v9 = vpop.permute.xlu0 %5191  ;;  %5239 = vmatpush.bf16.msra.mxu3 %v5202_v51  ;;  %v5354_v22 = vsel %vm759_vm3, %v5339_v48, %v5341_v21 }
 0x51c   : > { %v5203_v10 = vsel %vm605_vm2, %v5190_v28, %v5192_v9 }
 0x51d   : > { %5253 = vmatpush.bf16.msrb.mxu0 %v5203_v10 }
 0x51f   : > { %5962 = vrot.lane.b32.xlu1 %v12409_v4, %s10358_s9 }
 0x520   : > { %9758 = vmatmul.msk.bf16.vlgmr.msra.gmra.mxu3 %vm361_vm1, %v12546_v60  ;;  %v12568_v46 = vpop.f32.mrf.mxu3  ;;  %v12584_v0 = vpop.f32.mrf.mxu2 }
 0x521   : > { %5964 = vrot.lane.b32.xlu2 %v12420_v27, %s10358_s9  ;;  %v5194_v17 = vpop.permute.xlu1 %5193  ;;  %v12603_v58 = vpop.f32.mrf.mxu1  ;;  %s14172_s9 = smov 28  }
 0x522   : > { %6103 = vrot.lane.b32.xlu0 %v12357_v13, %s10359_s15  ;;  %v5204_v31 = vsel %vm605_vm2, %v5192_v9, %v5194_v17  ;;  %v5205_v33 = vsel %vm605_vm2, %v5194_v17, %v5196_v54  ;;  %v5351_v47 = vpop.permute.xlu2 %5350  ;;  %v4895_v44 = vpop.f32.mrf.mxu0 }
 0x523   : > { %v5198_v53 = vpop.permute.xlu0 %5197  ;;  %5267 = vmatpush.bf16.msrb.mxu1 %v5204_v31  ;;  %5281 = vmatpush.bf16.msrb.mxu2 %v5205_v33  ;;  %v12634_v2 = vadd.f32 %v4895_v44, %v12534_v50 }
 0x524   : > { %v5206_v39 = vsel %vm605_vm2, %v5196_v54, %v5198_v53 }
 0x525   : > { %5295 = vmatpush.bf16.msrb.mxu3 %v5206_v39 }
 0x527   : > { %5378 = vmatpush.bf16.msra.mxu1 %v5354_v22  ;;  %6105 = vrot.lane.b32.xlu1 %v12359_v12, %s10359_s15 }
 0x528   : > { %9759 = vmatmul.msk.bf16.vlgmr.msrb.gmra.mxu0 %vm361_vm1, %v12546_v60  ;;  %v12590_v5 = vpop.f32.mrf.mxu3  ;;  %9761 = vmatmul.msk.bf16.vlgmr.msrb.gmra.mxu2 %vm361_vm1, %v12546_v60  ;;  %v12606_v11 = vpop.f32.mrf.mxu2 }
 0x529   : > { %9760 = vmatmul.msk.bf16.vlgmr.msrb.gmra.mxu1 %vm361_vm1, %v12546_v60  ;;  %6107 = vrot.lane.b32.xlu2 %v12382_v23, %s10359_s15  ;;  %v5200_v43 = vpop.permute.xlu1 %5199  ;;  %v4909_v8 = vpop.f32.mrf.mxu1 }
 0x52a   : > { %6109 = vrot.lane.b32.xlu0 %v12384_v37, %s10359_s15  ;;  %v5207_v38 = vsel %vm605_vm2, %v5198_v53, %v5200_v43  ;;  %v5494_v29 = vpop.permute.xlu2 %5493  ;;  %v12637_v6 = vadd.f32 %v4909_v8, %v12541_v35  ;;  %v12648_v50 = vpop.f32.mrf.mxu0  ;;  %vm14178_vm2 = vmmov %vm14177_vm0 }
 0x52b   : > { %v5343_v1 = vpop.permute.xlu0 %5342  ;;  %5309 = vmatpush.bf16.msra.mxu0 %v5207_v38 }
 0x52c   : > { %v5355_v56 = vsel %vm759_vm3, %v5341_v21, %v5343_v1 }
 0x52d   : > { %5392 = vmatpush.bf16.msra.mxu2 %v5355_v56 }
 0x52f   : > { %6111 = vrot.lane.b32.xlu1 %v12399_v14, %s10359_s15 }
 0x530   : > { %9762 = vmatmul.msk.bf16.vlgmr.msrb.gmra.mxu3 %vm361_vm1, %v12546_v60  ;;  %v12610_v42 = vpop.f32.mrf.mxu3  ;;  %v4923_v36 = vpop.f32.mrf.mxu2 }
 0x531   : > { %6113 = vrot.lane.b32.xlu2 %v12401_v18, %s10359_s15  ;;  %v5345_v32 = vpop.permute.xlu1 %5344  ;;  %v12640_v20 = vadd.f32 %v4923_v36, %v12550_v15  ;;  %v12650_v63 = vpop.f32.mrf.mxu1 }
 0x532   : > { %6115 = vrot.lane.b32.xlu0 %v12409_v4, %s10359_s15  ;;  %v5356_v59 = vsel %vm759_vm3, %v5343_v1, %v5345_v32  ;;  %v5500_v34 = vpop.permute.xlu2 %5499  ;;  %v4951_v15 = vpop.f32.mrf.mxu0 }
 0x533   : > { %v5347_v57 = vpop.permute.xlu0 %5346  ;;  %5406 = vmatpush.bf16.msra.mxu3 %v5356_v59  ;;  %v12673_v10 = vadd.f32 %v4951_v15, %v12574_v19 }
 0x534   : > { %v5357_v45 = vsel %vm759_vm3, %v5345_v32, %v5347_v57 }
 0x535   : > { %5420 = vmatpush.bf16.msrb.mxu0 %v5357_v45 }
 0x537   : > { %6117 = vrot.lane.b32.xlu1 %v12420_v27, %s10359_s15  ;;  %s14173_s15 = smov 27  }
 0x538   : > { %9763 = vmatmul.msk.bf16.vlgmr.msra.gmra.mxu0 %vm361_vm1, %v12546_v60  ;;  %9771 = vmatmul.msk.bf16.vlgmr.msra.gmra.mxu2 %vm361_vm1, %v10182_v62  ;;  %v4937_v3 = vpop.f32.mrf.mxu3  ;;  %v12652_v16 = vpop.f32.mrf.mxu2 }
 0x539   : > { %9770 = vmatmul.msk.bf16.vlgmr.msra.gmra.mxu1 %vm361_vm1, %v10182_v62  ;;  %6256 = vrot.lane.b32.xlu2 %v12357_v13, %s14172_s9  ;;  %v5349_v26 = vpop.permute.xlu1 %5348  ;;  %v12645_v55 = vadd.f32 %v4937_v3, %v12572_v7  ;;  %v4965_v28 = vpop.f32.mrf.mxu1 }
 0x53a   : > { %6258 = vrot.lane.b32.xlu0 %v12359_v12, %s14172_s9  ;;  %v5358_v61 = vsel %vm759_vm3, %v5347_v57, %v5349_v26  ;;  %v5359_v54 = vsel %vm759_vm3, %v5349_v26, %v5351_v47  ;;  %v5506_v60 = vpop.permute.xlu2 %5505  ;;  %v12676_v48 = vadd.f32 %v4965_v28, %v12584_v0 }
 0x53b   : > { %v5353_v24 = vpop.permute.xlu0 %5352  ;;  %5434 = vmatpush.bf16.msrb.mxu1 %v5358_v61  ;;  %5448 = vmatpush.bf16.msrb.mxu2 %v5359_v54  ;;  %v10184_v61 = vld [vmem:[%s14092_s4 + $0x28] sm:$0xff] }
 0x53c   : > { %v5360_v30 = vsel %vm759_vm3, %v5351_v47, %v5353_v24  ;;  %vm14179_vm3 = vmmov %vm14177_vm0 }
 0x53d   : > { %5462 = vmatpush.bf16.msrb.mxu3 %v5360_v30 }
 0x53f   : > { %6260 = vrot.lane.b32.xlu1 %v12382_v23, %s14172_s9 }
 0x540   : > { %9772 = vmatmul.msk.bf16.vlgmr.msra.gmra.mxu3 %vm361_vm1, %v10182_v62  ;;  %v4979_v9 = vpop.f32.mrf.mxu2  ;;  %v12728_v24 = vpop.f32.mrf.mxu3 }
 0x541   : > { %6262 = vrot.lane.b32.xlu2 %v12384_v37, %s14172_s9  ;;  %v5492_v52 = vpop.permute.xlu1 %5491  ;;  %v12679_v7 = vadd.f32 %v4979_v9, %v12590_v5  ;;  %v10183_v5 = vld [vmem:[%s14092_s4 + $0x20] sm:$0xff] }
 0x542   : > { %6264 = vrot.lane.b32.xlu0 %v12399_v14, %s14172_s9  ;;  %v5507_v21 = vsel %vm913_vm4, %v5492_v52, %v5494_v29  ;;  %v5649_v22 = vpop.permute.xlu2 %5648 }
 0x543   : > { %v5496_v41 = vpop.permute.xlu0 %5495  ;;  %5531 = vmatpush.bf16.msra.mxu0 %v5507_v21 }
 0x544   : > { %v5508_v35 = vsel %vm913_vm4, %v5494_v29, %v5496_v41 }
 0x545   : > { %5545 = vmatpush.bf16.msra.mxu1 %v5508_v35 }
 0x547   : > { %6266 = vrot.lane.b32.xlu1 %v12401_v18, %s14172_s9 }
 0x548   : > { %9773 = vmatmul.msk.bf16.vlgmr.msrb.gmra.mxu0 %vm361_vm1, %v10182_v62  ;;  %9775 = vmatmul.msk.bf16.vlgmr.msrb.gmra.mxu2 %vm361_vm1, %v10182_v62 }
 0x549   : > { %9774 = vmatmul.msk.bf16.vlgmr.msrb.gmra.mxu1 %vm361_vm1, %v10182_v62  ;;  %6268 = vrot.lane.b32.xlu2 %v12409_v4, %s14172_s9  ;;  %v5498_v51 = vpop.permute.xlu1 %5497 }
 0x54a   : > { %6409 = vrot.lane.b32.xlu0 %v12357_v13, %s14173_s15  ;;  %v5509_v53 = vsel %vm913_vm4, %v5496_v41, %v5498_v51  ;;  %v5510_v31 = vsel %vm913_vm4, %v5498_v51, %v5500_v34  ;;  %v5655_v43 = vpop.permute.xlu2 %5654 }
 0x54b   : > { %v5502_v17 = vpop.permute.xlu0 %5501  ;;  %5559 = vmatpush.bf16.msra.mxu2 %v5509_v53  ;;  %5573 = vmatpush.bf16.msra.mxu3 %v5510_v31  ;;  %v12759_v53 = vpop.f32.mrf.mxu1 }
 0x54c   : > { %v5511_v33 = vsel %vm913_vm4, %v5500_v34, %v5502_v17 }
 0x54d   : > { %5587 = vmatpush.bf16.msrb.mxu0 %v5511_v33 }
 0x54f   : > { %6411 = vrot.lane.b32.xlu1 %v12359_v12, %s14173_s15 }
 0x550   : > { %9776 = vmatmul.msk.bf16.vlgmr.msrb.gmra.mxu3 %vm361_vm1, %v10182_v62 }
 0x551   : > { %6413 = vrot.lane.b32.xlu2 %v12382_v23, %s14173_s15  ;;  %v5504_v19 = vpop.permute.xlu1 %5503 }
 0x552   : > { %6270 = vrot.lane.b32.xlu0 %v12420_v27, %s14172_s9  ;;  %v5512_v0 = vsel %vm913_vm4, %v5502_v17, %v5504_v19  ;;  %v5513_v47 = vsel %vm913_vm4, %v5504_v19, %v5506_v60  ;;  %v5800_v44 = vpop.permute.xlu2 %5799  ;;  %v12757_v17 = vpop.f32.mrf.mxu0  ;;  %vm14180_vm4 = vmmov %vm14177_vm0  ;;  %s14209_s9 = smov 55  }
 0x553   : > { %v5645_v39 = vpop.permute.xlu0 %5644  ;;  %5601 = vmatpush.bf16.msrb.mxu1 %v5512_v0  ;;  %5615 = vmatpush.bf16.msrb.mxu2 %v5513_v47 }
 0x557   : > { %6415 = vrot.lane.b32.xlu1 %v12384_v37, %s14173_s15 }
 0x558   : > { %9783 = vmatmul.msk.bf16.vlgmr.msra.gmra.mxu0 %vm361_vm1, %v10183_v5  ;;  %9785 = vmatmul.msk.bf16.vlgmr.msra.gmra.mxu2 %vm361_vm1, %v10183_v5 }
 0x559   : > { %9784 = vmatmul.msk.bf16.vlgmr.msra.gmra.mxu1 %vm361_vm1, %v10183_v5  ;;  %6417 = vrot.lane.b32.xlu2 %v12399_v14, %s14173_s15  ;;  %v5647_v38 = vpop.permute.xlu1 %5646 }
 0x55a   : > { %6419 = vrot.lane.b32.xlu0 %v12401_v18, %s14173_s15  ;;  %v5660_v56 = vsel %vm1067_vm5, %v5645_v39, %v5647_v38  ;;  %v5661_v29 = vsel %vm1067_vm5, %v5647_v38, %v5649_v22  ;;  %v5804_v54 = vpop.permute.xlu2 %5803 }
 0x55b   : > { %v5651_v1 = vpop.permute.xlu0 %5650  ;;  %5684 = vmatpush.bf16.msrb.mxu3 %v5660_v56  ;;  %5698 = vmatpush.bf16.msra.mxu0 %v5661_v29 }
 0x55c   : > { %v5662_v32 = vsel %vm1067_vm5, %v5649_v22, %v5651_v1  ;;  %v12763_v22 = vpop.f32.mrf.mxu2 }
 0x55d   : > { %5712 = vmatpush.bf16.msra.mxu1 %v5662_v32 }
 0x55f   : > { %6421 = vrot.lane.b32.xlu1 %v12409_v4, %s14173_s15 }
 0x560   : > { %9786 = vmatmul.msk.bf16.vlgmr.msra.gmra.mxu3 %vm361_vm1, %v10183_v5 }
 0x561   : > { %6423 = vrot.lane.b32.xlu2 %v12420_v27, %s14173_s15  ;;  %v5653_v57 = vpop.permute.xlu1 %5652 }
 0x562   : > { %6564 = vrot.lane.b32.xlu0 %v12359_v12, %s14174_s17  ;;  %v5663_v45 = vsel %vm1067_vm5, %v5651_v1, %v5653_v57  ;;  %v5664_v62 = vsel %vm1067_vm5, %v5653_v57, %v5655_v43 }
 0x563   : > { %v5657_v59 = vpop.permute.xlu0 %5656  ;;  %5726 = vmatpush.bf16.msra.mxu2 %v5663_v45  ;;  %5740 = vmatpush.bf16.msra.mxu3 %v5664_v62  ;;  %v5810_v60 = vpop.permute.xlu2 %5809 }
 0x564   : > { %v5665_v8 = vsel %vm1067_vm5, %v5655_v43, %v5657_v59 }
 0x567   : > { %6566 = vrot.lane.b32.xlu1 %v12382_v23, %s14174_s17 }
 0x568   : > { %9787 = vmatmul.msk.bf16.vlgmr.msrb.gmra.mxu0 %vm361_vm1, %v10183_v5  ;;  %9789 = vmatmul.msk.bf16.vlgmr.msrb.gmra.mxu2 %vm361_vm1, %v10183_v5 }
 0x569   : > { %9788 = vmatmul.msk.bf16.vlgmr.msrb.gmra.mxu1 %vm361_vm1, %v10183_v5  ;;  %5754 = vmatpush.bf16.msrb.mxu0 %v5665_v8  ;;  %v5798_v36 = vpop.permute.xlu1 %5797  ;;  %v12774_v5 = vld [vmem:[%s14092_s4 + $0x30] sm:$0xff] }
 0x56a   : > { %6568 = vrot.lane.b32.xlu2 %v12384_v37, %s14174_s17  ;;  %6562 = vrot.lane.b32.xlu0 %v12357_v13, %s14174_s17  ;;  %v5813_v26 = vsel %vm1221_vm6, %v5798_v36, %v5800_v44 }
 0x56b   : > { %v5802_v3 = vpop.permute.xlu0 %5801  ;;  %5837 = vmatpush.bf16.msrb.mxu2 %v5813_v26  ;;  %v5955_v33 = vpop.permute.xlu2 %5954 }
 0x56c   : > { %v5814_v34 = vsel %vm1221_vm6, %v5800_v44, %v5802_v3  ;;  %v5815_v15 = vsel %vm1221_vm6, %v5802_v3, %v5804_v54 }
 0x56f   : > { %6570 = vrot.lane.b32.xlu1 %v12399_v14, %s14174_s17 }
 0x570   : > { %9796 = vmatmul.msk.bf16.vlgmr.msrb.gmra.mxu3 %vm361_vm1, %v10184_v61 }
 0x571   : > { %5851 = vmatpush.bf16.msrb.mxu3 %v5814_v34  ;;  %v5659_v30 = vpop.permute.xlu1 %5658 }
 0x572   : > { %6572 = vrot.lane.b32.xlu2 %v12401_v18, %s14174_s17  ;;  %6574 = vrot.lane.b32.xlu0 %v12409_v4, %s14174_s17  ;;  %v5666_v52 = vsel %vm1067_vm5, %v5657_v59, %v5659_v30  ;;  %vm14181_vm5 = vmmov %vm14177_vm0 }
 0x573   : > { %v5806_v21 = vpop.permute.xlu0 %5805  ;;  %5768 = vmatpush.bf16.msrb.mxu1 %v5666_v52  ;;  %v5959_v57 = vpop.permute.xlu2 %5958 }
 0x574   : > { %v5816_v28 = vsel %vm1221_vm6, %v5804_v54, %v5806_v21 }
 0x575   : > { %v5074_v41 = vpop.f32.mrf.mxu3 }
 0x576   : > { %v12743_v35 = vadd.f32 %v5074_v41, %v12634_v2 }
 0x577   : > { %6576 = vrot.lane.b32.xlu1 %v12420_v27, %s14174_s17  ;;  %s14190_s17 = smov 7  }
 0x578   : > { %9797 = vmatmul.msk.bf16.vlgmr.msra.gmra.mxu0 %vm361_vm1, %v10184_v61  ;;  %9799 = vmatmul.msk.bf16.vlgmr.msra.gmra.mxu2 %vm361_vm1, %v10184_v61 }
 0x579   : > { %9798 = vmatmul.msk.bf16.vlgmr.msra.gmra.mxu1 %vm361_vm1, %v10184_v61  ;;  %5865 = vmatpush.bf16.msra.mxu0 %v5815_v15  ;;  %v5808_v2 = vpop.permute.xlu1 %5807 }
 0x57a   : > { %5879 = vmatpush.bf16.msra.mxu1 %v5816_v28  ;;  %6715 = vrot.lane.b32.xlu2 %v12357_v13, %s14175_s20  ;;  %v5817_v51 = vsel %vm1221_vm6, %v5806_v21, %v5808_v2  ;;  %v5818_v31 = vsel %vm1221_vm6, %v5808_v2, %v5810_v60 }
 0x57b   : > { %6717 = vrot.lane.b32.xlu0 %v12359_v12, %s14175_s20  ;;  %5893 = vmatpush.bf16.msra.mxu2 %v5817_v51  ;;  %v5965_v52 = vpop.permute.xlu2 %5964 }
 0x57c   : > { %v5812_v9 = vpop.permute.xlu0 %5811 }
 0x57d   : > { %v5819_v1 = vsel %vm1221_vm6, %v5810_v60, %v5812_v9  ;;  %v12790_v29 = vpop.f32.mrf.mxu3  ;;  %vm14182_vm6 = vmmov %vm14177_vm0 }
 0x57f   : > { %6719 = vrot.lane.b32.xlu1 %v12382_v23, %s14175_s20 }
 0x580   : > { %9800 = vmatmul.msk.bf16.vlgmr.msra.gmra.mxu3 %vm361_vm1, %v10184_v61 }
 0x581   : > { %5907 = vmatpush.bf16.msra.mxu3 %v5818_v31  ;;  %v5953_v19 = vpop.permute.xlu1 %5952 }
 0x582   : > { %6721 = vrot.lane.b32.xlu2 %v12384_v37, %s14175_s20  ;;  %v5967_v56 = vsel %vm1375_vm7, %v5953_v19, %v5955_v33 }
 0x583   : > { %6723 = vrot.lane.b32.xlu0 %v12399_v14, %s14175_s20  ;;  %v6108_v51 = vpop.permute.xlu2 %6107 }
 0x584   : > { %v5957_v39 = vpop.permute.xlu0 %5956 }
 0x585   : > { %v5088_v0 = vpop.f32.mrf.mxu0  ;;  %v5968_v8 = vsel %vm1375_vm7, %v5955_v33, %v5957_v39  ;;  %v5969_v21 = vsel %vm1375_vm7, %v5957_v39, %v5959_v57 }
 0x586   : > { %v5102_v47 = vpop.f32.mrf.mxu1  ;;  %v12777_v43 = vadd.f32 %v5088_v0, %v12637_v6  ;;  %v12861_v0 = vld [vmem:[%s14092_s4 + $0x38] sm:$0xff] }
 0x587   : > { %v12780_v38 = vadd.f32 %v5102_v47, %v12640_v20  ;;  %6725 = vrot.lane.b32.xlu1 %v12401_v18, %s14175_s20 }
 0x588   : > { %9801 = vmatmul.msk.bf16.vlgmr.msrb.gmra.mxu0 %vm361_vm1, %v10184_v61  ;;  %9809 = vmatmul.msk.bf16.vlgmr.msrb.gmra.mxu2 %vm361_vm1, %v12774_v5 }
 0x589   : > { %9802 = vmatmul.msk.bf16.vlgmr.msrb.gmra.mxu1 %vm361_vm1, %v10184_v61  ;;  %5921 = vmatpush.bf16.msrb.mxu0 %v5819_v1  ;;  %v5951_v20 = vpop.permute.xlu1 %5950 }
 0x58a   : > { %6004 = vmatpush.bf16.msrb.mxu2 %v5967_v56  ;;  %6727 = vrot.lane.b32.xlu2 %v12409_v4, %s14175_s20  ;;  %v5966_v59 = vsel %vm1375_vm7, %v5951_v20, %v5953_v19  ;;  %v4912_v20 = vadd.f32 %v12650_v63, %v12564_v49  ;;  %v4940_v63 = vadd.f32 %v12728_v24, %v12600_v25 }
 0x58b   : > { %v5116_v6 = vpop.f32.mrf.mxu2  ;;  %6729 = vrot.lane.b32.xlu0 %v12420_v27, %s14175_s20  ;;  %5990 = vmatpush.bf16.msrb.mxu1 %v5966_v59  ;;  %s14195_s20 = smov 6  }
 0x58c   : > { %v5166_v32 = vadd.f32 %v5116_v6, %v12645_v55  ;;  %v5961_v44 = vpop.permute.xlu0 %5960 }
 0x58d   : > { %v12798_v45 = vpop.f32.mrf.mxu0 }
 0x58e   : > { %v12800_v62 = vpop.f32.mrf.mxu1  ;;  %v5171_v49 = vadd.f32 %v12798_v45, %v4912_v20 }
 0x58f   : > { %6868 = vrot.lane.b32.xlu1 %v12357_v13, %s10364_s14 }
 0x590   : > { %9810 = vmatmul.msk.bf16.vlgmr.msrb.gmra.mxu3 %vm361_vm1, %v12774_v5 }
 0x591   : > { %6018 = vmatpush.bf16.msrb.mxu3 %v5968_v8  ;;  %v5963_v54 = vpop.permute.xlu1 %5962 }
 0x592   : > { %6870 = vrot.lane.b32.xlu2 %v12359_v12, %s10364_s14  ;;  %v5971_v41 = vsel %vm1375_vm7, %v5961_v44, %v5963_v54  ;;  %v5972_v9 = vsel %vm1375_vm7, %v5963_v54, %v5965_v52  ;;  %v4954_v52 = vadd.f32 %v12757_v17, %v12603_v58 }
 0x593   : > { %v12807_v36 = vpop.f32.mrf.mxu2  ;;  %6872 = vrot.lane.b32.xlu0 %v12382_v23, %s10364_s14  ;;  %v5130_v55 = vpop.f32.mrf.mxu3 }
 0x594   : > { %v12814_v26 = vadd.f32 %v5130_v55, %v12673_v10  ;;  %v6104_v10 = vpop.permute.xlu0 %6103  ;;  %v5173_v45 = vadd.f32 %v12807_v36, %v4940_v63 }
 0x595   : > { %v5144_v3 = vpop.f32.mrf.mxu0 }
 0x596   : > { %v5158_v61 = vpop.f32.mrf.mxu1  ;;  %v12817_v34 = vadd.f32 %v5144_v3, %v12676_v48  ;;  %v5970_v48 = vsel %vm1375_vm7, %v5959_v57, %v5961_v44  ;;  %v4926_v57 = vadd.f32 %v12652_v16, %v12568_v46  ;;  %vm14183_vm7 = vmmov %vm14177_vm0 }
 0x597   : > { %v12820_v30 = vadd.f32 %v5158_v61, %v12679_v7  ;;  %6874 = vrot.lane.b32.xlu1 %v12384_v37, %s10364_s14 }
 0x598   : > { %9811 = vmatmul.msk.bf16.vlgmr.msra.gmra.mxu0 %vm361_vm1, %v12774_v5  ;;  %9813 = vmatmul.msk.bf16.vlgmr.msra.gmra.mxu2 %vm361_vm1, %v12774_v5  ;;  %v5172_v44 = vadd.f32 %v12800_v62, %v4926_v57 }
 0x599   : > { %9812 = vmatmul.msk.bf16.vlgmr.msra.gmra.mxu1 %vm361_vm1, %v12774_v5  ;;  %6032 = vmatpush.bf16.msra.mxu0 %v5969_v21  ;;  %v6106_v31 = vpop.permute.xlu1 %6105 }
 0x59a   : > { %6046 = vmatpush.bf16.msra.mxu1 %v5970_v48  ;;  %6060 = vmatpush.bf16.msra.mxu2 %v5971_v41 }
 0x59b   : > { %6876 = vrot.lane.b32.xlu2 %v12399_v14, %s10364_s14  ;;  %v5132_v7 = vpop.f32.mrf.mxu3  ;;  %6878 = vrot.lane.b32.xlu0 %v12401_v18, %s10364_s14  ;;  %v5227_v60 = vpop.f32.mrf.mxu2 }
 0x59c   : > { %v12838_v15 = vadd.f32 %v5227_v60, %v12743_v35  ;;  %v6110_v33 = vpop.permute.xlu0 %6109  ;;  %v5174_v36 = vadd.f32 %v5132_v7, %v4954_v52 }
 0x59d   : > { %v12840_v28 = vpop.f32.mrf.mxu0 }
 0x59e   : > { %v12842_v2 = vpop.f32.mrf.mxu1 }
 0x59f   : > { %6880 = vrot.lane.b32.xlu1 %v12409_v4, %s10364_s14 }
 0x5a0   : > { %9814 = vmatmul.msk.bf16.vlgmr.msra.gmra.mxu3 %vm361_vm1, %v12774_v5 }
 0x5a1   : > { %6074 = vmatpush.bf16.msra.mxu3 %v5972_v9  ;;  %v6112_v8 = vpop.permute.xlu1 %6111 }
 0x5a2   : > { %v6122_v62 = vsel %vm14180_vm4, %v6110_v33, %v6112_v8 }
 0x5a3   : > { %7021 = vrot.lane.b32.xlu2 %v12357_v13, %s14176_s23  ;;  %v5241_v35 = vpop.f32.mrf.mxu3  ;;  %7023 = vrot.lane.b32.xlu0 %v12359_v12, %s14176_s23  ;;  %v12853_v19 = vpop.f32.mrf.mxu2 }
 0x5a4   : > { %v12856_v39 = vadd.f32 %v5241_v35, %v12777_v43  ;;  %v6119_v43 = vsel %vm14177_vm0, %v6104_v10, %v6106_v31  ;;  %v6116_v25 = vpop.permute.xlu0 %6115  ;;  %vm14193_vm0 = vmmov %vm14185_vm8 }
 0x5a5   : > { %v5255_v47 = vpop.f32.mrf.mxu0 }
 0x5a6   : > { %v12864_v1 = vadd.f32 %v5255_v47, %v12780_v38  ;;  %v5269_v56 = vpop.f32.mrf.mxu1  ;;  %v6120_v38 = vsel %vm14178_vm2, %v6106_v31, %v6108_v51  ;;  %v4968_v31 = vadd.f32 %v12759_v53, %v12606_v11  ;;  %v4982_v11 = vadd.f32 %v12763_v22, %v12610_v42  ;;  %vm14194_vm2 = vmmov %vm14192_vm14 }
 0x5a7   : > { %v12866_v6 = vadd.f32 %v5269_v56, %v5166_v32  ;;  %v6121_v32 = vsel %vm14179_vm3, %v6108_v51, %v6110_v33  ;;  %7025 = vrot.lane.b32.xlu1 %v12382_v23, %s14176_s23  ;;  %vm14196_vm3 = vmmov %vm14194_vm2 }
 0x5a8   : > { %9815 = vmatmul.msk.bf16.vlgmr.msrb.gmra.mxu0 %vm361_vm1, %v12774_v5  ;;  %9823 = vmatmul.msk.bf16.vlgmr.msrb.gmra.mxu2 %vm361_vm1, %v12861_v0  ;;  %v6114_v5 = vpop.permute.xlu2 %6113  ;;  %v5175_v53 = vadd.f32 %v12840_v28, %v4968_v31  ;;  %vm14197_vm4 = vmmov %vm14194_vm2 }
 0x5a9   : > { %9822 = vmatmul.msk.bf16.vlgmr.msrb.gmra.mxu1 %vm361_vm1, %v12861_v0  ;;  %6143 = vmatpush.bf16.msrb.mxu0 %v6119_v43  ;;  %v6118_v17 = vpop.permute.xlu1 %6117 }
 0x5aa   : > { %6157 = vmatpush.bf16.msrb.mxu1 %v6120_v38  ;;  %6171 = vmatpush.bf16.msrb.mxu2 %v6121_v32  ;;  %v6125_v33 = vsel %vm14182_vm6, %v6116_v25, %v6118_v17  ;;  %vm14199_vm6 = vmmov %vm14194_vm2 }
 0x5ab   : > { %6882 = vrot.lane.b32.xlu2 %v12420_v27, %s10364_s14  ;;  %v5243_v59 = vpop.f32.mrf.mxu3  ;;  %7027 = vrot.lane.b32.xlu0 %v12384_v37, %s14176_s23  ;;  %v5283_v16 = vpop.f32.mrf.mxu2  ;;  %s14184_s14 = smov 8  }
 0x5ac   : > { %v12891_v46 = vadd.f32 %v5243_v59, %v5171_v49  ;;  %v12895_v24 = vadd.f32 %v5283_v16, %v12814_v26  ;;  %v6259_v9 = vpop.permute.xlu0 %6258 }
 0x5ad   : > { %v5257_v55 = vpop.f32.mrf.mxu0 }
 0x5ae   : > { %v12897_v3 = vadd.f32 %v5257_v55, %v5172_v44  ;;  %v5271_v61 = vpop.f32.mrf.mxu1 }
 0x5af   : > { %v12899_v54 = vadd.f32 %v5271_v61, %v5173_v45  ;;  %7029 = vrot.lane.b32.xlu1 %v12399_v14, %s14176_s23 }
 0x5b0   : > { %9824 = vmatmul.msk.bf16.vlgmr.msrb.gmra.mxu3 %vm361_vm1, %v12861_v0  ;;  %v6257_v48 = vpop.permute.xlu2 %6256 }
 0x5b1   : > { %6185 = vmatpush.bf16.msrb.mxu3 %v6122_v62  ;;  %v6272_v32 = vsel %vm14185_vm8, %v6257_v48, %v6259_v9  ;;  %v6261_v57 = vpop.permute.xlu1 %6260  ;;  %vm14201_vm8 = vcmask 211968  }
 0x5b2   : > { %v6273_v16 = vsel %vm14186_vm15, %v6259_v9, %v6261_v57  ;;  %vm14202_vm15 = vmmov %vm14201_vm8 }
 0x5b3   : > { %7031 = vrot.lane.b32.xlu2 %v12401_v18, %s14176_s23  ;;  %v5297_v26 = vpop.f32.mrf.mxu3  ;;  %7033 = vrot.lane.b32.xlu0 %v12409_v4, %s14176_s23  ;;  %v5285_v21 = vpop.f32.mrf.mxu2 }
 0x5b4   : > { %v12913_v10 = vadd.f32 %v5297_v26, %v12817_v34  ;;  %v12915_v41 = vadd.f32 %v5285_v21, %v5174_v36  ;;  %v6123_v34 = vsel %vm14181_vm5, %v6112_v8, %v6114_v5  ;;  %vm14198_vm5 = vmmov %vm14194_vm2 }
 0x5b5   : > { %v5311_v58 = vpop.f32.mrf.mxu0 }
 0x5b6   : > { %v12918_v7 = vadd.f32 %v5311_v58, %v12820_v30  ;;  %v5380_v60 = vpop.f32.mrf.mxu1  ;;  %v4898_v30 = vadd.f32 %v12648_v50, %v12556_v40  ;;  %v5176_v50 = vadd.f32 %v12842_v2, %v4982_v11  ;;  %v6265_v2 = vpop.permute.xlu0 %6264 }
 0x5b7   : > { %v12921_v51 = vadd.f32 %v5380_v60, %v12838_v15  ;;  %v6124_v15 = vsel %vm14183_vm7, %v6114_v5, %v6116_v25  ;;  %7035 = vrot.lane.b32.xlu1 %v12420_v27, %s14176_s23  ;;  %vm14200_vm7 = vmmov %vm14194_vm2  ;;  %s14203_s23 = smov 56  }
 0x5b8   : > { %9825 = vmatmul.msk.bf16.vlgmr.msra.gmra.mxu0 %vm361_vm1, %v12861_v0  ;;  %9827 = vmatmul.msk.bf16.vlgmr.msra.gmra.mxu2 %vm361_vm1, %v12861_v0  ;;  %v5170_v35 = vadd.f32 %v12790_v29, %v4898_v30  ;;  %v6263_v38 = vpop.permute.xlu2 %6262 }
 0x5b9   : > { %9826 = vmatmul.msk.bf16.vlgmr.msra.gmra.mxu1 %vm361_vm1, %v12861_v0  ;;  %6199 = vmatpush.bf16.msra.mxu0 %v6123_v34  ;;  %v6275_v45 = vsel %vm14188_vm12, %v6263_v38, %v6265_v2  ;;  %vm14205_vm12 = vmmov %vm14201_vm8 }
 0x5ba   : > { %6213 = vmatpush.bf16.msra.mxu1 %v6124_v15  ;;  %6227 = vmatpush.bf16.msra.mxu2 %v6125_v33  ;;  %v5323_v22 = vadd.f32 %v12853_v19, %v5170_v35  ;;  %v13031_v35 = vld [vmem:[%s14092_s4 + $0x48] sm:$0xff] }
 0x5bb   : > { %7176 = vrot.lane.b32.xlu2 %v12359_v12, %s14184_s14  ;;  %v5299_v40 = vpop.f32.mrf.mxu3  ;;  %7178 = vrot.lane.b32.xlu0 %v12382_v23, %s14184_s14  ;;  %v5394_v42 = vpop.f32.mrf.mxu2 }
 0x5bc   : > { %v5328_v47 = vadd.f32 %v5299_v40, %v5175_v53  ;;  %v5470_v28 = vadd.f32 %v5394_v42, %v12856_v39 }
 0x5bd   : > { %v5313_v56 = vpop.f32.mrf.mxu0 }
 0x5be   : > { %v12949_v29 = vadd.f32 %v5313_v56, %v5176_v50  ;;  %v5382_v20 = vpop.f32.mrf.mxu1  ;;  %v6410_v25 = vpop.permute.xlu0 %6409 }
 0x5bf   : > { %v12951_v43 = vadd.f32 %v5382_v20, %v5323_v22  ;;  %7180 = vrot.lane.b32.xlu1 %v12384_v37, %s14184_s14 }
 0x5c0   : > { %9828 = vmatmul.msk.bf16.vlgmr.msra.gmra.mxu3 %vm361_vm1, %v12861_v0  ;;  %v10187_v0 = vld [vmem:[%s14092_s4 + $0x40] sm:$0xff] }
 0x5c1   : > { %6296 = vmatpush.bf16.msra.mxu3 %v6272_v32 }
 0x5c3   : > { %7174 = vrot.lane.b32.xlu2 %v12357_v13, %s14184_s14  ;;  %v5408_v19 = vpop.f32.mrf.mxu3  ;;  %7182 = vrot.lane.b32.xlu0 %v12399_v14, %s14184_s14  ;;  %v5396_v39 = vpop.f32.mrf.mxu2 }
 0x5c4   : > { %v12963_v49 = vadd.f32 %v5408_v19, %v12864_v1  ;;  %v12969_v63 = vadd.f32 %v5396_v39, %v12891_v46  ;;  %v6274_v1 = vsel %vm14187_vm11, %v6261_v57, %v6263_v38  ;;  %v6269_v46 = vpop.permute.xlu2 %6268  ;;  %vm14204_vm11 = vmmov %vm14201_vm8 }
 0x5c5   : > { %v5422_v5 = vpop.f32.mrf.mxu0 }
 0x5c6   : > { %v12972_v59 = vadd.f32 %v5422_v5, %v12866_v6  ;;  %v5436_v44 = vpop.f32.mrf.mxu1  ;;  %v6267_v6 = vpop.permute.xlu1 %6266 }
 0x5c7   : > { %v12975_v8 = vadd.f32 %v5436_v44, %v12895_v24  ;;  %7184 = vrot.lane.b32.xlu1 %v12401_v18, %s14184_s14  ;;  %v6276_v48 = vsel %vm14189_vm10, %v6265_v2, %v6267_v6  ;;  %v6271_v17 = vpop.permute.xlu0 %6270  ;;  %v6277_v33 = vsel %vm14191_vm9, %v6267_v6, %v6269_v46  ;;  %vm14206_vm10 = vmmov %vm14201_vm8 }
 0x5c8   : > { %9835 = vmatmul.msk.bf16.vlgmr.msrb.gmra.mxu0 %vm361_vm1, %v10187_v0  ;;  %9837 = vmatmul.msk.bf16.vlgmr.msrb.gmra.mxu2 %vm361_vm1, %v10187_v0  ;;  %v6278_v15 = vsel %vm14193_vm0, %v6269_v46, %v6271_v17  ;;  %vm14207_vm9 = vmmov %vm14201_vm8  ;;  %vm14210_vm0 = vcmask 146432  }
 0x5c9   : > { %9836 = vmatmul.msk.bf16.vlgmr.msrb.gmra.mxu1 %vm361_vm1, %v10187_v0  ;;  %6310 = vmatpush.bf16.msrb.mxu0 %v6273_v16 }
 0x5ca   : > { %6324 = vmatpush.bf16.msrb.mxu1 %v6274_v1  ;;  %6338 = vmatpush.bf16.msrb.mxu2 %v6275_v45 }
 0x5cb   : > { %7186 = vrot.lane.b32.xlu2 %v12409_v4, %s14184_s14  ;;  %v5410_v24 = vpop.f32.mrf.mxu3  ;;  %7188 = vrot.lane.b32.xlu0 %v12420_v27, %s14184_s14  ;;  %v5450_v61 = vpop.f32.mrf.mxu2  ;;  %s14227_s14 = smov 36  }
 0x5cc   : > { %v5478_v55 = vadd.f32 %v5410_v24, %v12897_v3  ;;  %v5474_v62 = vadd.f32 %v5450_v61, %v12913_v10  ;;  %v6414_v10 = vpop.permute.xlu2 %6413 }
 0x5cd   : > { %v5424_v52 = vpop.f32.mrf.mxu0 }
 0x5ce   : > { %v12992_v36 = vadd.f32 %v5424_v52, %v12899_v54  ;;  %v5438_v26 = vpop.f32.mrf.mxu1  ;;  %v6412_v58 = vpop.permute.xlu1 %6411 }
 0x5cf   : > { %v12995_v21 = vadd.f32 %v5438_v26, %v12915_v41  ;;  %7327 = vrot.lane.b32.xlu1 %v12357_v13, %s14190_s17  ;;  %v6426_v56 = vsel %vm14194_vm2, %v6412_v58, %v6414_v10  ;;  %v6420_v20 = vpop.permute.xlu0 %6419  ;;  %vm14211_vm2 = vmmov %vm14210_vm0 }
 0x5d0   : > { %9838 = vmatmul.msk.bf16.vlgmr.msrb.gmra.mxu3 %vm361_vm1, %v10187_v0 }
 0x5d1   : > { %6352 = vmatpush.bf16.msrb.mxu3 %v6276_v48 }
 0x5d3   : > { %7329 = vrot.lane.b32.xlu2 %v12359_v12, %s14190_s17  ;;  %v5464_v3 = vpop.f32.mrf.mxu3  ;;  %7331 = vrot.lane.b32.xlu0 %v12382_v23, %s14190_s17  ;;  %v5452_v54 = vpop.f32.mrf.mxu2 }
 0x5d4   : > { %v13006_v41 = vadd.f32 %v5464_v3, %v12918_v7  ;;  %v13008_v60 = vadd.f32 %v5452_v54, %v5328_v47  ;;  %v6425_v7 = vsel %vm14192_vm14, %v6410_v25, %v6412_v58  ;;  %v10202_v3 = vld [vmem:[#allocation2 + $0x24] sm:$0xf0]  ;;  %vm14208_vm14 = vmmov %vm14201_vm8 }
 0x5d5   : > { %v5533_v9 = vpop.f32.mrf.mxu0  ;;  %v10198_v58 = vld [vmem:[#allocation2 + $0x8] sm:$0xf] }
 0x5d6   : > { %v5547_v31 = vpop.f32.mrf.mxu1  ;;  %v13011_v34 = vadd.f32 %v5533_v9, %v12921_v51 }
 0x5d7   : > { %v13013_v30 = vadd.f32 %v5547_v31, %v5470_v28  ;;  %7333 = vrot.lane.b32.xlu1 %v12384_v37, %s14190_s17  ;;  %v6418_v28 = vpop.permute.xlu2 %6417  ;;  %v6565_v44 = vpop.permute.xlu0 %6564 }
 0x5d8   : > { %9839 = vmatmul.msk.bf16.vlgmr.msra.gmra.mxu0 %vm361_vm1, %v10187_v0  ;;  %9841 = vmatmul.msk.bf16.vlgmr.msra.gmra.mxu2 %vm361_vm1, %v10187_v0 }
 0x5d9   : > { %9840 = vmatmul.msk.bf16.vlgmr.msra.gmra.mxu1 %vm361_vm1, %v10187_v0  ;;  %6366 = vmatpush.bf16.msra.mxu0 %v6277_v33 }
 0x5da   : > { %6380 = vmatpush.bf16.msra.mxu1 %v6278_v15  ;;  %6449 = vmatpush.bf16.msra.mxu2 %v6425_v7 }
 0x5db   : > { %7335 = vrot.lane.b32.xlu2 %v12399_v14, %s14190_s17  ;;  %v5466_v51 = vpop.f32.mrf.mxu3  ;;  %7337 = vrot.lane.b32.xlu0 %v12401_v18, %s14190_s17  ;;  %v5561_v53 = vpop.f32.mrf.mxu2 }
 0x5dc   : > { %v5482_v11 = vadd.f32 %v5466_v51, %v12949_v29  ;;  %v13034_v40 = vadd.f32 %v5561_v53, %v12963_v49  ;;  %v6416_v29 = vpop.permute.xlu1 %6415 }
 0x5dd   : > { %v5535_v50 = vpop.f32.mrf.mxu0  ;;  %v6427_v0 = vsel %vm14196_vm3, %v6414_v10, %v6416_v29  ;;  %v10203_v10 = vld [vmem:[#allocation2 + $0x2c] sm:$0xf0]  ;;  %vm14212_vm3 = vmmov %vm14210_vm0 }
 0x5de   : > { %v5549_v47 = vpop.f32.mrf.mxu1  ;;  %v13037_v42 = vadd.f32 %v5535_v50, %v12951_v43 }
 0x5df   : > { %v13040_v22 = vadd.f32 %v5549_v47, %v12969_v63  ;;  %7339 = vrot.lane.b32.xlu1 %v12409_v4, %s14190_s17  ;;  %v6429_v63 = vsel %vm14198_vm5, %v6418_v28, %v6420_v20  ;;  %v6424_v5 = vpop.permute.xlu2 %6423  ;;  %vm14215_vm5 = vmmov %vm14210_vm0 }
 0x5e0   : > { %9848 = vmatmul.msk.bf16.vlgmr.msra.gmra.mxu3 %vm361_vm1, %v13031_v35 }
 0x5e1   : > { %6463 = vmatpush.bf16.msra.mxu3 %v6426_v56  ;;  %v10199_v56 = vld [vmem:[#allocation2 + $0x10] sm:$0xf] }
 0x5e3   : > { %7341 = vrot.lane.b32.xlu2 %v12420_v27, %s14190_s17  ;;  %v5575_v43 = vpop.f32.mrf.mxu3  ;;  %7480 = vrot.lane.b32.xlu0 %v12357_v13, %s14195_s20  ;;  %v5563_v38 = vpop.f32.mrf.mxu2  ;;  %v6428_v13 = vsel %vm14197_vm4, %v6416_v29, %v6418_v28  ;;  %v9983_v29 = vld [vmem:[#allocation2 + $0x14] sm:$0xf]  ;;  %vm14213_vm4 = vmmov %vm14210_vm0  ;;  %s269_s17 = sand.u32 1, %s10342_s25  }
 0x5e4   : > { %v13052_v32 = vadd.f32 %v5575_v43, %v12972_v59  ;;  %v13054_v57 = vadd.f32 %v5563_v38, %v5478_v55  ;;  %v6422_v59 = vpop.permute.xlu1 %6421 }
 0x5e5   : > { %v5589_v2 = vpop.f32.mrf.mxu0  ;;  %v6431_v17 = vsel %vm14200_vm7, %v6422_v59, %v6424_v5  ;;  %v10205_v5 = vld [vmem:[#allocation2 + $0x3c] sm:$0xf0]  ;;  %vm14217_vm7 = vmmov %vm14210_vm0 }
 0x5e6   : > { %v5603_v19 = vpop.f32.mrf.mxu1  ;;  %v13057_v39 = vadd.f32 %v5589_v2, %v12975_v8  ;;  %v9993_v2 = vld [vmem:[#allocation2 + $0x40] sm:$0xf0] }
 0x5e7   : > { %v13059_v49 = vadd.f32 %v5603_v19, %v5474_v62  ;;  %7482 = vrot.lane.b32.xlu1 %v12359_v12, %s14195_s20  ;;  %v13095_v24 = vpop.permute.xlu2 %6568  ;;  %v9967_v62 = vld [vmem:[#allocation2 + $0x4] sm:$0xf]  ;;  %v9985_v19 = vld [vmem:[#allocation2 + $0x38] sm:$0xf0] }
 0x5e8   : > { %9849 = vmatmul.msk.bf16.vlgmr.msrb.gmra.mxu0 %vm361_vm1, %v13031_v35  ;;  %9851 = vmatmul.msk.bf16.vlgmr.msrb.gmra.mxu2 %vm361_vm1, %v13031_v35 }
 0x5e9   : > { %9850 = vmatmul.msk.bf16.vlgmr.msrb.gmra.mxu1 %vm361_vm1, %v13031_v35  ;;  %6477 = vmatpush.bf16.msrb.mxu0 %v6427_v0 }
 0x5ea   : > { %6491 = vmatpush.bf16.msrb.mxu1 %v6428_v13  ;;  %6505 = vmatpush.bf16.msrb.mxu2 %v6429_v63  ;;  %v10201_v63 = vld [vmem:[#allocation2 + $0x20] sm:$0xf] }
 0x5eb   : > { %7484 = vrot.lane.b32.xlu2 %v12382_v23, %s14195_s20  ;;  %v5577_v8 = vpop.f32.mrf.mxu3  ;;  %7486 = vrot.lane.b32.xlu0 %v12384_v37, %s14195_s20  ;;  %v5617_v1 = vpop.f32.mrf.mxu2  ;;  %v6430_v23 = vsel %vm14199_vm6, %v6420_v20, %v6422_v59  ;;  %vm14216_vm6 = vmmov %vm14210_vm0 }
 0x5ec   : > { %v13077_v16 = vadd.f32 %v5577_v8, %v12992_v36  ;;  %v13080_v45 = vadd.f32 %v5617_v1, %v13006_v41  ;;  %v6567_v52 = vpop.permute.xlu1 %6566  ;;  %v6563_v36 = vpop.permute.xlu0 %6562  ;;  %v13115_v41 = vor.u32 %v10202_v3, %v9967_v62 }
 0x5ed   : > { %v5591_v46 = vpop.f32.mrf.mxu0  ;;  %v6579_v31 = vsel %vm14201_vm8, %v6565_v44, %v6567_v52 }
 0x5ee   : > { %v5605_v6 = vpop.f32.mrf.mxu1  ;;  %v13083_v25 = vadd.f32 %v5591_v46, %v12995_v21  ;;  %v9991_v46 = vld [vmem:[#allocation2 + $0x1c] sm:$0xf] }
 0x5ef   : > { %v13086_v12 = vadd.f32 %v5605_v6, %v13008_v60  ;;  %7488 = vrot.lane.b32.xlu1 %v12399_v14, %s14195_s20  ;;  %v13107_v14 = vld [vmem:[%s14092_s4 + $0x50] sm:$0xff]  ;;  %v9975_v60 = vld [vmem:[#allocation2 + $0xc] sm:$0xf]  ;;  %v6573_v50 = vpop.permute.xlu2 %6572 }
 0x5f0   : > { %9852 = vmatmul.msk.bf16.vlgmr.msrb.gmra.mxu3 %vm361_vm1, %v13031_v35 }
 0x5f1   : > { %6519 = vmatpush.bf16.msrb.mxu3 %v6430_v23  ;;  %v13184_v23 = vor.u32 %v10205_v5, %v9991_v46 }
 0x5f3   : > { %7490 = vrot.lane.b32.xlu2 %v12401_v18, %s14195_s20  ;;  %v5686_v37 = vpop.f32.mrf.mxu3  ;;  %7492 = vrot.lane.b32.xlu0 %v12409_v4, %s14195_s20  ;;  %v5619_v55 = vpop.f32.mrf.mxu2  ;;  %v9969_v18 = vld [vmem:[#allocation2 + $0x28] sm:$0xf0] }
 0x5f4   : > { %v13100_v61 = vadd.f32 %v5686_v37, %v13011_v34  ;;  %v13102_v26 = vadd.f32 %v5619_v55, %v5482_v11  ;;  %v13122_v9 = vor.u32 %v10198_v58, %v9969_v18  ;;  %v6578_v34 = vsel %vm14202_vm15, %v6563_v36, %v6565_v44  ;;  %v9977_v11 = vld [vmem:[#allocation2 + $0x30] sm:$0xf0]  ;;  %v6571_v38 = vpop.permute.xlu1 %6570  ;;  %v6575_v0 = vpop.permute.xlu0 %6574  ;;  %v10200_v44 = vld [vmem:[#allocation2 + $0x18] sm:$0xf] }
 0x5f5   : > { %v5700_v21 = vpop.f32.mrf.mxu0  ;;  %v13152_v20 = vor.u32 %v10199_v56, %v9977_v11  ;;  %v6581_v6 = vsel %vm14205_vm12, %v13095_v24, %v6571_v38  ;;  %v6583_v37 = vsel %vm14207_vm9, %v6573_v50, %v6575_v0 }
 0x5f6   : > { %v5714_v48 = vpop.f32.mrf.mxu1  ;;  %v13110_v4 = vadd.f32 %v5700_v21, %v13013_v30  ;;  %v13128_v30 = vor.u32 %v10203_v10, %v9975_v60 }
 0x5f7   : > { %v13113_v54 = vadd.f32 %v5714_v48, %v13034_v40  ;;  %7673 = vrot.lane.b32.xlu1 %v13115_v41, %s14203_s23  ;;  %v10204_v40 = vld [vmem:[#allocation2 + $0x34] sm:$0xf0] }
 0x5f8   : > { %9853 = vmatmul.msk.bf16.vlgmr.msra.gmra.mxu0 %vm361_vm1, %v13031_v35  ;;  %9861 = vmatmul.msk.bf16.vlgmr.msra.gmra.mxu2 %vm361_vm1, %v13107_v14  ;;  %v13154_v43 = vor.u32 %v10204_v40, %v9983_v29 }
 0x5f9   : > { %9854 = vmatmul.msk.bf16.vlgmr.msra.gmra.mxu1 %vm361_vm1, %v13031_v35  ;;  %6533 = vmatpush.bf16.msra.mxu0 %v6431_v17  ;;  %v13221_v17 = vld [vmem:[%s14092_s4 + $0x58] sm:$0xff] }
 0x5fa   : > { %6602 = vmatpush.bf16.msra.mxu1 %v6578_v34  ;;  %6616 = vmatpush.bf16.msra.mxu2 %v6579_v31 }
 0x5fb   : > { %7675 = vrot.lane.b32.xlu2 %v13122_v9, %s14203_s23  ;;  %v5688_v33 = vpop.f32.mrf.mxu3  ;;  %7677 = vrot.lane.b32.xlu0 %v13128_v30, %s14203_s23  ;;  %v5728_v15 = vpop.f32.mrf.mxu2 }
 0x5fc   : > { %v13137_v7 = vadd.f32 %v5688_v33, %v13037_v42  ;;  %v13140_v51 = vadd.f32 %v5728_v15, %v13052_v32  ;;  %v6580_v42 = vsel %vm14204_vm11, %v6567_v52, %v13095_v24  ;;  %v6577_v55 = vpop.permute.xlu1 %6576  ;;  %v6718_v58 = vpop.permute.xlu0 %6717 }
 0x5fd   : > { %v5702_v53 = vpop.f32.mrf.mxu0  ;;  %v6584_v3 = vsel %vm14208_vm14, %v6575_v0, %v6577_v55  ;;  %vm14229_vm14 = vcmask 56320  }
 0x5fe   : > { %v5716_v35 = vpop.f32.mrf.mxu1  ;;  %v13143_v47 = vadd.f32 %v5702_v53, %v13040_v22 }
 0x5ff   : > { %v13146_v28 = vadd.f32 %v5716_v35, %v13054_v57  ;;  %7494 = vrot.lane.b32.xlu1 %v12420_v27, %s14195_s20 }
 0x600   : > { %9862 = vmatmul.msk.bf16.vlgmr.msra.gmra.mxu3 %vm361_vm1, %v13107_v14 }
 0x601   : > { %6630 = vmatpush.bf16.msra.mxu3 %v6580_v42 }
 0x603   : > { %7679 = vrot.lane.b32.xlu2 %v13152_v20, %s14203_s23  ;;  %v5742_v22 = vpop.f32.mrf.mxu3  ;;  %7681 = vrot.lane.b32.xlu0 %v13154_v43, %s14203_s23  ;;  %v5730_v32 = vpop.f32.mrf.mxu2 }
 0x604   : > { %v13163_v57 = vadd.f32 %v5742_v22, %v13057_v39  ;;  %v13166_v13 = vadd.f32 %v5730_v32, %v13077_v16  ;;  %v13174_v39 = vor.u32 %v10200_v44, %v9985_v19  ;;  %v13182_v16 = vor.u32 %v10201_v63, %v9993_v2  ;;  %v6720_v31 = vpop.permute.xlu1 %6719 }
 0x605   : > { %v5756_v27 = vpop.f32.mrf.mxu0 }
 0x606   : > { %v5770_v59 = vpop.f32.mrf.mxu1  ;;  %v13169_v8 = vadd.f32 %v5756_v27, %v13059_v49  ;;  %v6716_v49 = vpop.permute.xlu2 %6715 }
 0x607   : > { %v13172_v1 = vadd.f32 %v5770_v59, %v13080_v45  ;;  %v6582_v45 = vsel %vm14206_vm10, %v6571_v38, %v6573_v50  ;;  %7683 = vrot.lane.b32.xlu1 %v13174_v39, %s14203_s23  ;;  %v6731_v11 = vsel %vm14210_vm0, %v6716_v49, %v6718_v58  ;;  %vm14230_vm0 = vmmov %vm14229_vm14 }
 0x608   : > { %9863 = vmatmul.msk.bf16.vlgmr.msrb.gmra.mxu0 %vm361_vm1, %v13107_v14  ;;  %9865 = vmatmul.msk.bf16.vlgmr.msrb.gmra.mxu2 %vm361_vm1, %v13107_v14 }
 0x609   : > { %9864 = vmatmul.msk.bf16.vlgmr.msrb.gmra.mxu1 %vm361_vm1, %v13107_v14  ;;  %6644 = vmatpush.bf16.msrb.mxu0 %v6581_v6 }
 0x60a   : > { %6658 = vmatpush.bf16.msrb.mxu1 %v6582_v45  ;;  %6672 = vmatpush.bf16.msrb.mxu2 %v6583_v37 }
 0x60b   : > { %7685 = vrot.lane.b32.xlu2 %v13184_v23, %s14203_s23  ;;  %v5744_v24 = vpop.f32.mrf.mxu3  ;;  %7687 = vrot.lane.b32.xlu0 %v13182_v16, %s14203_s23  ;;  %v5839_v52 = vpop.f32.mrf.mxu2 }
 0x60c   : > { %v5786_v62 = vadd.f32 %v5744_v24, %v13083_v25  ;;  %v13198_v36 = vadd.f32 %v5839_v52, %v13100_v61  ;;  %v6726_v22 = vpop.permute.xlu1 %6725 }
 0x60d   : > { %v5758_v18 = vpop.f32.mrf.mxu0 }
 0x60e   : > { %v13201_v21 = vadd.f32 %v5758_v18, %v13086_v12  ;;  %v5772_v48 = vpop.f32.mrf.mxu1  ;;  %v6722_v25 = vpop.permute.xlu2 %6721 }
 0x60f   : > { %v13205_v10 = vadd.f32 %v5772_v48, %v13102_v26  ;;  %7828 = vrot.lane.b32.xlu1 %v13122_v9, %s14209_s9 }
 0x610   : > { %9866 = vmatmul.msk.bf16.vlgmr.msrb.gmra.mxu3 %vm361_vm1, %v13107_v14 }
 0x611   : > { %6686 = vmatpush.bf16.msrb.mxu3 %v6584_v3 }
 0x613   : > { %7830 = vrot.lane.b32.xlu2 %v13128_v30, %s14209_s9  ;;  %v5853_v12 = vpop.f32.mrf.mxu3  ;;  %7832 = vrot.lane.b32.xlu0 %v13152_v20, %s14209_s9  ;;  %v5841_v61 = vpop.f32.mrf.mxu2 }
 0x614   : > { %v13216_v26 = vadd.f32 %v5853_v12, %v13110_v4  ;;  %v13224_v60 = vadd.f32 %v5841_v61, %v13137_v7  ;;  %v6732_v4 = vsel %vm14211_vm2, %v6718_v58, %v6720_v31  ;;  %v6733_v7 = vsel %vm14212_vm3, %v6720_v31, %v6722_v25  ;;  %v10191_v58 = vld [vmem:[%s14092_s4 + $0x60] sm:$0xff]  ;;  %vm14231_vm2 = vmmov %vm14230_vm0 }
 0x615   : > { %v5867_v34 = vpop.f32.mrf.mxu0  ;;  %vm14232_vm3 = vmmov %vm14230_vm0 }
 0x616   : > { %v13227_v33 = vadd.f32 %v5867_v34, %v13113_v54  ;;  %v5881_v15 = vpop.f32.mrf.mxu1  ;;  %v6724_v54 = vpop.permute.xlu0 %6723 }
 0x617   : > { %v13231_v53 = vadd.f32 %v5881_v15, %v13140_v51  ;;  %7826 = vrot.lane.b32.xlu1 %v13115_v41, %s14209_s9  ;;  %v6728_v40 = vpop.permute.xlu2 %6727  ;;  %v6734_v38 = vsel %vm14213_vm4, %v6722_v25, %v6724_v54  ;;  %v6735_v27 = vsel %vm14215_vm5, %v6724_v54, %v6726_v22  ;;  %vm14233_vm4 = vmmov %vm14230_vm0 }
 0x618   : > { %9867 = vmatmul.msk.bf16.vlgmr.msra.gmra.mxu0 %vm361_vm1, %v13107_v14  ;;  %9875 = vmatmul.msk.bf16.vlgmr.msra.gmra.mxu2 %vm361_vm1, %v13221_v17  ;;  %v6736_v44 = vsel %vm14216_vm6, %v6726_v22, %v6728_v40  ;;  %vm14234_vm5 = vmmov %vm14230_vm0 }
 0x619   : > { %9874 = vmatmul.msk.bf16.vlgmr.msra.gmra.mxu1 %vm361_vm1, %v13221_v17  ;;  %6755 = vmatpush.bf16.msra.mxu0 %v6731_v11  ;;  %vm14235_vm6 = vmmov %vm14230_vm0 }
 0x61a   : > { %6769 = vmatpush.bf16.msra.mxu1 %v6732_v4  ;;  %6783 = vmatpush.bf16.msra.mxu2 %v6733_v7 }
 0x61b   : > { %7834 = vrot.lane.b32.xlu2 %v13154_v43, %s14209_s9  ;;  %v5855_v14 = vpop.f32.mrf.mxu3  ;;  %7836 = vrot.lane.b32.xlu0 %v13174_v39, %s14209_s9  ;;  %v5895_v35 = vpop.f32.mrf.mxu2 }
 0x61c   : > { %v5936_v51 = vadd.f32 %v5855_v14, %v13143_v47  ;;  %v5932_v50 = vadd.f32 %v5895_v35, %v13163_v57 }
 0x61d   : > { %v5869_v56 = vpop.f32.mrf.mxu0 }
 0x61e   : > { %v13250_v42 = vadd.f32 %v5869_v56, %v13146_v28  ;;  %v5883_v29 = vpop.f32.mrf.mxu1  ;;  %v6730_v19 = vpop.permute.xlu0 %6729 }
 0x61f   : > { %v13254_v32 = vadd.f32 %v5883_v29, %v13166_v13  ;;  %7838 = vrot.lane.b32.xlu1 %v13184_v23, %s14209_s9  ;;  %v6871_v13 = vpop.permute.xlu2 %6870 }
 0x620   : > { %9876 = vmatmul.msk.bf16.vlgmr.msra.gmra.mxu3 %vm361_vm1, %v13221_v17 }
 0x621   : > { %6797 = vmatpush.bf16.msra.mxu3 %v6734_v38 }
 0x623   : > { %7840 = vrot.lane.b32.xlu2 %v13182_v16, %s14209_s9  ;;  %v5909_v47 = vpop.f32.mrf.mxu3  ;;  %7979 = vrot.lane.b32.xlu0 %v13115_v41, %s14214_s16  ;;  %v5897_v28 = vpop.f32.mrf.mxu2  ;;  %s9125_s9 = scalar_lea.sflag [#allocation4], %s269_s17 }
 0x624   : > { %v13265_v57 = vadd.f32 %v5909_v47, %v13169_v8  ;;  %v13267_v2 = vadd.f32 %v5897_v28, %v5786_v62  ;;  %v6737_v8 = vsel %vm14217_vm7, %v6728_v40, %v6730_v19  ;;  %vm14236_vm7 = vcmask 48128  }
 0x625   : > { %v5923_v0 = vpop.f32.mrf.mxu0 }
 0x626   : > { %v13270_v63 = vadd.f32 %v5923_v0, %v13172_v1  ;;  %v5992_v5 = vpop.f32.mrf.mxu1  ;;  %v6869_v1 = vpop.permute.xlu1 %6868 }
 0x627   : > { %v13274_v59 = vadd.f32 %v5992_v5, %v13198_v36  ;;  %7981 = vrot.lane.b32.xlu1 %v13122_v9, %s14214_s16  ;;  %v6884_v62 = vsel %vm2299_vm13, %v6869_v1, %v6871_v13  ;;  %v6877_v36 = vpop.permute.xlu2 %6876  ;;  %v6873_v18 = vpop.permute.xlu0 %6872 }
 0x628   : > { %9877 = vmatmul.msk.bf16.vlgmr.msrb.gmra.mxu0 %vm361_vm1, %v13221_v17  ;;  %9879 = vmatmul.msk.bf16.vlgmr.msrb.gmra.mxu2 %vm361_vm1, %v13221_v17 }
 0x629   : > { %9878 = vmatmul.msk.bf16.vlgmr.msrb.gmra.mxu1 %vm361_vm1, %v13221_v17  ;;  %6811 = vmatpush.bf16.msrb.mxu0 %v6735_v27 }
 0x62a   : > { %6825 = vmatpush.bf16.msrb.mxu1 %v6736_v44  ;;  %6839 = vmatpush.bf16.msrb.mxu2 %v6737_v8  ;;  %v13377_v44 = vld [vmem:[%s14092_s4 + $0x68] sm:$0xff] }
 0x62b   : > { %7983 = vrot.lane.b32.xlu2 %v13128_v30, %s14214_s16  ;;  %v5911_v46 = vpop.f32.mrf.mxu3  ;;  %7985 = vrot.lane.b32.xlu0 %v13152_v20, %s14214_s16  ;;  %v6006_v49 = vpop.f32.mrf.mxu2 }
 0x62c   : > { %v5940_v6 = vadd.f32 %v5911_v46, %v13201_v21  ;;  %v13292_v45 = vadd.f32 %v6006_v49, %v13216_v26 }
 0x62d   : > { %v5925_v37 = vpop.f32.mrf.mxu0 }
 0x62e   : > { %v13295_v24 = vadd.f32 %v5925_v37, %v13205_v10  ;;  %v5994_v55 = vpop.f32.mrf.mxu1  ;;  %v6875_v48 = vpop.permute.xlu1 %6874 }
 0x62f   : > { %v13299_v52 = vadd.f32 %v5994_v55, %v13224_v60  ;;  %7987 = vrot.lane.b32.xlu1 %v13154_v43, %s14214_s16  ;;  %v6886_v31 = vsel %vm2299_vm13, %v6873_v18, %v6875_v48  ;;  %v6887_v34 = vsel %vm2299_vm13, %v6875_v48, %v6877_v36  ;;  %v6879_v11 = vpop.permute.xlu0 %6878 }
 0x630   : > { %9880 = vmatmul.msk.bf16.vlgmr.msrb.gmra.mxu3 %vm361_vm1, %v13221_v17  ;;  %v6885_v17 = vsel %vm2299_vm13, %v6871_v13, %v6873_v18  ;;  %v6888_v40 = vsel %vm2299_vm13, %v6877_v36, %v6879_v11 }
 0x631   : > { %6908 = vmatpush.bf16.msrb.mxu3 %v6884_v62 }
 0x633   : > { %7989 = vrot.lane.b32.xlu2 %v13174_v39, %s14214_s16  ;;  %v6020_v21 = vpop.f32.mrf.mxu3  ;;  %7991 = vrot.lane.b32.xlu0 %v13184_v23, %s14214_s16  ;;  %v6008_v3 = vpop.f32.mrf.mxu2 }
 0x634   : > { %v13310_v10 = vadd.f32 %v6020_v21, %v13227_v33  ;;  %v13315_v25 = vadd.f32 %v6008_v3, %v5936_v51  ;;  %v7022_v33 = vpop.permute.xlu2 %7021 }
 0x635   : > { %v6034_v12 = vpop.f32.mrf.mxu0 }
 0x636   : > { %v13318_v61 = vadd.f32 %v6034_v12, %v13231_v53  ;;  %v6048_v26 = vpop.f32.mrf.mxu1  ;;  %v6881_v14 = vpop.permute.xlu1 %6880 }
 0x637   : > { %v13321_v60 = vadd.f32 %v6048_v26, %v5932_v50  ;;  %7993 = vrot.lane.b32.xlu1 %v13182_v16, %s14214_s16 }
 0x638   : > { %9887 = vmatmul.msk.bf16.vlgmr.msra.gmra.mxu0 %vm361_vm1, %v10191_v58  ;;  %9889 = vmatmul.msk.bf16.vlgmr.msra.gmra.mxu2 %vm361_vm1, %v10191_v58 }
 0x639   : > { %9888 = vmatmul.msk.bf16.vlgmr.msra.gmra.mxu1 %vm361_vm1, %v10191_v58  ;;  %6922 = vmatpush.bf16.msra.mxu0 %v6885_v17 }
 0x63a   : > { %6936 = vmatpush.bf16.msra.mxu1 %v6886_v31  ;;  %6950 = vmatpush.bf16.msra.mxu2 %v6887_v34 }
 0x63b   : > { %8132 = vrot.lane.b32.xlu2 %v13115_v41, %s14218_s18  ;;  %v6022_v15 = vpop.f32.mrf.mxu3  ;;  %8134 = vrot.lane.b32.xlu0 %v13122_v9, %s14218_s18  ;;  %v6062_v4 = vpop.f32.mrf.mxu2 }
 0x63c   : > { %v6090_v53 = vadd.f32 %v6022_v15, %v13250_v42  ;;  %v6086_v7 = vadd.f32 %v6062_v4, %v13265_v57  ;;  %v6883_v38 = vpop.permute.xlu2 %6882 }
 0x63d   : > { %v6036_v54 = vpop.f32.mrf.mxu0  ;;  %v6890_v13 = vsel %vm2299_vm13, %v6881_v14, %v6883_v38 }
 0x63e   : > { %v13337_v51 = vadd.f32 %v6036_v54, %v13254_v32  ;;  %v6050_v35 = vpop.f32.mrf.mxu1  ;;  %v7024_v32 = vpop.permute.xlu0 %7023 }
 0x63f   : > { %v13341_v50 = vadd.f32 %v6050_v35, %v13267_v2  ;;  %8136 = vrot.lane.b32.xlu1 %v13128_v30, %s14218_s18  ;;  %v6889_v2 = vsel %vm2299_vm13, %v6879_v11, %v6881_v14  ;;  %v7026_v19 = vpop.permute.xlu1 %7025  ;;  %vm14221_vm13 = vcmask 64512  }
 0x640   : > { %9890 = vmatmul.msk.bf16.vlgmr.msra.gmra.mxu3 %vm361_vm1, %v10191_v58  ;;  %vm14222_vm8 = vmmov %vm14221_vm13 }
 0x641   : > { %6964 = vmatpush.bf16.msra.mxu3 %v6888_v40  ;;  %vm14223_vm15 = vmmov %vm14222_vm8 }
 0x642   : > { %vm14224_vm11 = vmmov %vm14222_vm8 }
 0x643   : > { %8138 = vrot.lane.b32.xlu2 %v13152_v20, %s14218_s18  ;;  %v6076_v56 = vpop.f32.mrf.mxu3  ;;  %8140 = vrot.lane.b32.xlu0 %v13154_v43, %s14218_s18  ;;  %v6064_v42 = vpop.f32.mrf.mxu2  ;;  %vm14225_vm12 = vmmov %vm14222_vm8 }
 0x644   : > { %v13351_v29 = vadd.f32 %v6076_v56, %v13270_v63  ;;  %v13353_v22 = vadd.f32 %v6064_v42, %v5940_v6  ;;  %v7037_v63 = vsel %vm361_vm1, %v7022_v33, %v7024_v32  ;;  %v7032_v49 = vpop.permute.xlu2 %7031  ;;  %v13445_v56 = vld [vmem:[%s14092_s4 + $0x70] sm:$0xff]  ;;  %vm14226_vm10 = vmmov %vm14222_vm8 }
 0x645   : > { %v6145_v47 = vpop.f32.mrf.mxu0  ;;  %vm14228_vm9 = vmmov %vm14222_vm8 }
 0x646   : > { %v13356_v28 = vadd.f32 %v6145_v47, %v13274_v59  ;;  %v6159_v57 = vpop.f32.mrf.mxu1 }
 0x647   : > { %v13360_v0 = vadd.f32 %v6159_v57, %v13292_v45  ;;  %8142 = vrot.lane.b32.xlu1 %v13174_v39, %s14218_s18  ;;  %v7038_v45 = vsel %vm361_vm1, %v7024_v32, %v7026_v19  ;;  %v7030_v55 = vpop.permute.xlu1 %7029 }
 0x648   : > { %9891 = vmatmul.msk.bf16.vlgmr.msrb.gmra.mxu0 %vm361_vm1, %v10191_v58  ;;  %9893 = vmatmul.msk.bf16.vlgmr.msrb.gmra.mxu2 %vm361_vm1, %v10191_v58  ;;  %v7041_v12 = vsel %vm361_vm1, %v7030_v55, %v7032_v49 }
 0x649   : > { %9892 = vmatmul.msk.bf16.vlgmr.msrb.gmra.mxu1 %vm361_vm1, %v10191_v58  ;;  %6978 = vmatpush.bf16.msrb.mxu0 %v6889_v2 }
 0x64a   : > { %6992 = vmatpush.bf16.msrb.mxu1 %v6890_v13  ;;  %7061 = vmatpush.bf16.msrb.mxu2 %v7037_v63 }
 0x64b   : > { %8144 = vrot.lane.b32.xlu2 %v13184_v23, %s14218_s18  ;;  %v6078_v5 = vpop.f32.mrf.mxu3  ;;  %8285 = vrot.lane.b32.xlu0 %v13115_v41, %s14219_s19  ;;  %v6173_v59 = vpop.f32.mrf.mxu2 }
 0x64c   : > { %v6094_v27 = vadd.f32 %v6078_v5, %v13295_v24  ;;  %v13380_v8 = vadd.f32 %v6173_v59, %v13310_v10  ;;  %v7028_v24 = vpop.permute.xlu0 %7027 }
 0x64d   : > { %v6147_v1 = vpop.f32.mrf.mxu0  ;;  %v7039_v10 = vsel %vm361_vm1, %v7026_v19, %v7028_v24 }
 0x64e   : > { %v13383_v46 = vadd.f32 %v6147_v1, %v13299_v52  ;;  %v6161_v6 = vpop.f32.mrf.mxu1 }
 0x64f   : > { %v13387_v37 = vadd.f32 %v6161_v6, %v13315_v25  ;;  %8287 = vrot.lane.b32.xlu1 %v13122_v9, %s14219_s19  ;;  %v7040_v25 = vsel %vm361_vm1, %v7028_v24, %v7030_v55 }
 0x650   : > { %9900 = vmatmul.msk.bf16.vlgmr.msrb.gmra.mxu3 %vm361_vm1, %v13377_v44 }
 0x651   : > { %7075 = vmatpush.bf16.msrb.mxu3 %v7038_v45 }
 0x653   : > { %8289 = vrot.lane.b32.xlu2 %v13128_v30, %s14219_s19  ;;  %v6187_v62 = vpop.f32.mrf.mxu3  ;;  %8146 = vrot.lane.b32.xlu0 %v13182_v16, %s14218_s18  ;;  %v6175_v52 = vpop.f32.mrf.mxu2  ;;  %s10214_s18 = smul.u32 112, %s269_s17 }
 0x654   : > { %v6237_v36 = vadd.f32 %v6187_v62, %v13318_v61  ;;  %v13398_v18 = vadd.f32 %v6175_v52, %v6090_v53  ;;  %v7177_v61 = vpop.permute.xlu2 %7176  ;;  %v7034_v26 = vpop.permute.xlu0 %7033 }
 0x655   : > { %v6201_v21 = vpop.f32.mrf.mxu0  ;;  %v7042_v4 = vsel %vm361_vm1, %v7032_v49, %v7034_v26 }
 0x656   : > { %v13401_v48 = vadd.f32 %v6201_v21, %v13321_v60  ;;  %v6215_v3 = vpop.f32.mrf.mxu1  ;;  %v7036_v60 = vpop.permute.xlu1 %7035 }
 0x657   : > { %v13404_v58 = vadd.f32 %v6215_v3, %v6086_v7  ;;  %8291 = vrot.lane.b32.xlu1 %v13152_v20, %s14219_s19  ;;  %v7043_v32 = vsel %vm361_vm1, %v7034_v26, %v7036_v60 }
 0x658   : > { %9901 = vmatmul.msk.bf16.vlgmr.msra.gmra.mxu0 %vm361_vm1, %v13377_v44  ;;  %9903 = vmatmul.msk.bf16.vlgmr.msra.gmra.mxu2 %vm361_vm1, %v13377_v44 }
 0x659   : > { %9902 = vmatmul.msk.bf16.vlgmr.msra.gmra.mxu1 %vm361_vm1, %v13377_v44  ;;  %7089 = vmatpush.bf16.msra.mxu0 %v7039_v10 }
 0x65a   : > { %7103 = vmatpush.bf16.msra.mxu1 %v7040_v25  ;;  %7117 = vmatpush.bf16.msra.mxu2 %v7041_v12 }
 0x65b   : > { %8293 = vrot.lane.b32.xlu2 %v13154_v43, %s14219_s19  ;;  %v6189_v17 = vpop.f32.mrf.mxu3  ;;  %8295 = vrot.lane.b32.xlu0 %v13174_v39, %s14219_s19  ;;  %v6229_v34 = vpop.f32.mrf.mxu2 }
 0x65c   : > { %v6244_v31 = vadd.f32 %v6189_v17, %v13337_v51  ;;  %v6240_v33 = vadd.f32 %v6229_v34, %v13351_v29  ;;  %v7175_v35 = vpop.permute.xlu2 %7174  ;;  %v7179_v40 = vpop.permute.xlu0 %7178 }
 0x65d   : > { %v6203_v15 = vpop.f32.mrf.mxu0  ;;  %v7191_v57 = vsel %vm14222_vm8, %v7177_v61, %v7179_v40  ;;  %vm14238_vm8 = vmmov %vm14236_vm7 }
 0x65e   : > { %v13423_v11 = vadd.f32 %v6203_v15, %v13341_v50  ;;  %v6217_v53 = vpop.f32.mrf.mxu1  ;;  %v7181_v42 = vpop.permute.xlu1 %7180 }
 0x65f   : > { %v13427_v7 = vadd.f32 %v6217_v53, %v13353_v22  ;;  %8297 = vrot.lane.b32.xlu1 %v13184_v23, %s14219_s19  ;;  %v7192_v59 = vsel %vm14223_vm15, %v7179_v40, %v7181_v42  ;;  %vm14239_vm15 = vmmov %vm14236_vm7 }
 0x660   : > { %9904 = vmatmul.msk.bf16.vlgmr.msra.gmra.mxu3 %vm361_vm1, %v13377_v44 }
 0x661   : > { %7131 = vmatpush.bf16.msra.mxu3 %v7042_v4  ;;  %v13534_v4 = vld [vmem:[%s14092_s4 + $0x78] sm:$0xff] }
 0x663   : > { %8299 = vrot.lane.b32.xlu2 %v13182_v16, %s14219_s19  ;;  %v6298_v14 = vpop.f32.mrf.mxu3  ;;  %8440 = vrot.lane.b32.xlu0 %v13122_v9, %s14220_s22  ;;  %v6231_v54 = vpop.f32.mrf.mxu2  ;;  %s10216_s19 = smul.u32 112, %s10442_s28 }
 0x664   : > { %v13438_v51 = vadd.f32 %v6298_v14, %v13356_v28  ;;  %v13440_v50 = vadd.f32 %v6231_v54, %v6094_v27  ;;  %v7190_v28 = vsel %vm14221_vm13, %v7175_v35, %v7177_v61  ;;  %v7183_v1 = vpop.permute.xlu0 %7182  ;;  %v7187_v62 = vpop.permute.xlu2 %7186  ;;  %vm14237_vm13 = vmmov %vm14236_vm7 }
 0x665   : > { %v6312_v29 = vpop.f32.mrf.mxu0  ;;  %v7193_v52 = vsel %vm14224_vm11, %v7181_v42, %v7183_v1  ;;  %vm14240_vm11 = vmmov %vm14236_vm7  ;;  %s9136_s21 = scalar_lea.hbm %s14095_s7, %s10216_s19 }
 0x666   : > { %v13448_v38 = vadd.f32 %v6312_v29, %v13360_v0  ;;  %v6326_v22 = vpop.f32.mrf.mxu1 }
 0x667   : > { %v13452_v47 = vadd.f32 %v6326_v22, %v13380_v8  ;;  %8442 = vrot.lane.b32.xlu1 %v13128_v30, %s14220_s22 }
 0x668   : > { %9905 = vmatmul.msk.bf16.vlgmr.msrb.gmra.mxu0 %vm361_vm1, %v13377_v44  ;;  %9913 = vmatmul.msk.bf16.vlgmr.msrb.gmra.mxu2 %vm361_vm1, %v13445_v56 }
 0x669   : > { %9906 = vmatmul.msk.bf16.vlgmr.msrb.gmra.mxu1 %vm361_vm1, %v13377_v44  ;;  %7145 = vmatpush.bf16.msrb.mxu0 %v7043_v32  ;;  %v7185_v44 = vpop.permute.xlu1 %7184 }
 0x66a   : > { %7214 = vmatpush.bf16.msrb.mxu1 %v7190_v28  ;;  %7228 = vmatpush.bf16.msrb.mxu2 %v7191_v57  ;;  %v7195_v21 = vsel %vm14226_vm10, %v7185_v44, %v7187_v62  ;;  %vm14242_vm10 = vcmask 457728  }
 0x66b   : > { %8444 = vrot.lane.b32.xlu2 %v13152_v20, %s14220_s22  ;;  %v6300_v2 = vpop.f32.mrf.mxu3  ;;  %8438 = vrot.lane.b32.xlu0 %v13115_v41, %s14220_s22  ;;  %v6340_v0 = vpop.f32.mrf.mxu2 }
 0x66c   : > { %v6394_v19 = vadd.f32 %v6300_v2, %v13383_v46  ;;  %v13469_v13 = vadd.f32 %v6340_v0, %v6237_v36  ;;  %v7189_v3 = vpop.permute.xlu0 %7188  ;;  %v7330_v34 = vpop.permute.xlu2 %7329 }
 0x66d   : > { %v6314_v63 = vpop.f32.mrf.mxu0  ;;  %v7196_v60 = vsel %vm14228_vm9, %v7187_v62, %v7189_v3  ;;  %vm14243_vm9 = vmmov %vm14236_vm7 }
 0x66e   : > { %v13472_v5 = vadd.f32 %v6314_v63, %v13387_v37  ;;  %v6328_v27 = vpop.f32.mrf.mxu1 }
 0x66f   : > { %v13476_v8 = vadd.f32 %v6328_v27, %v13398_v18  ;;  %8446 = vrot.lane.b32.xlu1 %v13154_v43, %s14220_s22  ;;  %v7194_v18 = vsel %vm14225_vm12, %v7183_v1, %v7185_v44  ;;  %vm14241_vm12 = vmmov %vm14236_vm7 }
 0x670   : > { %9914 = vmatmul.msk.bf16.vlgmr.msrb.gmra.mxu3 %vm361_vm1, %v13445_v56 }
 0x671   : > { %7242 = vmatpush.bf16.msrb.mxu3 %v7192_v59 }
 0x673   : > { %8448 = vrot.lane.b32.xlu2 %v13174_v39, %s14220_s22  ;;  %v6354_v46 = vpop.f32.mrf.mxu3  ;;  %8450 = vrot.lane.b32.xlu0 %v13184_v23, %s14220_s22  ;;  %v6342_v6 = vpop.f32.mrf.mxu2 }
 0x674   : > { %v13487_v49 = vadd.f32 %v6354_v46, %v13401_v48  ;;  %v13489_v45 = vadd.f32 %v6342_v6, %v6244_v31  ;;  %v7328_v48 = vpop.permute.xlu1 %7327  ;;  %v7336_v32 = vpop.permute.xlu2 %7335 }
 0x675   : > { %v6368_v37 = vpop.f32.mrf.mxu0  ;;  %v7343_v40 = vsel %vm14229_vm14, %v7328_v48, %v7330_v34  ;;  %vm14244_vm14 = vmmov %vm14242_vm10 }
 0x676   : > { %v13492_v24 = vadd.f32 %v6368_v37, %v13404_v58  ;;  %v6382_v55 = vpop.f32.mrf.mxu1 }
 0x677   : > { %v13495_v36 = vadd.f32 %v6382_v55, %v6240_v33  ;;  %8452 = vrot.lane.b32.xlu1 %v13182_v16, %s14220_s22  ;;  %s9139_s22 = sshll.u32 %s9136_s21, 4  ;;  %s9140_s22 = int_to_ptr.hbm [resolvable:$true] %s9139_s22 }
 0x678   : > { %9915 = vmatmul.msk.bf16.vlgmr.msra.gmra.mxu0 %vm361_vm1, %v13445_v56  ;;  %9917 = vmatmul.msk.bf16.vlgmr.msra.gmra.mxu2 %vm361_vm1, %v13445_v56  ;;  %s10302_s15 = sshra.s32 %s9140_s22, 4  ;;  %s10303_s15 = int_to_ptr.hbm [resolvable:$true] %s10302_s15 }
 0x679   : > { %9916 = vmatmul.msk.bf16.vlgmr.msra.gmra.mxu1 %vm361_vm1, %v13445_v56  ;;  %7256 = vmatpush.bf16.msra.mxu0 %v7193_v52  ;;  %p10309_p0 = scmp.lt.s32.totalorder %s10303_s15, %s14095_s7 }
 0x67a   : > { %7270 = vmatpush.bf16.msra.mxu1 %v7194_v18  ;;  %7284 = vmatpush.bf16.msra.mxu2 %v7195_v21 }
 0x67b   : > { %8591 = vrot.lane.b32.xlu2 %v13115_v41, %s14227_s14  ;;  %v6356_v10 = vpop.f32.mrf.mxu3  ;;  %8593 = vrot.lane.b32.xlu0 %v13122_v9, %s14227_s14  ;;  %v6451_v25 = vpop.f32.mrf.mxu2 }
 0x67c   : > { %v6398_v58 = vadd.f32 %v6356_v10, %v13423_v11  ;;  %v6540_v12 = vadd.f32 %v6451_v25, %v13438_v51  ;;  %v7334_v15 = vpop.permute.xlu1 %7333  ;;  %v7342_v6 = vpop.permute.xlu2 %7341 }
 0x67d   : > { %v6370_v61 = vpop.f32.mrf.mxu0 }
 0x67e   : > { %v13514_v26 = vadd.f32 %v6370_v61, %v13427_v7  ;;  %v6384_v17 = vpop.f32.mrf.mxu1  ;;  %v7332_v7 = vpop.permute.xlu0 %7331 }
 0x67f   : > { %v13518_v31 = vadd.f32 %v6384_v17, %v13440_v50  ;;  %8595 = vrot.lane.b32.xlu1 %v13128_v30, %s14227_s14  ;;  %v7344_v42 = vsel %vm14230_vm0, %v7330_v34, %v7332_v7  ;;  %v7345_v29 = vsel %vm14231_vm2, %v7332_v7, %v7334_v15  ;;  %v10195_v34 = vld [vmem:[%s14092_s4 + $0x80] sm:$0xff]  ;;  %vm14245_vm0 = vmmov %vm14242_vm10 }
 0x680   : > { %9918 = vmatmul.msk.bf16.vlgmr.msra.gmra.mxu3 %vm361_vm1, %v13445_v56  ;;  %vm14246_vm2 = vmmov %vm14245_vm0 }
 0x681   : > { %7298 = vmatpush.bf16.msra.mxu3 %v7196_v60 }
 0x683   : > { %8597 = vrot.lane.b32.xlu2 %v13152_v20, %s14227_s14  ;;  %v6465_v33 = vpop.f32.mrf.mxu3  ;;  %8599 = vrot.lane.b32.xlu0 %v13154_v43, %s14227_s14  ;;  %v6453_v11 = vpop.f32.mrf.mxu2 }
 0x684   : > { %v13529_v53 = vadd.f32 %v6465_v33, %v13448_v38  ;;  %v13536_v14 = vadd.f32 %v6453_v11, %v6394_v19  ;;  %v7340_v28 = vpop.permute.xlu1 %7339  ;;  %v7485_v17 = vpop.permute.xlu2 %7484 }
 0x685   : > { %v6479_v54 = vpop.f32.mrf.mxu0  ;;  %v7349_v55 = vsel %vm14235_vm6, %v7340_v28, %v7342_v6  ;;  %vm14250_vm6 = vcmask 449536  }
 0x686   : > { %v13539_v51 = vadd.f32 %v6479_v54, %v13452_v47  ;;  %v6493_v35 = vpop.f32.mrf.mxu1  ;;  %v7338_v2 = vpop.permute.xlu0 %7337 }
 0x687   : > { %v13543_v50 = vadd.f32 %v6493_v35, %v13469_v13  ;;  %8601 = vrot.lane.b32.xlu1 %v13174_v39, %s14227_s14  ;;  %v7346_v13 = vsel %vm14232_vm3, %v7334_v15, %v7336_v32  ;;  %vm14247_vm3 = vmmov %vm14245_vm0 }
 0x688   : > { %9919 = vmatmul.msk.bf16.vlgmr.msrb.gmra.mxu0 %vm361_vm1, %v13445_v56  ;;  %9927 = vmatmul.msk.bf16.vlgmr.msrb.gmra.mxu2 %vm361_vm1, %v13534_v4 }
 0x689   : > { %9926 = vmatmul.msk.bf16.vlgmr.msrb.gmra.mxu1 %vm361_vm1, %v13534_v4  ;;  %7367 = vmatpush.bf16.msrb.mxu0 %v7343_v40 }
 0x68a   : > { %7381 = vmatpush.bf16.msrb.mxu1 %v7344_v42  ;;  %7395 = vmatpush.bf16.msrb.mxu2 %v7345_v29 }
 0x68b   : > { %8603 = vrot.lane.b32.xlu2 %v13184_v23, %s14227_s14  ;;  %v6467_v56 = vpop.f32.mrf.mxu3  ;;  %8605 = vrot.lane.b32.xlu0 %v13182_v16, %s14227_s14  ;;  %v6507_v22 = vpop.f32.mrf.mxu2  ;;  %s10304_s14 = scalar_lea.hbm %s10303_s15, 112 }
 0x68c   : > { %v6548_v38 = vadd.f32 %v6467_v56, %v13472_v5  ;;  %v13561_v47 = vadd.f32 %v6507_v22, %v13487_v49  ;;  %v7347_v49 = vsel %vm14233_vm4, %v7336_v32, %v7338_v2  ;;  %v7491_v42 = vpop.permute.xlu2 %7490  ;;  %vm14248_vm4 = vmmov %vm14245_vm0  ;;  %p10305_p11 = scmp.ne.s32.totalorder %s10303_s15, %s10304_s14 }
 0x68d   : > { %v6481_v57 = vpop.f32.mrf.mxu0 }
 0x68e   : > { %v13564_v19 = vadd.f32 %v6481_v57, %v13476_v8  ;;  %v6495_v0 = vpop.f32.mrf.mxu1  ;;  %v7481_v62 = vpop.permute.xlu0 %7480  ;;  %p10306_p12 = pnand %p10305_p11, %p10459_p5 }
 0x68f   : > { %v13568_v63 = vadd.f32 %v6495_v0, %v13489_v45  ;;  %8744 = vrot.lane.b32.xlu1 %v13115_v41, %s10376_s13  ;;  %v7483_v45 = vpop.permute.xlu1 %7482 }
 0x690   : > { %9928 = vmatmul.msk.bf16.vlgmr.msrb.gmra.mxu3 %vm361_vm1, %v13534_v4  ;;  %p10307_p13 = pneg %p10306_p12 }
 0x691   : > { %7409 = vmatpush.bf16.msrb.mxu3 %v7346_v13 }
 0x693   : > { %8746 = vrot.lane.b32.xlu2 %v13122_v9, %s10376_s13  ;;  %v6521_v5 = vpop.f32.mrf.mxu3  ;;  %8748 = vrot.lane.b32.xlu0 %v13128_v30, %s10376_s13  ;;  %v6509_v27 = vpop.f32.mrf.mxu2 }
 0x694   : > { %v13579_v59 = vadd.f32 %v6521_v5, %v13492_v24  ;;  %v13581_v44 = vadd.f32 %v6509_v27, %v6398_v58  ;;  %v7348_v24 = vsel %vm14234_vm5, %v7338_v2, %v7340_v28  ;;  %v7496_v58 = vsel %vm14236_vm7, %v7481_v62, %v7483_v45  ;;  %vm14249_vm5 = vmmov %vm14245_vm0 }
 0x695   : > { %v6535_v8 = vpop.f32.mrf.mxu0  ;;  %vm14251_vm7 = vmmov %vm14250_vm6 }
 0x696   : > { %v13584_v1 = vadd.f32 %v6535_v8, %v13495_v36  ;;  %v6604_v46 = vpop.f32.mrf.mxu1  ;;  %v7487_v61 = vpop.permute.xlu0 %7486 }
 0x697   : > { %v13587_v37 = vadd.f32 %v6604_v46, %v6540_v12  ;;  %8750 = vrot.lane.b32.xlu1 %v13152_v20, %s10376_s13  ;;  %v7489_v12 = vpop.permute.xlu1 %7488 }
 0x698   : > { %9929 = vmatmul.msk.bf16.vlgmr.msra.gmra.mxu0 %vm361_vm1, %v13534_v4  ;;  %9931 = vmatmul.msk.bf16.vlgmr.msra.gmra.mxu2 %vm361_vm1, %v13534_v4  ;;  %v7499_v7 = vsel %vm14239_vm15, %v7487_v61, %v7489_v12  ;;  %vm14254_vm15 = vmmov %vm14250_vm6 }
 0x699   : > { %9930 = vmatmul.msk.bf16.vlgmr.msra.gmra.mxu1 %vm361_vm1, %v13534_v4  ;;  %7423 = vmatpush.bf16.msra.mxu0 %v7347_v49 }
 0x69a   : > { %7437 = vmatpush.bf16.msra.mxu1 %v7348_v24  ;;  %7451 = vmatpush.bf16.msra.mxu2 %v7349_v55 }
 0x69b   : > { %8752 = vrot.lane.b32.xlu2 %v13154_v43, %s10376_s13  ;;  %v6523_v52 = vpop.f32.mrf.mxu3  ;;  %8754 = vrot.lane.b32.xlu0 %v13174_v39, %s10376_s13  ;;  %v6618_v18 = vpop.f32.mrf.mxu2 }
 0x69c   : > { %v6552_v36 = vadd.f32 %v6523_v52, %v13514_v26  ;;  %v13605_v21 = vadd.f32 %v6618_v18, %v13529_v53  ;;  %v7497_v53 = vsel %vm14237_vm13, %v7483_v45, %v7485_v17  ;;  %vm14252_vm13 = vmmov %vm14250_vm6 }
 0x69d   : > { %v6537_v48 = vpop.f32.mrf.mxu0 }
 0x69e   : > { %v13608_v3 = vadd.f32 %v6537_v48, %v13518_v31  ;;  %v6606_v10 = vpop.f32.mrf.mxu1  ;;  %v7493_v40 = vpop.permute.xlu0 %7492 }
 0x69f   : > { %v13612_v25 = vadd.f32 %v6606_v10, %v13536_v14  ;;  %8756 = vrot.lane.b32.xlu1 %v13184_v23, %s10376_s13  ;;  %v7674_v54 = vpop.permute.xlu1 %7673 }
 0x6a0   : > { %9932 = vmatmul.msk.bf16.vlgmr.msra.gmra.mxu3 %vm361_vm1, %v13534_v4 }
 0x6a1   : > { %7520 = vmatpush.bf16.msra.mxu3 %v7496_v58 }
 0x6a3   : > { %8897 = vrot.lane.b32.xlu2 %v13115_v41, %s10377_s8  ;;  %v6632_v26 = vpop.f32.mrf.mxu3  ;;  %8899 = vrot.lane.b32.xlu0 %v13122_v9, %s10377_s8  ;;  %v6620_v60 = vpop.f32.mrf.mxu2  ;;  %v7498_v9 = vsel %vm14238_vm8, %v7485_v17, %v7487_v61  ;;  %vm14253_vm8 = vmmov %vm14250_vm6 }
 0x6a4   : > { %v13623_v31 = vadd.f32 %v6632_v26, %v13539_v51  ;;  %v13628_v33 = vadd.f32 %v6620_v60, %v6548_v38  ;;  %v7500_v38 = vsel %vm14240_vm11, %v7489_v12, %v7491_v42  ;;  %vm14255_vm11 = vmmov %vm14250_vm6 }
 0x6a5   : > { %v6646_v15 = vpop.f32.mrf.mxu0 }
 0x6a6   : > { %v13631_v11 = vadd.f32 %v6646_v15, %v13543_v50  ;;  %v6660_v41 = vpop.f32.mrf.mxu1 }
 0x6a7   : > { %v13635_v4 = vadd.f32 %v6660_v41, %v13561_v47  ;;  %8901 = vrot.lane.b32.xlu1 %v13128_v30, %s10377_s8  ;;  %v7495_v57 = vpop.permute.xlu1 %7494 }
 0x6a8   : > { %9939 = vmatmul.msk.bf16.vlgmr.msrb.gmra.mxu0 %vm361_vm1, %v10195_v34  ;;  %9941 = vmatmul.msk.bf16.vlgmr.msrb.gmra.mxu2 %vm361_vm1, %v10195_v34  ;;  %v7502_v27 = vsel %vm14243_vm9, %v7493_v40, %v7495_v57 }
 0x6a9   : > { %9940 = vmatmul.msk.bf16.vlgmr.msrb.gmra.mxu1 %vm361_vm1, %v10195_v34  ;;  %7534 = vmatpush.bf16.msrb.mxu0 %v7497_v53 }
 0x6aa   : > { %7548 = vmatpush.bf16.msrb.mxu1 %v7498_v9  ;;  %7562 = vmatpush.bf16.msrb.mxu2 %v7499_v7 }
 0x6ab   : > { %8758 = vrot.lane.b32.xlu2 %v13182_v16, %s10376_s13  ;;  %v6634_v14 = vpop.f32.mrf.mxu3  ;;  %8903 = vrot.lane.b32.xlu0 %v13152_v20, %s10377_s8  ;;  %v6674_v35 = vpop.f32.mrf.mxu2  ;;  %s14000_s13 = scalar_lea.vmem [#allocation3], %s10214_s18  ;;  %s10308_s18 = scalar_lea.hbm %s14095_s7, 224 }
 0x6ac   : > { %v6702_v51 = vadd.f32 %v6634_v14, %v13564_v19  ;;  %v6698_v50 = vadd.f32 %v6674_v35, %v13579_v59  ;;  %v7678_v19 = vpop.permute.xlu0 %7677  ;;  %p10310_p1 = scmp.lt.s32.totalorder %s10308_s18, %s10304_s14 }
 0x6ad   : > { %v6648_v29 = vpop.f32.mrf.mxu0 }
 0x6ae   : > { %v13651_v56 = vadd.f32 %v6648_v29, %v13568_v63  ;;  %v6662_v30 = vpop.f32.mrf.mxu1  ;;  %v7501_v63 = vsel %vm14241_vm12, %v7491_v42, %v7493_v40  ;;  %v13714_v40 = vld [vmem:[%s14092_s4 + $0x90] sm:$0xff]  ;;  %vm14256_vm12 = vmmov %vm14250_vm6  ;;  %p10311_p2 = por %p10310_p1, %p10309_p0 }
 0x6af   : > { %v13655_v22 = vadd.f32 %v6662_v30, %v13581_v44  ;;  %8905 = vrot.lane.b32.xlu1 %v13154_v43, %s10377_s8  ;;  %v7676_v43 = vpop.permute.xlu2 %7675  ;;  %v7684_v55 = vpop.permute.xlu1 %7683 }
 0x6b0   : > { %9942 = vmatmul.msk.bf16.vlgmr.msrb.gmra.mxu3 %vm361_vm1, %v10195_v34  ;;  %v7689_v5 = vsel %vm14242_vm10, %v7674_v54, %v7676_v43  ;;  %vm14257_vm10 = vcmask 441344   ;;  %p10312_p3 = pnand %p10311_p2, %p10307_p13 }
 0x6b1   : > { %7576 = vmatpush.bf16.msrb.mxu3 %v7500_v38  ;;  %vm14258_vm9 = vmmov %vm14257_vm10 }
 0x6b3   : > { %8907 = vrot.lane.b32.xlu2 %v13174_v39, %s10377_s8  ;;  %v6688_v20 = vpop.f32.mrf.mxu3  ;;  %8909 = vrot.lane.b32.xlu0 %v13184_v23, %s10377_s8  ;;  %v6676_v32 = vpop.f32.mrf.mxu2  ;;  %v9042_v23 = vld [vmem:[%s14094_s6] sm:$0xff] }
 0x6b4   : > { %v6699_v47 = vadd.f32 %v6688_v20, %v13584_v1  ;;  %v13665_v28 = vadd.f32 %v6676_v32, %v6552_v36  ;;  %v10196_v1 = vld [vmem:[%s14092_s4 + $0x88] sm:$0xff] }
 0x6b5   : > { %v6757_v2 = vpop.f32.mrf.mxu0 }
 0x6b6   : > { %v13668_v0 = vadd.f32 %v6757_v2, %v13587_v37  ;;  %v6771_v13 = vpop.f32.mrf.mxu1  ;;  %v7690_v37 = vsel %vm14244_vm14, %v7676_v43, %v7678_v19  ;;  %vm14259_vm14 = vmmov %vm14258_vm9 }
 0x6b7   : > { %v13672_v39 = vadd.f32 %v6771_v13, %v13605_v21  ;;  %8911 = vrot.lane.b32.xlu1 %v13182_v16, %s10377_s8  ;;  %v7682_v16 = vpop.permute.xlu0 %7681  ;;  %v7680_v52 = vpop.permute.xlu2 %7679  ;;  %s9137_s8 = sshll.u32 %s14000_s13, 4  ;;  %s9138_s8 = int_to_ptr.vmem [resolvable:$true] %s9137_s8 }
 0x6b8   : > { %9943 = vmatmul.msk.bf16.vlgmr.msra.gmra.mxu0 %vm361_vm1, %v10195_v34  ;;  %9945 = vmatmul.msk.bf16.vlgmr.msra.gmra.mxu2 %vm361_vm1, %v10195_v34  ;;  %v7691_v58 = vsel %vm14245_vm0, %v7678_v19, %v7680_v52  ;;  %v7692_v12 = vsel %vm14246_vm2, %v7680_v52, %v7682_v16  ;;  %v7693_v61 = vsel %vm14247_vm3, %v7682_v16, %v7684_v55  ;;  %v7829_v60 = vpop.permute.xlu1 %7828  ;;  %vm14260_vm0 = vmmov %vm14258_vm9 }
 0x6b9   : > { %9944 = vmatmul.msk.bf16.vlgmr.msra.gmra.mxu1 %vm361_vm1, %v10195_v34  ;;  %7590 = vmatpush.bf16.msra.mxu0 %v7501_v63  ;;  %vm14261_vm2 = vmmov %vm14260_vm0 }
 0x6ba   : > { %7604 = vmatpush.bf16.msra.mxu1 %v7502_v27  ;;  %7713 = vmatpush.bf16.msra.mxu2 %v7689_v5  ;;  %vm14262_vm3 = vmmov %vm14260_vm0 }
 0x6bb   : > { %9046 = vperm.xlu2 %10286, %v9042_v23   ;;  %v6690_v59 = vpop.f32.mrf.mxu3  ;;  %v6785_v8 = vpop.f32.mrf.mxu2 }
 0x6bc   : > { %v6706_v44 = vadd.f32 %v6690_v59, %v13608_v3  ;;  %v6848_v46 = vadd.f32 %v6785_v8, %v13623_v31 }
 0x6bd   : > { %v6759_v6 = vpop.f32.mrf.mxu0 }
 0x6be   : > { %v6853_v49 = vadd.f32 %v6759_v6, %v13612_v25  ;;  %v6773_v45 = vpop.f32.mrf.mxu1 }
 0x6bf   : > { %v13692_v24 = vadd.f32 %v6773_v45, %v13628_v33  ;;  %v7688_v26 = vpop.permute.xlu0 %7687  ;;  %v7686_v15 = vpop.permute.xlu2 %7685 }
 0x6c0   : > { %9952 = vmatmul.msk.bf16.vlgmr.msra.gmra.mxu3 %vm361_vm1, %v10196_v1  ;;  %v7695_v38 = vsel %vm14249_vm5, %v7686_v15, %v7688_v26  ;;  %vm14264_vm5 = vcmask 375808  }
 0x6c1   : > { %7727 = vmatpush.bf16.msra.mxu3 %v7690_v37 }
 0x6c3   : > { %v6799_v62 = vpop.f32.mrf.mxu3  ;;  %v6787_v36 = vpop.f32.mrf.mxu2 }
 0x6c4   : > { %v6849_v18 = vadd.f32 %v6799_v62, %v13631_v11  ;;  %v6855_v21 = vadd.f32 %v6787_v36, %v6702_v51 }
 0x6c5   : > { %v6813_v48 = vpop.f32.mrf.mxu0 }
 0x6c6   : > { %v6850_v3 = vadd.f32 %v6813_v48, %v13635_v4  ;;  %v6827_v10 = vpop.f32.mrf.mxu1  ;;  %v7694_v4 = vsel %vm14248_vm4, %v7684_v55, %v7686_v15  ;;  %vm14263_vm4 = vmmov %vm14260_vm0 }
 0x6c7   : > { %v13698_v25 = vadd.f32 %v6827_v10, %v6698_v50  ;;  %v7833_v51 = vpop.permute.xlu0 %7832  ;;  %v7827_v50 = vpop.permute.xlu1 %7826 }
 0x6c8   : > { %9953 = vmatmul.msk.bf16.vlgmr.msrb.gmra.mxu0 %vm361_vm1, %v10196_v1  ;;  %9955 = vmatmul.msk.bf16.vlgmr.msrb.gmra.mxu2 %vm361_vm1, %v10196_v1  ;;  %v7831_v30 = vpop.permute.xlu2 %7830  ;;  %v7842_v32 = vsel %vm14251_vm7, %v7827_v50, %v7829_v60  ;;  %vm14266_vm7 = vmmov %vm14264_vm5 }
 0x6c9   : > { %9954 = vmatmul.msk.bf16.vlgmr.msrb.gmra.mxu1 %vm361_vm1, %v10196_v1  ;;  %7741 = vmatpush.bf16.msrb.mxu0 %v7691_v58  ;;  %v7843_v20 = vsel %vm14250_vm6, %v7829_v60, %v7831_v30  ;;  %v7844_v43 = vsel %vm14252_vm13, %v7831_v30, %v7833_v51  ;;  %v10206_v60 = vld [vmem:[%s14092_s4 + $0x98] sm:$0xff]  ;;  %vm14265_vm6 = vmmov %vm14264_vm5 }
 0x6ca   : > { %7755 = vmatpush.bf16.msrb.mxu1 %v7692_v12  ;;  %7769 = vmatpush.bf16.msrb.mxu2 %v7693_v61  ;;  %vm14267_vm13 = vmmov %vm14264_vm5 }
 0x6cb   : > { %v6801_v17 = vpop.f32.mrf.mxu3  ;;  %v6841_v34 = vpop.f32.mrf.mxu2 }
 0x6cc   : > { %v6856_v31 = vadd.f32 %v6801_v17, %v13651_v56  ;;  %v6852_v33 = vadd.f32 %v6841_v34, %v6699_v47 }
 0x6cd   : > { %v6815_v11 = vpop.f32.mrf.mxu0 }
 0x6ce   : > { %v6857_v41 = vadd.f32 %v6815_v11, %v13655_v22  ;;  %v6829_v53 = vpop.f32.mrf.mxu1 }
 0x6cf   : > { %v6858_v9 = vadd.f32 %v6829_v53, %v13665_v28  ;;  %v7837_v63 = vpop.permute.xlu0 %7836  ;;  %v7839_v8 = vpop.permute.xlu1 %7838 }
 0x6d0   : > { %9956 = vmatmul.msk.bf16.vlgmr.msrb.gmra.mxu3 %vm361_vm1, %v10196_v1  ;;  %v7835_v23 = vpop.permute.xlu2 %7834 }
 0x6d1   : > { %7783 = vmatpush.bf16.msrb.mxu3 %v7694_v4  ;;  %v7846_v37 = vsel %vm14254_vm15, %v7835_v23, %v7837_v63  ;;  %vm14269_vm15 = vmmov %vm14264_vm5 }
 0x6d3   : > { %v6910_v7 = vpop.f32.mrf.mxu3  ;;  %v6843_v14 = vpop.f32.mrf.mxu2 }
 0x6d4   : > { %v6999_v54 = vadd.f32 %v6910_v7, %v13668_v0  ;;  %v6859_v35 = vadd.f32 %v6843_v14, %v6706_v44 }
 0x6d5   : > { %v6924_v42 = vpop.f32.mrf.mxu0 }
 0x6d6   : > { %v7000_v29 = vadd.f32 %v6924_v42, %v13672_v39  ;;  %v6938_v56 = vpop.f32.mrf.mxu1 }
 0x6d7   : > { %v7001_v22 = vadd.f32 %v6938_v56, %v6848_v46  ;;  %v7980_v16 = vpop.permute.xlu0 %7979 }
 0x6d8   : > { %9957 = vmatmul.msk.bf16.vlgmr.msra.gmra.mxu0 %vm361_vm1, %v10196_v1  ;;  %9997 = vmatmul.msk.bf16.vlgmr.msra.gmra.mxu2 %vm361_vm1, %v13714_v40  ;;  %v7841_v36 = vpop.permute.xlu2 %7840 }
 0x6d9   : > { %9958 = vmatmul.msk.bf16.vlgmr.msra.gmra.mxu1 %vm361_vm1, %v10196_v1  ;;  %7797 = vmatpush.bf16.msra.mxu0 %v7695_v38  ;;  %v7848_v10 = vsel %vm14256_vm12, %v7839_v8, %v7841_v36  ;;  %vm14271_vm12 = vmmov %vm14264_vm5 }
 0x6da   : > { %7866 = vmatpush.bf16.msra.mxu1 %v7842_v32  ;;  %7880 = vmatpush.bf16.msra.mxu2 %v7843_v20 }
 0x6db   : > { %v6912_v47 = vpop.f32.mrf.mxu3  ;;  %v6952_v57 = vpop.f32.mrf.mxu2 }
 0x6dc   : > { %v7006_v28 = vadd.f32 %v6912_v47, %v6853_v49  ;;  %v7002_v2 = vadd.f32 %v6952_v57, %v6849_v18  ;;  %v7845_v49 = vsel %vm14253_vm8, %v7833_v51, %v7835_v23  ;;  %vm14268_vm8 = vmmov %vm14264_vm5 }
 0x6dd   : > { %v6926_v19 = vpop.f32.mrf.mxu0 }
 0x6de   : > { %v7007_v0 = vadd.f32 %v6926_v19, %v13692_v24  ;;  %v6940_v13 = vpop.f32.mrf.mxu1  ;;  %v7847_v24 = vsel %vm14255_vm11, %v7837_v63, %v7839_v8  ;;  %vm14270_vm11 = vcmask 367616  }
 0x6df   : > { %v13726_v39 = vadd.f32 %v6940_v13, %v6855_v21  ;;  %v7986_v61 = vpop.permute.xlu0 %7985 }
 0x6e0   : > { %9998 = vmatmul.msk.bf16.vlgmr.msra.gmra.mxu3 %vm361_vm1, %v13714_v40 }
 0x6e1   : > { %7894 = vmatpush.bf16.msra.mxu3 %v7844_v43 }
 0x6e3   : > { %v6966_v5 = vpop.f32.mrf.mxu3  ;;  %v6954_v27 = vpop.f32.mrf.mxu2 }
 0x6e4   : > { %v7003_v59 = vadd.f32 %v6966_v5, %v6850_v3  ;;  %v7009_v44 = vadd.f32 %v6954_v27, %v6856_v31 }
 0x6e5   : > { %v6980_v1 = vpop.f32.mrf.mxu0 }
 0x6e6   : > { %v7004_v46 = vadd.f32 %v6980_v1, %v13698_v25  ;;  %v6994_v6 = vpop.f32.mrf.mxu1  ;;  %v7982_v25 = vpop.permute.xlu1 %7981 }
 0x6e7   : > { %v13732_v45 = vadd.f32 %v6994_v6, %v6852_v33  ;;  %v7984_v33 = vpop.permute.xlu2 %7983  ;;  %v7992_v50 = vpop.permute.xlu0 %7991 }
 0x6e8   : > { %9999 = vmatmul.msk.bf16.vlgmr.msrb.gmra.mxu0 %vm361_vm1, %v13714_v40  ;;  %10001 = vmatmul.msk.bf16.vlgmr.msrb.gmra.mxu2 %vm361_vm1, %v13714_v40  ;;  %v7996_v4 = vsel %vm14258_vm9, %v7982_v25, %v7984_v33 }
 0x6e9   : > { %10000 = vmatmul.msk.bf16.vlgmr.msrb.gmra.mxu1 %vm361_vm1, %v13714_v40  ;;  %7908 = vmatpush.bf16.msrb.mxu0 %v7845_v49 }
 0x6ea   : > { %7922 = vmatpush.bf16.msrb.mxu1 %v7846_v37  ;;  %7936 = vmatpush.bf16.msrb.mxu2 %v7847_v24 }
 0x6eb   : > { %v6968_v55 = vpop.f32.mrf.mxu3  ;;  %v7063_v52 = vpop.f32.mrf.mxu2 }
 0x6ec   : > { %v7010_v62 = vadd.f32 %v6968_v55, %v6857_v41  ;;  %v7152_v18 = vadd.f32 %v7063_v52, %v6999_v54  ;;  %v7995_v41 = vsel %vm14257_vm10, %v7980_v16, %v7982_v25  ;;  %vm14272_vm10 = vmmov %vm14270_vm11 }
 0x6ed   : > { %v6982_v21 = vpop.f32.mrf.mxu0  ;;  %vm14273_vm9 = vmmov %vm14272_vm10 }
 0x6ee   : > { %v7011_v48 = vadd.f32 %v6982_v21, %v6858_v9  ;;  %v6996_v3 = vpop.f32.mrf.mxu1  ;;  %v7997_v9 = vsel %vm14259_vm14, %v7984_v33, %v7986_v61  ;;  %v7988_v14 = vpop.permute.xlu1 %7987  ;;  %vm14274_vm14 = vmmov %vm14273_vm9 }
 0x6ef   : > { %v13743_v58 = vadd.f32 %v6996_v3, %v6859_v35  ;;  %v7998_v56 = vsel %vm14260_vm0, %v7986_v61, %v7988_v14  ;;  %v7990_v38 = vpop.permute.xlu2 %7989  ;;  %v8135_v13 = vpop.permute.xlu0 %8134  ;;  %vm14275_vm0 = vmmov %vm14273_vm9 }
 0x6f0   : > { %10002 = vmatmul.msk.bf16.vlgmr.msrb.gmra.mxu3 %vm361_vm1, %v13714_v40  ;;  %v8000_v63 = vsel %vm14262_vm3, %v7990_v38, %v7992_v50  ;;  %vm14277_vm3 = vmmov %vm14275_vm0 }
 0x6f1   : > { %7950 = vmatpush.bf16.msrb.mxu3 %v7848_v10 }
 0x6f3   : > { %v7077_v12 = vpop.f32.mrf.mxu3  ;;  %v7065_v26 = vpop.f32.mrf.mxu2 }
 0x6f4   : > { %v7153_v17 = vadd.f32 %v7077_v12, %v7000_v29  ;;  %v7159_v31 = vadd.f32 %v7065_v26, %v7006_v28 }
 0x6f5   : > { %v7091_v34 = vpop.f32.mrf.mxu0 }
 0x6f6   : > { %v7154_v15 = vadd.f32 %v7091_v34, %v7001_v22  ;;  %v7105_v11 = vpop.f32.mrf.mxu1  ;;  %v7994_v28 = vpop.permute.xlu1 %7993 }
 0x6f7   : > { %v13751_v53 = vadd.f32 %v7105_v11, %v7002_v2  ;;  %v8133_v23 = vpop.permute.xlu2 %8132  ;;  %v8141_v37 = vpop.permute.xlu0 %8140 }
 0x6f8   : > { %10003 = vmatmul.msk.bf16.vlgmr.msra.gmra.mxu0 %vm361_vm1, %v13714_v40  ;;  %10011 = vmatmul.msk.bf16.vlgmr.msra.gmra.mxu2 %vm361_vm1, %v10206_v60  ;;  %v8148_v6 = vsel %vm14264_vm5, %v8133_v23, %v8135_v13 }
 0x6f9   : > { %10010 = vmatmul.msk.bf16.vlgmr.msra.gmra.mxu1 %vm361_vm1, %v10206_v60  ;;  %8019 = vmatpush.bf16.msra.mxu0 %v7995_v41 }
 0x6fa   : > { %8033 = vmatpush.bf16.msra.mxu1 %v7996_v4  ;;  %8047 = vmatpush.bf16.msra.mxu2 %v7997_v9 }
 0x6fb   : > { %v7079_v7 = vpop.f32.mrf.mxu3  ;;  %v7119_v51 = vpop.f32.mrf.mxu2 }
 0x6fc   : > { %v7160_v54 = vadd.f32 %v7079_v7, %v7007_v0  ;;  %v7156_v35 = vadd.f32 %v7119_v51, %v7003_v59  ;;  %v7999_v0 = vsel %vm14261_vm2, %v7988_v14, %v7990_v38  ;;  %vm14276_vm2 = vmmov %vm14275_vm0 }
 0x6fd   : > { %v7093_v42 = vpop.f32.mrf.mxu0 }
 0x6fe   : > { %v7161_v40 = vadd.f32 %v7093_v42, %v13726_v39  ;;  %v7107_v29 = vpop.f32.mrf.mxu1  ;;  %v8001_v39 = vsel %vm14263_vm4, %v7992_v50, %v7994_v28  ;;  %vm14278_vm4 = vcmask 359424  }
 0x6ff   : > { %v13761_v30 = vadd.f32 %v7107_v29, %v7009_v44  ;;  %v8139_v52 = vpop.permute.xlu2 %8138  ;;  %v8286_v26 = vpop.permute.xlu0 %8285  ;;  %vm14279_vm5 = vmmov %vm14278_vm4 }
 0x700   : > { %10012 = vmatmul.msk.bf16.vlgmr.msra.gmra.mxu3 %vm361_vm1, %v10206_v60  ;;  %v8151_v25 = vsel %vm14267_vm13, %v8139_v52, %v8141_v37  ;;  %vm14282_vm13 = vmmov %vm14278_vm4 }
 0x701   : > { %8061 = vmatpush.bf16.msra.mxu3 %v7998_v56 }
 0x703   : > { %v7133_v22 = vpop.f32.mrf.mxu3  ;;  %v7121_v20 = vpop.f32.mrf.mxu2 }
 0x704   : > { %v7157_v32 = vadd.f32 %v7133_v22, %v7004_v46  ;;  %v7163_v47 = vadd.f32 %v7121_v20, %v7010_v62  ;;  %v10207_v62 = vld [vmem:[%s14092_s4 + $0xa0] sm:$0xff] }
 0x705   : > { %v7147_v57 = vpop.f32.mrf.mxu0 }
 0x706   : > { %v7158_v2 = vadd.f32 %v7147_v57, %v13732_v45  ;;  %v7216_v19 = vpop.f32.mrf.mxu1  ;;  %v8137_v45 = vpop.permute.xlu1 %8136 }
 0x707   : > { %v13766_v43 = vadd.f32 %v7216_v19, %v7152_v18  ;;  %v8149_v3 = vsel %vm14265_vm6, %v8135_v13, %v8137_v45  ;;  %v8145_v33 = vpop.permute.xlu2 %8144  ;;  %v8147_v51 = vpop.permute.xlu0 %8146  ;;  %vm14280_vm6 = vmmov %vm14278_vm4 }
 0x708   : > { %10013 = vmatmul.msk.bf16.vlgmr.msrb.gmra.mxu0 %vm361_vm1, %v10206_v60  ;;  %10015 = vmatmul.msk.bf16.vlgmr.msrb.gmra.mxu2 %vm361_vm1, %v10206_v60  ;;  %v8154_v38 = vsel %vm14271_vm12, %v8145_v33, %v8147_v51 }
 0x709   : > { %10014 = vmatmul.msk.bf16.vlgmr.msrb.gmra.mxu1 %vm361_vm1, %v10206_v60  ;;  %8075 = vmatpush.bf16.msrb.mxu0 %v7999_v0 }
 0x70a   : > { %8089 = vmatpush.bf16.msrb.mxu1 %v8000_v63  ;;  %8103 = vmatpush.bf16.msrb.mxu2 %v8001_v39 }
 0x70b   : > { %v7135_v5 = vpop.f32.mrf.mxu3  ;;  %v7230_v59 = vpop.f32.mrf.mxu2 }
 0x70c   : > { %v7164_v27 = vadd.f32 %v7135_v5, %v7011_v48  ;;  %v7306_v44 = vadd.f32 %v7230_v59, %v7153_v17 }
 0x70d   : > { %v7149_v8 = vpop.f32.mrf.mxu0 }
 0x70e   : > { %v7165_v1 = vadd.f32 %v7149_v8, %v13743_v58  ;;  %v7218_v46 = vpop.f32.mrf.mxu1  ;;  %v8150_v58 = vsel %vm14266_vm7, %v8137_v45, %v8139_v52  ;;  %v8143_v12 = vpop.permute.xlu1 %8142  ;;  %vm14281_vm7 = vmmov %vm14278_vm4 }
 0x70f   : > { %v13775_v49 = vadd.f32 %v7218_v46, %v7159_v31  ;;  %v8152_v41 = vsel %vm14268_vm8, %v8141_v37, %v8143_v12  ;;  %v8290_v56 = vpop.permute.xlu2 %8289  ;;  %v8296_v63 = vpop.permute.xlu0 %8295  ;;  %vm14283_vm8 = vmmov %vm14278_vm4 }
 0x710   : > { %10016 = vmatmul.msk.bf16.vlgmr.msrb.gmra.mxu3 %vm361_vm1, %v10206_v60 }
 0x711   : > { %8172 = vmatpush.bf16.msrb.mxu3 %v8148_v6 }
 0x713   : > { %v7244_v24 = vpop.f32.mrf.mxu3  ;;  %v7232_v16 = vpop.f32.mrf.mxu2 }
 0x714   : > { %v7307_v55 = vadd.f32 %v7244_v24, %v7154_v15  ;;  %v7313_v36 = vadd.f32 %v7232_v16, %v7160_v54 }
 0x715   : > { %v7258_v18 = vpop.f32.mrf.mxu0 }
 0x716   : > { %v13782_v21 = vadd.f32 %v7258_v18, %v13751_v53  ;;  %v7272_v48 = vpop.f32.mrf.mxu1  ;;  %v8288_v14 = vpop.permute.xlu1 %8287 }
 0x717   : > { %v13785_v10 = vadd.f32 %v7272_v48, %v7156_v35  ;;  %v8302_v0 = vsel %vm14272_vm10, %v8288_v14, %v8290_v56  ;;  %v8294_v39 = vpop.permute.xlu2 %8293  ;;  %v8441_v16 = vpop.permute.xlu0 %8440 }
 0x718   : > { %10023 = vmatmul.msk.bf16.vlgmr.msra.gmra.mxu0 %vm361_vm1, %v10207_v62  ;;  %10025 = vmatmul.msk.bf16.vlgmr.msra.gmra.mxu2 %vm361_vm1, %v10207_v62  ;;  %v8305_v45 = vsel %vm14275_vm0, %v8294_v39, %v8296_v63 }
 0x719   : > { %10024 = vmatmul.msk.bf16.vlgmr.msra.gmra.mxu1 %vm361_vm1, %v10207_v62  ;;  %8186 = vmatpush.bf16.msra.mxu0 %v8149_v3 }
 0x71a   : > { %8200 = vmatpush.bf16.msra.mxu1 %v8150_v58  ;;  %8214 = vmatpush.bf16.msra.mxu2 %v8151_v25 }
 0x71b   : > { %v7246_v61 = vpop.f32.mrf.mxu3  ;;  %v7286_v60 = vpop.f32.mrf.mxu2 }
 0x71c   : > { %v7314_v17 = vadd.f32 %v7246_v61, %v7161_v40  ;;  %v7310_v31 = vadd.f32 %v7286_v60, %v7157_v32  ;;  %v8153_v40 = vsel %vm14269_vm15, %v8143_v12, %v8145_v33  ;;  %vm14284_vm15 = vmmov %vm14278_vm4 }
 0x71d   : > { %v7260_v34 = vpop.f32.mrf.mxu0 }
 0x71e   : > { %v7315_v15 = vadd.f32 %v7260_v34, %v13761_v30  ;;  %v7274_v11 = vpop.f32.mrf.mxu1  ;;  %v8301_v30 = vsel %vm14270_vm11, %v8286_v26, %v8288_v14  ;;  %vm14285_vm11 = vcmask 293888  }
 0x71f   : > { %v13794_v53 = vadd.f32 %v7274_v11, %v7163_v47  ;;  %v10208_v47 = vld [vmem:[%s14092_s4 + $0xa8] sm:$0xff]  ;;  %v8300_v52 = vpop.permute.xlu2 %8299  ;;  %v8439_v60 = vpop.permute.xlu0 %8438  ;;  %vm14286_vm12 = vmmov %vm14285_vm11 }
 0x720   : > { %10026 = vmatmul.msk.bf16.vlgmr.msra.gmra.mxu3 %vm361_vm1, %v10207_v62  ;;  %vm14287_vm10 = vmmov %vm14285_vm11 }
 0x721   : > { %8228 = vmatpush.bf16.msra.mxu3 %v8152_v41 }
 0x723   : > { %v7300_v4 = vpop.f32.mrf.mxu3  ;;  %v7288_v9 = vpop.f32.mrf.mxu2 }
 0x724   : > { %v7311_v7 = vadd.f32 %v7300_v4, %v7158_v2  ;;  %v7317_v54 = vadd.f32 %v7288_v9, %v7164_v27  ;;  %v8454_v4 = vsel %vm14279_vm5, %v8439_v60, %v8441_v16 }
 0x725   : > { %v7369_v35 = vpop.f32.mrf.mxu0 }
 0x726   : > { %v7458_v50 = vadd.f32 %v7369_v35, %v13766_v43  ;;  %v7383_v42 = vpop.f32.mrf.mxu1  ;;  %v8292_v43 = vpop.permute.xlu1 %8291 }
 0x727   : > { %v13799_v29 = vadd.f32 %v7383_v42, %v7306_v44  ;;  %v8303_v46 = vsel %vm14273_vm9, %v8290_v56, %v8292_v43  ;;  %v8445_v34 = vpop.permute.xlu2 %8444  ;;  %vm14288_vm9 = vmmov %vm14287_vm10 }
 0x728   : > { %10027 = vmatmul.msk.bf16.vlgmr.msrb.gmra.mxu0 %vm361_vm1, %v10207_v62  ;;  %10029 = vmatmul.msk.bf16.vlgmr.msrb.gmra.mxu2 %vm361_vm1, %v10207_v62  ;;  %vm14290_vm0 = vmmov %vm14288_vm9 }
 0x729   : > { %10028 = vmatmul.msk.bf16.vlgmr.msrb.gmra.mxu1 %vm361_vm1, %v10207_v62  ;;  %8242 = vmatpush.bf16.msrb.mxu0 %v8153_v40 }
 0x72a   : > { %8256 = vmatpush.bf16.msrb.mxu1 %v8154_v38  ;;  %8325 = vmatpush.bf16.msrb.mxu2 %v8301_v30 }
 0x72b   : > { %v7302_v22 = vpop.f32.mrf.mxu3  ;;  %v7397_v32 = vpop.f32.mrf.mxu2 }
 0x72c   : > { %v7318_v20 = vadd.f32 %v7302_v22, %v7165_v1  ;;  %v7460_v28 = vadd.f32 %v7397_v32, %v7307_v55  ;;  %v8451_v32 = vpop.permute.xlu0 %8450 }
 0x72d   : > { %v7371_v57 = vpop.f32.mrf.mxu0 }
 0x72e   : > { %v7465_v2 = vadd.f32 %v7371_v57, %v13775_v49  ;;  %v7385_v19 = vpop.f32.mrf.mxu1  ;;  %v8304_v49 = vsel %vm14274_vm14, %v8292_v43, %v8294_v39  ;;  %v8298_v37 = vpop.permute.xlu1 %8297  ;;  %vm14289_vm14 = vmmov %vm14288_vm9 }
 0x72f   : > { %v13811_v13 = vadd.f32 %v7385_v19, %v7313_v36  ;;  %v8306_v3 = vsel %vm14276_vm2, %v8296_v63, %v8298_v37  ;;  %v8307_v11 = vsel %vm14277_vm3, %v8298_v37, %v8300_v52  ;;  %vm14291_vm2 = vmmov %vm14290_vm0  ;;  %vm14292_vm3 = vcmask 285696  }
 0x730   : > { %10036 = vmatmul.msk.bf16.vlgmr.msrb.gmra.mxu3 %vm361_vm1, %v10208_v47  ;;  %vm14294_vm5 = vmmov %vm14292_vm3 }
 0x731   : > { %8339 = vmatpush.bf16.msrb.mxu3 %v8302_v0 }
 0x733   : > { %v7411_v23 = vpop.f32.mrf.mxu3  ;;  %v7399_v5 = vpop.f32.mrf.mxu2 }
 0x734   : > { %v7461_v27 = vadd.f32 %v7411_v23, %v13782_v21  ;;  %v7467_v59 = vadd.f32 %v7399_v5, %v7314_v17  ;;  %v13830_v17 = vld [vmem:[%s14092_s4 + $0xb0] sm:$0xff] }
 0x735   : > { %v7425_v44 = vpop.f32.mrf.mxu0 }
 0x736   : > { %v7462_v8 = vadd.f32 %v7425_v44, %v13785_v10  ;;  %v7439_v1 = vpop.f32.mrf.mxu1  ;;  %v8443_v61 = vpop.permute.xlu1 %8442 }
 0x737   : > { %v13817_v6 = vadd.f32 %v7439_v1, %v7310_v31  ;;  %v8456_v42 = vsel %vm14280_vm6, %v8443_v61, %v8445_v34  ;;  %vm14295_vm6 = vmmov %vm14292_vm3 }
 0x738   : > { %10037 = vmatmul.msk.bf16.vlgmr.msra.gmra.mxu0 %vm361_vm1, %v10208_v47  ;;  %10039 = vmatmul.msk.bf16.vlgmr.msra.gmra.mxu2 %vm361_vm1, %v10208_v47 }
 0x739   : > { %10038 = vmatmul.msk.bf16.vlgmr.msra.gmra.mxu1 %vm361_vm1, %v10208_v47  ;;  %8353 = vmatpush.bf16.msra.mxu0 %v8303_v46 }
 0x73a   : > { %8367 = vmatpush.bf16.msra.mxu1 %v8304_v49  ;;  %8381 = vmatpush.bf16.msra.mxu2 %v8305_v45 }
 0x73b   : > { %v7413_v24 = vpop.f32.mrf.mxu3  ;;  %v7453_v62 = vpop.f32.mrf.mxu2 }
 0x73c   : > { %v7468_v55 = vadd.f32 %v7413_v24, %v7315_v15  ;;  %v7464_v36 = vadd.f32 %v7453_v62, %v7311_v7  ;;  %v10210_v24 = vld [vmem:[%s14092_s4 + $0xb8] sm:$0xff] }
 0x73d   : > { %v7427_v18 = vpop.f32.mrf.mxu0 }
 0x73e   : > { %v7469_v21 = vadd.f32 %v7427_v18, %v13794_v53  ;;  %v7441_v48 = vpop.f32.mrf.mxu1  ;;  %v8455_v53 = vsel %vm14278_vm4, %v8441_v16, %v8443_v61  ;;  %v8447_v56 = vpop.permute.xlu1 %8446  ;;  %vm14293_vm4 = vmmov %vm14292_vm3 }
 0x73f   : > { %v7470_v10 = vadd.f32 %v7441_v48, %v7317_v54 }
 0x740   : > { %10040 = vmatmul.msk.bf16.vlgmr.msra.gmra.mxu3 %vm361_vm1, %v10208_v47 }
 0x741   : > { %8395 = vmatpush.bf16.msra.mxu3 %v8306_v3 }
 0x743   : > { %v7522_v58 = vpop.f32.mrf.mxu3  ;;  %v7455_v25 = vpop.f32.mrf.mxu2 }
 0x744   : > { %v7611_v12 = vadd.f32 %v7522_v58, %v7458_v50  ;;  %v7471_v26 = vadd.f32 %v7455_v25, %v7318_v20 }
 0x745   : > { %v7536_v31 = vpop.f32.mrf.mxu0 }
 0x746   : > { %v7612_v33 = vadd.f32 %v7536_v31, %v13799_v29  ;;  %v7550_v15 = vpop.f32.mrf.mxu1  ;;  %v8449_v29 = vpop.permute.xlu2 %8448 }
 0x747   : > { %v7613_v41 = vadd.f32 %v7550_v15, %v7460_v28  ;;  %v8458_v0 = vsel %vm14282_vm13, %v8447_v56, %v8449_v29  ;;  %v8453_v39 = vpop.permute.xlu1 %8452  ;;  %vm14297_vm13 = vmmov %vm14292_vm3 }
 0x748   : > { %10041 = vmatmul.msk.bf16.vlgmr.msrb.gmra.mxu0 %vm361_vm1, %v10208_v47  ;;  %10049 = vmatmul.msk.bf16.vlgmr.msrb.gmra.mxu2 %vm361_vm1, %v13830_v17  ;;  %v8460_v1 = vsel %vm14284_vm15, %v8451_v32, %v8453_v39  ;;  %v10211_v39 = vld [vmem:[%s14092_s4 + $0xc0] sm:$0xff]  ;;  %vm14299_vm15 = vcmask 277504  }
 0x749   : > { %10042 = vmatmul.msk.bf16.vlgmr.msrb.gmra.mxu1 %vm361_vm1, %v10208_v47  ;;  %8409 = vmatpush.bf16.msrb.mxu0 %v8307_v11 }
 0x74a   : > { %8478 = vmatpush.bf16.msrb.mxu1 %v8454_v4  ;;  %8492 = vmatpush.bf16.msrb.mxu2 %v8455_v53 }
 0x74b   : > { %v7524_v9 = vpop.f32.mrf.mxu3  ;;  %v7564_v14 = vpop.f32.mrf.mxu2 }
 0x74c   : > { %v7618_v7 = vadd.f32 %v7524_v9, %v7465_v2  ;;  %v7614_v54 = vadd.f32 %v7564_v14, %v7461_v27  ;;  %v8457_v2 = vsel %vm14281_vm7, %v8445_v34, %v8447_v56  ;;  %vm14296_vm7 = vmmov %vm14292_vm3 }
 0x74d   : > { %v7538_v51 = vpop.f32.mrf.mxu0 }
 0x74e   : > { %v7619_v35 = vadd.f32 %v7538_v51, %v13811_v13  ;;  %v7552_v50 = vpop.f32.mrf.mxu1  ;;  %v8459_v13 = vsel %vm14283_vm8, %v8449_v29, %v8451_v32  ;;  %v8592_v43 = vpop.permute.xlu2 %8591  ;;  %vm14298_vm8 = vmmov %vm14292_vm3 }
 0x74f   : > { %v13842_v40 = vadd.f32 %v7552_v50, %v7467_v59  ;;  %v8596_v62 = vpop.permute.xlu1 %8595 }
 0x750   : > { %10050 = vmatmul.msk.bf16.vlgmr.msrb.gmra.mxu3 %vm361_vm1, %v13830_v17 }
 0x751   : > { %8506 = vmatpush.bf16.msrb.mxu3 %v8456_v42 }
 0x753   : > { %v7578_v30 = vpop.f32.mrf.mxu3  ;;  %v7566_v38 = vpop.f32.mrf.mxu2 }
 0x754   : > { %v7615_v22 = vadd.f32 %v7578_v30, %v7462_v8  ;;  %v7621_v20 = vadd.f32 %v7566_v38, %v7468_v55 }
 0x755   : > { %v7592_v47 = vpop.f32.mrf.mxu0 }
 0x756   : > { %v7616_v28 = vadd.f32 %v7592_v47, %v13817_v6  ;;  %v7606_v57 = vpop.f32.mrf.mxu1  ;;  %v8594_v6 = vpop.permute.xlu0 %8593 }
 0x757   : > { %v13848_v19 = vadd.f32 %v7606_v57, %v7464_v36  ;;  %v8598_v16 = vpop.permute.xlu2 %8597  ;;  %v8608_v3 = vsel %vm14286_vm12, %v8594_v6, %v8596_v62  ;;  %v8602_v11 = vpop.permute.xlu1 %8601 }
 0x758   : > { %10051 = vmatmul.msk.bf16.vlgmr.msra.gmra.mxu0 %vm361_vm1, %v13830_v17  ;;  %10053 = vmatmul.msk.bf16.vlgmr.msra.gmra.mxu2 %vm361_vm1, %v13830_v17 }
 0x759   : > { %10052 = vmatmul.msk.bf16.vlgmr.msra.gmra.mxu1 %vm361_vm1, %v13830_v17  ;;  %8520 = vmatpush.bf16.msra.mxu0 %v8457_v2 }
 0x75a   : > { %8534 = vmatpush.bf16.msra.mxu1 %v8458_v0  ;;  %8548 = vmatpush.bf16.msra.mxu2 %v8459_v13 }
 0x75b   : > { %v7580_v63 = vpop.f32.mrf.mxu3  ;;  %v7715_v5 = vpop.f32.mrf.mxu2 }
 0x75c   : > { %v7622_v23 = vadd.f32 %v7580_v63, %v7469_v21  ;;  %v7804_v27 = vadd.f32 %v7715_v5, %v7611_v12  ;;  %v8607_v21 = vsel %vm14285_vm11, %v8592_v43, %v8594_v6  ;;  %vm14300_vm11 = vmmov %vm14299_vm15 }
 0x75d   : > { %v7594_v59 = vpop.f32.mrf.mxu0  ;;  %vm14301_vm12 = vmmov %vm14300_vm11 }
 0x75e   : > { %v7623_v44 = vadd.f32 %v7594_v59, %v7470_v10  ;;  %v7608_v8 = vpop.f32.mrf.mxu1  ;;  %v8609_v10 = vsel %vm14287_vm10, %v8596_v62, %v8598_v16  ;;  %v8600_v25 = vpop.permute.xlu0 %8599  ;;  %vm14302_vm10 = vmmov %vm14300_vm11 }
 0x75f   : > { %v13859_v46 = vadd.f32 %v7608_v8, %v7471_v26  ;;  %v8604_v34 = vpop.permute.xlu2 %8603  ;;  %v8745_v30 = vpop.permute.xlu1 %8744 }
 0x760   : > { %10054 = vmatmul.msk.bf16.vlgmr.msra.gmra.mxu3 %vm361_vm1, %v13830_v17  ;;  %v8612_v42 = vsel %vm14290_vm0, %v8602_v11, %v8604_v34 }
 0x761   : > { %8562 = vmatpush.bf16.msra.mxu3 %v8460_v1 }
 0x763   : > { %v7729_v49 = vpop.f32.mrf.mxu3  ;;  %v7717_v45 = vpop.f32.mrf.mxu2 }
 0x764   : > { %v7805_v37 = vadd.f32 %v7729_v49, %v7612_v33  ;;  %v7811_v55 = vadd.f32 %v7717_v45, %v7618_v7  ;;  %v8610_v33 = vsel %vm14288_vm9, %v8598_v16, %v8600_v25  ;;  %vm14303_vm9 = vmmov %vm14302_vm10 }
 0x765   : > { %v7743_v52 = vpop.f32.mrf.mxu0  ;;  %vm14305_vm0 = vmmov %vm14303_vm9 }
 0x766   : > { %v7806_v36 = vadd.f32 %v7743_v52, %v7613_v41  ;;  %v7757_v18 = vpop.f32.mrf.mxu1  ;;  %v8606_v7 = vpop.permute.xlu0 %8605 }
 0x767   : > { %v13867_v48 = vadd.f32 %v7757_v18, %v7614_v54  ;;  %v8747_v29 = vpop.permute.xlu2 %8746  ;;  %v8751_v5 = vpop.permute.xlu1 %8750 }
 0x768   : > { %10055 = vmatmul.msk.bf16.vlgmr.msrb.gmra.mxu0 %vm361_vm1, %v13830_v17  ;;  %10063 = vmatmul.msk.bf16.vlgmr.msrb.gmra.mxu2 %vm361_vm1, %v10210_v24  ;;  %v8760_v57 = vsel %vm14292_vm3, %v8745_v30, %v8747_v29 }
 0x769   : > { %10062 = vmatmul.msk.bf16.vlgmr.msrb.gmra.mxu1 %vm361_vm1, %v10210_v24  ;;  %8631 = vmatpush.bf16.msrb.mxu0 %v8607_v21 }
 0x76a   : > { %8645 = vmatpush.bf16.msrb.mxu1 %v8608_v3  ;;  %8659 = vmatpush.bf16.msrb.mxu2 %v8609_v10 }
 0x76b   : > { %v7731_v58 = vpop.f32.mrf.mxu3  ;;  %v7771_v61 = vpop.f32.mrf.mxu2 }
 0x76c   : > { %v7812_v12 = vadd.f32 %v7731_v58, %v7619_v35  ;;  %v7808_v26 = vadd.f32 %v7771_v61, %v7615_v22  ;;  %v8611_v35 = vsel %vm14289_vm14, %v8600_v25, %v8602_v11  ;;  %vm14304_vm14 = vmmov %vm14303_vm9 }
 0x76d   : > { %v7745_v60 = vpop.f32.mrf.mxu0 }
 0x76e   : > { %v7813_v31 = vadd.f32 %v7745_v60, %v13842_v40  ;;  %v7759_v17 = vpop.f32.mrf.mxu1  ;;  %v8613_v40 = vsel %vm14291_vm2, %v8604_v34, %v8606_v7 }
 0x76f   : > { %v13877_v15 = vadd.f32 %v7759_v17, %v7621_v20  ;;  %v8753_v13 = vpop.permute.xlu2 %8752 }
 0x770   : > { %10064 = vmatmul.msk.bf16.vlgmr.msrb.gmra.mxu3 %vm361_vm1, %v10210_v24  ;;  %v8763_v6 = vsel %vm14295_vm6, %v8751_v5, %v8753_v13 }
 0x771   : > { %8673 = vmatpush.bf16.msrb.mxu3 %v8610_v33 }
 0x773   : > { %v7785_v41 = vpop.f32.mrf.mxu3  ;;  %v7773_v53 = vpop.f32.mrf.mxu2 }
 0x774   : > { %v7809_v4 = vadd.f32 %v7785_v41, %v7616_v28  ;;  %v7815_v9 = vadd.f32 %v7773_v53, %v7622_v23 }
 0x775   : > { %v7799_v14 = vpop.f32.mrf.mxu0 }
 0x776   : > { %v7810_v54 = vadd.f32 %v7799_v14, %v13848_v19  ;;  %v7868_v51 = vpop.f32.mrf.mxu1  ;;  %v8749_v19 = vpop.permute.xlu0 %8748 }
 0x777   : > { %v13882_v50 = vadd.f32 %v7868_v51, %v7804_v27  ;;  %v8761_v8 = vsel %vm14293_vm4, %v8747_v29, %v8749_v19 }
 0x778   : > { %10065 = vmatmul.msk.bf16.vlgmr.msra.gmra.mxu0 %vm361_vm1, %v10210_v24  ;;  %10067 = vmatmul.msk.bf16.vlgmr.msra.gmra.mxu2 %vm361_vm1, %v10210_v24 }
 0x779   : > { %10066 = vmatmul.msk.bf16.vlgmr.msra.gmra.mxu1 %vm361_vm1, %v10210_v24  ;;  %8687 = vmatpush.bf16.msra.mxu0 %v8611_v35 }
 0x77a   : > { %8701 = vmatpush.bf16.msra.mxu1 %v8612_v42  ;;  %8715 = vmatpush.bf16.msra.mxu2 %v8613_v40 }
 0x77b   : > { %v7787_v56 = vpop.f32.mrf.mxu3  ;;  %v7882_v22 = vpop.f32.mrf.mxu2 }
 0x77c   : > { %v7816_v38 = vadd.f32 %v7787_v56, %v7623_v44  ;;  %v7958_v20 = vadd.f32 %v7882_v22, %v7805_v37 }
 0x77d   : > { %v7801_v32 = vpop.f32.mrf.mxu0 }
 0x77e   : > { %v7817_v47 = vadd.f32 %v7801_v32, %v13859_v46  ;;  %v7870_v28 = vpop.f32.mrf.mxu1  ;;  %v8762_v46 = vsel %vm14294_vm5, %v8749_v19, %v8751_v5  ;;  %v8755_v45 = vpop.permute.xlu0 %8754 }
 0x77f   : > { %v13891_v2 = vadd.f32 %v7870_v28, %v7811_v55  ;;  %v8898_v55 = vpop.permute.xlu2 %8897  ;;  %v8764_v18 = vsel %vm14296_vm7, %v8753_v13, %v8755_v45 }
 0x780   : > { %10068 = vmatmul.msk.bf16.vlgmr.msra.gmra.mxu3 %vm361_vm1, %v10210_v24 }
 0x781   : > { %8784 = vmatpush.bf16.msra.mxu3 %v8760_v57 }
 0x783   : > { %v7896_v0 = vpop.f32.mrf.mxu3  ;;  %v7884_v43 = vpop.f32.mrf.mxu2 }
 0x784   : > { %v7959_v63 = vadd.f32 %v7896_v0, %v7806_v36  ;;  %v7965_v23 = vadd.f32 %v7884_v43, %v7812_v12 }
 0x785   : > { %v7910_v27 = vpop.f32.mrf.mxu0 }
 0x786   : > { %v7960_v59 = vadd.f32 %v7910_v27, %v13867_v48  ;;  %v7924_v44 = vpop.f32.mrf.mxu1  ;;  %v8757_v48 = vpop.permute.xlu1 %8756 }
 0x787   : > { %v7961_v1 = vadd.f32 %v7924_v44, %v7808_v26  ;;  %v8900_v12 = vpop.permute.xlu0 %8899  ;;  %v8765_v17 = vsel %vm14297_vm13, %v8755_v45, %v8757_v48 }
 0x788   : > { %10075 = vmatmul.msk.bf16.vlgmr.msrb.gmra.mxu0 %vm361_vm1, %v10211_v39  ;;  %10077 = vmatmul.msk.bf16.vlgmr.msrb.gmra.mxu2 %vm361_vm1, %v10211_v39 }
 0x789   : > { %10076 = vmatmul.msk.bf16.vlgmr.msrb.gmra.mxu1 %vm361_vm1, %v10211_v39  ;;  %8798 = vmatpush.bf16.msrb.mxu0 %v8761_v8  ;;  %v9043_v8 = vld [vmem:[%s14094_s6 + $0x8] sm:$0xff] }
 0x78a   : > { %8812 = vmatpush.bf16.msrb.mxu1 %v8762_v46  ;;  %8826 = vmatpush.bf16.msrb.mxu2 %v8763_v6 }
 0x78b   : > { %v7898_v49 = vpop.f32.mrf.mxu3  ;;  %v7938_v24 = vpop.f32.mrf.mxu2  ;;  %9051 = vperm.xlu0 %10287, %v9043_v8  }
 0x78c   : > { %v7966_v37 = vadd.f32 %v7898_v49, %v7813_v31  ;;  %v7962_v16 = vadd.f32 %v7938_v24, %v7809_v4  ;;  %v8759_v31 = vpop.permute.xlu2 %8758 }
 0x78d   : > { %v7912_v62 = vpop.f32.mrf.mxu0  ;;  %v8766_v33 = vsel %vm14298_vm8, %v8757_v48, %v8759_v31 }
 0x78e   : > { %v7967_v52 = vadd.f32 %v7912_v62, %v13877_v15  ;;  %v7926_v36 = vpop.f32.mrf.mxu1  ;;  %v8913_v15 = vsel %vm14299_vm15, %v8898_v55, %v8900_v12  ;;  %v8902_v41 = vpop.permute.xlu1 %8901 }
 0x78f   : > { %v7968_v21 = vadd.f32 %v7926_v36, %v7815_v9  ;;  %v10212_v9 = vld [vmem:[%s14092_s4 + $0xc8] sm:$0xff]  ;;  %v8914_v35 = vsel %vm14300_vm11, %v8900_v12, %v8902_v41  ;;  %v8904_v42 = vpop.permute.xlu0 %8903 }
 0x790   : > { %10078 = vmatmul.msk.bf16.vlgmr.msrb.gmra.mxu3 %vm361_vm1, %v10211_v39  ;;  %v8915_v28 = vsel %vm14301_vm12, %v8902_v41, %v8904_v42 }
 0x791   : > { %8840 = vmatpush.bf16.msrb.mxu3 %v8764_v18 }
 0x793   : > { %v7952_v3 = vpop.f32.mrf.mxu3  ;;  %v7940_v10 = vpop.f32.mrf.mxu2 }
 0x794   : > { %v7963_v58 = vadd.f32 %v7952_v3, %v7810_v54  ;;  %v7969_v25 = vadd.f32 %v7940_v10, %v7816_v38 }
 0x795   : > { %v8021_v61 = vpop.f32.mrf.mxu0 }
 0x796   : > { %v8110_v26 = vadd.f32 %v8021_v61, %v13882_v50  ;;  %v8035_v60 = vpop.f32.mrf.mxu1  ;;  %v8906_v38 = vpop.permute.xlu1 %8905 }
 0x797   : > { %v13909_v34 = vadd.f32 %v8035_v60, %v7958_v20 }
 0x798   : > { %10079 = vmatmul.msk.bf16.vlgmr.msra.gmra.mxu0 %vm361_vm1, %v10211_v39  ;;  %10081 = vmatmul.msk.bf16.vlgmr.msra.gmra.mxu2 %vm361_vm1, %v10211_v39 }
 0x799   : > { %10080 = vmatmul.msk.bf16.vlgmr.msra.gmra.mxu1 %vm361_vm1, %v10211_v39  ;;  %8854 = vmatpush.bf16.msra.mxu0 %v8765_v17 }
 0x79a   : > { %8868 = vmatpush.bf16.msra.mxu1 %v8766_v33  ;;  %8937 = vmatpush.bf16.msra.mxu2 %v8913_v15 }
 0x79b   : > { %v7954_v11 = vpop.f32.mrf.mxu3  ;;  %v8049_v4 = vpop.f32.mrf.mxu2 }
 0x79c   : > { %v7970_v53 = vadd.f32 %v7954_v11, %v7817_v47  ;;  %v8112_v7 = vadd.f32 %v8049_v4, %v7959_v63  ;;  %v8908_v47 = vpop.permute.xlu2 %8907  ;;  %v8910_v63 = vpop.permute.xlu0 %8909 }
 0x79d   : > { %v8023_v14 = vpop.f32.mrf.mxu0  ;;  %v8917_v19 = vsel %vm14303_vm9, %v8906_v38, %v8908_v47 }
 0x79e   : > { %v8117_v54 = vadd.f32 %v8023_v14, %v13891_v2  ;;  %v8037_v51 = vpop.f32.mrf.mxu1  ;;  %v8916_v2 = vsel %vm14302_vm10, %v8904_v42, %v8906_v38  ;;  %v8912_v49 = vpop.permute.xlu1 %8911 }
 0x79f   : > { %v8118_v50 = vadd.f32 %v8037_v51, %v7965_v23  ;;  %v8919_v62 = vsel %vm14305_vm0, %v8910_v63, %v8912_v49 }
 0x7a0   : > { %10088 = vmatmul.msk.bf16.vlgmr.msra.gmra.mxu3 %vm361_vm1, %v10212_v9 }
 0x7a1   : > { %8951 = vmatpush.bf16.msra.mxu3 %v8914_v35 }
 0x7a3   : > { %v8063_v40 = vpop.f32.mrf.mxu3  ;;  %v8051_v29 = vpop.f32.mrf.mxu2 }
 0x7a4   : > { %v8113_v56 = vadd.f32 %v8063_v40, %v7960_v59  ;;  %v8119_v30 = vadd.f32 %v8051_v29, %v7966_v37  ;;  %v8918_v59 = vsel %vm14304_vm14, %v8908_v47, %v8910_v63  ;;  %v10213_v37 = vld [vmem:[%s14092_s4 + $0xd0] sm:$0xff] }
 0x7a5   : > { %v8077_v22 = vpop.f32.mrf.mxu0 }
 0x7a6   : > { %v8114_v20 = vadd.f32 %v8077_v22, %v7961_v1  ;;  %v8091_v32 = vpop.f32.mrf.mxu1 }
 0x7a7   : > { %v8115_v57 = vadd.f32 %v8091_v32, %v7962_v16 }
 0x7a8   : > { %10089 = vmatmul.msk.bf16.vlgmr.msrb.gmra.mxu0 %vm361_vm1, %v10212_v9  ;;  %10091 = vmatmul.msk.bf16.vlgmr.msrb.gmra.mxu2 %vm361_vm1, %v10212_v9 }
 0x7a9   : > { %10090 = vmatmul.msk.bf16.vlgmr.msrb.gmra.mxu1 %vm361_vm1, %v10212_v9  ;;  %8965 = vmatpush.bf16.msrb.mxu0 %v8915_v28 }
 0x7aa   : > { %8979 = vmatpush.bf16.msrb.mxu1 %v8916_v2  ;;  %8993 = vmatpush.bf16.msrb.mxu2 %v8917_v19 }
 0x7ab   : > { %v8065_v0 = vpop.f32.mrf.mxu3  ;;  %v8105_v43 = vpop.f32.mrf.mxu2 }
 0x7ac   : > { %v8120_v13 = vadd.f32 %v8065_v0, %v7967_v52  ;;  %v8116_v39 = vadd.f32 %v8105_v43, %v7963_v58 }
 0x7ad   : > { %v8079_v23 = vpop.f32.mrf.mxu0 }
 0x7ae   : > { %v8121_v5 = vadd.f32 %v8079_v23, %v7968_v21  ;;  %v8093_v27 = vpop.f32.mrf.mxu1 }
 0x7af   : > { %v8122_v44 = vadd.f32 %v8093_v27, %v7969_v25 }
 0x7b0   : > { %10092 = vmatmul.msk.bf16.vlgmr.msrb.gmra.mxu3 %vm361_vm1, %v10212_v9 }
 0x7b1   : > { %9007 = vmatpush.bf16.msrb.mxu3 %v8918_v59 }
 0x7b3   : > { %v8174_v1 = vpop.f32.mrf.mxu3  ;;  %v8107_v46 = vpop.f32.mrf.mxu2 }
 0x7b4   : > { %v8263_v6 = vadd.f32 %v8174_v1, %v8110_v26  ;;  %v8123_v45 = vadd.f32 %v8107_v46, %v7970_v53 }
 0x7b5   : > { %v8188_v24 = vpop.f32.mrf.mxu0 }
 0x7b6   : > { %v8264_v16 = vadd.f32 %v8188_v24, %v13909_v34  ;;  %v8202_v55 = vpop.f32.mrf.mxu1 }
 0x7b7   : > { %v8265_v52 = vadd.f32 %v8202_v55, %v8112_v7 }
 0x7b8   : > { %10093 = vmatmul.msk.bf16.vlgmr.msra.gmra.mxu0 %vm361_vm1, %v10212_v9  ;;  %10101 = vmatmul.msk.bf16.vlgmr.msra.gmra.mxu2 %vm361_vm1, %v10213_v37 }
 0x7b9   : > { %10094 = vmatmul.msk.bf16.vlgmr.msra.gmra.mxu1 %vm361_vm1, %v10212_v9  ;;  %9021 = vmatpush.bf16.msra.mxu0 %v8919_v62 }
 0x7bb   : > { %v8176_v36 = vpop.f32.mrf.mxu3  ;;  %v8216_v21 = vpop.f32.mrf.mxu2 }
 0x7bc   : > { %v8270_v18 = vadd.f32 %v8176_v36, %v8117_v54  ;;  %v8266_v48 = vadd.f32 %v8216_v21, %v8113_v56 }
 0x7bd   : > { %v8190_v3 = vpop.f32.mrf.mxu0 }
 0x7be   : > { %v8271_v10 = vadd.f32 %v8190_v3, %v8118_v50  ;;  %v8204_v58 = vpop.f32.mrf.mxu1 }
 0x7bf   : > { %v8272_v25 = vadd.f32 %v8204_v58, %v8119_v30 }
 0x7c0   : > { %10102 = vmatmul.msk.bf16.vlgmr.msra.gmra.mxu3 %vm361_vm1, %v10213_v37 }
 0x7c3   : > { %v8230_v12 = vpop.f32.mrf.mxu3  ;;  %v8218_v61 = vpop.f32.mrf.mxu2 }
 0x7c4   : > { %v8267_v26 = vadd.f32 %v8230_v12, %v8114_v20  ;;  %v8273_v60 = vadd.f32 %v8218_v61, %v8120_v13 }
 0x7c5   : > { %v8244_v31 = vpop.f32.mrf.mxu0 }
 0x7c6   : > { %v8268_v17 = vadd.f32 %v8244_v31, %v8115_v57  ;;  %v8258_v34 = vpop.f32.mrf.mxu1 }
 0x7c7   : > { %v8269_v33 = vadd.f32 %v8258_v34, %v8116_v39 }
 0x7c8   : > { %10103 = vmatmul.msk.bf16.vlgmr.msrb.gmra.mxu0 %vm361_vm1, %v10213_v37  ;;  %10105 = vmatmul.msk.bf16.vlgmr.msrb.gmra.mxu2 %vm361_vm1, %v10213_v37 }
 0x7c9   : > { %10104 = vmatmul.msk.bf16.vlgmr.msrb.gmra.mxu1 %vm361_vm1, %v10213_v37 }
 0x7cb   : > { %v8232_v15 = vpop.f32.mrf.mxu3  ;;  %v8327_v41 = vpop.f32.mrf.mxu2 }
 0x7cc   : > { %v8274_v11 = vadd.f32 %v8232_v15, %v8121_v5  ;;  %v8416_v53 = vadd.f32 %v8327_v41, %v8263_v6 }
 0x7cd   : > { %v8246_v4 = vpop.f32.mrf.mxu0 }
 0x7ce   : > { %v8275_v9 = vadd.f32 %v8246_v4, %v8122_v44  ;;  %v8260_v7 = vpop.f32.mrf.mxu1 }
 0x7cf   : > { %v8276_v14 = vadd.f32 %v8260_v7, %v8123_v45 }
 0x7d0   : > { %10106 = vmatmul.msk.bf16.vlgmr.msrb.gmra.mxu3 %vm361_vm1, %v10213_v37 }
 0x7d3   : > { %v8341_v54 = vpop.f32.mrf.mxu3  ;;  %v8329_v51 = vpop.f32.mrf.mxu2 }
 0x7d4   : > { %v8417_v35 = vadd.f32 %v8341_v54, %v8264_v16  ;;  %v8423_v50 = vadd.f32 %v8329_v51, %v8270_v18 }
 0x7d5   : > { %v8355_v42 = vpop.f32.mrf.mxu0 }
 0x7d6   : > { %v8418_v40 = vadd.f32 %v8355_v42, %v8265_v52  ;;  %v8369_v29 = vpop.f32.mrf.mxu1 }
 0x7d7   : > { %v8419_v56 = vadd.f32 %v8369_v29, %v8266_v48 }
 0x7d8   : > { %10107 = vmatmul.msk.bf16.vlgmr.msra.gmra.mxu0 %vm361_vm1, %v10213_v37 }
 0x7db   : > { %v8343_v30 = vpop.f32.mrf.mxu3  ;;  %v8383_v22 = vpop.f32.mrf.mxu2 }
 0x7dc   : > { %v8424_v38 = vadd.f32 %v8343_v30, %v8271_v10  ;;  %v8420_v20 = vadd.f32 %v8383_v22, %v8267_v26 }
 0x7dd   : > { %v8357_v32 = vpop.f32.mrf.mxu0 }
 0x7de   : > { %v8425_v47 = vadd.f32 %v8357_v32, %v8272_v25  ;;  %v8371_v28 = vpop.f32.mrf.mxu1 }
 0x7df   : > { %v8426_v57 = vadd.f32 %v8371_v28, %v8273_v60 }
 0x7e3   : > { %v8397_v2 = vpop.f32.mrf.mxu3  ;;  %v8385_v19 = vpop.f32.mrf.mxu2 }
 0x7e4   : > { %v8421_v0 = vadd.f32 %v8397_v2, %v8268_v17  ;;  %v8427_v13 = vadd.f32 %v8385_v19, %v8274_v11 }
 0x7e5   : > { %v8411_v43 = vpop.f32.mrf.mxu0 }
 0x7e6   : > { %v8422_v63 = vadd.f32 %v8411_v43, %v8269_v33  ;;  %v8480_v39 = vpop.f32.mrf.mxu1  ;;  %v13992_v43 = vpop.permute.xlu2 %9046 }
 0x7e7   : > { %v8569_v23 = vadd.f32 %v8480_v39, %v8416_v53 }
 0x7eb   : > { %v8399_v5 = vpop.f32.mrf.mxu3  ;;  %v8494_v59 = vpop.f32.mrf.mxu2 }
 0x7ec   : > { %v8428_v27 = vadd.f32 %v8399_v5, %v8275_v9  ;;  %v13947_v44 = vadd.f32 %v8494_v59, %v8417_v35 }
 0x7ed   : > { %v8413_v8 = vpop.f32.mrf.mxu0 }
 0x7ee   : > { %v8429_v1 = vadd.f32 %v8413_v8, %v8276_v14  ;;  %v8482_v46 = vpop.f32.mrf.mxu1 }
 0x7ef   : > { %v8576_v6 = vadd.f32 %v8482_v46, %v8423_v50 }
 0x7f3   : > { %v8508_v49 = vpop.f32.mrf.mxu3  ;;  %v8496_v45 = vpop.f32.mrf.mxu2 }
 0x7f4   : > { %v8571_v37 = vadd.f32 %v8508_v49, %v8418_v40  ;;  %v13949_v24 = vadd.f32 %v8496_v45, %v8424_v38 }
 0x7f5   : > { %v8522_v16 = vpop.f32.mrf.mxu0 }
 0x7f6   : > { %v8572_v55 = vadd.f32 %v8522_v16, %v8419_v56  ;;  %v8536_v62 = vpop.f32.mrf.mxu1 }
 0x7f7   : > { %v13951_v52 = vadd.f32 %v8536_v62, %v8420_v20 }
 0x7fb   : > { %v8510_v36 = vpop.f32.mrf.mxu3  ;;  %v8550_v21 = vpop.f32.mrf.mxu2 }
 0x7fc   : > { %v13953_v18 = vadd.f32 %v8510_v36, %v8425_v47  ;;  %v13955_v48 = vadd.f32 %v8550_v21, %v8421_v0 }
 0x7fd   : > { %v8524_v3 = vpop.f32.mrf.mxu0  ;;  %v14003_v21 = vpop.permute.xlu0 %9051 }
 0x7fe   : > { %v13957_v10 = vadd.f32 %v8524_v3, %v8426_v57  ;;  %v8538_v58 = vpop.f32.mrf.mxu1 }
 0x7ff   : > { %v13959_v25 = vadd.f32 %v8538_v58, %v8427_v13 }
 0x803   : > { %v8564_v12 = vpop.f32.mrf.mxu3  ;;  %v8552_v61 = vpop.f32.mrf.mxu2 }
 0x804   : > { %v13961_v26 = vadd.f32 %v8564_v12, %v8422_v63  ;;  %v13963_v60 = vadd.f32 %v8552_v61, %v8428_v27 }
 0x805   : > { %v8633_v31 = vpop.f32.mrf.mxu0 }
 0x806   : > { %v8647_v17 = vpop.f32.mrf.mxu1  ;;  %v8722_v57 = vadd.f32 %v8633_v31, %v8569_v23 }
 0x807   : > { %v8723_v27 = vadd.f32 %v8647_v17, %v13947_v44 }
 0x80b   : > { %v8566_v34 = vpop.f32.mrf.mxu3  ;;  %v8661_v15 = vpop.f32.mrf.mxu2 }
 0x80c   : > { %v13965_v33 = vadd.f32 %v8566_v34, %v8429_v1  ;;  %v8724_v1 = vadd.f32 %v8661_v15, %v8571_v37 }
 0x80d   : > { %v8635_v11 = vpop.f32.mrf.mxu0 }
 0x80e   : > { %v8649_v41 = vpop.f32.mrf.mxu1  ;;  %v8729_v59 = vadd.f32 %v8635_v11, %v8576_v6 }
 0x813   : > { %v8675_v53 = vpop.f32.mrf.mxu3  ;;  %v8663_v4 = vpop.f32.mrf.mxu2 }
 0x814   : > { %v8725_v16 = vadd.f32 %v8675_v53, %v8572_v55  ;;  %v8730_v55 = vadd.f32 %v8649_v41, %v13949_v24 }
 0x815   : > { %v8689_v9 = vpop.f32.mrf.mxu0 }
 0x816   : > { %v13967_v7 = vpop.f32.mrf.mxu1  ;;  %v8726_v15 = vadd.f32 %v8689_v9, %v13951_v52 }
 0x81b   : > { %v13969_v14 = vpop.f32.mrf.mxu3  ;;  %v13971_v54 = vpop.f32.mrf.mxu2 }
 0x81c   : > { %v8732_v52 = vadd.f32 %v13969_v14, %v13957_v10 }
 0x81d   : > { %v13973_v51 = vpop.f32.mrf.mxu0 }
 0x81e   : > { %v13975_v35 = vpop.f32.mrf.mxu1 }
 0x823   : > { %v8786_v50 = vpop.f32.mrf.mxu3  ;;  %v13977_v42 = vpop.f32.mrf.mxu2 }
 0x824   : > { %v8875_v2 = vadd.f32 %v8786_v50, %v8722_v57  ;;  %v8731_v50 = vadd.f32 %v8663_v4, %v13953_v18 }
 0x825   : > { %v8800_v40 = vpop.f32.mrf.mxu0 }
 0x826   : > { %v8814_v29 = vpop.f32.mrf.mxu1  ;;  %v8876_v8 = vadd.f32 %v8800_v40, %v8723_v27 }
 0x827   : > { %v8877_v3 = vadd.f32 %v8814_v29, %v8724_v1 }
 0x82b   : > { %v8788_v56 = vpop.f32.mrf.mxu3  ;;  %v8828_v30 = vpop.f32.mrf.mxu2 }
 0x82c   : > { %v8882_v46 = vadd.f32 %v8788_v56, %v8729_v59  ;;  %v8878_v44 = vadd.f32 %v8828_v30, %v8725_v16 }
 0x82d   : > { %v8802_v38 = vpop.f32.mrf.mxu0 }
 0x82e   : > { %v13979_v22 = vpop.f32.mrf.mxu1  ;;  %v8883_v40 = vadd.f32 %v8802_v38, %v8730_v55 }
 0x82f   : > { %v8884_v4 = vadd.f32 %v13979_v22, %v8731_v50 }
 0x833   : > { %v8842_v20 = vpop.f32.mrf.mxu3  ;;  %v13981_v32 = vpop.f32.mrf.mxu2 }
 0x834   : > { %v8879_v30 = vadd.f32 %v8842_v20, %v8726_v15  ;;  %v8885_v20 = vadd.f32 %v13981_v32, %v8732_v52  ;;  %v8733_v32 = vadd.f32 %v13973_v51, %v13959_v25  ;;  %v8735_v15 = vadd.f32 %v13977_v42, %v13965_v33 }
 0x835   : > { %v13983_v47 = vpop.f32.mrf.mxu0 }
 0x836   : > { %v13985_v28 = vpop.f32.mrf.mxu1 }
 0x83b   : > { %v13988_v19 = vpop.f32.mrf.mxu3  ;;  %v8939_v0 = vpop.f32.mrf.mxu2 }
 0x83c   : > { %v9028_v13 = vadd.f32 %v8939_v0, %v8875_v2 }
 0x83d   : > { %v13994_v63 = vpop.f32.mrf.mxu0 }
 0x83e   : > { %v9054_v39 = vadd.f32 %v13992_v43, %v9028_v13  ;;  %v13997_v5 = vpop.f32.mrf.mxu1 }
 0x83f   : > { %v8888_v50 = vadd.f32 %v13997_v5, %v8735_v15 }
 0x840   : > { %vm9068_vm1 = vcmp.ge.f32.partialorder %v9054_v39, 0.0  ;;  %v9082_v23 = vmul.f32 0.2, %v9054_v39 }
 0x842   : > { %v9096_v49 = vsel %vm9068_vm1, %v9054_v39, %v9082_v23  ;;  %v8727_v23 = vadd.f32 %v13967_v7, %v13955_v48  ;;  %v8886_v7 = vadd.f32 %v13988_v19, %v8733_v32 }
 0x843   : > { %v8953_v45 = vpop.f32.mrf.mxu3  ;;  %9110 = vst [vmem:[%s14000_s13] sm:$0xff] %v9096_v49  ;;  %v8941_v62 = vpop.f32.mrf.mxu2  ;;  %v8728_v49 = vadd.f32 %v13971_v54, %v13961_v26 }
 0x844   : > { %v9029_v36 = vadd.f32 %v8953_v45, %v8876_v8  ;;  %v9035_v58 = vadd.f32 %v8941_v62, %v8882_v46  ;;  %v8880_v45 = vadd.f32 %v13983_v47, %v8727_v23 }
 0x845   : > { %v8967_v12 = vpop.f32.mrf.mxu0  ;;  %v8881_v26 = vadd.f32 %v13985_v28, %v8728_v49 }
 0x846   : > { %v9055_v6 = vadd.f32 %v13992_v43, %v9029_v36  ;;  %v9030_v61 = vadd.f32 %v8967_v12, %v8877_v3  ;;  %v8981_v37 = vpop.f32.mrf.mxu1  ;;  %v9061_v31 = vadd.f32 %v14003_v21, %v9035_v58 }
 0x847   : > { %v9031_v34 = vadd.f32 %v8981_v37, %v8878_v44  ;;  %v8734_v37 = vadd.f32 %v13975_v35, %v13963_v60 }
 0x848   : > { %vm9069_vm2 = vcmp.ge.f32.partialorder %v9055_v6, 0.0  ;;  %v9083_v17 = vmul.f32 0.2, %v9055_v6  ;;  %v9056_v11 = vadd.f32 %v13992_v43, %v9030_v61  ;;  %vm9075_vm3 = vcmp.ge.f32.partialorder %v9061_v31, 0.0 }
 0x849   : > { %v9089_v53 = vmul.f32 0.2, %v9061_v31  ;;  %v9057_v56 = vadd.f32 %v13992_v43, %v9031_v34 }
 0x84a   : > { %v9097_v29 = vsel %vm9069_vm2, %v9055_v6, %v9083_v17  ;;  %vm9070_vm4 = vcmp.ge.f32.partialorder %v9056_v11, 0.0  ;;  %v9084_v24 = vmul.f32 0.2, %v9056_v11  ;;  %v8887_v17 = vadd.f32 %v13994_v63, %v8734_v37 }
 0x84b   : > { %9111 = vst [vmem:[%s14000_s13 + $0x8] sm:$0xff] %v9097_v29  ;;  %v9103_v41 = vsel %vm9075_vm3, %v9061_v31, %v9089_v53  ;;  %v8955_v57 = vpop.f32.mrf.mxu3  ;;  %vm9071_vm5 = vcmp.ge.f32.partialorder %v9057_v56, 0.0  ;;  %v9085_v9 = vmul.f32 0.2, %v9057_v56  ;;  %v8995_v18 = vpop.f32.mrf.mxu2 }
 0x84c   : > { %9117 = vst [vmem:[%s14000_s13 + $0x38] sm:$0xff] %v9103_v41  ;;  %v9036_v2 = vadd.f32 %v8955_v57, %v8883_v40  ;;  %v9098_v38 = vsel %vm9070_vm4, %v9056_v11, %v9084_v24  ;;  %v9032_v0 = vadd.f32 %v8995_v18, %v8879_v30 }
 0x84d   : > { %9112 = vst [vmem:[%s14000_s13 + $0x10] sm:$0xff] %v9098_v38  ;;  %v9099_v13 = vsel %vm9071_vm5, %v9057_v56, %v9085_v9  ;;  %v8969_v27 = vpop.f32.mrf.mxu0 }
 0x84e   : > { %v9062_v39 = vadd.f32 %v14003_v21, %v9036_v2  ;;  %9113 = vst [vmem:[%s14000_s13 + $0x18] sm:$0xff] %v9099_v13  ;;  %v9058_v59 = vadd.f32 %v13992_v43, %v9032_v0  ;;  %v9037_v10 = vadd.f32 %v8969_v27, %v8884_v4  ;;  %v8983_v14 = vpop.f32.mrf.mxu1 }
 0x84f   : > { %v9038_v8 = vadd.f32 %v8983_v14, %v8885_v20 }
 0x850   : > { %vm9076_vm6 = vcmp.ge.f32.partialorder %v9062_v39, 0.0  ;;  %v9090_v22 = vmul.f32 0.2, %v9062_v39  ;;  %vm9072_vm7 = vcmp.ge.f32.partialorder %v9058_v59, 0.0  ;;  %v9086_v1 = vmul.f32 0.2, %v9058_v59 }
 0x851   : > { %v9063_v46 = vadd.f32 %v14003_v21, %v9037_v10  ;;  %v9064_v48 = vadd.f32 %v14003_v21, %v9038_v8 }
 0x852   : > { %v9104_v16 = vsel %vm9076_vm6, %v9062_v39, %v9090_v22  ;;  %v9100_v62 = vsel %vm9072_vm7, %v9058_v59, %v9086_v1 }
 0x853   : > { %9118 = vst [vmem:[%s14000_s13 + $0x40] sm:$0xff] %v9104_v16  ;;  %vm9077_vm13 = vcmp.ge.f32.partialorder %v9063_v46, 0.0  ;;  %v9091_v25 = vmul.f32 0.2, %v9063_v46  ;;  %v9009_v51 = vpop.f32.mrf.mxu3  ;;  %vm9078_vm8 = vcmp.ge.f32.partialorder %v9064_v48, 0.0  ;;  %v8997_v3 = vpop.f32.mrf.mxu2 }
 0x854   : > { %9114 = vst [vmem:[%s14000_s13 + $0x20] sm:$0xff] %v9100_v62  ;;  %v9092_v36 = vmul.f32 0.2, %v9064_v48  ;;  %v9033_v58 = vadd.f32 %v9009_v51, %v8880_v45  ;;  %v9039_v47 = vadd.f32 %v8997_v3, %v8886_v7 }
 0x855   : > { %v9105_v54 = vsel %vm9077_vm13, %v9063_v46, %v9091_v25  ;;  %v9023_v6 = vpop.f32.mrf.mxu0 }
 0x856   : > { %9119 = vst [vmem:[%s14000_s13 + $0x48] sm:$0xff] %v9105_v54  ;;  %v9106_v44 = vsel %vm9078_vm8, %v9064_v48, %v9092_v36  ;;  %v9059_v19 = vadd.f32 %v13992_v43, %v9033_v58  ;;  %v9065_v12 = vadd.f32 %v14003_v21, %v9039_v47  ;;  %v9034_v61 = vadd.f32 %v9023_v6, %v8881_v26 }
 0x857   : > { %9120 = vst [vmem:[%s14000_s13 + $0x50] sm:$0xff] %v9106_v44 }
 0x858   : > { %vm9073_vm15 = vcmp.ge.f32.partialorder %v9059_v19, 0.0  ;;  %v9087_v31 = vmul.f32 0.2, %v9059_v19  ;;  %vm9079_vm11 = vcmp.ge.f32.partialorder %v9065_v12, 0.0  ;;  %v9093_v28 = vmul.f32 0.2, %v9065_v12 }
 0x859   : > { %v9060_v55 = vadd.f32 %v13992_v43, %v9034_v61 }
 0x85a   : > { %v9101_v34 = vsel %vm9073_vm15, %v9059_v19, %v9087_v31  ;;  %v9107_v11 = vsel %vm9079_vm11, %v9065_v12, %v9093_v28 }
 0x85b   : > { %9115 = vst [vmem:[%s14000_s13 + $0x28] sm:$0xff] %v9101_v34  ;;  %vm9074_vm12 = vcmp.ge.f32.partialorder %v9060_v55, 0.0  ;;  %v9088_v53 = vmul.f32 0.2, %v9060_v55  ;;  %v9011_v60 = vpop.f32.mrf.mxu3 }
 0x85c   : > { %9121 = vst [vmem:[%s14000_s13 + $0x58] sm:$0xff] %v9107_v11  ;;  %v9040_v35 = vadd.f32 %v9011_v60, %v8887_v17 }
 0x85d   : > { %v9102_v40 = vsel %vm9074_vm12, %v9060_v55, %v9088_v53  ;;  %v9025_v63 = vpop.f32.mrf.mxu0 }
 0x85e   : > { %9116 = vst [vmem:[%s14000_s13 + $0x30] sm:$0xff] %v9102_v40  ;;  %v9066_v43 = vadd.f32 %v14003_v21, %v9040_v35  ;;  %v9041_v33 = vadd.f32 %v9025_v63, %v8888_v50 }
 0x860   : > { %vm9080_vm10 = vcmp.ge.f32.partialorder %v9066_v43, 0.0  ;;  %v9094_v42 = vmul.f32 0.2, %v9066_v43  ;;  %v9067_v29 = vadd.f32 %v14003_v21, %v9041_v33 }
 0x862   : > { %v9108_v5 = vsel %vm9080_vm10, %v9066_v43, %v9094_v42  ;;  %vm9081_vm9 = vcmp.ge.f32.partialorder %v9067_v29, 0.0  ;;  %v9095_v56 = vmul.f32 0.2, %v9067_v29 }
 0x863   : > { %9122 = vst [vmem:[%s14000_s13 + $0x60] sm:$0xff] %v9108_v5 }
 0x864   : > { %v9109_v30 = vsel %vm9081_vm9, %v9067_v29, %v9095_v56 }
 0x865   : > { %9123 = vst [vmem:[%s14000_s13 + $0x68] sm:$0xff] %v9109_v30 }
 0x866   : > { %10315 = shalt.err (!%p10312_p3)
}
 0x867   : > { %s10380_s17 = smov 896  }
 0x868   : > { %10217 = dma.vmem_to_hbm [thread:$0]  (%p10459_p5), %s9138_s8, 1792, %s9140_s22, %s9125_s9, %s10380_s17, %s10380_s17, %s14203_s23  }
 0x869 PF: > { %p10223_p4 = scmp.ge.s32.totalorder %s10350_s27, 2  ;;  %s9154_s13 = sand.u32 1, %s10338_s24  }
 0x86a   : > { %s9155_s20 = scalar_lea.sflag [#allocation4], %s9154_s13 }
 0x86b   : > { %p10220_p7 = pnand %p10223_p4, %p10463_p6 }
 0x86d   : > { %p10221_p8 = pneg %p10220_p7 }
 0x86f   : > { %10333 = dma.done.wait (%p10221_p8), %s9155_s20, 1792  }
 0x870   : > { %10335 = vsyncadd (%p10221_p8), %s9155_s20, 4294965504  ;;  %p17_p9 = scmp.ge.s32.totalorder %s10446_s30, 4   ;;  %s14306_s24 = smov %s10342_s25 }
 0x871   : > { %s14307_s25 = smov %s10346_s26  ;;  %s14308_s26 = smov %s10457_s10 }
 0x872   : > { %s14309_s27 = smov %s10446_s30  ;;  %19 = sbr.rel (!%p17_p9) target bundleno = 3 (0x3), region = 135 }
 0x877   :  { %9161 = vsyncpa [#allocation4], 1 }
 0x878   :  { %9163 = vsyncpa [#allocation4 + $0x1], 1 }

</bundles_post_ra>
